<compile_context>
chip_gen: v6e
topology: v6e:2x2x1
jax: 0.10.0
libtpu: 0.0.40
codegen_flags: <defaults>
</compile_context>

<pallas_src>
import functools

import jax
import jax.numpy as jnp
from jax import lax
from jax.experimental import pallas as pl
from jax.experimental.pallas import tpu as pltpu


# ------------------------------ shape helpers -------------------------------

def _derive_dims(H, W):
    OH1, OW1 = H - 2, W - 2            # conv1 (3x3, VALID, stride 1)
    PH1, PW1 = OH1 // 2, OW1 // 2      # maxpool 2x2, floor
    OH2, OW2 = PH1 - 2, PW1 - 2        # conv2
    P2H, P2W = OH2 // 2, OW2 // 2      # maxpool 2x2, floor
    return OH1, OW1, PH1, PW1, OH2, OW2, P2H, P2W


# ------------------------------ fused kernel --------------------------------

def _fused_cnn_kernel(x_ref, w1_ref, b1_ref, w2_ref, b2_ref,
                      fc1w_ref, fc1b_ref, fc2w_ref, fc2b_ref,
                      o_ref,
                      patch1_ref, a1_ref, p1_ref, patch2_ref, a2_ref,
                      *, dims):
    """Whole CNN forward for one image; everything stays in VMEM."""
    OH1, OW1, PH1, PW1, OH2, OW2, P2H, P2W = dims
    C1 = 32
    K = 3

    # ---- conv1: in-kernel im2col + one MXU matmul + bias + ReLU ------------
    # x_ref holds the image TRANSPOSED to (W, H) so every im2col column is a
    # contiguous (OW1, 1) slice (no in-kernel transpose needed).
    for oh in range(OH1):
        r0 = oh * OW1
        for kh in range(K):
            for kw in range(K):
                tap = kh * K + kw
                patch1_ref[r0:r0 + OW1, tap:tap + 1] = (
                    x_ref[kw:kw + OW1, oh + kh:oh + kh + 1])
    a1 = jnp.dot(patch1_ref[...], w1_ref[...],
                 preferred_element_type=jnp.float32)            # (OH1*OW1, 32)
    a1_ref[...] = jnp.maximum(a1 + b1_ref[...], 0.0)

    # ---- maxpool 2x2 (floor) on the VMEM-resident conv1 output -------------
    for ph in range(PH1):
        top = a1_ref[(2 * ph) * OW1:(2 * ph) * OW1 + OW1, :]       # (OW1, 32)
        bot = a1_ref[(2 * ph + 1) * OW1:(2 * ph + 1) * OW1 + OW1, :]
        m = jnp.maximum(top, bot)                                  # max over dh
        for pw in range(PW1):
            dst = ph * PW1 + pw
            p1_ref[dst:dst + 1, :] = jnp.maximum(
                m[2 * pw:2 * pw + 1, :], m[2 * pw + 1:2 * pw + 2, :])

    # ---- conv2: in-kernel im2col + one MXU matmul + bias + ReLU ------------
    for oh in range(OH2):
        r0 = oh * OW2
        for kh in range(K):
            for kw in range(K):
                tap = kh * K + kw
                src = (oh + kh) * PW1 + kw
                patch2_ref[r0:r0 + OW2, tap * C1:(tap + 1) * C1] = (
                    p1_ref[src:src + OW2, :])
    a2 = jnp.dot(patch2_ref[...], w2_ref[...],
                 preferred_element_type=jnp.float32)            # (OH2*OW2, 64)
    a2_ref[...] = jnp.maximum(a2 + b2_ref[...], 0.0)

    # ---- maxpool 2x2 (floor) fused directly into fc1 -----------------------
    # fc1 is computed as a sum of (1,64)@(64,128) matmuls over pooled
    # positions; fc1 weights are pre-permuted to match PyTorch's NCHW flatten.
    acc = jnp.zeros((1, 128), jnp.float32)
    for pr in range(P2H):
        for pc in range(P2W):
            r00 = (2 * pr) * OW2 + 2 * pc
            r10 = (2 * pr + 1) * OW2 + 2 * pc
            v = jnp.maximum(
                jnp.maximum(a2_ref[r00:r00 + 1, :], a2_ref[r00 + 1:r00 + 2, :]),
                jnp.maximum(a2_ref[r10:r10 + 1, :], a2_ref[r10 + 1:r10 + 2, :]))
            acc = acc + jnp.dot(v, fc1w_ref[pr * P2W + pc],
                                preferred_element_type=jnp.float32)
    h = jnp.maximum(acc + fc1b_ref[...], 0.0)                       # (1, 128)

    # ---- fc2 (output padded to 128 lanes for a lane-dense store) -----------
    out = jnp.dot(h, fc2w_ref[...],
                  preferred_element_type=jnp.float32) + fc2b_ref[...]
    o_ref[...] = out.astype(o_ref.dtype)


# ------------------------------ wrapper --------------------------------------

def cnn_forward(params, x):
    """x: (N, 1, H, W) float32 -> logits (N, 10)."""
    N, Cin, H, W = x.shape
    assert Cin == 1
    dims = _derive_dims(H, W)
    OH1, OW1, PH1, PW1, OH2, OW2, P2H, P2W = dims

    # One-time layout prep (pre-transposed / pre-reshaped weights, lane-padded
    # fc2) — tiny, outside the kernel.
    x_t = jnp.swapaxes(x[:, 0, :, :], 1, 2)                         # (N, W, H)
    w1 = params["conv1_w"].reshape(32, 9).T                         # (9, 32)
    b1 = params["conv1_b"].reshape(1, 32)
    w2 = params["conv2_w"].transpose(2, 3, 1, 0).reshape(9 * 32, 64)
    b2 = params["conv2_b"].reshape(1, 64)
    fc1w = (params["fc1_w"].reshape(128, 64, P2H, P2W)
            .transpose(2, 3, 1, 0).reshape(P2H * P2W, 64, 128))
    fc1b = params["fc1_b"].reshape(1, 128)
    fc2w = jnp.zeros((128, 128), jnp.float32).at[:, :10].set(params["fc2_w"].T)
    fc2b = jnp.zeros((1, 128), jnp.float32).at[0, :10].set(params["fc2_b"])

    kern = functools.partial(_fused_cnn_kernel, dims=dims)

    def full_spec(*shape):
        return pl.BlockSpec(shape, lambda n, _nd=len(shape): (0,) * _nd)

    out = pl.pallas_call(
        kern,
        out_shape=jax.ShapeDtypeStruct((N, 1, 128), jnp.float32),
        grid=(N,),
        in_specs=[
            pl.BlockSpec((None, W, H), lambda n: (n, 0, 0)),   # image (transposed)
            full_spec(9, 32), full_spec(1, 32),                # conv1 w, b
            full_spec(9 * 32, 64), full_spec(1, 64),           # conv2 w, b
            full_spec(P2H * P2W, 64, 128), full_spec(1, 128),  # fc1 w, b
            full_spec(128, 128), full_spec(1, 128),            # fc2 w, b (padded)
        ],
        out_specs=pl.BlockSpec((None, 1, 128), lambda n: (n, 0, 0)),
        scratch_shapes=[
            pltpu.VMEM((OH1 * OW1, 9), jnp.float32),       # conv1 im2col patches
            pltpu.VMEM((OH1 * OW1, 32), jnp.float32),      # conv1 + relu output
            pltpu.VMEM((PH1 * PW1, 32), jnp.float32),      # pool1 output
            pltpu.VMEM((OH2 * OW2, 9 * 32), jnp.float32),  # conv2 im2col patches
            pltpu.VMEM((OH2 * OW2, 64), jnp.float32),      # conv2 + relu output
        ],
        compiler_params=pltpu.CompilerParams(
            dimension_semantics=("parallel",)),
    )(x_t, w1, b1, w2, b2, fc1w, fc1b, fc2w, fc2b)

    return out[:, 0, :10]


# ------------------------------ params & reference ---------------------------

def init_params(key, image_dims):
    H, W = image_dims
    _, _, _, _, _, _, P2H, P2W = _derive_dims(H, W)
    fc1_in = 64 * P2H * P2W
    ks = jax.random.split(key, 8)

    def uni(k, shape, fan_in):
        bound = 1.0 / jnp.sqrt(float(fan_in))
        return jax.random.uniform(k, shape, jnp.float32, -bound, bound)

    return dict(
        conv1_w=uni(ks[0], (32, 1, 3, 3), 1 * 9),
        conv1_b=uni(ks[1], (32,), 1 * 9),
        conv2_w=uni(ks[2], (64, 32, 3, 3), 32 * 9),
        conv2_b=uni(ks[3], (64,), 32 * 9),
        fc1_w=uni(ks[4], (128, fc1_in), fc1_in),
        fc1_b=uni(ks[5], (128,), fc1_in),
        fc2_w=uni(ks[6], (10, 128), 128),
        fc2_b=uni(ks[7], (10,), 128),
    )


def cnn_reference(params, x):
    """Pure-JAX reference (no Pallas), mirrors the PyTorch forward."""
    def conv(x, w, b):
        y = lax.conv_general_dilated(
            x, w, (1, 1), "VALID", dimension_numbers=("NCHW", "OIHW", "NCHW"))
        return jax.nn.relu(y + b[None, :, None, None])

    def pool(x):
        return lax.reduce_window(x, -jnp.inf, lax.max,
                                 (1, 1, 2, 2), (1, 1, 2, 2), "VALID")

    x = pool(conv(x, params["conv1_w"], params["conv1_b"]))
    x = pool(conv(x, params["conv2_w"], params["conv2_b"]))
    x = x.reshape(x.shape[0], -1)
    x = jax.nn.relu(x @ params["fc1_w"].T + params["fc1_b"])
    return x @ params["fc2_w"].T + params["fc2_b"]


if __name__ == "__main__":
    key = jax.random.PRNGKey(0)
    pkey, xkey = jax.random.split(key)

    image_dims = (16, 16)   # small analogue of the default 28x28 MNIST input
    batch = 2
    params = init_params(pkey, image_dims)
    x = jax.random.normal(xkey, (batch, 1, *image_dims), jnp.float32)

    fwd = jax.jit(cnn_forward)
    out = jax.block_until_ready(fwd(params, x))
    ref = jax.block_until_ready(cnn_reference(params, x))

    assert out.shape == (batch, 10), out.shape
    err = float(jnp.max(jnp.abs(out - ref)))
    assert jnp.allclose(out, ref, atol=1e-4, rtol=1e-4), f"max abs err {err}"
    print("KERNEL_OK")
</pallas_src>

<mosaic_0001>
module attributes {stable_mosaic.version = 11 : i64} {
  func.func @_fused_cnn_kernel(%arg0: i32, %arg1: memref<1x16x16xf32, #tpu.memory_space<vmem>>, %arg2: memref<9x32xf32, #tpu.memory_space<vmem>>, %arg3: memref<1x32xf32, #tpu.memory_space<vmem>>, %arg4: memref<288x64xf32, #tpu.memory_space<vmem>>, %arg5: memref<1x64xf32, #tpu.memory_space<vmem>>, %arg6: memref<4x64x128xf32, #tpu.memory_space<vmem>>, %arg7: memref<1x128xf32, #tpu.memory_space<vmem>>, %arg8: memref<128x128xf32, #tpu.memory_space<vmem>>, %arg9: memref<1x128xf32, #tpu.memory_space<vmem>>, %arg10: memref<1x1x128xf32, #tpu.memory_space<vmem>>, %arg11: memref<196x9xf32, #tpu.memory_space<vmem>>, %arg12: memref<196x32xf32, #tpu.memory_space<vmem>>, %arg13: memref<49x32xf32, #tpu.memory_space<vmem>>, %arg14: memref<25x288xf32, #tpu.memory_space<vmem>>, %arg15: memref<25x64xf32, #tpu.memory_space<vmem>>) attributes {dimension_semantics = [#tpu.dimension_semantics<parallel>], iteration_bounds = array<i64: 2>, scalar_prefetch = 0 : i64, scratch_operands = 5 : i64, tpu.core_type = #tpu.core_type<tc>, window_params = [{transform_indices = @transform_0, window_bounds = array<i64: 1, 16, 16>}, {pipeline_mode = #tpu.pipeline_mode<synchronous>, transform_indices = @transform_1, window_bounds = array<i64: 9, 32>}, {pipeline_mode = #tpu.pipeline_mode<synchronous>, transform_indices = @transform_2, window_bounds = array<i64: 1, 32>}, {pipeline_mode = #tpu.pipeline_mode<synchronous>, transform_indices = @transform_3, window_bounds = array<i64: 288, 64>}, {pipeline_mode = #tpu.pipeline_mode<synchronous>, transform_indices = @transform_4, window_bounds = array<i64: 1, 64>}, {pipeline_mode = #tpu.pipeline_mode<synchronous>, transform_indices = @transform_5, window_bounds = array<i64: 4, 64, 128>}, {pipeline_mode = #tpu.pipeline_mode<synchronous>, transform_indices = @transform_6, window_bounds = array<i64: 1, 128>}, {pipeline_mode = #tpu.pipeline_mode<synchronous>, transform_indices = @transform_7, window_bounds = array<i64: 128, 128>}, {pipeline_mode = #tpu.pipeline_mode<synchronous>, transform_indices = @transform_8, window_bounds = array<i64: 1, 128>}, {transform_indices = @transform_9, window_bounds = array<i64: 1, 1, 128>}]} {
    %c0 = arith.constant 0 : index
    %c0_0 = arith.constant 0 : index
    %c0_1 = arith.constant 0 : index
    %0 = vector.load %arg1[%c0, %c0_0, %c0_1] : memref<1x16x16xf32, #tpu.memory_space<vmem>>, vector<1x14x1xf32>
    %1 = vector.shape_cast %0 : vector<1x14x1xf32> to vector<14x1xf32>
    %c0_2 = arith.constant 0 : index
    %c0_3 = arith.constant 0 : index
    %2 = vector.load %arg11[%c0_2, %c0_3] : memref<196x9xf32, #tpu.memory_space<vmem>>, vector<14x1xf32>
    tpu.vector_store %arg11[%c0_2, %c0_3], %1 {strides = array<i32>} : memref<196x9xf32, #tpu.memory_space<vmem>>, vector<14x1xf32>,
    %c0_4 = arith.constant 0 : index
    %c1 = arith.constant 1 : index
    %c0_5 = arith.constant 0 : index
    %3 = vector.load %arg1[%c0_4, %c1, %c0_5] : memref<1x16x16xf32, #tpu.memory_space<vmem>>, vector<1x14x1xf32>
    %4 = vector.shape_cast %3 : vector<1x14x1xf32> to vector<14x1xf32>
    %c0_6 = arith.constant 0 : index
    %c1_7 = arith.constant 1 : index
    %5 = vector.load %arg11[%c0_6, %c1_7] : memref<196x9xf32, #tpu.memory_space<vmem>>, vector<14x1xf32>
    tpu.vector_store %arg11[%c0_6, %c1_7], %4 {strides = array<i32>} : memref<196x9xf32, #tpu.memory_space<vmem>>, vector<14x1xf32>,
    %c0_8 = arith.constant 0 : index
    %c2 = arith.constant 2 : index
    %c0_9 = arith.constant 0 : index
    %6 = vector.load %arg1[%c0_8, %c2, %c0_9] : memref<1x16x16xf32, #tpu.memory_space<vmem>>, vector<1x14x1xf32>
    %7 = vector.shape_cast %6 : vector<1x14x1xf32> to vector<14x1xf32>
    %c0_10 = arith.constant 0 : index
    %c2_11 = arith.constant 2 : index
    %8 = vector.load %arg11[%c0_10, %c2_11] : memref<196x9xf32, #tpu.memory_space<vmem>>, vector<14x1xf32>
    tpu.vector_store %arg11[%c0_10, %c2_11], %7 {strides = array<i32>} : memref<196x9xf32, #tpu.memory_space<vmem>>, vector<14x1xf32>,
    %c0_12 = arith.constant 0 : index
    %c0_13 = arith.constant 0 : index
    %c1_14 = arith.constant 1 : index
    %9 = vector.load %arg1[%c0_12, %c0_13, %c1_14] : memref<1x16x16xf32, #tpu.memory_space<vmem>>, vector<1x14x1xf32>
    %10 = vector.shape_cast %9 : vector<1x14x1xf32> to vector<14x1xf32>
    %c0_15 = arith.constant 0 : index
    %c3 = arith.constant 3 : index
    %11 = vector.load %arg11[%c0_15, %c3] : memref<196x9xf32, #tpu.memory_space<vmem>>, vector<14x1xf32>
    tpu.vector_store %arg11[%c0_15, %c3], %10 {strides = array<i32>} : memref<196x9xf32, #tpu.memory_space<vmem>>, vector<14x1xf32>,
    %c0_16 = arith.constant 0 : index
    %c1_17 = arith.constant 1 : index
    %c1_18 = arith.constant 1 : index
    %12 = vector.load %arg1[%c0_16, %c1_17, %c1_18] : memref<1x16x16xf32, #tpu.memory_space<vmem>>, vector<1x14x1xf32>
    %13 = vector.shape_cast %12 : vector<1x14x1xf32> to vector<14x1xf32>
    %c0_19 = arith.constant 0 : index
    %c4 = arith.constant 4 : index
    %14 = vector.load %arg11[%c0_19, %c4] : memref<196x9xf32, #tpu.memory_space<vmem>>, vector<14x1xf32>
    tpu.vector_store %arg11[%c0_19, %c4], %13 {strides = array<i32>} : memref<196x9xf32, #tpu.memory_space<vmem>>, vector<14x1xf32>,
    %c0_20 = arith.constant 0 : index
    %c2_21 = arith.constant 2 : index
    %c1_22 = arith.constant 1 : index
    %15 = vector.load %arg1[%c0_20, %c2_21, %c1_22] : memref<1x16x16xf32, #tpu.memory_space<vmem>>, vector<1x14x1xf32>
    %16 = vector.shape_cast %15 : vector<1x14x1xf32> to vector<14x1xf32>
    %c0_23 = arith.constant 0 : index
    %c5 = arith.constant 5 : index
    %17 = vector.load %arg11[%c0_23, %c5] : memref<196x9xf32, #tpu.memory_space<vmem>>, vector<14x1xf32>
    tpu.vector_store %arg11[%c0_23, %c5], %16 {strides = array<i32>} : memref<196x9xf32, #tpu.memory_space<vmem>>, vector<14x1xf32>,
    %c0_24 = arith.constant 0 : index
    %c0_25 = arith.constant 0 : index
    %c2_26 = arith.constant 2 : index
    %18 = vector.load %arg1[%c0_24, %c0_25, %c2_26] : memref<1x16x16xf32, #tpu.memory_space<vmem>>, vector<1x14x1xf32>
    %19 = vector.shape_cast %18 : vector<1x14x1xf32> to vector<14x1xf32>
    %c0_27 = arith.constant 0 : index
    %c6 = arith.constant 6 : index
    %20 = vector.load %arg11[%c0_27, %c6] : memref<196x9xf32, #tpu.memory_space<vmem>>, vector<14x1xf32>
    tpu.vector_store %arg11[%c0_27, %c6], %19 {strides = array<i32>} : memref<196x9xf32, #tpu.memory_space<vmem>>, vector<14x1xf32>,
    %c0_28 = arith.constant 0 : index
    %c1_29 = arith.constant 1 : index
    %c2_30 = arith.constant 2 : index
    %21 = vector.load %arg1[%c0_28, %c1_29, %c2_30] : memref<1x16x16xf32, #tpu.memory_space<vmem>>, vector<1x14x1xf32>
    %22 = vector.shape_cast %21 : vector<1x14x1xf32> to vector<14x1xf32>
    %c0_31 = arith.constant 0 : index
    %c7 = arith.constant 7 : index
    %23 = vector.load %arg11[%c0_31, %c7] : memref<196x9xf32, #tpu.memory_space<vmem>>, vector<14x1xf32>
    tpu.vector_store %arg11[%c0_31, %c7], %22 {strides = array<i32>} : memref<196x9xf32, #tpu.memory_space<vmem>>, vector<14x1xf32>,
    %c0_32 = arith.constant 0 : index
    %c2_33 = arith.constant 2 : index
    %c2_34 = arith.constant 2 : index
    %24 = vector.load %arg1[%c0_32, %c2_33, %c2_34] : memref<1x16x16xf32, #tpu.memory_space<vmem>>, vector<1x14x1xf32>
    %25 = vector.shape_cast %24 : vector<1x14x1xf32> to vector<14x1xf32>
    %c0_35 = arith.constant 0 : index
    %c8 = arith.constant 8 : index
    %26 = vector.load %arg11[%c0_35, %c8] : memref<196x9xf32, #tpu.memory_space<vmem>>, vector<14x1xf32>
    tpu.vector_store %arg11[%c0_35, %c8], %25 {strides = array<i32>} : memref<196x9xf32, #tpu.memory_space<vmem>>, vector<14x1xf32>,
    %c0_36 = arith.constant 0 : index
    %c0_37 = arith.constant 0 : index
    %c1_38 = arith.constant 1 : index
    %27 = vector.load %arg1[%c0_36, %c0_37, %c1_38] : memref<1x16x16xf32, #tpu.memory_space<vmem>>, vector<1x14x1xf32>
    %28 = vector.shape_cast %27 : vector<1x14x1xf32> to vector<14x1xf32>
    %c14 = arith.constant 14 : index
    %c0_39 = arith.constant 0 : index
    %29 = vector.load %arg11[%c14, %c0_39] : memref<196x9xf32, #tpu.memory_space<vmem>>, vector<14x1xf32>
    tpu.vector_store %arg11[%c14, %c0_39], %28 {strides = array<i32>} : memref<196x9xf32, #tpu.memory_space<vmem>>, vector<14x1xf32>,
    %c0_40 = arith.constant 0 : index
    %c1_41 = arith.constant 1 : index
    %c1_42 = arith.constant 1 : index
    %30 = vector.load %arg1[%c0_40, %c1_41, %c1_42] : memref<1x16x16xf32, #tpu.memory_space<vmem>>, vector<1x14x1xf32>
    %31 = vector.shape_cast %30 : vector<1x14x1xf32> to vector<14x1xf32>
    %c14_43 = arith.constant 14 : index
    %c1_44 = arith.constant 1 : index
    %32 = vector.load %arg11[%c14_43, %c1_44] : memref<196x9xf32, #tpu.memory_space<vmem>>, vector<14x1xf32>
    tpu.vector_store %arg11[%c14_43, %c1_44], %31 {strides = array<i32>} : memref<196x9xf32, #tpu.memory_space<vmem>>, vector<14x1xf32>,
    %c0_45 = arith.constant 0 : index
    %c2_46 = arith.constant 2 : index
    %c1_47 = arith.constant 1 : index
    %33 = vector.load %arg1[%c0_45, %c2_46, %c1_47] : memref<1x16x16xf32, #tpu.memory_space<vmem>>, vector<1x14x1xf32>
    %34 = vector.shape_cast %33 : vector<1x14x1xf32> to vector<14x1xf32>
    %c14_48 = arith.constant 14 : index
    %c2_49 = arith.constant 2 : index
    %35 = vector.load %arg11[%c14_48, %c2_49] : memref<196x9xf32, #tpu.memory_space<vmem>>, vector<14x1xf32>
    tpu.vector_store %arg11[%c14_48, %c2_49], %34 {strides = array<i32>} : memref<196x9xf32, #tpu.memory_space<vmem>>, vector<14x1xf32>,
    %c0_50 = arith.constant 0 : index
    %c0_51 = arith.constant 0 : index
    %c2_52 = arith.constant 2 : index
    %36 = vector.load %arg1[%c0_50, %c0_51, %c2_52] : memref<1x16x16xf32, #tpu.memory_space<vmem>>, vector<1x14x1xf32>
    %37 = vector.shape_cast %36 : vector<1x14x1xf32> to vector<14x1xf32>
    %c14_53 = arith.constant 14 : index
    %c3_54 = arith.constant 3 : index
    %38 = vector.load %arg11[%c14_53, %c3_54] : memref<196x9xf32, #tpu.memory_space<vmem>>, vector<14x1xf32>
    tpu.vector_store %arg11[%c14_53, %c3_54], %37 {strides = array<i32>} : memref<196x9xf32, #tpu.memory_space<vmem>>, vector<14x1xf32>,
    %c0_55 = arith.constant 0 : index
    %c1_56 = arith.constant 1 : index
    %c2_57 = arith.constant 2 : index
    %39 = vector.load %arg1[%c0_55, %c1_56, %c2_57] : memref<1x16x16xf32, #tpu.memory_space<vmem>>, vector<1x14x1xf32>
    %40 = vector.shape_cast %39 : vector<1x14x1xf32> to vector<14x1xf32>
    %c14_58 = arith.constant 14 : index
    %c4_59 = arith.constant 4 : index
    %41 = vector.load %arg11[%c14_58, %c4_59] : memref<196x9xf32, #tpu.memory_space<vmem>>, vector<14x1xf32>
    tpu.vector_store %arg11[%c14_58, %c4_59], %40 {strides = array<i32>} : memref<196x9xf32, #tpu.memory_space<vmem>>, vector<14x1xf32>,
    %c0_60 = arith.constant 0 : index
    %c2_61 = arith.constant 2 : index
    %c2_62 = arith.constant 2 : index
    %42 = vector.load %arg1[%c0_60, %c2_61, %c2_62] : memref<1x16x16xf32, #tpu.memory_space<vmem>>, vector<1x14x1xf32>
    %43 = vector.shape_cast %42 : vector<1x14x1xf32> to vector<14x1xf32>
    %c14_63 = arith.constant 14 : index
    %c5_64 = arith.constant 5 : index
    %44 = vector.load %arg11[%c14_63, %c5_64] : memref<196x9xf32, #tpu.memory_space<vmem>>, vector<14x1xf32>
    tpu.vector_store %arg11[%c14_63, %c5_64], %43 {strides = array<i32>} : memref<196x9xf32, #tpu.memory_space<vmem>>, vector<14x1xf32>,
    %c0_65 = arith.constant 0 : index
    %c0_66 = arith.constant 0 : index
    %c3_67 = arith.constant 3 : index
    %45 = vector.load %arg1[%c0_65, %c0_66, %c3_67] : memref<1x16x16xf32, #tpu.memory_space<vmem>>, vector<1x14x1xf32>
    %46 = vector.shape_cast %45 : vector<1x14x1xf32> to vector<14x1xf32>
    %c14_68 = arith.constant 14 : index
    %c6_69 = arith.constant 6 : index
    %47 = vector.load %arg11[%c14_68, %c6_69] : memref<196x9xf32, #tpu.memory_space<vmem>>, vector<14x1xf32>
    tpu.vector_store %arg11[%c14_68, %c6_69], %46 {strides = array<i32>} : memref<196x9xf32, #tpu.memory_space<vmem>>, vector<14x1xf32>,
    %c0_70 = arith.constant 0 : index
    %c1_71 = arith.constant 1 : index
    %c3_72 = arith.constant 3 : index
    %48 = vector.load %arg1[%c0_70, %c1_71, %c3_72] : memref<1x16x16xf32, #tpu.memory_space<vmem>>, vector<1x14x1xf32>
    %49 = vector.shape_cast %48 : vector<1x14x1xf32> to vector<14x1xf32>
    %c14_73 = arith.constant 14 : index
    %c7_74 = arith.constant 7 : index
    %50 = vector.load %arg11[%c14_73, %c7_74] : memref<196x9xf32, #tpu.memory_space<vmem>>, vector<14x1xf32>
    tpu.vector_store %arg11[%c14_73, %c7_74], %49 {strides = array<i32>} : memref<196x9xf32, #tpu.memory_space<vmem>>, vector<14x1xf32>,
    %c0_75 = arith.constant 0 : index
    %c2_76 = arith.constant 2 : index
    %c3_77 = arith.constant 3 : index
    %51 = vector.load %arg1[%c0_75, %c2_76, %c3_77] : memref<1x16x16xf32, #tpu.memory_space<vmem>>, vector<1x14x1xf32>
    %52 = vector.shape_cast %51 : vector<1x14x1xf32> to vector<14x1xf32>
    %c14_78 = arith.constant 14 : index
    %c8_79 = arith.constant 8 : index
    %53 = vector.load %arg11[%c14_78, %c8_79] : memref<196x9xf32, #tpu.memory_space<vmem>>, vector<14x1xf32>
    tpu.vector_store %arg11[%c14_78, %c8_79], %52 {strides = array<i32>} : memref<196x9xf32, #tpu.memory_space<vmem>>, vector<14x1xf32>,
    %c0_80 = arith.constant 0 : index
    %c0_81 = arith.constant 0 : index
    %c2_82 = arith.constant 2 : index
    %54 = vector.load %arg1[%c0_80, %c0_81, %c2_82] : memref<1x16x16xf32, #tpu.memory_space<vmem>>, vector<1x14x1xf32>
    %55 = vector.shape_cast %54 : vector<1x14x1xf32> to vector<14x1xf32>
    %c28 = arith.constant 28 : index
    %c0_83 = arith.constant 0 : index
    %56 = vector.load %arg11[%c28, %c0_83] : memref<196x9xf32, #tpu.memory_space<vmem>>, vector<14x1xf32>
    tpu.vector_store %arg11[%c28, %c0_83], %55 {strides = array<i32>} : memref<196x9xf32, #tpu.memory_space<vmem>>, vector<14x1xf32>,
    %c0_84 = arith.constant 0 : index
    %c1_85 = arith.constant 1 : index
    %c2_86 = arith.constant 2 : index
    %57 = vector.load %arg1[%c0_84, %c1_85, %c2_86] : memref<1x16x16xf32, #tpu.memory_space<vmem>>, vector<1x14x1xf32>
    %58 = vector.shape_cast %57 : vector<1x14x1xf32> to vector<14x1xf32>
    %c28_87 = arith.constant 28 : index
    %c1_88 = arith.constant 1 : index
    %59 = vector.load %arg11[%c28_87, %c1_88] : memref<196x9xf32, #tpu.memory_space<vmem>>, vector<14x1xf32>
    tpu.vector_store %arg11[%c28_87, %c1_88], %58 {strides = array<i32>} : memref<196x9xf32, #tpu.memory_space<vmem>>, vector<14x1xf32>,
    %c0_89 = arith.constant 0 : index
    %c2_90 = arith.constant 2 : index
    %c2_91 = arith.constant 2 : index
    %60 = vector.load %arg1[%c0_89, %c2_90, %c2_91] : memref<1x16x16xf32, #tpu.memory_space<vmem>>, vector<1x14x1xf32>
    %61 = vector.shape_cast %60 : vector<1x14x1xf32> to vector<14x1xf32>
    %c28_92 = arith.constant 28 : index
    %c2_93 = arith.constant 2 : index
    %62 = vector.load %arg11[%c28_92, %c2_93] : memref<196x9xf32, #tpu.memory_space<vmem>>, vector<14x1xf32>
    tpu.vector_store %arg11[%c28_92, %c2_93], %61 {strides = array<i32>} : memref<196x9xf32, #tpu.memory_space<vmem>>, vector<14x1xf32>,
    %c0_94 = arith.constant 0 : index
    %c0_95 = arith.constant 0 : index
    %c3_96 = arith.constant 3 : index
    %63 = vector.load %arg1[%c0_94, %c0_95, %c3_96] : memref<1x16x16xf32, #tpu.memory_space<vmem>>, vector<1x14x1xf32>
    %64 = vector.shape_cast %63 : vector<1x14x1xf32> to vector<14x1xf32>
    %c28_97 = arith.constant 28 : index
    %c3_98 = arith.constant 3 : index
    %65 = vector.load %arg11[%c28_97, %c3_98] : memref<196x9xf32, #tpu.memory_space<vmem>>, vector<14x1xf32>
    tpu.vector_store %arg11[%c28_97, %c3_98], %64 {strides = array<i32>} : memref<196x9xf32, #tpu.memory_space<vmem>>, vector<14x1xf32>,
    %c0_99 = arith.constant 0 : index
    %c1_100 = arith.constant 1 : index
    %c3_101 = arith.constant 3 : index
    %66 = vector.load %arg1[%c0_99, %c1_100, %c3_101] : memref<1x16x16xf32, #tpu.memory_space<vmem>>, vector<1x14x1xf32>
    %67 = vector.shape_cast %66 : vector<1x14x1xf32> to vector<14x1xf32>
    %c28_102 = arith.constant 28 : index
    %c4_103 = arith.constant 4 : index
    %68 = vector.load %arg11[%c28_102, %c4_103] : memref<196x9xf32, #tpu.memory_space<vmem>>, vector<14x1xf32>
    tpu.vector_store %arg11[%c28_102, %c4_103], %67 {strides = array<i32>} : memref<196x9xf32, #tpu.memory_space<vmem>>, vector<14x1xf32>,
    %c0_104 = arith.constant 0 : index
    %c2_105 = arith.constant 2 : index
    %c3_106 = arith.constant 3 : index
    %69 = vector.load %arg1[%c0_104, %c2_105, %c3_106] : memref<1x16x16xf32, #tpu.memory_space<vmem>>, vector<1x14x1xf32>
    %70 = vector.shape_cast %69 : vector<1x14x1xf32> to vector<14x1xf32>
    %c28_107 = arith.constant 28 : index
    %c5_108 = arith.constant 5 : index
    %71 = vector.load %arg11[%c28_107, %c5_108] : memref<196x9xf32, #tpu.memory_space<vmem>>, vector<14x1xf32>
    tpu.vector_store %arg11[%c28_107, %c5_108], %70 {strides = array<i32>} : memref<196x9xf32, #tpu.memory_space<vmem>>, vector<14x1xf32>,
    %c0_109 = arith.constant 0 : index
    %c0_110 = arith.constant 0 : index
    %c4_111 = arith.constant 4 : index
    %72 = vector.load %arg1[%c0_109, %c0_110, %c4_111] : memref<1x16x16xf32, #tpu.memory_space<vmem>>, vector<1x14x1xf32>
    %73 = vector.shape_cast %72 : vector<1x14x1xf32> to vector<14x1xf32>
    %c28_112 = arith.constant 28 : index
    %c6_113 = arith.constant 6 : index
    %74 = vector.load %arg11[%c28_112, %c6_113] : memref<196x9xf32, #tpu.memory_space<vmem>>, vector<14x1xf32>
    tpu.vector_store %arg11[%c28_112, %c6_113], %73 {strides = array<i32>} : memref<196x9xf32, #tpu.memory_space<vmem>>, vector<14x1xf32>,
    %c0_114 = arith.constant 0 : index
    %c1_115 = arith.constant 1 : index
    %c4_116 = arith.constant 4 : index
    %75 = vector.load %arg1[%c0_114, %c1_115, %c4_116] : memref<1x16x16xf32, #tpu.memory_space<vmem>>, vector<1x14x1xf32>
    %76 = vector.shape_cast %75 : vector<1x14x1xf32> to vector<14x1xf32>
    %c28_117 = arith.constant 28 : index
    %c7_118 = arith.constant 7 : index
    %77 = vector.load %arg11[%c28_117, %c7_118] : memref<196x9xf32, #tpu.memory_space<vmem>>, vector<14x1xf32>
    tpu.vector_store %arg11[%c28_117, %c7_118], %76 {strides = array<i32>} : memref<196x9xf32, #tpu.memory_space<vmem>>, vector<14x1xf32>,
    %c0_119 = arith.constant 0 : index
    %c2_120 = arith.constant 2 : index
    %c4_121 = arith.constant 4 : index
    %78 = vector.load %arg1[%c0_119, %c2_120, %c4_121] : memref<1x16x16xf32, #tpu.memory_space<vmem>>, vector<1x14x1xf32>
    %79 = vector.shape_cast %78 : vector<1x14x1xf32> to vector<14x1xf32>
    %c28_122 = arith.constant 28 : index
    %c8_123 = arith.constant 8 : index
    %80 = vector.load %arg11[%c28_122, %c8_123] : memref<196x9xf32, #tpu.memory_space<vmem>>, vector<14x1xf32>
    tpu.vector_store %arg11[%c28_122, %c8_123], %79 {strides = array<i32>} : memref<196x9xf32, #tpu.memory_space<vmem>>, vector<14x1xf32>,
    %c0_124 = arith.constant 0 : index
    %c0_125 = arith.constant 0 : index
    %c3_126 = arith.constant 3 : index
    %81 = vector.load %arg1[%c0_124, %c0_125, %c3_126] : memref<1x16x16xf32, #tpu.memory_space<vmem>>, vector<1x14x1xf32>
    %82 = vector.shape_cast %81 : vector<1x14x1xf32> to vector<14x1xf32>
    %c42 = arith.constant 42 : index
    %c0_127 = arith.constant 0 : index
    %83 = vector.load %arg11[%c42, %c0_127] : memref<196x9xf32, #tpu.memory_space<vmem>>, vector<14x1xf32>
    tpu.vector_store %arg11[%c42, %c0_127], %82 {strides = array<i32>} : memref<196x9xf32, #tpu.memory_space<vmem>>, vector<14x1xf32>,
    %c0_128 = arith.constant 0 : index
    %c1_129 = arith.constant 1 : index
    %c3_130 = arith.constant 3 : index
    %84 = vector.load %arg1[%c0_128, %c1_129, %c3_130] : memref<1x16x16xf32, #tpu.memory_space<vmem>>, vector<1x14x1xf32>
    %85 = vector.shape_cast %84 : vector<1x14x1xf32> to vector<14x1xf32>
    %c42_131 = arith.constant 42 : index
    %c1_132 = arith.constant 1 : index
    %86 = vector.load %arg11[%c42_131, %c1_132] : memref<196x9xf32, #tpu.memory_space<vmem>>, vector<14x1xf32>
    tpu.vector_store %arg11[%c42_131, %c1_132], %85 {strides = array<i32>} : memref<196x9xf32, #tpu.memory_space<vmem>>, vector<14x1xf32>,
    %c0_133 = arith.constant 0 : index
    %c2_134 = arith.constant 2 : index
    %c3_135 = arith.constant 3 : index
    %87 = vector.load %arg1[%c0_133, %c2_134, %c3_135] : memref<1x16x16xf32, #tpu.memory_space<vmem>>, vector<1x14x1xf32>
    %88 = vector.shape_cast %87 : vector<1x14x1xf32> to vector<14x1xf32>
    %c42_136 = arith.constant 42 : index
    %c2_137 = arith.constant 2 : index
    %89 = vector.load %arg11[%c42_136, %c2_137] : memref<196x9xf32, #tpu.memory_space<vmem>>, vector<14x1xf32>
    tpu.vector_store %arg11[%c42_136, %c2_137], %88 {strides = array<i32>} : memref<196x9xf32, #tpu.memory_space<vmem>>, vector<14x1xf32>,
    %c0_138 = arith.constant 0 : index
    %c0_139 = arith.constant 0 : index
    %c4_140 = arith.constant 4 : index
    %90 = vector.load %arg1[%c0_138, %c0_139, %c4_140] : memref<1x16x16xf32, #tpu.memory_space<vmem>>, vector<1x14x1xf32>
    %91 = vector.shape_cast %90 : vector<1x14x1xf32> to vector<14x1xf32>
    %c42_141 = arith.constant 42 : index
    %c3_142 = arith.constant 3 : index
    %92 = vector.load %arg11[%c42_141, %c3_142] : memref<196x9xf32, #tpu.memory_space<vmem>>, vector<14x1xf32>
    tpu.vector_store %arg11[%c42_141, %c3_142], %91 {strides = array<i32>} : memref<196x9xf32, #tpu.memory_space<vmem>>, vector<14x1xf32>,
    %c0_143 = arith.constant 0 : index
    %c1_144 = arith.constant 1 : index
    %c4_145 = arith.constant 4 : index
    %93 = vector.load %arg1[%c0_143, %c1_144, %c4_145] : memref<1x16x16xf32, #tpu.memory_space<vmem>>, vector<1x14x1xf32>
    %94 = vector.shape_cast %93 : vector<1x14x1xf32> to vector<14x1xf32>
    %c42_146 = arith.constant 42 : index
    %c4_147 = arith.constant 4 : index
    %95 = vector.load %arg11[%c42_146, %c4_147] : memref<196x9xf32, #tpu.memory_space<vmem>>, vector<14x1xf32>
    tpu.vector_store %arg11[%c42_146, %c4_147], %94 {strides = array<i32>} : memref<196x9xf32, #tpu.memory_space<vmem>>, vector<14x1xf32>,
    %c0_148 = arith.constant 0 : index
    %c2_149 = arith.constant 2 : index
    %c4_150 = arith.constant 4 : index
    %96 = vector.load %arg1[%c0_148, %c2_149, %c4_150] : memref<1x16x16xf32, #tpu.memory_space<vmem>>, vector<1x14x1xf32>
    %97 = vector.shape_cast %96 : vector<1x14x1xf32> to vector<14x1xf32>
    %c42_151 = arith.constant 42 : index
    %c5_152 = arith.constant 5 : index
    %98 = vector.load %arg11[%c42_151, %c5_152] : memref<196x9xf32, #tpu.memory_space<vmem>>, vector<14x1xf32>
    tpu.vector_store %arg11[%c42_151, %c5_152], %97 {strides = array<i32>} : memref<196x9xf32, #tpu.memory_space<vmem>>, vector<14x1xf32>,
    %c0_153 = arith.constant 0 : index
    %c0_154 = arith.constant 0 : index
    %c5_155 = arith.constant 5 : index
    %99 = vector.load %arg1[%c0_153, %c0_154, %c5_155] : memref<1x16x16xf32, #tpu.memory_space<vmem>>, vector<1x14x1xf32>
    %100 = vector.shape_cast %99 : vector<1x14x1xf32> to vector<14x1xf32>
    %c42_156 = arith.constant 42 : index
    %c6_157 = arith.constant 6 : index
    %101 = vector.load %arg11[%c42_156, %c6_157] : memref<196x9xf32, #tpu.memory_space<vmem>>, vector<14x1xf32>
    tpu.vector_store %arg11[%c42_156, %c6_157], %100 {strides = array<i32>} : memref<196x9xf32, #tpu.memory_space<vmem>>, vector<14x1xf32>,
    %c0_158 = arith.constant 0 : index
    %c1_159 = arith.constant 1 : index
    %c5_160 = arith.constant 5 : index
    %102 = vector.load %arg1[%c0_158, %c1_159, %c5_160] : memref<1x16x16xf32, #tpu.memory_space<vmem>>, vector<1x14x1xf32>
    %103 = vector.shape_cast %102 : vector<1x14x1xf32> to vector<14x1xf32>
    %c42_161 = arith.constant 42 : index
    %c7_162 = arith.constant 7 : index
    %104 = vector.load %arg11[%c42_161, %c7_162] : memref<196x9xf32, #tpu.memory_space<vmem>>, vector<14x1xf32>
    tpu.vector_store %arg11[%c42_161, %c7_162], %103 {strides = array<i32>} : memref<196x9xf32, #tpu.memory_space<vmem>>, vector<14x1xf32>,
    %c0_163 = arith.constant 0 : index
    %c2_164 = arith.constant 2 : index
    %c5_165 = arith.constant 5 : index
    %105 = vector.load %arg1[%c0_163, %c2_164, %c5_165] : memref<1x16x16xf32, #tpu.memory_space<vmem>>, vector<1x14x1xf32>
    %106 = vector.shape_cast %105 : vector<1x14x1xf32> to vector<14x1xf32>
    %c42_166 = arith.constant 42 : index
    %c8_167 = arith.constant 8 : index
    %107 = vector.load %arg11[%c42_166, %c8_167] : memref<196x9xf32, #tpu.memory_space<vmem>>, vector<14x1xf32>
    tpu.vector_store %arg11[%c42_166, %c8_167], %106 {strides = array<i32>} : memref<196x9xf32, #tpu.memory_space<vmem>>, vector<14x1xf32>,
    %c0_168 = arith.constant 0 : index
    %c0_169 = arith.constant 0 : index
    %c4_170 = arith.constant 4 : index
    %108 = vector.load %arg1[%c0_168, %c0_169, %c4_170] : memref<1x16x16xf32, #tpu.memory_space<vmem>>, vector<1x14x1xf32>
    %109 = vector.shape_cast %108 : vector<1x14x1xf32> to vector<14x1xf32>
    %c56 = arith.constant 56 : index
    %c0_171 = arith.constant 0 : index
    %110 = vector.load %arg11[%c56, %c0_171] : memref<196x9xf32, #tpu.memory_space<vmem>>, vector<14x1xf32>
    tpu.vector_store %arg11[%c56, %c0_171], %109 {strides = array<i32>} : memref<196x9xf32, #tpu.memory_space<vmem>>, vector<14x1xf32>,
    %c0_172 = arith.constant 0 : index
    %c1_173 = arith.constant 1 : index
    %c4_174 = arith.constant 4 : index
    %111 = vector.load %arg1[%c0_172, %c1_173, %c4_174] : memref<1x16x16xf32, #tpu.memory_space<vmem>>, vector<1x14x1xf32>
    %112 = vector.shape_cast %111 : vector<1x14x1xf32> to vector<14x1xf32>
    %c56_175 = arith.constant 56 : index
    %c1_176 = arith.constant 1 : index
    %113 = vector.load %arg11[%c56_175, %c1_176] : memref<196x9xf32, #tpu.memory_space<vmem>>, vector<14x1xf32>
    tpu.vector_store %arg11[%c56_175, %c1_176], %112 {strides = array<i32>} : memref<196x9xf32, #tpu.memory_space<vmem>>, vector<14x1xf32>,
    %c0_177 = arith.constant 0 : index
    %c2_178 = arith.constant 2 : index
    %c4_179 = arith.constant 4 : index
    %114 = vector.load %arg1[%c0_177, %c2_178, %c4_179] : memref<1x16x16xf32, #tpu.memory_space<vmem>>, vector<1x14x1xf32>
    %115 = vector.shape_cast %114 : vector<1x14x1xf32> to vector<14x1xf32>
    %c56_180 = arith.constant 56 : index
    %c2_181 = arith.constant 2 : index
    %116 = vector.load %arg11[%c56_180, %c2_181] : memref<196x9xf32, #tpu.memory_space<vmem>>, vector<14x1xf32>
    tpu.vector_store %arg11[%c56_180, %c2_181], %115 {strides = array<i32>} : memref<196x9xf32, #tpu.memory_space<vmem>>, vector<14x1xf32>,
    %c0_182 = arith.constant 0 : index
    %c0_183 = arith.constant 0 : index
    %c5_184 = arith.constant 5 : index
    %117 = vector.load %arg1[%c0_182, %c0_183, %c5_184] : memref<1x16x16xf32, #tpu.memory_space<vmem>>, vector<1x14x1xf32>
    %118 = vector.shape_cast %117 : vector<1x14x1xf32> to vector<14x1xf32>
    %c56_185 = arith.constant 56 : index
    %c3_186 = arith.constant 3 : index
    %119 = vector.load %arg11[%c56_185, %c3_186] : memref<196x9xf32, #tpu.memory_space<vmem>>, vector<14x1xf32>
    tpu.vector_store %arg11[%c56_185, %c3_186], %118 {strides = array<i32>} : memref<196x9xf32, #tpu.memory_space<vmem>>, vector<14x1xf32>,
    %c0_187 = arith.constant 0 : index
    %c1_188 = arith.constant 1 : index
    %c5_189 = arith.constant 5 : index
    %120 = vector.load %arg1[%c0_187, %c1_188, %c5_189] : memref<1x16x16xf32, #tpu.memory_space<vmem>>, vector<1x14x1xf32>
    %121 = vector.shape_cast %120 : vector<1x14x1xf32> to vector<14x1xf32>
    %c56_190 = arith.constant 56 : index
    %c4_191 = arith.constant 4 : index
    %122 = vector.load %arg11[%c56_190, %c4_191] : memref<196x9xf32, #tpu.memory_space<vmem>>, vector<14x1xf32>
    tpu.vector_store %arg11[%c56_190, %c4_191], %121 {strides = array<i32>} : memref<196x9xf32, #tpu.memory_space<vmem>>, vector<14x1xf32>,
    %c0_192 = arith.constant 0 : index
    %c2_193 = arith.constant 2 : index
    %c5_194 = arith.constant 5 : index
    %123 = vector.load %arg1[%c0_192, %c2_193, %c5_194] : memref<1x16x16xf32, #tpu.memory_space<vmem>>, vector<1x14x1xf32>
    %124 = vector.shape_cast %123 : vector<1x14x1xf32> to vector<14x1xf32>
    %c56_195 = arith.constant 56 : index
    %c5_196 = arith.constant 5 : index
    %125 = vector.load %arg11[%c56_195, %c5_196] : memref<196x9xf32, #tpu.memory_space<vmem>>, vector<14x1xf32>
    tpu.vector_store %arg11[%c56_195, %c5_196], %124 {strides = array<i32>} : memref<196x9xf32, #tpu.memory_space<vmem>>, vector<14x1xf32>,
    %c0_197 = arith.constant 0 : index
    %c0_198 = arith.constant 0 : index
    %c6_199 = arith.constant 6 : index
    %126 = vector.load %arg1[%c0_197, %c0_198, %c6_199] : memref<1x16x16xf32, #tpu.memory_space<vmem>>, vector<1x14x1xf32>
    %127 = vector.shape_cast %126 : vector<1x14x1xf32> to vector<14x1xf32>
    %c56_200 = arith.constant 56 : index
    %c6_201 = arith.constant 6 : index
    %128 = vector.load %arg11[%c56_200, %c6_201] : memref<196x9xf32, #tpu.memory_space<vmem>>, vector<14x1xf32>
    tpu.vector_store %arg11[%c56_200, %c6_201], %127 {strides = array<i32>} : memref<196x9xf32, #tpu.memory_space<vmem>>, vector<14x1xf32>,
    %c0_202 = arith.constant 0 : index
    %c1_203 = arith.constant 1 : index
    %c6_204 = arith.constant 6 : index
    %129 = vector.load %arg1[%c0_202, %c1_203, %c6_204] : memref<1x16x16xf32, #tpu.memory_space<vmem>>, vector<1x14x1xf32>
    %130 = vector.shape_cast %129 : vector<1x14x1xf32> to vector<14x1xf32>
    %c56_205 = arith.constant 56 : index
    %c7_206 = arith.constant 7 : index
    %131 = vector.load %arg11[%c56_205, %c7_206] : memref<196x9xf32, #tpu.memory_space<vmem>>, vector<14x1xf32>
    tpu.vector_store %arg11[%c56_205, %c7_206], %130 {strides = array<i32>} : memref<196x9xf32, #tpu.memory_space<vmem>>, vector<14x1xf32>,
    %c0_207 = arith.constant 0 : index
    %c2_208 = arith.constant 2 : index
    %c6_209 = arith.constant 6 : index
    %132 = vector.load %arg1[%c0_207, %c2_208, %c6_209] : memref<1x16x16xf32, #tpu.memory_space<vmem>>, vector<1x14x1xf32>
    %133 = vector.shape_cast %132 : vector<1x14x1xf32> to vector<14x1xf32>
    %c56_210 = arith.constant 56 : index
    %c8_211 = arith.constant 8 : index
    %134 = vector.load %arg11[%c56_210, %c8_211] : memref<196x9xf32, #tpu.memory_space<vmem>>, vector<14x1xf32>
    tpu.vector_store %arg11[%c56_210, %c8_211], %133 {strides = array<i32>} : memref<196x9xf32, #tpu.memory_space<vmem>>, vector<14x1xf32>,
    %c0_212 = arith.constant 0 : index
    %c0_213 = arith.constant 0 : index
    %c5_214 = arith.constant 5 : index
    %135 = vector.load %arg1[%c0_212, %c0_213, %c5_214] : memref<1x16x16xf32, #tpu.memory_space<vmem>>, vector<1x14x1xf32>
    %136 = vector.shape_cast %135 : vector<1x14x1xf32> to vector<14x1xf32>
    %c70 = arith.constant 70 : index
    %c0_215 = arith.constant 0 : index
    %137 = vector.load %arg11[%c70, %c0_215] : memref<196x9xf32, #tpu.memory_space<vmem>>, vector<14x1xf32>
    tpu.vector_store %arg11[%c70, %c0_215], %136 {strides = array<i32>} : memref<196x9xf32, #tpu.memory_space<vmem>>, vector<14x1xf32>,
    %c0_216 = arith.constant 0 : index
    %c1_217 = arith.constant 1 : index
    %c5_218 = arith.constant 5 : index
    %138 = vector.load %arg1[%c0_216, %c1_217, %c5_218] : memref<1x16x16xf32, #tpu.memory_space<vmem>>, vector<1x14x1xf32>
    %139 = vector.shape_cast %138 : vector<1x14x1xf32> to vector<14x1xf32>
    %c70_219 = arith.constant 70 : index
    %c1_220 = arith.constant 1 : index
    %140 = vector.load %arg11[%c70_219, %c1_220] : memref<196x9xf32, #tpu.memory_space<vmem>>, vector<14x1xf32>
    tpu.vector_store %arg11[%c70_219, %c1_220], %139 {strides = array<i32>} : memref<196x9xf32, #tpu.memory_space<vmem>>, vector<14x1xf32>,
    %c0_221 = arith.constant 0 : index
    %c2_222 = arith.constant 2 : index
    %c5_223 = arith.constant 5 : index
    %141 = vector.load %arg1[%c0_221, %c2_222, %c5_223] : memref<1x16x16xf32, #tpu.memory_space<vmem>>, vector<1x14x1xf32>
    %142 = vector.shape_cast %141 : vector<1x14x1xf32> to vector<14x1xf32>
    %c70_224 = arith.constant 70 : index
    %c2_225 = arith.constant 2 : index
    %143 = vector.load %arg11[%c70_224, %c2_225] : memref<196x9xf32, #tpu.memory_space<vmem>>, vector<14x1xf32>
    tpu.vector_store %arg11[%c70_224, %c2_225], %142 {strides = array<i32>} : memref<196x9xf32, #tpu.memory_space<vmem>>, vector<14x1xf32>,
    %c0_226 = arith.constant 0 : index
    %c0_227 = arith.constant 0 : index
    %c6_228 = arith.constant 6 : index
    %144 = vector.load %arg1[%c0_226, %c0_227, %c6_228] : memref<1x16x16xf32, #tpu.memory_space<vmem>>, vector<1x14x1xf32>
    %145 = vector.shape_cast %144 : vector<1x14x1xf32> to vector<14x1xf32>
    %c70_229 = arith.constant 70 : index
    %c3_230 = arith.constant 3 : index
    %146 = vector.load %arg11[%c70_229, %c3_230] : memref<196x9xf32, #tpu.memory_space<vmem>>, vector<14x1xf32>
    tpu.vector_store %arg11[%c70_229, %c3_230], %145 {strides = array<i32>} : memref<196x9xf32, #tpu.memory_space<vmem>>, vector<14x1xf32>,
    %c0_231 = arith.constant 0 : index
    %c1_232 = arith.constant 1 : index
    %c6_233 = arith.constant 6 : index
    %147 = vector.load %arg1[%c0_231, %c1_232, %c6_233] : memref<1x16x16xf32, #tpu.memory_space<vmem>>, vector<1x14x1xf32>
    %148 = vector.shape_cast %147 : vector<1x14x1xf32> to vector<14x1xf32>
    %c70_234 = arith.constant 70 : index
    %c4_235 = arith.constant 4 : index
    %149 = vector.load %arg11[%c70_234, %c4_235] : memref<196x9xf32, #tpu.memory_space<vmem>>, vector<14x1xf32>
    tpu.vector_store %arg11[%c70_234, %c4_235], %148 {strides = array<i32>} : memref<196x9xf32, #tpu.memory_space<vmem>>, vector<14x1xf32>,
    %c0_236 = arith.constant 0 : index
    %c2_237 = arith.constant 2 : index
    %c6_238 = arith.constant 6 : index
    %150 = vector.load %arg1[%c0_236, %c2_237, %c6_238] : memref<1x16x16xf32, #tpu.memory_space<vmem>>, vector<1x14x1xf32>
    %151 = vector.shape_cast %150 : vector<1x14x1xf32> to vector<14x1xf32>
    %c70_239 = arith.constant 70 : index
    %c5_240 = arith.constant 5 : index
    %152 = vector.load %arg11[%c70_239, %c5_240] : memref<196x9xf32, #tpu.memory_space<vmem>>, vector<14x1xf32>
    tpu.vector_store %arg11[%c70_239, %c5_240], %151 {strides = array<i32>} : memref<196x9xf32, #tpu.memory_space<vmem>>, vector<14x1xf32>,
    %c0_241 = arith.constant 0 : index
    %c0_242 = arith.constant 0 : index
    %c7_243 = arith.constant 7 : index
    %153 = vector.load %arg1[%c0_241, %c0_242, %c7_243] : memref<1x16x16xf32, #tpu.memory_space<vmem>>, vector<1x14x1xf32>
    %154 = vector.shape_cast %153 : vector<1x14x1xf32> to vector<14x1xf32>
    %c70_244 = arith.constant 70 : index
    %c6_245 = arith.constant 6 : index
    %155 = vector.load %arg11[%c70_244, %c6_245] : memref<196x9xf32, #tpu.memory_space<vmem>>, vector<14x1xf32>
    tpu.vector_store %arg11[%c70_244, %c6_245], %154 {strides = array<i32>} : memref<196x9xf32, #tpu.memory_space<vmem>>, vector<14x1xf32>,
    %c0_246 = arith.constant 0 : index
    %c1_247 = arith.constant 1 : index
    %c7_248 = arith.constant 7 : index
    %156 = vector.load %arg1[%c0_246, %c1_247, %c7_248] : memref<1x16x16xf32, #tpu.memory_space<vmem>>, vector<1x14x1xf32>
    %157 = vector.shape_cast %156 : vector<1x14x1xf32> to vector<14x1xf32>
    %c70_249 = arith.constant 70 : index
    %c7_250 = arith.constant 7 : index
    %158 = vector.load %arg11[%c70_249, %c7_250] : memref<196x9xf32, #tpu.memory_space<vmem>>, vector<14x1xf32>
    tpu.vector_store %arg11[%c70_249, %c7_250], %157 {strides = array<i32>} : memref<196x9xf32, #tpu.memory_space<vmem>>, vector<14x1xf32>,
    %c0_251 = arith.constant 0 : index
    %c2_252 = arith.constant 2 : index
    %c7_253 = arith.constant 7 : index
    %159 = vector.load %arg1[%c0_251, %c2_252, %c7_253] : memref<1x16x16xf32, #tpu.memory_space<vmem>>, vector<1x14x1xf32>
    %160 = vector.shape_cast %159 : vector<1x14x1xf32> to vector<14x1xf32>
    %c70_254 = arith.constant 70 : index
    %c8_255 = arith.constant 8 : index
    %161 = vector.load %arg11[%c70_254, %c8_255] : memref<196x9xf32, #tpu.memory_space<vmem>>, vector<14x1xf32>
    tpu.vector_store %arg11[%c70_254, %c8_255], %160 {strides = array<i32>} : memref<196x9xf32, #tpu.memory_space<vmem>>, vector<14x1xf32>,
    %c0_256 = arith.constant 0 : index
    %c0_257 = arith.constant 0 : index
    %c6_258 = arith.constant 6 : index
    %162 = vector.load %arg1[%c0_256, %c0_257, %c6_258] : memref<1x16x16xf32, #tpu.memory_space<vmem>>, vector<1x14x1xf32>
    %163 = vector.shape_cast %162 : vector<1x14x1xf32> to vector<14x1xf32>
    %c84 = arith.constant 84 : index
    %c0_259 = arith.constant 0 : index
    %164 = vector.load %arg11[%c84, %c0_259] : memref<196x9xf32, #tpu.memory_space<vmem>>, vector<14x1xf32>
    tpu.vector_store %arg11[%c84, %c0_259], %163 {strides = array<i32>} : memref<196x9xf32, #tpu.memory_space<vmem>>, vector<14x1xf32>,
    %c0_260 = arith.constant 0 : index
    %c1_261 = arith.constant 1 : index
    %c6_262 = arith.constant 6 : index
    %165 = vector.load %arg1[%c0_260, %c1_261, %c6_262] : memref<1x16x16xf32, #tpu.memory_space<vmem>>, vector<1x14x1xf32>
    %166 = vector.shape_cast %165 : vector<1x14x1xf32> to vector<14x1xf32>
    %c84_263 = arith.constant 84 : index
    %c1_264 = arith.constant 1 : index
    %167 = vector.load %arg11[%c84_263, %c1_264] : memref<196x9xf32, #tpu.memory_space<vmem>>, vector<14x1xf32>
    tpu.vector_store %arg11[%c84_263, %c1_264], %166 {strides = array<i32>} : memref<196x9xf32, #tpu.memory_space<vmem>>, vector<14x1xf32>,
    %c0_265 = arith.constant 0 : index
    %c2_266 = arith.constant 2 : index
    %c6_267 = arith.constant 6 : index
    %168 = vector.load %arg1[%c0_265, %c2_266, %c6_267] : memref<1x16x16xf32, #tpu.memory_space<vmem>>, vector<1x14x1xf32>
    %169 = vector.shape_cast %168 : vector<1x14x1xf32> to vector<14x1xf32>
    %c84_268 = arith.constant 84 : index
    %c2_269 = arith.constant 2 : index
    %170 = vector.load %arg11[%c84_268, %c2_269] : memref<196x9xf32, #tpu.memory_space<vmem>>, vector<14x1xf32>
    tpu.vector_store %arg11[%c84_268, %c2_269], %169 {strides = array<i32>} : memref<196x9xf32, #tpu.memory_space<vmem>>, vector<14x1xf32>,
    %c0_270 = arith.constant 0 : index
    %c0_271 = arith.constant 0 : index
    %c7_272 = arith.constant 7 : index
    %171 = vector.load %arg1[%c0_270, %c0_271, %c7_272] : memref<1x16x16xf32, #tpu.memory_space<vmem>>, vector<1x14x1xf32>
    %172 = vector.shape_cast %171 : vector<1x14x1xf32> to vector<14x1xf32>
    %c84_273 = arith.constant 84 : index
    %c3_274 = arith.constant 3 : index
    %173 = vector.load %arg11[%c84_273, %c3_274] : memref<196x9xf32, #tpu.memory_space<vmem>>, vector<14x1xf32>
    tpu.vector_store %arg11[%c84_273, %c3_274], %172 {strides = array<i32>} : memref<196x9xf32, #tpu.memory_space<vmem>>, vector<14x1xf32>,
    %c0_275 = arith.constant 0 : index
    %c1_276 = arith.constant 1 : index
    %c7_277 = arith.constant 7 : index
    %174 = vector.load %arg1[%c0_275, %c1_276, %c7_277] : memref<1x16x16xf32, #tpu.memory_space<vmem>>, vector<1x14x1xf32>
    %175 = vector.shape_cast %174 : vector<1x14x1xf32> to vector<14x1xf32>
    %c84_278 = arith.constant 84 : index
    %c4_279 = arith.constant 4 : index
    %176 = vector.load %arg11[%c84_278, %c4_279] : memref<196x9xf32, #tpu.memory_space<vmem>>, vector<14x1xf32>
    tpu.vector_store %arg11[%c84_278, %c4_279], %175 {strides = array<i32>} : memref<196x9xf32, #tpu.memory_space<vmem>>, vector<14x1xf32>,
    %c0_280 = arith.constant 0 : index
    %c2_281 = arith.constant 2 : index
    %c7_282 = arith.constant 7 : index
    %177 = vector.load %arg1[%c0_280, %c2_281, %c7_282] : memref<1x16x16xf32, #tpu.memory_space<vmem>>, vector<1x14x1xf32>
    %178 = vector.shape_cast %177 : vector<1x14x1xf32> to vector<14x1xf32>
    %c84_283 = arith.constant 84 : index
    %c5_284 = arith.constant 5 : index
    %179 = vector.load %arg11[%c84_283, %c5_284] : memref<196x9xf32, #tpu.memory_space<vmem>>, vector<14x1xf32>
    tpu.vector_store %arg11[%c84_283, %c5_284], %178 {strides = array<i32>} : memref<196x9xf32, #tpu.memory_space<vmem>>, vector<14x1xf32>,
    %c0_285 = arith.constant 0 : index
    %c0_286 = arith.constant 0 : index
    %c8_287 = arith.constant 8 : index
    %180 = vector.load %arg1[%c0_285, %c0_286, %c8_287] : memref<1x16x16xf32, #tpu.memory_space<vmem>>, vector<1x14x1xf32>
    %181 = vector.shape_cast %180 : vector<1x14x1xf32> to vector<14x1xf32>
    %c84_288 = arith.constant 84 : index
    %c6_289 = arith.constant 6 : index
    %182 = vector.load %arg11[%c84_288, %c6_289] : memref<196x9xf32, #tpu.memory_space<vmem>>, vector<14x1xf32>
    tpu.vector_store %arg11[%c84_288, %c6_289], %181 {strides = array<i32>} : memref<196x9xf32, #tpu.memory_space<vmem>>, vector<14x1xf32>,
    %c0_290 = arith.constant 0 : index
    %c1_291 = arith.constant 1 : index
    %c8_292 = arith.constant 8 : index
    %183 = vector.load %arg1[%c0_290, %c1_291, %c8_292] : memref<1x16x16xf32, #tpu.memory_space<vmem>>, vector<1x14x1xf32>
    %184 = vector.shape_cast %183 : vector<1x14x1xf32> to vector<14x1xf32>
    %c84_293 = arith.constant 84 : index
    %c7_294 = arith.constant 7 : index
    %185 = vector.load %arg11[%c84_293, %c7_294] : memref<196x9xf32, #tpu.memory_space<vmem>>, vector<14x1xf32>
    tpu.vector_store %arg11[%c84_293, %c7_294], %184 {strides = array<i32>} : memref<196x9xf32, #tpu.memory_space<vmem>>, vector<14x1xf32>,
    %c0_295 = arith.constant 0 : index
    %c2_296 = arith.constant 2 : index
    %c8_297 = arith.constant 8 : index
    %186 = vector.load %arg1[%c0_295, %c2_296, %c8_297] : memref<1x16x16xf32, #tpu.memory_space<vmem>>, vector<1x14x1xf32>
    %187 = vector.shape_cast %186 : vector<1x14x1xf32> to vector<14x1xf32>
    %c84_298 = arith.constant 84 : index
    %c8_299 = arith.constant 8 : index
    %188 = vector.load %arg11[%c84_298, %c8_299] : memref<196x9xf32, #tpu.memory_space<vmem>>, vector<14x1xf32>
    tpu.vector_store %arg11[%c84_298, %c8_299], %187 {strides = array<i32>} : memref<196x9xf32, #tpu.memory_space<vmem>>, vector<14x1xf32>,
    %c0_300 = arith.constant 0 : index
    %c0_301 = arith.constant 0 : index
    %c7_302 = arith.constant 7 : index
    %189 = vector.load %arg1[%c0_300, %c0_301, %c7_302] : memref<1x16x16xf32, #tpu.memory_space<vmem>>, vector<1x14x1xf32>
    %190 = vector.shape_cast %189 : vector<1x14x1xf32> to vector<14x1xf32>
    %c98 = arith.constant 98 : index
    %c0_303 = arith.constant 0 : index
    %191 = vector.load %arg11[%c98, %c0_303] : memref<196x9xf32, #tpu.memory_space<vmem>>, vector<14x1xf32>
    tpu.vector_store %arg11[%c98, %c0_303], %190 {strides = array<i32>} : memref<196x9xf32, #tpu.memory_space<vmem>>, vector<14x1xf32>,
    %c0_304 = arith.constant 0 : index
    %c1_305 = arith.constant 1 : index
    %c7_306 = arith.constant 7 : index
    %192 = vector.load %arg1[%c0_304, %c1_305, %c7_306] : memref<1x16x16xf32, #tpu.memory_space<vmem>>, vector<1x14x1xf32>
    %193 = vector.shape_cast %192 : vector<1x14x1xf32> to vector<14x1xf32>
    %c98_307 = arith.constant 98 : index
    %c1_308 = arith.constant 1 : index
    %194 = vector.load %arg11[%c98_307, %c1_308] : memref<196x9xf32, #tpu.memory_space<vmem>>, vector<14x1xf32>
    tpu.vector_store %arg11[%c98_307, %c1_308], %193 {strides = array<i32>} : memref<196x9xf32, #tpu.memory_space<vmem>>, vector<14x1xf32>,
    %c0_309 = arith.constant 0 : index
    %c2_310 = arith.constant 2 : index
    %c7_311 = arith.constant 7 : index
    %195 = vector.load %arg1[%c0_309, %c2_310, %c7_311] : memref<1x16x16xf32, #tpu.memory_space<vmem>>, vector<1x14x1xf32>
    %196 = vector.shape_cast %195 : vector<1x14x1xf32> to vector<14x1xf32>
    %c98_312 = arith.constant 98 : index
    %c2_313 = arith.constant 2 : index
    %197 = vector.load %arg11[%c98_312, %c2_313] : memref<196x9xf32, #tpu.memory_space<vmem>>, vector<14x1xf32>
    tpu.vector_store %arg11[%c98_312, %c2_313], %196 {strides = array<i32>} : memref<196x9xf32, #tpu.memory_space<vmem>>, vector<14x1xf32>,
    %c0_314 = arith.constant 0 : index
    %c0_315 = arith.constant 0 : index
    %c8_316 = arith.constant 8 : index
    %198 = vector.load %arg1[%c0_314, %c0_315, %c8_316] : memref<1x16x16xf32, #tpu.memory_space<vmem>>, vector<1x14x1xf32>
    %199 = vector.shape_cast %198 : vector<1x14x1xf32> to vector<14x1xf32>
    %c98_317 = arith.constant 98 : index
    %c3_318 = arith.constant 3 : index
    %200 = vector.load %arg11[%c98_317, %c3_318] : memref<196x9xf32, #tpu.memory_space<vmem>>, vector<14x1xf32>
    tpu.vector_store %arg11[%c98_317, %c3_318], %199 {strides = array<i32>} : memref<196x9xf32, #tpu.memory_space<vmem>>, vector<14x1xf32>,
    %c0_319 = arith.constant 0 : index
    %c1_320 = arith.constant 1 : index
    %c8_321 = arith.constant 8 : index
    %201 = vector.load %arg1[%c0_319, %c1_320, %c8_321] : memref<1x16x16xf32, #tpu.memory_space<vmem>>, vector<1x14x1xf32>
    %202 = vector.shape_cast %201 : vector<1x14x1xf32> to vector<14x1xf32>
    %c98_322 = arith.constant 98 : index
    %c4_323 = arith.constant 4 : index
    %203 = vector.load %arg11[%c98_322, %c4_323] : memref<196x9xf32, #tpu.memory_space<vmem>>, vector<14x1xf32>
    tpu.vector_store %arg11[%c98_322, %c4_323], %202 {strides = array<i32>} : memref<196x9xf32, #tpu.memory_space<vmem>>, vector<14x1xf32>,
    %c0_324 = arith.constant 0 : index
    %c2_325 = arith.constant 2 : index
    %c8_326 = arith.constant 8 : index
    %204 = vector.load %arg1[%c0_324, %c2_325, %c8_326] : memref<1x16x16xf32, #tpu.memory_space<vmem>>, vector<1x14x1xf32>
    %205 = vector.shape_cast %204 : vector<1x14x1xf32> to vector<14x1xf32>
    %c98_327 = arith.constant 98 : index
    %c5_328 = arith.constant 5 : index
    %206 = vector.load %arg11[%c98_327, %c5_328] : memref<196x9xf32, #tpu.memory_space<vmem>>, vector<14x1xf32>
    tpu.vector_store %arg11[%c98_327, %c5_328], %205 {strides = array<i32>} : memref<196x9xf32, #tpu.memory_space<vmem>>, vector<14x1xf32>,
    %c0_329 = arith.constant 0 : index
    %c0_330 = arith.constant 0 : index
    %c9 = arith.constant 9 : index
    %207 = vector.load %arg1[%c0_329, %c0_330, %c9] : memref<1x16x16xf32, #tpu.memory_space<vmem>>, vector<1x14x1xf32>
    %208 = vector.shape_cast %207 : vector<1x14x1xf32> to vector<14x1xf32>
    %c98_331 = arith.constant 98 : index
    %c6_332 = arith.constant 6 : index
    %209 = vector.load %arg11[%c98_331, %c6_332] : memref<196x9xf32, #tpu.memory_space<vmem>>, vector<14x1xf32>
    tpu.vector_store %arg11[%c98_331, %c6_332], %208 {strides = array<i32>} : memref<196x9xf32, #tpu.memory_space<vmem>>, vector<14x1xf32>,
    %c0_333 = arith.constant 0 : index
    %c1_334 = arith.constant 1 : index
    %c9_335 = arith.constant 9 : index
    %210 = vector.load %arg1[%c0_333, %c1_334, %c9_335] : memref<1x16x16xf32, #tpu.memory_space<vmem>>, vector<1x14x1xf32>
    %211 = vector.shape_cast %210 : vector<1x14x1xf32> to vector<14x1xf32>
    %c98_336 = arith.constant 98 : index
    %c7_337 = arith.constant 7 : index
    %212 = vector.load %arg11[%c98_336, %c7_337] : memref<196x9xf32, #tpu.memory_space<vmem>>, vector<14x1xf32>
    tpu.vector_store %arg11[%c98_336, %c7_337], %211 {strides = array<i32>} : memref<196x9xf32, #tpu.memory_space<vmem>>, vector<14x1xf32>,
    %c0_338 = arith.constant 0 : index
    %c2_339 = arith.constant 2 : index
    %c9_340 = arith.constant 9 : index
    %213 = vector.load %arg1[%c0_338, %c2_339, %c9_340] : memref<1x16x16xf32, #tpu.memory_space<vmem>>, vector<1x14x1xf32>
    %214 = vector.shape_cast %213 : vector<1x14x1xf32> to vector<14x1xf32>
    %c98_341 = arith.constant 98 : index
    %c8_342 = arith.constant 8 : index
    %215 = vector.load %arg11[%c98_341, %c8_342] : memref<196x9xf32, #tpu.memory_space<vmem>>, vector<14x1xf32>
    tpu.vector_store %arg11[%c98_341, %c8_342], %214 {strides = array<i32>} : memref<196x9xf32, #tpu.memory_space<vmem>>, vector<14x1xf32>,
    %c0_343 = arith.constant 0 : index
    %c0_344 = arith.constant 0 : index
    %c8_345 = arith.constant 8 : index
    %216 = vector.load %arg1[%c0_343, %c0_344, %c8_345] : memref<1x16x16xf32, #tpu.memory_space<vmem>>, vector<1x14x1xf32>
    %217 = vector.shape_cast %216 : vector<1x14x1xf32> to vector<14x1xf32>
    %c112 = arith.constant 112 : index
    %c0_346 = arith.constant 0 : index
    %218 = vector.load %arg11[%c112, %c0_346] : memref<196x9xf32, #tpu.memory_space<vmem>>, vector<14x1xf32>
    tpu.vector_store %arg11[%c112, %c0_346], %217 {strides = array<i32>} : memref<196x9xf32, #tpu.memory_space<vmem>>, vector<14x1xf32>,
    %c0_347 = arith.constant 0 : index
    %c1_348 = arith.constant 1 : index
    %c8_349 = arith.constant 8 : index
    %219 = vector.load %arg1[%c0_347, %c1_348, %c8_349] : memref<1x16x16xf32, #tpu.memory_space<vmem>>, vector<1x14x1xf32>
    %220 = vector.shape_cast %219 : vector<1x14x1xf32> to vector<14x1xf32>
    %c112_350 = arith.constant 112 : index
    %c1_351 = arith.constant 1 : index
    %221 = vector.load %arg11[%c112_350, %c1_351] : memref<196x9xf32, #tpu.memory_space<vmem>>, vector<14x1xf32>
    tpu.vector_store %arg11[%c112_350, %c1_351], %220 {strides = array<i32>} : memref<196x9xf32, #tpu.memory_space<vmem>>, vector<14x1xf32>,
    %c0_352 = arith.constant 0 : index
    %c2_353 = arith.constant 2 : index
    %c8_354 = arith.constant 8 : index
    %222 = vector.load %arg1[%c0_352, %c2_353, %c8_354] : memref<1x16x16xf32, #tpu.memory_space<vmem>>, vector<1x14x1xf32>
    %223 = vector.shape_cast %222 : vector<1x14x1xf32> to vector<14x1xf32>
    %c112_355 = arith.constant 112 : index
    %c2_356 = arith.constant 2 : index
    %224 = vector.load %arg11[%c112_355, %c2_356] : memref<196x9xf32, #tpu.memory_space<vmem>>, vector<14x1xf32>
    tpu.vector_store %arg11[%c112_355, %c2_356], %223 {strides = array<i32>} : memref<196x9xf32, #tpu.memory_space<vmem>>, vector<14x1xf32>,
    %c0_357 = arith.constant 0 : index
    %c0_358 = arith.constant 0 : index
    %c9_359 = arith.constant 9 : index
    %225 = vector.load %arg1[%c0_357, %c0_358, %c9_359] : memref<1x16x16xf32, #tpu.memory_space<vmem>>, vector<1x14x1xf32>
    %226 = vector.shape_cast %225 : vector<1x14x1xf32> to vector<14x1xf32>
    %c112_360 = arith.constant 112 : index
    %c3_361 = arith.constant 3 : index
    %227 = vector.load %arg11[%c112_360, %c3_361] : memref<196x9xf32, #tpu.memory_space<vmem>>, vector<14x1xf32>
    tpu.vector_store %arg11[%c112_360, %c3_361], %226 {strides = array<i32>} : memref<196x9xf32, #tpu.memory_space<vmem>>, vector<14x1xf32>,
    %c0_362 = arith.constant 0 : index
    %c1_363 = arith.constant 1 : index
    %c9_364 = arith.constant 9 : index
    %228 = vector.load %arg1[%c0_362, %c1_363, %c9_364] : memref<1x16x16xf32, #tpu.memory_space<vmem>>, vector<1x14x1xf32>
    %229 = vector.shape_cast %228 : vector<1x14x1xf32> to vector<14x1xf32>
    %c112_365 = arith.constant 112 : index
    %c4_366 = arith.constant 4 : index
    %230 = vector.load %arg11[%c112_365, %c4_366] : memref<196x9xf32, #tpu.memory_space<vmem>>, vector<14x1xf32>
    tpu.vector_store %arg11[%c112_365, %c4_366], %229 {strides = array<i32>} : memref<196x9xf32, #tpu.memory_space<vmem>>, vector<14x1xf32>,
    %c0_367 = arith.constant 0 : index
    %c2_368 = arith.constant 2 : index
    %c9_369 = arith.constant 9 : index
    %231 = vector.load %arg1[%c0_367, %c2_368, %c9_369] : memref<1x16x16xf32, #tpu.memory_space<vmem>>, vector<1x14x1xf32>
    %232 = vector.shape_cast %231 : vector<1x14x1xf32> to vector<14x1xf32>
    %c112_370 = arith.constant 112 : index
    %c5_371 = arith.constant 5 : index
    %233 = vector.load %arg11[%c112_370, %c5_371] : memref<196x9xf32, #tpu.memory_space<vmem>>, vector<14x1xf32>
    tpu.vector_store %arg11[%c112_370, %c5_371], %232 {strides = array<i32>} : memref<196x9xf32, #tpu.memory_space<vmem>>, vector<14x1xf32>,
    %c0_372 = arith.constant 0 : index
    %c0_373 = arith.constant 0 : index
    %c10 = arith.constant 10 : index
    %234 = vector.load %arg1[%c0_372, %c0_373, %c10] : memref<1x16x16xf32, #tpu.memory_space<vmem>>, vector<1x14x1xf32>
    %235 = vector.shape_cast %234 : vector<1x14x1xf32> to vector<14x1xf32>
    %c112_374 = arith.constant 112 : index
    %c6_375 = arith.constant 6 : index
    %236 = vector.load %arg11[%c112_374, %c6_375] : memref<196x9xf32, #tpu.memory_space<vmem>>, vector<14x1xf32>
    tpu.vector_store %arg11[%c112_374, %c6_375], %235 {strides = array<i32>} : memref<196x9xf32, #tpu.memory_space<vmem>>, vector<14x1xf32>,
    %c0_376 = arith.constant 0 : index
    %c1_377 = arith.constant 1 : index
    %c10_378 = arith.constant 10 : index
    %237 = vector.load %arg1[%c0_376, %c1_377, %c10_378] : memref<1x16x16xf32, #tpu.memory_space<vmem>>, vector<1x14x1xf32>
    %238 = vector.shape_cast %237 : vector<1x14x1xf32> to vector<14x1xf32>
    %c112_379 = arith.constant 112 : index
    %c7_380 = arith.constant 7 : index
    %239 = vector.load %arg11[%c112_379, %c7_380] : memref<196x9xf32, #tpu.memory_space<vmem>>, vector<14x1xf32>
    tpu.vector_store %arg11[%c112_379, %c7_380], %238 {strides = array<i32>} : memref<196x9xf32, #tpu.memory_space<vmem>>, vector<14x1xf32>,
    %c0_381 = arith.constant 0 : index
    %c2_382 = arith.constant 2 : index
    %c10_383 = arith.constant 10 : index
    %240 = vector.load %arg1[%c0_381, %c2_382, %c10_383] : memref<1x16x16xf32, #tpu.memory_space<vmem>>, vector<1x14x1xf32>
    %241 = vector.shape_cast %240 : vector<1x14x1xf32> to vector<14x1xf32>
    %c112_384 = arith.constant 112 : index
    %c8_385 = arith.constant 8 : index
    %242 = vector.load %arg11[%c112_384, %c8_385] : memref<196x9xf32, #tpu.memory_space<vmem>>, vector<14x1xf32>
    tpu.vector_store %arg11[%c112_384, %c8_385], %241 {strides = array<i32>} : memref<196x9xf32, #tpu.memory_space<vmem>>, vector<14x1xf32>,
    %c0_386 = arith.constant 0 : index
    %c0_387 = arith.constant 0 : index
    %c9_388 = arith.constant 9 : index
    %243 = vector.load %arg1[%c0_386, %c0_387, %c9_388] : memref<1x16x16xf32, #tpu.memory_space<vmem>>, vector<1x14x1xf32>
    %244 = vector.shape_cast %243 : vector<1x14x1xf32> to vector<14x1xf32>
    %c126 = arith.constant 126 : index
    %c0_389 = arith.constant 0 : index
    %245 = vector.load %arg11[%c126, %c0_389] : memref<196x9xf32, #tpu.memory_space<vmem>>, vector<14x1xf32>
    tpu.vector_store %arg11[%c126, %c0_389], %244 {strides = array<i32>} : memref<196x9xf32, #tpu.memory_space<vmem>>, vector<14x1xf32>,
    %c0_390 = arith.constant 0 : index
    %c1_391 = arith.constant 1 : index
    %c9_392 = arith.constant 9 : index
    %246 = vector.load %arg1[%c0_390, %c1_391, %c9_392] : memref<1x16x16xf32, #tpu.memory_space<vmem>>, vector<1x14x1xf32>
    %247 = vector.shape_cast %246 : vector<1x14x1xf32> to vector<14x1xf32>
    %c126_393 = arith.constant 126 : index
    %c1_394 = arith.constant 1 : index
    %248 = vector.load %arg11[%c126_393, %c1_394] : memref<196x9xf32, #tpu.memory_space<vmem>>, vector<14x1xf32>
    tpu.vector_store %arg11[%c126_393, %c1_394], %247 {strides = array<i32>} : memref<196x9xf32, #tpu.memory_space<vmem>>, vector<14x1xf32>,
    %c0_395 = arith.constant 0 : index
    %c2_396 = arith.constant 2 : index
    %c9_397 = arith.constant 9 : index
    %249 = vector.load %arg1[%c0_395, %c2_396, %c9_397] : memref<1x16x16xf32, #tpu.memory_space<vmem>>, vector<1x14x1xf32>
    %250 = vector.shape_cast %249 : vector<1x14x1xf32> to vector<14x1xf32>
    %c126_398 = arith.constant 126 : index
    %c2_399 = arith.constant 2 : index
    %251 = vector.load %arg11[%c126_398, %c2_399] : memref<196x9xf32, #tpu.memory_space<vmem>>, vector<14x1xf32>
    tpu.vector_store %arg11[%c126_398, %c2_399], %250 {strides = array<i32>} : memref<196x9xf32, #tpu.memory_space<vmem>>, vector<14x1xf32>,
    %c0_400 = arith.constant 0 : index
    %c0_401 = arith.constant 0 : index
    %c10_402 = arith.constant 10 : index
    %252 = vector.load %arg1[%c0_400, %c0_401, %c10_402] : memref<1x16x16xf32, #tpu.memory_space<vmem>>, vector<1x14x1xf32>
    %253 = vector.shape_cast %252 : vector<1x14x1xf32> to vector<14x1xf32>
    %c126_403 = arith.constant 126 : index
    %c3_404 = arith.constant 3 : index
    %254 = vector.load %arg11[%c126_403, %c3_404] : memref<196x9xf32, #tpu.memory_space<vmem>>, vector<14x1xf32>
    tpu.vector_store %arg11[%c126_403, %c3_404], %253 {strides = array<i32>} : memref<196x9xf32, #tpu.memory_space<vmem>>, vector<14x1xf32>,
    %c0_405 = arith.constant 0 : index
    %c1_406 = arith.constant 1 : index
    %c10_407 = arith.constant 10 : index
    %255 = vector.load %arg1[%c0_405, %c1_406, %c10_407] : memref<1x16x16xf32, #tpu.memory_space<vmem>>, vector<1x14x1xf32>
    %256 = vector.shape_cast %255 : vector<1x14x1xf32> to vector<14x1xf32>
    %c126_408 = arith.constant 126 : index
    %c4_409 = arith.constant 4 : index
    %257 = vector.load %arg11[%c126_408, %c4_409] : memref<196x9xf32, #tpu.memory_space<vmem>>, vector<14x1xf32>
    tpu.vector_store %arg11[%c126_408, %c4_409], %256 {strides = array<i32>} : memref<196x9xf32, #tpu.memory_space<vmem>>, vector<14x1xf32>,
    %c0_410 = arith.constant 0 : index
    %c2_411 = arith.constant 2 : index
    %c10_412 = arith.constant 10 : index
    %258 = vector.load %arg1[%c0_410, %c2_411, %c10_412] : memref<1x16x16xf32, #tpu.memory_space<vmem>>, vector<1x14x1xf32>
    %259 = vector.shape_cast %258 : vector<1x14x1xf32> to vector<14x1xf32>
    %c126_413 = arith.constant 126 : index
    %c5_414 = arith.constant 5 : index
    %260 = vector.load %arg11[%c126_413, %c5_414] : memref<196x9xf32, #tpu.memory_space<vmem>>, vector<14x1xf32>
    tpu.vector_store %arg11[%c126_413, %c5_414], %259 {strides = array<i32>} : memref<196x9xf32, #tpu.memory_space<vmem>>, vector<14x1xf32>,
    %c0_415 = arith.constant 0 : index
    %c0_416 = arith.constant 0 : index
    %c11 = arith.constant 11 : index
    %261 = vector.load %arg1[%c0_415, %c0_416, %c11] : memref<1x16x16xf32, #tpu.memory_space<vmem>>, vector<1x14x1xf32>
    %262 = vector.shape_cast %261 : vector<1x14x1xf32> to vector<14x1xf32>
    %c126_417 = arith.constant 126 : index
    %c6_418 = arith.constant 6 : index
    %263 = vector.load %arg11[%c126_417, %c6_418] : memref<196x9xf32, #tpu.memory_space<vmem>>, vector<14x1xf32>
    tpu.vector_store %arg11[%c126_417, %c6_418], %262 {strides = array<i32>} : memref<196x9xf32, #tpu.memory_space<vmem>>, vector<14x1xf32>,
    %c0_419 = arith.constant 0 : index
    %c1_420 = arith.constant 1 : index
    %c11_421 = arith.constant 11 : index
    %264 = vector.load %arg1[%c0_419, %c1_420, %c11_421] : memref<1x16x16xf32, #tpu.memory_space<vmem>>, vector<1x14x1xf32>
    %265 = vector.shape_cast %264 : vector<1x14x1xf32> to vector<14x1xf32>
    %c126_422 = arith.constant 126 : index
    %c7_423 = arith.constant 7 : index
    %266 = vector.load %arg11[%c126_422, %c7_423] : memref<196x9xf32, #tpu.memory_space<vmem>>, vector<14x1xf32>
    tpu.vector_store %arg11[%c126_422, %c7_423], %265 {strides = array<i32>} : memref<196x9xf32, #tpu.memory_space<vmem>>, vector<14x1xf32>,
    %c0_424 = arith.constant 0 : index
    %c2_425 = arith.constant 2 : index
    %c11_426 = arith.constant 11 : index
    %267 = vector.load %arg1[%c0_424, %c2_425, %c11_426] : memref<1x16x16xf32, #tpu.memory_space<vmem>>, vector<1x14x1xf32>
    %268 = vector.shape_cast %267 : vector<1x14x1xf32> to vector<14x1xf32>
    %c126_427 = arith.constant 126 : index
    %c8_428 = arith.constant 8 : index
    %269 = vector.load %arg11[%c126_427, %c8_428] : memref<196x9xf32, #tpu.memory_space<vmem>>, vector<14x1xf32>
    tpu.vector_store %arg11[%c126_427, %c8_428], %268 {strides = array<i32>} : memref<196x9xf32, #tpu.memory_space<vmem>>, vector<14x1xf32>,
    %c0_429 = arith.constant 0 : index
    %c0_430 = arith.constant 0 : index
    %c10_431 = arith.constant 10 : index
    %270 = vector.load %arg1[%c0_429, %c0_430, %c10_431] : memref<1x16x16xf32, #tpu.memory_space<vmem>>, vector<1x14x1xf32>
    %271 = vector.shape_cast %270 : vector<1x14x1xf32> to vector<14x1xf32>
    %c140 = arith.constant 140 : index
    %c0_432 = arith.constant 0 : index
    %272 = vector.load %arg11[%c140, %c0_432] : memref<196x9xf32, #tpu.memory_space<vmem>>, vector<14x1xf32>
    tpu.vector_store %arg11[%c140, %c0_432], %271 {strides = array<i32>} : memref<196x9xf32, #tpu.memory_space<vmem>>, vector<14x1xf32>,
    %c0_433 = arith.constant 0 : index
    %c1_434 = arith.constant 1 : index
    %c10_435 = arith.constant 10 : index
    %273 = vector.load %arg1[%c0_433, %c1_434, %c10_435] : memref<1x16x16xf32, #tpu.memory_space<vmem>>, vector<1x14x1xf32>
    %274 = vector.shape_cast %273 : vector<1x14x1xf32> to vector<14x1xf32>
    %c140_436 = arith.constant 140 : index
    %c1_437 = arith.constant 1 : index
    %275 = vector.load %arg11[%c140_436, %c1_437] : memref<196x9xf32, #tpu.memory_space<vmem>>, vector<14x1xf32>
    tpu.vector_store %arg11[%c140_436, %c1_437], %274 {strides = array<i32>} : memref<196x9xf32, #tpu.memory_space<vmem>>, vector<14x1xf32>,
    %c0_438 = arith.constant 0 : index
    %c2_439 = arith.constant 2 : index
    %c10_440 = arith.constant 10 : index
    %276 = vector.load %arg1[%c0_438, %c2_439, %c10_440] : memref<1x16x16xf32, #tpu.memory_space<vmem>>, vector<1x14x1xf32>
    %277 = vector.shape_cast %276 : vector<1x14x1xf32> to vector<14x1xf32>
    %c140_441 = arith.constant 140 : index
    %c2_442 = arith.constant 2 : index
    %278 = vector.load %arg11[%c140_441, %c2_442] : memref<196x9xf32, #tpu.memory_space<vmem>>, vector<14x1xf32>
    tpu.vector_store %arg11[%c140_441, %c2_442], %277 {strides = array<i32>} : memref<196x9xf32, #tpu.memory_space<vmem>>, vector<14x1xf32>,
    %c0_443 = arith.constant 0 : index
    %c0_444 = arith.constant 0 : index
    %c11_445 = arith.constant 11 : index
    %279 = vector.load %arg1[%c0_443, %c0_444, %c11_445] : memref<1x16x16xf32, #tpu.memory_space<vmem>>, vector<1x14x1xf32>
    %280 = vector.shape_cast %279 : vector<1x14x1xf32> to vector<14x1xf32>
    %c140_446 = arith.constant 140 : index
    %c3_447 = arith.constant 3 : index
    %281 = vector.load %arg11[%c140_446, %c3_447] : memref<196x9xf32, #tpu.memory_space<vmem>>, vector<14x1xf32>
    tpu.vector_store %arg11[%c140_446, %c3_447], %280 {strides = array<i32>} : memref<196x9xf32, #tpu.memory_space<vmem>>, vector<14x1xf32>,
    %c0_448 = arith.constant 0 : index
    %c1_449 = arith.constant 1 : index
    %c11_450 = arith.constant 11 : index
    %282 = vector.load %arg1[%c0_448, %c1_449, %c11_450] : memref<1x16x16xf32, #tpu.memory_space<vmem>>, vector<1x14x1xf32>
    %283 = vector.shape_cast %282 : vector<1x14x1xf32> to vector<14x1xf32>
    %c140_451 = arith.constant 140 : index
    %c4_452 = arith.constant 4 : index
    %284 = vector.load %arg11[%c140_451, %c4_452] : memref<196x9xf32, #tpu.memory_space<vmem>>, vector<14x1xf32>
    tpu.vector_store %arg11[%c140_451, %c4_452], %283 {strides = array<i32>} : memref<196x9xf32, #tpu.memory_space<vmem>>, vector<14x1xf32>,
    %c0_453 = arith.constant 0 : index
    %c2_454 = arith.constant 2 : index
    %c11_455 = arith.constant 11 : index
    %285 = vector.load %arg1[%c0_453, %c2_454, %c11_455] : memref<1x16x16xf32, #tpu.memory_space<vmem>>, vector<1x14x1xf32>
    %286 = vector.shape_cast %285 : vector<1x14x1xf32> to vector<14x1xf32>
    %c140_456 = arith.constant 140 : index
    %c5_457 = arith.constant 5 : index
    %287 = vector.load %arg11[%c140_456, %c5_457] : memref<196x9xf32, #tpu.memory_space<vmem>>, vector<14x1xf32>
    tpu.vector_store %arg11[%c140_456, %c5_457], %286 {strides = array<i32>} : memref<196x9xf32, #tpu.memory_space<vmem>>, vector<14x1xf32>,
    %c0_458 = arith.constant 0 : index
    %c0_459 = arith.constant 0 : index
    %c12 = arith.constant 12 : index
    %288 = vector.load %arg1[%c0_458, %c0_459, %c12] : memref<1x16x16xf32, #tpu.memory_space<vmem>>, vector<1x14x1xf32>
    %289 = vector.shape_cast %288 : vector<1x14x1xf32> to vector<14x1xf32>
    %c140_460 = arith.constant 140 : index
    %c6_461 = arith.constant 6 : index
    %290 = vector.load %arg11[%c140_460, %c6_461] : memref<196x9xf32, #tpu.memory_space<vmem>>, vector<14x1xf32>
    tpu.vector_store %arg11[%c140_460, %c6_461], %289 {strides = array<i32>} : memref<196x9xf32, #tpu.memory_space<vmem>>, vector<14x1xf32>,
    %c0_462 = arith.constant 0 : index
    %c1_463 = arith.constant 1 : index
    %c12_464 = arith.constant 12 : index
    %291 = vector.load %arg1[%c0_462, %c1_463, %c12_464] : memref<1x16x16xf32, #tpu.memory_space<vmem>>, vector<1x14x1xf32>
    %292 = vector.shape_cast %291 : vector<1x14x1xf32> to vector<14x1xf32>
    %c140_465 = arith.constant 140 : index
    %c7_466 = arith.constant 7 : index
    %293 = vector.load %arg11[%c140_465, %c7_466] : memref<196x9xf32, #tpu.memory_space<vmem>>, vector<14x1xf32>
    tpu.vector_store %arg11[%c140_465, %c7_466], %292 {strides = array<i32>} : memref<196x9xf32, #tpu.memory_space<vmem>>, vector<14x1xf32>,
    %c0_467 = arith.constant 0 : index
    %c2_468 = arith.constant 2 : index
    %c12_469 = arith.constant 12 : index
    %294 = vector.load %arg1[%c0_467, %c2_468, %c12_469] : memref<1x16x16xf32, #tpu.memory_space<vmem>>, vector<1x14x1xf32>
    %295 = vector.shape_cast %294 : vector<1x14x1xf32> to vector<14x1xf32>
    %c140_470 = arith.constant 140 : index
    %c8_471 = arith.constant 8 : index
    %296 = vector.load %arg11[%c140_470, %c8_471] : memref<196x9xf32, #tpu.memory_space<vmem>>, vector<14x1xf32>
    tpu.vector_store %arg11[%c140_470, %c8_471], %295 {strides = array<i32>} : memref<196x9xf32, #tpu.memory_space<vmem>>, vector<14x1xf32>,
    %c0_472 = arith.constant 0 : index
    %c0_473 = arith.constant 0 : index
    %c11_474 = arith.constant 11 : index
    %297 = vector.load %arg1[%c0_472, %c0_473, %c11_474] : memref<1x16x16xf32, #tpu.memory_space<vmem>>, vector<1x14x1xf32>
    %298 = vector.shape_cast %297 : vector<1x14x1xf32> to vector<14x1xf32>
    %c154 = arith.constant 154 : index
    %c0_475 = arith.constant 0 : index
    %299 = vector.load %arg11[%c154, %c0_475] : memref<196x9xf32, #tpu.memory_space<vmem>>, vector<14x1xf32>
    tpu.vector_store %arg11[%c154, %c0_475], %298 {strides = array<i32>} : memref<196x9xf32, #tpu.memory_space<vmem>>, vector<14x1xf32>,
    %c0_476 = arith.constant 0 : index
    %c1_477 = arith.constant 1 : index
    %c11_478 = arith.constant 11 : index
    %300 = vector.load %arg1[%c0_476, %c1_477, %c11_478] : memref<1x16x16xf32, #tpu.memory_space<vmem>>, vector<1x14x1xf32>
    %301 = vector.shape_cast %300 : vector<1x14x1xf32> to vector<14x1xf32>
    %c154_479 = arith.constant 154 : index
    %c1_480 = arith.constant 1 : index
    %302 = vector.load %arg11[%c154_479, %c1_480] : memref<196x9xf32, #tpu.memory_space<vmem>>, vector<14x1xf32>
    tpu.vector_store %arg11[%c154_479, %c1_480], %301 {strides = array<i32>} : memref<196x9xf32, #tpu.memory_space<vmem>>, vector<14x1xf32>,
    %c0_481 = arith.constant 0 : index
    %c2_482 = arith.constant 2 : index
    %c11_483 = arith.constant 11 : index
    %303 = vector.load %arg1[%c0_481, %c2_482, %c11_483] : memref<1x16x16xf32, #tpu.memory_space<vmem>>, vector<1x14x1xf32>
    %304 = vector.shape_cast %303 : vector<1x14x1xf32> to vector<14x1xf32>
    %c154_484 = arith.constant 154 : index
    %c2_485 = arith.constant 2 : index
    %305 = vector.load %arg11[%c154_484, %c2_485] : memref<196x9xf32, #tpu.memory_space<vmem>>, vector<14x1xf32>
    tpu.vector_store %arg11[%c154_484, %c2_485], %304 {strides = array<i32>} : memref<196x9xf32, #tpu.memory_space<vmem>>, vector<14x1xf32>,
    %c0_486 = arith.constant 0 : index
    %c0_487 = arith.constant 0 : index
    %c12_488 = arith.constant 12 : index
    %306 = vector.load %arg1[%c0_486, %c0_487, %c12_488] : memref<1x16x16xf32, #tpu.memory_space<vmem>>, vector<1x14x1xf32>
    %307 = vector.shape_cast %306 : vector<1x14x1xf32> to vector<14x1xf32>
    %c154_489 = arith.constant 154 : index
    %c3_490 = arith.constant 3 : index
    %308 = vector.load %arg11[%c154_489, %c3_490] : memref<196x9xf32, #tpu.memory_space<vmem>>, vector<14x1xf32>
    tpu.vector_store %arg11[%c154_489, %c3_490], %307 {strides = array<i32>} : memref<196x9xf32, #tpu.memory_space<vmem>>, vector<14x1xf32>,
    %c0_491 = arith.constant 0 : index
    %c1_492 = arith.constant 1 : index
    %c12_493 = arith.constant 12 : index
    %309 = vector.load %arg1[%c0_491, %c1_492, %c12_493] : memref<1x16x16xf32, #tpu.memory_space<vmem>>, vector<1x14x1xf32>
    %310 = vector.shape_cast %309 : vector<1x14x1xf32> to vector<14x1xf32>
    %c154_494 = arith.constant 154 : index
    %c4_495 = arith.constant 4 : index
    %311 = vector.load %arg11[%c154_494, %c4_495] : memref<196x9xf32, #tpu.memory_space<vmem>>, vector<14x1xf32>
    tpu.vector_store %arg11[%c154_494, %c4_495], %310 {strides = array<i32>} : memref<196x9xf32, #tpu.memory_space<vmem>>, vector<14x1xf32>,
    %c0_496 = arith.constant 0 : index
    %c2_497 = arith.constant 2 : index
    %c12_498 = arith.constant 12 : index
    %312 = vector.load %arg1[%c0_496, %c2_497, %c12_498] : memref<1x16x16xf32, #tpu.memory_space<vmem>>, vector<1x14x1xf32>
    %313 = vector.shape_cast %312 : vector<1x14x1xf32> to vector<14x1xf32>
    %c154_499 = arith.constant 154 : index
    %c5_500 = arith.constant 5 : index
    %314 = vector.load %arg11[%c154_499, %c5_500] : memref<196x9xf32, #tpu.memory_space<vmem>>, vector<14x1xf32>
    tpu.vector_store %arg11[%c154_499, %c5_500], %313 {strides = array<i32>} : memref<196x9xf32, #tpu.memory_space<vmem>>, vector<14x1xf32>,
    %c0_501 = arith.constant 0 : index
    %c0_502 = arith.constant 0 : index
    %c13 = arith.constant 13 : index
    %315 = vector.load %arg1[%c0_501, %c0_502, %c13] : memref<1x16x16xf32, #tpu.memory_space<vmem>>, vector<1x14x1xf32>
    %316 = vector.shape_cast %315 : vector<1x14x1xf32> to vector<14x1xf32>
    %c154_503 = arith.constant 154 : index
    %c6_504 = arith.constant 6 : index
    %317 = vector.load %arg11[%c154_503, %c6_504] : memref<196x9xf32, #tpu.memory_space<vmem>>, vector<14x1xf32>
    tpu.vector_store %arg11[%c154_503, %c6_504], %316 {strides = array<i32>} : memref<196x9xf32, #tpu.memory_space<vmem>>, vector<14x1xf32>,
    %c0_505 = arith.constant 0 : index
    %c1_506 = arith.constant 1 : index
    %c13_507 = arith.constant 13 : index
    %318 = vector.load %arg1[%c0_505, %c1_506, %c13_507] : memref<1x16x16xf32, #tpu.memory_space<vmem>>, vector<1x14x1xf32>
    %319 = vector.shape_cast %318 : vector<1x14x1xf32> to vector<14x1xf32>
    %c154_508 = arith.constant 154 : index
    %c7_509 = arith.constant 7 : index
    %320 = vector.load %arg11[%c154_508, %c7_509] : memref<196x9xf32, #tpu.memory_space<vmem>>, vector<14x1xf32>
    tpu.vector_store %arg11[%c154_508, %c7_509], %319 {strides = array<i32>} : memref<196x9xf32, #tpu.memory_space<vmem>>, vector<14x1xf32>,
    %c0_510 = arith.constant 0 : index
    %c2_511 = arith.constant 2 : index
    %c13_512 = arith.constant 13 : index
    %321 = vector.load %arg1[%c0_510, %c2_511, %c13_512] : memref<1x16x16xf32, #tpu.memory_space<vmem>>, vector<1x14x1xf32>
    %322 = vector.shape_cast %321 : vector<1x14x1xf32> to vector<14x1xf32>
    %c154_513 = arith.constant 154 : index
    %c8_514 = arith.constant 8 : index
    %323 = vector.load %arg11[%c154_513, %c8_514] : memref<196x9xf32, #tpu.memory_space<vmem>>, vector<14x1xf32>
    tpu.vector_store %arg11[%c154_513, %c8_514], %322 {strides = array<i32>} : memref<196x9xf32, #tpu.memory_space<vmem>>, vector<14x1xf32>,
    %c0_515 = arith.constant 0 : index
    %c0_516 = arith.constant 0 : index
    %c12_517 = arith.constant 12 : index
    %324 = vector.load %arg1[%c0_515, %c0_516, %c12_517] : memref<1x16x16xf32, #tpu.memory_space<vmem>>, vector<1x14x1xf32>
    %325 = vector.shape_cast %324 : vector<1x14x1xf32> to vector<14x1xf32>
    %c168 = arith.constant 168 : index
    %c0_518 = arith.constant 0 : index
    %326 = vector.load %arg11[%c168, %c0_518] : memref<196x9xf32, #tpu.memory_space<vmem>>, vector<14x1xf32>
    tpu.vector_store %arg11[%c168, %c0_518], %325 {strides = array<i32>} : memref<196x9xf32, #tpu.memory_space<vmem>>, vector<14x1xf32>,
    %c0_519 = arith.constant 0 : index
    %c1_520 = arith.constant 1 : index
    %c12_521 = arith.constant 12 : index
    %327 = vector.load %arg1[%c0_519, %c1_520, %c12_521] : memref<1x16x16xf32, #tpu.memory_space<vmem>>, vector<1x14x1xf32>
    %328 = vector.shape_cast %327 : vector<1x14x1xf32> to vector<14x1xf32>
    %c168_522 = arith.constant 168 : index
    %c1_523 = arith.constant 1 : index
    %329 = vector.load %arg11[%c168_522, %c1_523] : memref<196x9xf32, #tpu.memory_space<vmem>>, vector<14x1xf32>
    tpu.vector_store %arg11[%c168_522, %c1_523], %328 {strides = array<i32>} : memref<196x9xf32, #tpu.memory_space<vmem>>, vector<14x1xf32>,
    %c0_524 = arith.constant 0 : index
    %c2_525 = arith.constant 2 : index
    %c12_526 = arith.constant 12 : index
    %330 = vector.load %arg1[%c0_524, %c2_525, %c12_526] : memref<1x16x16xf32, #tpu.memory_space<vmem>>, vector<1x14x1xf32>
    %331 = vector.shape_cast %330 : vector<1x14x1xf32> to vector<14x1xf32>
    %c168_527 = arith.constant 168 : index
    %c2_528 = arith.constant 2 : index
    %332 = vector.load %arg11[%c168_527, %c2_528] : memref<196x9xf32, #tpu.memory_space<vmem>>, vector<14x1xf32>
    tpu.vector_store %arg11[%c168_527, %c2_528], %331 {strides = array<i32>} : memref<196x9xf32, #tpu.memory_space<vmem>>, vector<14x1xf32>,
    %c0_529 = arith.constant 0 : index
    %c0_530 = arith.constant 0 : index
    %c13_531 = arith.constant 13 : index
    %333 = vector.load %arg1[%c0_529, %c0_530, %c13_531] : memref<1x16x16xf32, #tpu.memory_space<vmem>>, vector<1x14x1xf32>
    %334 = vector.shape_cast %333 : vector<1x14x1xf32> to vector<14x1xf32>
    %c168_532 = arith.constant 168 : index
    %c3_533 = arith.constant 3 : index
    %335 = vector.load %arg11[%c168_532, %c3_533] : memref<196x9xf32, #tpu.memory_space<vmem>>, vector<14x1xf32>
    tpu.vector_store %arg11[%c168_532, %c3_533], %334 {strides = array<i32>} : memref<196x9xf32, #tpu.memory_space<vmem>>, vector<14x1xf32>,
    %c0_534 = arith.constant 0 : index
    %c1_535 = arith.constant 1 : index
    %c13_536 = arith.constant 13 : index
    %336 = vector.load %arg1[%c0_534, %c1_535, %c13_536] : memref<1x16x16xf32, #tpu.memory_space<vmem>>, vector<1x14x1xf32>
    %337 = vector.shape_cast %336 : vector<1x14x1xf32> to vector<14x1xf32>
    %c168_537 = arith.constant 168 : index
    %c4_538 = arith.constant 4 : index
    %338 = vector.load %arg11[%c168_537, %c4_538] : memref<196x9xf32, #tpu.memory_space<vmem>>, vector<14x1xf32>
    tpu.vector_store %arg11[%c168_537, %c4_538], %337 {strides = array<i32>} : memref<196x9xf32, #tpu.memory_space<vmem>>, vector<14x1xf32>,
    %c0_539 = arith.constant 0 : index
    %c2_540 = arith.constant 2 : index
    %c13_541 = arith.constant 13 : index
    %339 = vector.load %arg1[%c0_539, %c2_540, %c13_541] : memref<1x16x16xf32, #tpu.memory_space<vmem>>, vector<1x14x1xf32>
    %340 = vector.shape_cast %339 : vector<1x14x1xf32> to vector<14x1xf32>
    %c168_542 = arith.constant 168 : index
    %c5_543 = arith.constant 5 : index
    %341 = vector.load %arg11[%c168_542, %c5_543] : memref<196x9xf32, #tpu.memory_space<vmem>>, vector<14x1xf32>
    tpu.vector_store %arg11[%c168_542, %c5_543], %340 {strides = array<i32>} : memref<196x9xf32, #tpu.memory_space<vmem>>, vector<14x1xf32>,
    %c0_544 = arith.constant 0 : index
    %c0_545 = arith.constant 0 : index
    %c14_546 = arith.constant 14 : index
    %342 = vector.load %arg1[%c0_544, %c0_545, %c14_546] : memref<1x16x16xf32, #tpu.memory_space<vmem>>, vector<1x14x1xf32>
    %343 = vector.shape_cast %342 : vector<1x14x1xf32> to vector<14x1xf32>
    %c168_547 = arith.constant 168 : index
    %c6_548 = arith.constant 6 : index
    %344 = vector.load %arg11[%c168_547, %c6_548] : memref<196x9xf32, #tpu.memory_space<vmem>>, vector<14x1xf32>
    tpu.vector_store %arg11[%c168_547, %c6_548], %343 {strides = array<i32>} : memref<196x9xf32, #tpu.memory_space<vmem>>, vector<14x1xf32>,
    %c0_549 = arith.constant 0 : index
    %c1_550 = arith.constant 1 : index
    %c14_551 = arith.constant 14 : index
    %345 = vector.load %arg1[%c0_549, %c1_550, %c14_551] : memref<1x16x16xf32, #tpu.memory_space<vmem>>, vector<1x14x1xf32>
    %346 = vector.shape_cast %345 : vector<1x14x1xf32> to vector<14x1xf32>
    %c168_552 = arith.constant 168 : index
    %c7_553 = arith.constant 7 : index
    %347 = vector.load %arg11[%c168_552, %c7_553] : memref<196x9xf32, #tpu.memory_space<vmem>>, vector<14x1xf32>
    tpu.vector_store %arg11[%c168_552, %c7_553], %346 {strides = array<i32>} : memref<196x9xf32, #tpu.memory_space<vmem>>, vector<14x1xf32>,
    %c0_554 = arith.constant 0 : index
    %c2_555 = arith.constant 2 : index
    %c14_556 = arith.constant 14 : index
    %348 = vector.load %arg1[%c0_554, %c2_555, %c14_556] : memref<1x16x16xf32, #tpu.memory_space<vmem>>, vector<1x14x1xf32>
    %349 = vector.shape_cast %348 : vector<1x14x1xf32> to vector<14x1xf32>
    %c168_557 = arith.constant 168 : index
    %c8_558 = arith.constant 8 : index
    %350 = vector.load %arg11[%c168_557, %c8_558] : memref<196x9xf32, #tpu.memory_space<vmem>>, vector<14x1xf32>
    tpu.vector_store %arg11[%c168_557, %c8_558], %349 {strides = array<i32>} : memref<196x9xf32, #tpu.memory_space<vmem>>, vector<14x1xf32>,
    %c0_559 = arith.constant 0 : index
    %c0_560 = arith.constant 0 : index
    %c13_561 = arith.constant 13 : index
    %351 = vector.load %arg1[%c0_559, %c0_560, %c13_561] : memref<1x16x16xf32, #tpu.memory_space<vmem>>, vector<1x14x1xf32>
    %352 = vector.shape_cast %351 : vector<1x14x1xf32> to vector<14x1xf32>
    %c182 = arith.constant 182 : index
    %c0_562 = arith.constant 0 : index
    %353 = vector.load %arg11[%c182, %c0_562] : memref<196x9xf32, #tpu.memory_space<vmem>>, vector<14x1xf32>
    tpu.vector_store %arg11[%c182, %c0_562], %352 {strides = array<i32>} : memref<196x9xf32, #tpu.memory_space<vmem>>, vector<14x1xf32>,
    %c0_563 = arith.constant 0 : index
    %c1_564 = arith.constant 1 : index
    %c13_565 = arith.constant 13 : index
    %354 = vector.load %arg1[%c0_563, %c1_564, %c13_565] : memref<1x16x16xf32, #tpu.memory_space<vmem>>, vector<1x14x1xf32>
    %355 = vector.shape_cast %354 : vector<1x14x1xf32> to vector<14x1xf32>
    %c182_566 = arith.constant 182 : index
    %c1_567 = arith.constant 1 : index
    %356 = vector.load %arg11[%c182_566, %c1_567] : memref<196x9xf32, #tpu.memory_space<vmem>>, vector<14x1xf32>
    tpu.vector_store %arg11[%c182_566, %c1_567], %355 {strides = array<i32>} : memref<196x9xf32, #tpu.memory_space<vmem>>, vector<14x1xf32>,
    %c0_568 = arith.constant 0 : index
    %c2_569 = arith.constant 2 : index
    %c13_570 = arith.constant 13 : index
    %357 = vector.load %arg1[%c0_568, %c2_569, %c13_570] : memref<1x16x16xf32, #tpu.memory_space<vmem>>, vector<1x14x1xf32>
    %358 = vector.shape_cast %357 : vector<1x14x1xf32> to vector<14x1xf32>
    %c182_571 = arith.constant 182 : index
    %c2_572 = arith.constant 2 : index
    %359 = vector.load %arg11[%c182_571, %c2_572] : memref<196x9xf32, #tpu.memory_space<vmem>>, vector<14x1xf32>
    tpu.vector_store %arg11[%c182_571, %c2_572], %358 {strides = array<i32>} : memref<196x9xf32, #tpu.memory_space<vmem>>, vector<14x1xf32>,
    %c0_573 = arith.constant 0 : index
    %c0_574 = arith.constant 0 : index
    %c14_575 = arith.constant 14 : index
    %360 = vector.load %arg1[%c0_573, %c0_574, %c14_575] : memref<1x16x16xf32, #tpu.memory_space<vmem>>, vector<1x14x1xf32>
    %361 = vector.shape_cast %360 : vector<1x14x1xf32> to vector<14x1xf32>
    %c182_576 = arith.constant 182 : index
    %c3_577 = arith.constant 3 : index
    %362 = vector.load %arg11[%c182_576, %c3_577] : memref<196x9xf32, #tpu.memory_space<vmem>>, vector<14x1xf32>
    tpu.vector_store %arg11[%c182_576, %c3_577], %361 {strides = array<i32>} : memref<196x9xf32, #tpu.memory_space<vmem>>, vector<14x1xf32>,
    %c0_578 = arith.constant 0 : index
    %c1_579 = arith.constant 1 : index
    %c14_580 = arith.constant 14 : index
    %363 = vector.load %arg1[%c0_578, %c1_579, %c14_580] : memref<1x16x16xf32, #tpu.memory_space<vmem>>, vector<1x14x1xf32>
    %364 = vector.shape_cast %363 : vector<1x14x1xf32> to vector<14x1xf32>
    %c182_581 = arith.constant 182 : index
    %c4_582 = arith.constant 4 : index
    %365 = vector.load %arg11[%c182_581, %c4_582] : memref<196x9xf32, #tpu.memory_space<vmem>>, vector<14x1xf32>
    tpu.vector_store %arg11[%c182_581, %c4_582], %364 {strides = array<i32>} : memref<196x9xf32, #tpu.memory_space<vmem>>, vector<14x1xf32>,
    %c0_583 = arith.constant 0 : index
    %c2_584 = arith.constant 2 : index
    %c14_585 = arith.constant 14 : index
    %366 = vector.load %arg1[%c0_583, %c2_584, %c14_585] : memref<1x16x16xf32, #tpu.memory_space<vmem>>, vector<1x14x1xf32>
    %367 = vector.shape_cast %366 : vector<1x14x1xf32> to vector<14x1xf32>
    %c182_586 = arith.constant 182 : index
    %c5_587 = arith.constant 5 : index
    %368 = vector.load %arg11[%c182_586, %c5_587] : memref<196x9xf32, #tpu.memory_space<vmem>>, vector<14x1xf32>
    tpu.vector_store %arg11[%c182_586, %c5_587], %367 {strides = array<i32>} : memref<196x9xf32, #tpu.memory_space<vmem>>, vector<14x1xf32>,
    %c0_588 = arith.constant 0 : index
    %c0_589 = arith.constant 0 : index
    %c15 = arith.constant 15 : index
    %369 = vector.load %arg1[%c0_588, %c0_589, %c15] : memref<1x16x16xf32, #tpu.memory_space<vmem>>, vector<1x14x1xf32>
    %370 = vector.shape_cast %369 : vector<1x14x1xf32> to vector<14x1xf32>
    %c182_590 = arith.constant 182 : index
    %c6_591 = arith.constant 6 : index
    %371 = vector.load %arg11[%c182_590, %c6_591] : memref<196x9xf32, #tpu.memory_space<vmem>>, vector<14x1xf32>
    tpu.vector_store %arg11[%c182_590, %c6_591], %370 {strides = array<i32>} : memref<196x9xf32, #tpu.memory_space<vmem>>, vector<14x1xf32>,
    %c0_592 = arith.constant 0 : index
    %c1_593 = arith.constant 1 : index
    %c15_594 = arith.constant 15 : index
    %372 = vector.load %arg1[%c0_592, %c1_593, %c15_594] : memref<1x16x16xf32, #tpu.memory_space<vmem>>, vector<1x14x1xf32>
    %373 = vector.shape_cast %372 : vector<1x14x1xf32> to vector<14x1xf32>
    %c182_595 = arith.constant 182 : index
    %c7_596 = arith.constant 7 : index
    %374 = vector.load %arg11[%c182_595, %c7_596] : memref<196x9xf32, #tpu.memory_space<vmem>>, vector<14x1xf32>
    tpu.vector_store %arg11[%c182_595, %c7_596], %373 {strides = array<i32>} : memref<196x9xf32, #tpu.memory_space<vmem>>, vector<14x1xf32>,
    %c0_597 = arith.constant 0 : index
    %c2_598 = arith.constant 2 : index
    %c15_599 = arith.constant 15 : index
    %375 = vector.load %arg1[%c0_597, %c2_598, %c15_599] : memref<1x16x16xf32, #tpu.memory_space<vmem>>, vector<1x14x1xf32>
    %376 = vector.shape_cast %375 : vector<1x14x1xf32> to vector<14x1xf32>
    %c182_600 = arith.constant 182 : index
    %c8_601 = arith.constant 8 : index
    %377 = vector.load %arg11[%c182_600, %c8_601] : memref<196x9xf32, #tpu.memory_space<vmem>>, vector<14x1xf32>
    tpu.vector_store %arg11[%c182_600, %c8_601], %376 {strides = array<i32>} : memref<196x9xf32, #tpu.memory_space<vmem>>, vector<14x1xf32>,
    %c0_602 = arith.constant 0 : index
    %c0_603 = arith.constant 0 : index
    %378 = vector.load %arg11[%c0_602, %c0_603] : memref<196x9xf32, #tpu.memory_space<vmem>>, vector<196x9xf32>
    %c0_604 = arith.constant 0 : index
    %c0_605 = arith.constant 0 : index
    %379 = vector.load %arg2[%c0_604, %c0_605] : memref<9x32xf32, #tpu.memory_space<vmem>>, vector<9x32xf32>
    %cst = arith.constant dense<0.000000e+00> : vector<196x32xf32>
    %380 = tpu.matmul %378, %379, %cst {dimension_numbers = #tpu.dot_dimension_numbers<[1], [0], [0], [1], [0, 0, 1, 1], [], []>} : vector<196x9xf32>, vector<9x32xf32>, vector<196x32xf32> -> vector<196x32xf32>
    %c0_606 = arith.constant 0 : index
    %c0_607 = arith.constant 0 : index
    %381 = vector.load %arg3[%c0_606, %c0_607] : memref<1x32xf32, #tpu.memory_space<vmem>>, vector<1x32xf32>
    %382 = vector.broadcast %381 : vector<1x32xf32> to vector<196x32xf32>
    %383 = arith.addf %380, %382 : vector<196x32xf32>
    %cst_608 = arith.constant 0.000000e+00 : f32
    %384 = vector.broadcast %cst_608 : f32 to vector<196x32xf32>
    %385 = arith.maximumf %383, %384 : vector<196x32xf32>
    %c0_609 = arith.constant 0 : index
    %c0_610 = arith.constant 0 : index
    %386 = vector.load %arg12[%c0_609, %c0_610] : memref<196x32xf32, #tpu.memory_space<vmem>>, vector<196x32xf32>
    tpu.vector_store %arg12[%c0_609, %c0_610], %385 {strides = array<i32>} : memref<196x32xf32, #tpu.memory_space<vmem>>, vector<196x32xf32>,
    %c0_611 = arith.constant 0 : index
    %c0_612 = arith.constant 0 : index
    %387 = vector.load %arg12[%c0_611, %c0_612] : memref<196x32xf32, #tpu.memory_space<vmem>>, vector<14x32xf32>
    %c14_613 = arith.constant 14 : index
    %c0_614 = arith.constant 0 : index
    %388 = vector.load %arg12[%c14_613, %c0_614] : memref<196x32xf32, #tpu.memory_space<vmem>>, vector<14x32xf32>
    %389 = arith.maximumf %387, %388 : vector<14x32xf32>
    %390 = vector.extract_strided_slice %389 {offsets = [0, 0], sizes = [1, 32], strides = [1, 1]} : vector<14x32xf32> to vector<1x32xf32>
    %391 = vector.extract_strided_slice %389 {offsets = [1, 0], sizes = [1, 32], strides = [1, 1]} : vector<14x32xf32> to vector<1x32xf32>
    %392 = arith.maximumf %390, %391 : vector<1x32xf32>
    %c0_615 = arith.constant 0 : index
    %c0_616 = arith.constant 0 : index
    %393 = vector.load %arg13[%c0_615, %c0_616] : memref<49x32xf32, #tpu.memory_space<vmem>>, vector<1x32xf32>
    tpu.vector_store %arg13[%c0_615, %c0_616], %392 {strides = array<i32>} : memref<49x32xf32, #tpu.memory_space<vmem>>, vector<1x32xf32>,
    %394 = vector.extract_strided_slice %389 {offsets = [2, 0], sizes = [1, 32], strides = [1, 1]} : vector<14x32xf32> to vector<1x32xf32>
    %395 = vector.extract_strided_slice %389 {offsets = [3, 0], sizes = [1, 32], strides = [1, 1]} : vector<14x32xf32> to vector<1x32xf32>
    %396 = arith.maximumf %394, %395 : vector<1x32xf32>
    %c1_617 = arith.constant 1 : index
    %c0_618 = arith.constant 0 : index
    %397 = vector.load %arg13[%c1_617, %c0_618] : memref<49x32xf32, #tpu.memory_space<vmem>>, vector<1x32xf32>
    tpu.vector_store %arg13[%c1_617, %c0_618], %396 {strides = array<i32>} : memref<49x32xf32, #tpu.memory_space<vmem>>, vector<1x32xf32>,
    %398 = vector.extract_strided_slice %389 {offsets = [4, 0], sizes = [1, 32], strides = [1, 1]} : vector<14x32xf32> to vector<1x32xf32>
    %399 = vector.extract_strided_slice %389 {offsets = [5, 0], sizes = [1, 32], strides = [1, 1]} : vector<14x32xf32> to vector<1x32xf32>
    %400 = arith.maximumf %398, %399 : vector<1x32xf32>
    %c2_619 = arith.constant 2 : index
    %c0_620 = arith.constant 0 : index
    %401 = vector.load %arg13[%c2_619, %c0_620] : memref<49x32xf32, #tpu.memory_space<vmem>>, vector<1x32xf32>
    tpu.vector_store %arg13[%c2_619, %c0_620], %400 {strides = array<i32>} : memref<49x32xf32, #tpu.memory_space<vmem>>, vector<1x32xf32>,
    %402 = vector.extract_strided_slice %389 {offsets = [6, 0], sizes = [1, 32], strides = [1, 1]} : vector<14x32xf32> to vector<1x32xf32>
    %403 = vector.extract_strided_slice %389 {offsets = [7, 0], sizes = [1, 32], strides = [1, 1]} : vector<14x32xf32> to vector<1x32xf32>
    %404 = arith.maximumf %402, %403 : vector<1x32xf32>
    %c3_621 = arith.constant 3 : index
    %c0_622 = arith.constant 0 : index
    %405 = vector.load %arg13[%c3_621, %c0_622] : memref<49x32xf32, #tpu.memory_space<vmem>>, vector<1x32xf32>
    tpu.vector_store %arg13[%c3_621, %c0_622], %404 {strides = array<i32>} : memref<49x32xf32, #tpu.memory_space<vmem>>, vector<1x32xf32>,
    %406 = vector.extract_strided_slice %389 {offsets = [8, 0], sizes = [1, 32], strides = [1, 1]} : vector<14x32xf32> to vector<1x32xf32>
    %407 = vector.extract_strided_slice %389 {offsets = [9, 0], sizes = [1, 32], strides = [1, 1]} : vector<14x32xf32> to vector<1x32xf32>
    %408 = arith.maximumf %406, %407 : vector<1x32xf32>
    %c4_623 = arith.constant 4 : index
    %c0_624 = arith.constant 0 : index
    %409 = vector.load %arg13[%c4_623, %c0_624] : memref<49x32xf32, #tpu.memory_space<vmem>>, vector<1x32xf32>
    tpu.vector_store %arg13[%c4_623, %c0_624], %408 {strides = array<i32>} : memref<49x32xf32, #tpu.memory_space<vmem>>, vector<1x32xf32>,
    %410 = vector.extract_strided_slice %389 {offsets = [10, 0], sizes = [1, 32], strides = [1, 1]} : vector<14x32xf32> to vector<1x32xf32>
    %411 = vector.extract_strided_slice %389 {offsets = [11, 0], sizes = [1, 32], strides = [1, 1]} : vector<14x32xf32> to vector<1x32xf32>
    %412 = arith.maximumf %410, %411 : vector<1x32xf32>
    %c5_625 = arith.constant 5 : index
    %c0_626 = arith.constant 0 : index
    %413 = vector.load %arg13[%c5_625, %c0_626] : memref<49x32xf32, #tpu.memory_space<vmem>>, vector<1x32xf32>
    tpu.vector_store %arg13[%c5_625, %c0_626], %412 {strides = array<i32>} : memref<49x32xf32, #tpu.memory_space<vmem>>, vector<1x32xf32>,
    %414 = vector.extract_strided_slice %389 {offsets = [12, 0], sizes = [1, 32], strides = [1, 1]} : vector<14x32xf32> to vector<1x32xf32>
    %415 = vector.extract_strided_slice %389 {offsets = [13, 0], sizes = [1, 32], strides = [1, 1]} : vector<14x32xf32> to vector<1x32xf32>
    %416 = arith.maximumf %414, %415 : vector<1x32xf32>
    %c6_627 = arith.constant 6 : index
    %c0_628 = arith.constant 0 : index
    %417 = vector.load %arg13[%c6_627, %c0_628] : memref<49x32xf32, #tpu.memory_space<vmem>>, vector<1x32xf32>
    tpu.vector_store %arg13[%c6_627, %c0_628], %416 {strides = array<i32>} : memref<49x32xf32, #tpu.memory_space<vmem>>, vector<1x32xf32>,
    %c28_629 = arith.constant 28 : index
    %c0_630 = arith.constant 0 : index
    %418 = vector.load %arg12[%c28_629, %c0_630] : memref<196x32xf32, #tpu.memory_space<vmem>>, vector<14x32xf32>
    %c42_631 = arith.constant 42 : index
    %c0_632 = arith.constant 0 : index
    %419 = vector.load %arg12[%c42_631, %c0_632] : memref<196x32xf32, #tpu.memory_space<vmem>>, vector<14x32xf32>
    %420 = arith.maximumf %418, %419 : vector<14x32xf32>
    %421 = vector.extract_strided_slice %420 {offsets = [0, 0], sizes = [1, 32], strides = [1, 1]} : vector<14x32xf32> to vector<1x32xf32>
    %422 = vector.extract_strided_slice %420 {offsets = [1, 0], sizes = [1, 32], strides = [1, 1]} : vector<14x32xf32> to vector<1x32xf32>
    %423 = arith.maximumf %421, %422 : vector<1x32xf32>
    %c7_633 = arith.constant 7 : index
    %c0_634 = arith.constant 0 : index
    %424 = vector.load %arg13[%c7_633, %c0_634] : memref<49x32xf32, #tpu.memory_space<vmem>>, vector<1x32xf32>
    tpu.vector_store %arg13[%c7_633, %c0_634], %423 {strides = array<i32>} : memref<49x32xf32, #tpu.memory_space<vmem>>, vector<1x32xf32>,
    %425 = vector.extract_strided_slice %420 {offsets = [2, 0], sizes = [1, 32], strides = [1, 1]} : vector<14x32xf32> to vector<1x32xf32>
    %426 = vector.extract_strided_slice %420 {offsets = [3, 0], sizes = [1, 32], strides = [1, 1]} : vector<14x32xf32> to vector<1x32xf32>
    %427 = arith.maximumf %425, %426 : vector<1x32xf32>
    %c8_635 = arith.constant 8 : index
    %c0_636 = arith.constant 0 : index
    %428 = vector.load %arg13[%c8_635, %c0_636] : memref<49x32xf32, #tpu.memory_space<vmem>>, vector<1x32xf32>
    tpu.vector_store %arg13[%c8_635, %c0_636], %427 {strides = array<i32>} : memref<49x32xf32, #tpu.memory_space<vmem>>, vector<1x32xf32>,
    %429 = vector.extract_strided_slice %420 {offsets = [4, 0], sizes = [1, 32], strides = [1, 1]} : vector<14x32xf32> to vector<1x32xf32>
    %430 = vector.extract_strided_slice %420 {offsets = [5, 0], sizes = [1, 32], strides = [1, 1]} : vector<14x32xf32> to vector<1x32xf32>
    %431 = arith.maximumf %429, %430 : vector<1x32xf32>
    %c9_637 = arith.constant 9 : index
    %c0_638 = arith.constant 0 : index
    %432 = vector.load %arg13[%c9_637, %c0_638] : memref<49x32xf32, #tpu.memory_space<vmem>>, vector<1x32xf32>
    tpu.vector_store %arg13[%c9_637, %c0_638], %431 {strides = array<i32>} : memref<49x32xf32, #tpu.memory_space<vmem>>, vector<1x32xf32>,
    %433 = vector.extract_strided_slice %420 {offsets = [6, 0], sizes = [1, 32], strides = [1, 1]} : vector<14x32xf32> to vector<1x32xf32>
    %434 = vector.extract_strided_slice %420 {offsets = [7, 0], sizes = [1, 32], strides = [1, 1]} : vector<14x32xf32> to vector<1x32xf32>
    %435 = arith.maximumf %433, %434 : vector<1x32xf32>
    %c10_639 = arith.constant 10 : index
    %c0_640 = arith.constant 0 : index
    %436 = vector.load %arg13[%c10_639, %c0_640] : memref<49x32xf32, #tpu.memory_space<vmem>>, vector<1x32xf32>
    tpu.vector_store %arg13[%c10_639, %c0_640], %435 {strides = array<i32>} : memref<49x32xf32, #tpu.memory_space<vmem>>, vector<1x32xf32>,
    %437 = vector.extract_strided_slice %420 {offsets = [8, 0], sizes = [1, 32], strides = [1, 1]} : vector<14x32xf32> to vector<1x32xf32>
    %438 = vector.extract_strided_slice %420 {offsets = [9, 0], sizes = [1, 32], strides = [1, 1]} : vector<14x32xf32> to vector<1x32xf32>
    %439 = arith.maximumf %437, %438 : vector<1x32xf32>
    %c11_641 = arith.constant 11 : index
    %c0_642 = arith.constant 0 : index
    %440 = vector.load %arg13[%c11_641, %c0_642] : memref<49x32xf32, #tpu.memory_space<vmem>>, vector<1x32xf32>
    tpu.vector_store %arg13[%c11_641, %c0_642], %439 {strides = array<i32>} : memref<49x32xf32, #tpu.memory_space<vmem>>, vector<1x32xf32>,
    %441 = vector.extract_strided_slice %420 {offsets = [10, 0], sizes = [1, 32], strides = [1, 1]} : vector<14x32xf32> to vector<1x32xf32>
    %442 = vector.extract_strided_slice %420 {offsets = [11, 0], sizes = [1, 32], strides = [1, 1]} : vector<14x32xf32> to vector<1x32xf32>
    %443 = arith.maximumf %441, %442 : vector<1x32xf32>
    %c12_643 = arith.constant 12 : index
    %c0_644 = arith.constant 0 : index
    %444 = vector.load %arg13[%c12_643, %c0_644] : memref<49x32xf32, #tpu.memory_space<vmem>>, vector<1x32xf32>
    tpu.vector_store %arg13[%c12_643, %c0_644], %443 {strides = array<i32>} : memref<49x32xf32, #tpu.memory_space<vmem>>, vector<1x32xf32>,
    %445 = vector.extract_strided_slice %420 {offsets = [12, 0], sizes = [1, 32], strides = [1, 1]} : vector<14x32xf32> to vector<1x32xf32>
    %446 = vector.extract_strided_slice %420 {offsets = [13, 0], sizes = [1, 32], strides = [1, 1]} : vector<14x32xf32> to vector<1x32xf32>
    %447 = arith.maximumf %445, %446 : vector<1x32xf32>
    %c13_645 = arith.constant 13 : index
    %c0_646 = arith.constant 0 : index
    %448 = vector.load %arg13[%c13_645, %c0_646] : memref<49x32xf32, #tpu.memory_space<vmem>>, vector<1x32xf32>
    tpu.vector_store %arg13[%c13_645, %c0_646], %447 {strides = array<i32>} : memref<49x32xf32, #tpu.memory_space<vmem>>, vector<1x32xf32>,
    %c56_647 = arith.constant 56 : index
    %c0_648 = arith.constant 0 : index
    %449 = vector.load %arg12[%c56_647, %c0_648] : memref<196x32xf32, #tpu.memory_space<vmem>>, vector<14x32xf32>
    %c70_649 = arith.constant 70 : index
    %c0_650 = arith.constant 0 : index
    %450 = vector.load %arg12[%c70_649, %c0_650] : memref<196x32xf32, #tpu.memory_space<vmem>>, vector<14x32xf32>
    %451 = arith.maximumf %449, %450 : vector<14x32xf32>
    %452 = vector.extract_strided_slice %451 {offsets = [0, 0], sizes = [1, 32], strides = [1, 1]} : vector<14x32xf32> to vector<1x32xf32>
    %453 = vector.extract_strided_slice %451 {offsets = [1, 0], sizes = [1, 32], strides = [1, 1]} : vector<14x32xf32> to vector<1x32xf32>
    %454 = arith.maximumf %452, %453 : vector<1x32xf32>
    %c14_651 = arith.constant 14 : index
    %c0_652 = arith.constant 0 : index
    %455 = vector.load %arg13[%c14_651, %c0_652] : memref<49x32xf32, #tpu.memory_space<vmem>>, vector<1x32xf32>
    tpu.vector_store %arg13[%c14_651, %c0_652], %454 {strides = array<i32>} : memref<49x32xf32, #tpu.memory_space<vmem>>, vector<1x32xf32>,
    %456 = vector.extract_strided_slice %451 {offsets = [2, 0], sizes = [1, 32], strides = [1, 1]} : vector<14x32xf32> to vector<1x32xf32>
    %457 = vector.extract_strided_slice %451 {offsets = [3, 0], sizes = [1, 32], strides = [1, 1]} : vector<14x32xf32> to vector<1x32xf32>
    %458 = arith.maximumf %456, %457 : vector<1x32xf32>
    %c15_653 = arith.constant 15 : index
    %c0_654 = arith.constant 0 : index
    %459 = vector.load %arg13[%c15_653, %c0_654] : memref<49x32xf32, #tpu.memory_space<vmem>>, vector<1x32xf32>
    tpu.vector_store %arg13[%c15_653, %c0_654], %458 {strides = array<i32>} : memref<49x32xf32, #tpu.memory_space<vmem>>, vector<1x32xf32>,
    %460 = vector.extract_strided_slice %451 {offsets = [4, 0], sizes = [1, 32], strides = [1, 1]} : vector<14x32xf32> to vector<1x32xf32>
    %461 = vector.extract_strided_slice %451 {offsets = [5, 0], sizes = [1, 32], strides = [1, 1]} : vector<14x32xf32> to vector<1x32xf32>
    %462 = arith.maximumf %460, %461 : vector<1x32xf32>
    %c16 = arith.constant 16 : index
    %c0_655 = arith.constant 0 : index
    %463 = vector.load %arg13[%c16, %c0_655] : memref<49x32xf32, #tpu.memory_space<vmem>>, vector<1x32xf32>
    tpu.vector_store %arg13[%c16, %c0_655], %462 {strides = array<i32>} : memref<49x32xf32, #tpu.memory_space<vmem>>, vector<1x32xf32>,
    %464 = vector.extract_strided_slice %451 {offsets = [6, 0], sizes = [1, 32], strides = [1, 1]} : vector<14x32xf32> to vector<1x32xf32>
    %465 = vector.extract_strided_slice %451 {offsets = [7, 0], sizes = [1, 32], strides = [1, 1]} : vector<14x32xf32> to vector<1x32xf32>
    %466 = arith.maximumf %464, %465 : vector<1x32xf32>
    %c17 = arith.constant 17 : index
    %c0_656 = arith.constant 0 : index
    %467 = vector.load %arg13[%c17, %c0_656] : memref<49x32xf32, #tpu.memory_space<vmem>>, vector<1x32xf32>
    tpu.vector_store %arg13[%c17, %c0_656], %466 {strides = array<i32>} : memref<49x32xf32, #tpu.memory_space<vmem>>, vector<1x32xf32>,
    %468 = vector.extract_strided_slice %451 {offsets = [8, 0], sizes = [1, 32], strides = [1, 1]} : vector<14x32xf32> to vector<1x32xf32>
    %469 = vector.extract_strided_slice %451 {offsets = [9, 0], sizes = [1, 32], strides = [1, 1]} : vector<14x32xf32> to vector<1x32xf32>
    %470 = arith.maximumf %468, %469 : vector<1x32xf32>
    %c18 = arith.constant 18 : index
    %c0_657 = arith.constant 0 : index
    %471 = vector.load %arg13[%c18, %c0_657] : memref<49x32xf32, #tpu.memory_space<vmem>>, vector<1x32xf32>
    tpu.vector_store %arg13[%c18, %c0_657], %470 {strides = array<i32>} : memref<49x32xf32, #tpu.memory_space<vmem>>, vector<1x32xf32>,
    %472 = vector.extract_strided_slice %451 {offsets = [10, 0], sizes = [1, 32], strides = [1, 1]} : vector<14x32xf32> to vector<1x32xf32>
    %473 = vector.extract_strided_slice %451 {offsets = [11, 0], sizes = [1, 32], strides = [1, 1]} : vector<14x32xf32> to vector<1x32xf32>
    %474 = arith.maximumf %472, %473 : vector<1x32xf32>
    %c19 = arith.constant 19 : index
    %c0_658 = arith.constant 0 : index
    %475 = vector.load %arg13[%c19, %c0_658] : memref<49x32xf32, #tpu.memory_space<vmem>>, vector<1x32xf32>
    tpu.vector_store %arg13[%c19, %c0_658], %474 {strides = array<i32>} : memref<49x32xf32, #tpu.memory_space<vmem>>, vector<1x32xf32>,
    %476 = vector.extract_strided_slice %451 {offsets = [12, 0], sizes = [1, 32], strides = [1, 1]} : vector<14x32xf32> to vector<1x32xf32>
    %477 = vector.extract_strided_slice %451 {offsets = [13, 0], sizes = [1, 32], strides = [1, 1]} : vector<14x32xf32> to vector<1x32xf32>
    %478 = arith.maximumf %476, %477 : vector<1x32xf32>
    %c20 = arith.constant 20 : index
    %c0_659 = arith.constant 0 : index
    %479 = vector.load %arg13[%c20, %c0_659] : memref<49x32xf32, #tpu.memory_space<vmem>>, vector<1x32xf32>
    tpu.vector_store %arg13[%c20, %c0_659], %478 {strides = array<i32>} : memref<49x32xf32, #tpu.memory_space<vmem>>, vector<1x32xf32>,
    %c84_660 = arith.constant 84 : index
    %c0_661 = arith.constant 0 : index
    %480 = vector.load %arg12[%c84_660, %c0_661] : memref<196x32xf32, #tpu.memory_space<vmem>>, vector<14x32xf32>
    %c98_662 = arith.constant 98 : index
    %c0_663 = arith.constant 0 : index
    %481 = vector.load %arg12[%c98_662, %c0_663] : memref<196x32xf32, #tpu.memory_space<vmem>>, vector<14x32xf32>
    %482 = arith.maximumf %480, %481 : vector<14x32xf32>
    %483 = vector.extract_strided_slice %482 {offsets = [0, 0], sizes = [1, 32], strides = [1, 1]} : vector<14x32xf32> to vector<1x32xf32>
    %484 = vector.extract_strided_slice %482 {offsets = [1, 0], sizes = [1, 32], strides = [1, 1]} : vector<14x32xf32> to vector<1x32xf32>
    %485 = arith.maximumf %483, %484 : vector<1x32xf32>
    %c21 = arith.constant 21 : index
    %c0_664 = arith.constant 0 : index
    %486 = vector.load %arg13[%c21, %c0_664] : memref<49x32xf32, #tpu.memory_space<vmem>>, vector<1x32xf32>
    tpu.vector_store %arg13[%c21, %c0_664], %485 {strides = array<i32>} : memref<49x32xf32, #tpu.memory_space<vmem>>, vector<1x32xf32>,
    %487 = vector.extract_strided_slice %482 {offsets = [2, 0], sizes = [1, 32], strides = [1, 1]} : vector<14x32xf32> to vector<1x32xf32>
    %488 = vector.extract_strided_slice %482 {offsets = [3, 0], sizes = [1, 32], strides = [1, 1]} : vector<14x32xf32> to vector<1x32xf32>
    %489 = arith.maximumf %487, %488 : vector<1x32xf32>
    %c22 = arith.constant 22 : index
    %c0_665 = arith.constant 0 : index
    %490 = vector.load %arg13[%c22, %c0_665] : memref<49x32xf32, #tpu.memory_space<vmem>>, vector<1x32xf32>
    tpu.vector_store %arg13[%c22, %c0_665], %489 {strides = array<i32>} : memref<49x32xf32, #tpu.memory_space<vmem>>, vector<1x32xf32>,
    %491 = vector.extract_strided_slice %482 {offsets = [4, 0], sizes = [1, 32], strides = [1, 1]} : vector<14x32xf32> to vector<1x32xf32>
    %492 = vector.extract_strided_slice %482 {offsets = [5, 0], sizes = [1, 32], strides = [1, 1]} : vector<14x32xf32> to vector<1x32xf32>
    %493 = arith.maximumf %491, %492 : vector<1x32xf32>
    %c23 = arith.constant 23 : index
    %c0_666 = arith.constant 0 : index
    %494 = vector.load %arg13[%c23, %c0_666] : memref<49x32xf32, #tpu.memory_space<vmem>>, vector<1x32xf32>
    tpu.vector_store %arg13[%c23, %c0_666], %493 {strides = array<i32>} : memref<49x32xf32, #tpu.memory_space<vmem>>, vector<1x32xf32>,
    %495 = vector.extract_strided_slice %482 {offsets = [6, 0], sizes = [1, 32], strides = [1, 1]} : vector<14x32xf32> to vector<1x32xf32>
    %496 = vector.extract_strided_slice %482 {offsets = [7, 0], sizes = [1, 32], strides = [1, 1]} : vector<14x32xf32> to vector<1x32xf32>
    %497 = arith.maximumf %495, %496 : vector<1x32xf32>
    %c24 = arith.constant 24 : index
    %c0_667 = arith.constant 0 : index
    %498 = vector.load %arg13[%c24, %c0_667] : memref<49x32xf32, #tpu.memory_space<vmem>>, vector<1x32xf32>
    tpu.vector_store %arg13[%c24, %c0_667], %497 {strides = array<i32>} : memref<49x32xf32, #tpu.memory_space<vmem>>, vector<1x32xf32>,
    %499 = vector.extract_strided_slice %482 {offsets = [8, 0], sizes = [1, 32], strides = [1, 1]} : vector<14x32xf32> to vector<1x32xf32>
    %500 = vector.extract_strided_slice %482 {offsets = [9, 0], sizes = [1, 32], strides = [1, 1]} : vector<14x32xf32> to vector<1x32xf32>
    %501 = arith.maximumf %499, %500 : vector<1x32xf32>
    %c25 = arith.constant 25 : index
    %c0_668 = arith.constant 0 : index
    %502 = vector.load %arg13[%c25, %c0_668] : memref<49x32xf32, #tpu.memory_space<vmem>>, vector<1x32xf32>
    tpu.vector_store %arg13[%c25, %c0_668], %501 {strides = array<i32>} : memref<49x32xf32, #tpu.memory_space<vmem>>, vector<1x32xf32>,
    %503 = vector.extract_strided_slice %482 {offsets = [10, 0], sizes = [1, 32], strides = [1, 1]} : vector<14x32xf32> to vector<1x32xf32>
    %504 = vector.extract_strided_slice %482 {offsets = [11, 0], sizes = [1, 32], strides = [1, 1]} : vector<14x32xf32> to vector<1x32xf32>
    %505 = arith.maximumf %503, %504 : vector<1x32xf32>
    %c26 = arith.constant 26 : index
    %c0_669 = arith.constant 0 : index
    %506 = vector.load %arg13[%c26, %c0_669] : memref<49x32xf32, #tpu.memory_space<vmem>>, vector<1x32xf32>
    tpu.vector_store %arg13[%c26, %c0_669], %505 {strides = array<i32>} : memref<49x32xf32, #tpu.memory_space<vmem>>, vector<1x32xf32>,
    %507 = vector.extract_strided_slice %482 {offsets = [12, 0], sizes = [1, 32], strides = [1, 1]} : vector<14x32xf32> to vector<1x32xf32>
    %508 = vector.extract_strided_slice %482 {offsets = [13, 0], sizes = [1, 32], strides = [1, 1]} : vector<14x32xf32> to vector<1x32xf32>
    %509 = arith.maximumf %507, %508 : vector<1x32xf32>
    %c27 = arith.constant 27 : index
    %c0_670 = arith.constant 0 : index
    %510 = vector.load %arg13[%c27, %c0_670] : memref<49x32xf32, #tpu.memory_space<vmem>>, vector<1x32xf32>
    tpu.vector_store %arg13[%c27, %c0_670], %509 {strides = array<i32>} : memref<49x32xf32, #tpu.memory_space<vmem>>, vector<1x32xf32>,
    %c112_671 = arith.constant 112 : index
    %c0_672 = arith.constant 0 : index
    %511 = vector.load %arg12[%c112_671, %c0_672] : memref<196x32xf32, #tpu.memory_space<vmem>>, vector<14x32xf32>
    %c126_673 = arith.constant 126 : index
    %c0_674 = arith.constant 0 : index
    %512 = vector.load %arg12[%c126_673, %c0_674] : memref<196x32xf32, #tpu.memory_space<vmem>>, vector<14x32xf32>
    %513 = arith.maximumf %511, %512 : vector<14x32xf32>
    %514 = vector.extract_strided_slice %513 {offsets = [0, 0], sizes = [1, 32], strides = [1, 1]} : vector<14x32xf32> to vector<1x32xf32>
    %515 = vector.extract_strided_slice %513 {offsets = [1, 0], sizes = [1, 32], strides = [1, 1]} : vector<14x32xf32> to vector<1x32xf32>
    %516 = arith.maximumf %514, %515 : vector<1x32xf32>
    %c28_675 = arith.constant 28 : index
    %c0_676 = arith.constant 0 : index
    %517 = vector.load %arg13[%c28_675, %c0_676] : memref<49x32xf32, #tpu.memory_space<vmem>>, vector<1x32xf32>
    tpu.vector_store %arg13[%c28_675, %c0_676], %516 {strides = array<i32>} : memref<49x32xf32, #tpu.memory_space<vmem>>, vector<1x32xf32>,
    %518 = vector.extract_strided_slice %513 {offsets = [2, 0], sizes = [1, 32], strides = [1, 1]} : vector<14x32xf32> to vector<1x32xf32>
    %519 = vector.extract_strided_slice %513 {offsets = [3, 0], sizes = [1, 32], strides = [1, 1]} : vector<14x32xf32> to vector<1x32xf32>
    %520 = arith.maximumf %518, %519 : vector<1x32xf32>
    %c29 = arith.constant 29 : index
    %c0_677 = arith.constant 0 : index
    %521 = vector.load %arg13[%c29, %c0_677] : memref<49x32xf32, #tpu.memory_space<vmem>>, vector<1x32xf32>
    tpu.vector_store %arg13[%c29, %c0_677], %520 {strides = array<i32>} : memref<49x32xf32, #tpu.memory_space<vmem>>, vector<1x32xf32>,
    %522 = vector.extract_strided_slice %513 {offsets = [4, 0], sizes = [1, 32], strides = [1, 1]} : vector<14x32xf32> to vector<1x32xf32>
    %523 = vector.extract_strided_slice %513 {offsets = [5, 0], sizes = [1, 32], strides = [1, 1]} : vector<14x32xf32> to vector<1x32xf32>
    %524 = arith.maximumf %522, %523 : vector<1x32xf32>
    %c30 = arith.constant 30 : index
    %c0_678 = arith.constant 0 : index
    %525 = vector.load %arg13[%c30, %c0_678] : memref<49x32xf32, #tpu.memory_space<vmem>>, vector<1x32xf32>
    tpu.vector_store %arg13[%c30, %c0_678], %524 {strides = array<i32>} : memref<49x32xf32, #tpu.memory_space<vmem>>, vector<1x32xf32>,
    %526 = vector.extract_strided_slice %513 {offsets = [6, 0], sizes = [1, 32], strides = [1, 1]} : vector<14x32xf32> to vector<1x32xf32>
    %527 = vector.extract_strided_slice %513 {offsets = [7, 0], sizes = [1, 32], strides = [1, 1]} : vector<14x32xf32> to vector<1x32xf32>
    %528 = arith.maximumf %526, %527 : vector<1x32xf32>
    %c31 = arith.constant 31 : index
    %c0_679 = arith.constant 0 : index
    %529 = vector.load %arg13[%c31, %c0_679] : memref<49x32xf32, #tpu.memory_space<vmem>>, vector<1x32xf32>
    tpu.vector_store %arg13[%c31, %c0_679], %528 {strides = array<i32>} : memref<49x32xf32, #tpu.memory_space<vmem>>, vector<1x32xf32>,
    %530 = vector.extract_strided_slice %513 {offsets = [8, 0], sizes = [1, 32], strides = [1, 1]} : vector<14x32xf32> to vector<1x32xf32>
    %531 = vector.extract_strided_slice %513 {offsets = [9, 0], sizes = [1, 32], strides = [1, 1]} : vector<14x32xf32> to vector<1x32xf32>
    %532 = arith.maximumf %530, %531 : vector<1x32xf32>
    %c32 = arith.constant 32 : index
    %c0_680 = arith.constant 0 : index
    %533 = vector.load %arg13[%c32, %c0_680] : memref<49x32xf32, #tpu.memory_space<vmem>>, vector<1x32xf32>
    tpu.vector_store %arg13[%c32, %c0_680], %532 {strides = array<i32>} : memref<49x32xf32, #tpu.memory_space<vmem>>, vector<1x32xf32>,
    %534 = vector.extract_strided_slice %513 {offsets = [10, 0], sizes = [1, 32], strides = [1, 1]} : vector<14x32xf32> to vector<1x32xf32>
    %535 = vector.extract_strided_slice %513 {offsets = [11, 0], sizes = [1, 32], strides = [1, 1]} : vector<14x32xf32> to vector<1x32xf32>
    %536 = arith.maximumf %534, %535 : vector<1x32xf32>
    %c33 = arith.constant 33 : index
    %c0_681 = arith.constant 0 : index
    %537 = vector.load %arg13[%c33, %c0_681] : memref<49x32xf32, #tpu.memory_space<vmem>>, vector<1x32xf32>
    tpu.vector_store %arg13[%c33, %c0_681], %536 {strides = array<i32>} : memref<49x32xf32, #tpu.memory_space<vmem>>, vector<1x32xf32>,
    %538 = vector.extract_strided_slice %513 {offsets = [12, 0], sizes = [1, 32], strides = [1, 1]} : vector<14x32xf32> to vector<1x32xf32>
    %539 = vector.extract_strided_slice %513 {offsets = [13, 0], sizes = [1, 32], strides = [1, 1]} : vector<14x32xf32> to vector<1x32xf32>
    %540 = arith.maximumf %538, %539 : vector<1x32xf32>
    %c34 = arith.constant 34 : index
    %c0_682 = arith.constant 0 : index
    %541 = vector.load %arg13[%c34, %c0_682] : memref<49x32xf32, #tpu.memory_space<vmem>>, vector<1x32xf32>
    tpu.vector_store %arg13[%c34, %c0_682], %540 {strides = array<i32>} : memref<49x32xf32, #tpu.memory_space<vmem>>, vector<1x32xf32>,
    %c140_683 = arith.constant 140 : index
    %c0_684 = arith.constant 0 : index
    %542 = vector.load %arg12[%c140_683, %c0_684] : memref<196x32xf32, #tpu.memory_space<vmem>>, vector<14x32xf32>
    %c154_685 = arith.constant 154 : index
    %c0_686 = arith.constant 0 : index
    %543 = vector.load %arg12[%c154_685, %c0_686] : memref<196x32xf32, #tpu.memory_space<vmem>>, vector<14x32xf32>
    %544 = arith.maximumf %542, %543 : vector<14x32xf32>
    %545 = vector.extract_strided_slice %544 {offsets = [0, 0], sizes = [1, 32], strides = [1, 1]} : vector<14x32xf32> to vector<1x32xf32>
    %546 = vector.extract_strided_slice %544 {offsets = [1, 0], sizes = [1, 32], strides = [1, 1]} : vector<14x32xf32> to vector<1x32xf32>
    %547 = arith.maximumf %545, %546 : vector<1x32xf32>
    %c35 = arith.constant 35 : index
    %c0_687 = arith.constant 0 : index
    %548 = vector.load %arg13[%c35, %c0_687] : memref<49x32xf32, #tpu.memory_space<vmem>>, vector<1x32xf32>
    tpu.vector_store %arg13[%c35, %c0_687], %547 {strides = array<i32>} : memref<49x32xf32, #tpu.memory_space<vmem>>, vector<1x32xf32>,
    %549 = vector.extract_strided_slice %544 {offsets = [2, 0], sizes = [1, 32], strides = [1, 1]} : vector<14x32xf32> to vector<1x32xf32>
    %550 = vector.extract_strided_slice %544 {offsets = [3, 0], sizes = [1, 32], strides = [1, 1]} : vector<14x32xf32> to vector<1x32xf32>
    %551 = arith.maximumf %549, %550 : vector<1x32xf32>
    %c36 = arith.constant 36 : index
    %c0_688 = arith.constant 0 : index
    %552 = vector.load %arg13[%c36, %c0_688] : memref<49x32xf32, #tpu.memory_space<vmem>>, vector<1x32xf32>
    tpu.vector_store %arg13[%c36, %c0_688], %551 {strides = array<i32>} : memref<49x32xf32, #tpu.memory_space<vmem>>, vector<1x32xf32>,
    %553 = vector.extract_strided_slice %544 {offsets = [4, 0], sizes = [1, 32], strides = [1, 1]} : vector<14x32xf32> to vector<1x32xf32>
    %554 = vector.extract_strided_slice %544 {offsets = [5, 0], sizes = [1, 32], strides = [1, 1]} : vector<14x32xf32> to vector<1x32xf32>
    %555 = arith.maximumf %553, %554 : vector<1x32xf32>
    %c37 = arith.constant 37 : index
    %c0_689 = arith.constant 0 : index
    %556 = vector.load %arg13[%c37, %c0_689] : memref<49x32xf32, #tpu.memory_space<vmem>>, vector<1x32xf32>
    tpu.vector_store %arg13[%c37, %c0_689], %555 {strides = array<i32>} : memref<49x32xf32, #tpu.memory_space<vmem>>, vector<1x32xf32>,
    %557 = vector.extract_strided_slice %544 {offsets = [6, 0], sizes = [1, 32], strides = [1, 1]} : vector<14x32xf32> to vector<1x32xf32>
    %558 = vector.extract_strided_slice %544 {offsets = [7, 0], sizes = [1, 32], strides = [1, 1]} : vector<14x32xf32> to vector<1x32xf32>
    %559 = arith.maximumf %557, %558 : vector<1x32xf32>
    %c38 = arith.constant 38 : index
    %c0_690 = arith.constant 0 : index
    %560 = vector.load %arg13[%c38, %c0_690] : memref<49x32xf32, #tpu.memory_space<vmem>>, vector<1x32xf32>
    tpu.vector_store %arg13[%c38, %c0_690], %559 {strides = array<i32>} : memref<49x32xf32, #tpu.memory_space<vmem>>, vector<1x32xf32>,
    %561 = vector.extract_strided_slice %544 {offsets = [8, 0], sizes = [1, 32], strides = [1, 1]} : vector<14x32xf32> to vector<1x32xf32>
    %562 = vector.extract_strided_slice %544 {offsets = [9, 0], sizes = [1, 32], strides = [1, 1]} : vector<14x32xf32> to vector<1x32xf32>
    %563 = arith.maximumf %561, %562 : vector<1x32xf32>
    %c39 = arith.constant 39 : index
    %c0_691 = arith.constant 0 : index
    %564 = vector.load %arg13[%c39, %c0_691] : memref<49x32xf32, #tpu.memory_space<vmem>>, vector<1x32xf32>
    tpu.vector_store %arg13[%c39, %c0_691], %563 {strides = array<i32>} : memref<49x32xf32, #tpu.memory_space<vmem>>, vector<1x32xf32>,
    %565 = vector.extract_strided_slice %544 {offsets = [10, 0], sizes = [1, 32], strides = [1, 1]} : vector<14x32xf32> to vector<1x32xf32>
    %566 = vector.extract_strided_slice %544 {offsets = [11, 0], sizes = [1, 32], strides = [1, 1]} : vector<14x32xf32> to vector<1x32xf32>
    %567 = arith.maximumf %565, %566 : vector<1x32xf32>
    %c40 = arith.constant 40 : index
    %c0_692 = arith.constant 0 : index
    %568 = vector.load %arg13[%c40, %c0_692] : memref<49x32xf32, #tpu.memory_space<vmem>>, vector<1x32xf32>
    tpu.vector_store %arg13[%c40, %c0_692], %567 {strides = array<i32>} : memref<49x32xf32, #tpu.memory_space<vmem>>, vector<1x32xf32>,
    %569 = vector.extract_strided_slice %544 {offsets = [12, 0], sizes = [1, 32], strides = [1, 1]} : vector<14x32xf32> to vector<1x32xf32>
    %570 = vector.extract_strided_slice %544 {offsets = [13, 0], sizes = [1, 32], strides = [1, 1]} : vector<14x32xf32> to vector<1x32xf32>
    %571 = arith.maximumf %569, %570 : vector<1x32xf32>
    %c41 = arith.constant 41 : index
    %c0_693 = arith.constant 0 : index
    %572 = vector.load %arg13[%c41, %c0_693] : memref<49x32xf32, #tpu.memory_space<vmem>>, vector<1x32xf32>
    tpu.vector_store %arg13[%c41, %c0_693], %571 {strides = array<i32>} : memref<49x32xf32, #tpu.memory_space<vmem>>, vector<1x32xf32>,
    %c168_694 = arith.constant 168 : index
    %c0_695 = arith.constant 0 : index
    %573 = vector.load %arg12[%c168_694, %c0_695] : memref<196x32xf32, #tpu.memory_space<vmem>>, vector<14x32xf32>
    %c182_696 = arith.constant 182 : index
    %c0_697 = arith.constant 0 : index
    %574 = vector.load %arg12[%c182_696, %c0_697] : memref<196x32xf32, #tpu.memory_space<vmem>>, vector<14x32xf32>
    %575 = arith.maximumf %573, %574 : vector<14x32xf32>
    %576 = vector.extract_strided_slice %575 {offsets = [0, 0], sizes = [1, 32], strides = [1, 1]} : vector<14x32xf32> to vector<1x32xf32>
    %577 = vector.extract_strided_slice %575 {offsets = [1, 0], sizes = [1, 32], strides = [1, 1]} : vector<14x32xf32> to vector<1x32xf32>
    %578 = arith.maximumf %576, %577 : vector<1x32xf32>
    %c42_698 = arith.constant 42 : index
    %c0_699 = arith.constant 0 : index
    %579 = vector.load %arg13[%c42_698, %c0_699] : memref<49x32xf32, #tpu.memory_space<vmem>>, vector<1x32xf32>
    tpu.vector_store %arg13[%c42_698, %c0_699], %578 {strides = array<i32>} : memref<49x32xf32, #tpu.memory_space<vmem>>, vector<1x32xf32>,
    %580 = vector.extract_strided_slice %575 {offsets = [2, 0], sizes = [1, 32], strides = [1, 1]} : vector<14x32xf32> to vector<1x32xf32>
    %581 = vector.extract_strided_slice %575 {offsets = [3, 0], sizes = [1, 32], strides = [1, 1]} : vector<14x32xf32> to vector<1x32xf32>
    %582 = arith.maximumf %580, %581 : vector<1x32xf32>
    %c43 = arith.constant 43 : index
    %c0_700 = arith.constant 0 : index
    %583 = vector.load %arg13[%c43, %c0_700] : memref<49x32xf32, #tpu.memory_space<vmem>>, vector<1x32xf32>
    tpu.vector_store %arg13[%c43, %c0_700], %582 {strides = array<i32>} : memref<49x32xf32, #tpu.memory_space<vmem>>, vector<1x32xf32>,
    %584 = vector.extract_strided_slice %575 {offsets = [4, 0], sizes = [1, 32], strides = [1, 1]} : vector<14x32xf32> to vector<1x32xf32>
    %585 = vector.extract_strided_slice %575 {offsets = [5, 0], sizes = [1, 32], strides = [1, 1]} : vector<14x32xf32> to vector<1x32xf32>
    %586 = arith.maximumf %584, %585 : vector<1x32xf32>
    %c44 = arith.constant 44 : index
    %c0_701 = arith.constant 0 : index
    %587 = vector.load %arg13[%c44, %c0_701] : memref<49x32xf32, #tpu.memory_space<vmem>>, vector<1x32xf32>
    tpu.vector_store %arg13[%c44, %c0_701], %586 {strides = array<i32>} : memref<49x32xf32, #tpu.memory_space<vmem>>, vector<1x32xf32>,
    %588 = vector.extract_strided_slice %575 {offsets = [6, 0], sizes = [1, 32], strides = [1, 1]} : vector<14x32xf32> to vector<1x32xf32>
    %589 = vector.extract_strided_slice %575 {offsets = [7, 0], sizes = [1, 32], strides = [1, 1]} : vector<14x32xf32> to vector<1x32xf32>
    %590 = arith.maximumf %588, %589 : vector<1x32xf32>
    %c45 = arith.constant 45 : index
    %c0_702 = arith.constant 0 : index
    %591 = vector.load %arg13[%c45, %c0_702] : memref<49x32xf32, #tpu.memory_space<vmem>>, vector<1x32xf32>
    tpu.vector_store %arg13[%c45, %c0_702], %590 {strides = array<i32>} : memref<49x32xf32, #tpu.memory_space<vmem>>, vector<1x32xf32>,
    %592 = vector.extract_strided_slice %575 {offsets = [8, 0], sizes = [1, 32], strides = [1, 1]} : vector<14x32xf32> to vector<1x32xf32>
    %593 = vector.extract_strided_slice %575 {offsets = [9, 0], sizes = [1, 32], strides = [1, 1]} : vector<14x32xf32> to vector<1x32xf32>
    %594 = arith.maximumf %592, %593 : vector<1x32xf32>
    %c46 = arith.constant 46 : index
    %c0_703 = arith.constant 0 : index
    %595 = vector.load %arg13[%c46, %c0_703] : memref<49x32xf32, #tpu.memory_space<vmem>>, vector<1x32xf32>
    tpu.vector_store %arg13[%c46, %c0_703], %594 {strides = array<i32>} : memref<49x32xf32, #tpu.memory_space<vmem>>, vector<1x32xf32>,
    %596 = vector.extract_strided_slice %575 {offsets = [10, 0], sizes = [1, 32], strides = [1, 1]} : vector<14x32xf32> to vector<1x32xf32>
    %597 = vector.extract_strided_slice %575 {offsets = [11, 0], sizes = [1, 32], strides = [1, 1]} : vector<14x32xf32> to vector<1x32xf32>
    %598 = arith.maximumf %596, %597 : vector<1x32xf32>
    %c47 = arith.constant 47 : index
    %c0_704 = arith.constant 0 : index
    %599 = vector.load %arg13[%c47, %c0_704] : memref<49x32xf32, #tpu.memory_space<vmem>>, vector<1x32xf32>
    tpu.vector_store %arg13[%c47, %c0_704], %598 {strides = array<i32>} : memref<49x32xf32, #tpu.memory_space<vmem>>, vector<1x32xf32>,
    %600 = vector.extract_strided_slice %575 {offsets = [12, 0], sizes = [1, 32], strides = [1, 1]} : vector<14x32xf32> to vector<1x32xf32>
    %601 = vector.extract_strided_slice %575 {offsets = [13, 0], sizes = [1, 32], strides = [1, 1]} : vector<14x32xf32> to vector<1x32xf32>
    %602 = arith.maximumf %600, %601 : vector<1x32xf32>
    %c48 = arith.constant 48 : index
    %c0_705 = arith.constant 0 : index
    %603 = vector.load %arg13[%c48, %c0_705] : memref<49x32xf32, #tpu.memory_space<vmem>>, vector<1x32xf32>
    tpu.vector_store %arg13[%c48, %c0_705], %602 {strides = array<i32>} : memref<49x32xf32, #tpu.memory_space<vmem>>, vector<1x32xf32>,
    %c0_706 = arith.constant 0 : index
    %c0_707 = arith.constant 0 : index
    %604 = vector.load %arg13[%c0_706, %c0_707] : memref<49x32xf32, #tpu.memory_space<vmem>>, vector<5x32xf32>
    %c0_708 = arith.constant 0 : index
    %c0_709 = arith.constant 0 : index
    %605 = vector.load %arg14[%c0_708, %c0_709] : memref<25x288xf32, #tpu.memory_space<vmem>>, vector<5x32xf32>
    tpu.vector_store %arg14[%c0_708, %c0_709], %604 {strides = array<i32>} : memref<25x288xf32, #tpu.memory_space<vmem>>, vector<5x32xf32>,
    %c1_710 = arith.constant 1 : index
    %c0_711 = arith.constant 0 : index
    %606 = vector.load %arg13[%c1_710, %c0_711] : memref<49x32xf32, #tpu.memory_space<vmem>>, vector<5x32xf32>
    %c0_712 = arith.constant 0 : index
    %c32_713 = arith.constant 32 : index
    %607 = vector.load %arg14[%c0_712, %c32_713] : memref<25x288xf32, #tpu.memory_space<vmem>>, vector<5x32xf32>
    tpu.vector_store %arg14[%c0_712, %c32_713], %606 {strides = array<i32>} : memref<25x288xf32, #tpu.memory_space<vmem>>, vector<5x32xf32>,
    %c2_714 = arith.constant 2 : index
    %c0_715 = arith.constant 0 : index
    %608 = vector.load %arg13[%c2_714, %c0_715] : memref<49x32xf32, #tpu.memory_space<vmem>>, vector<5x32xf32>
    %c0_716 = arith.constant 0 : index
    %c64 = arith.constant 64 : index
    %609 = vector.load %arg14[%c0_716, %c64] : memref<25x288xf32, #tpu.memory_space<vmem>>, vector<5x32xf32>
    tpu.vector_store %arg14[%c0_716, %c64], %608 {strides = array<i32>} : memref<25x288xf32, #tpu.memory_space<vmem>>, vector<5x32xf32>,
    %c7_717 = arith.constant 7 : index
    %c0_718 = arith.constant 0 : index
    %610 = vector.load %arg13[%c7_717, %c0_718] : memref<49x32xf32, #tpu.memory_space<vmem>>, vector<5x32xf32>
    %c0_719 = arith.constant 0 : index
    %c96 = arith.constant 96 : index
    %611 = vector.load %arg14[%c0_719, %c96] : memref<25x288xf32, #tpu.memory_space<vmem>>, vector<5x32xf32>
    tpu.vector_store %arg14[%c0_719, %c96], %610 {strides = array<i32>} : memref<25x288xf32, #tpu.memory_space<vmem>>, vector<5x32xf32>,
    %c8_720 = arith.constant 8 : index
    %c0_721 = arith.constant 0 : index
    %612 = vector.load %arg13[%c8_720, %c0_721] : memref<49x32xf32, #tpu.memory_space<vmem>>, vector<5x32xf32>
    %c0_722 = arith.constant 0 : index
    %c128 = arith.constant 128 : index
    %613 = vector.load %arg14[%c0_722, %c128] : memref<25x288xf32, #tpu.memory_space<vmem>>, vector<5x32xf32>
    tpu.vector_store %arg14[%c0_722, %c128], %612 {strides = array<i32>} : memref<25x288xf32, #tpu.memory_space<vmem>>, vector<5x32xf32>,
    %c9_723 = arith.constant 9 : index
    %c0_724 = arith.constant 0 : index
    %614 = vector.load %arg13[%c9_723, %c0_724] : memref<49x32xf32, #tpu.memory_space<vmem>>, vector<5x32xf32>
    %c0_725 = arith.constant 0 : index
    %c160 = arith.constant 160 : index
    %615 = vector.load %arg14[%c0_725, %c160] : memref<25x288xf32, #tpu.memory_space<vmem>>, vector<5x32xf32>
    tpu.vector_store %arg14[%c0_725, %c160], %614 {strides = array<i32>} : memref<25x288xf32, #tpu.memory_space<vmem>>, vector<5x32xf32>,
    %c14_726 = arith.constant 14 : index
    %c0_727 = arith.constant 0 : index
    %616 = vector.load %arg13[%c14_726, %c0_727] : memref<49x32xf32, #tpu.memory_space<vmem>>, vector<5x32xf32>
    %c0_728 = arith.constant 0 : index
    %c192 = arith.constant 192 : index
    %617 = vector.load %arg14[%c0_728, %c192] : memref<25x288xf32, #tpu.memory_space<vmem>>, vector<5x32xf32>
    tpu.vector_store %arg14[%c0_728, %c192], %616 {strides = array<i32>} : memref<25x288xf32, #tpu.memory_space<vmem>>, vector<5x32xf32>,
    %c15_729 = arith.constant 15 : index
    %c0_730 = arith.constant 0 : index
    %618 = vector.load %arg13[%c15_729, %c0_730] : memref<49x32xf32, #tpu.memory_space<vmem>>, vector<5x32xf32>
    %c0_731 = arith.constant 0 : index
    %c224 = arith.constant 224 : index
    %619 = vector.load %arg14[%c0_731, %c224] : memref<25x288xf32, #tpu.memory_space<vmem>>, vector<5x32xf32>
    tpu.vector_store %arg14[%c0_731, %c224], %618 {strides = array<i32>} : memref<25x288xf32, #tpu.memory_space<vmem>>, vector<5x32xf32>,
    %c16_732 = arith.constant 16 : index
    %c0_733 = arith.constant 0 : index
    %620 = vector.load %arg13[%c16_732, %c0_733] : memref<49x32xf32, #tpu.memory_space<vmem>>, vector<5x32xf32>
    %c0_734 = arith.constant 0 : index
    %c256 = arith.constant 256 : index
    %621 = vector.load %arg14[%c0_734, %c256] : memref<25x288xf32, #tpu.memory_space<vmem>>, vector<5x32xf32>
    tpu.vector_store %arg14[%c0_734, %c256], %620 {strides = array<i32>} : memref<25x288xf32, #tpu.memory_space<vmem>>, vector<5x32xf32>,
    %c7_735 = arith.constant 7 : index
    %c0_736 = arith.constant 0 : index
    %622 = vector.load %arg13[%c7_735, %c0_736] : memref<49x32xf32, #tpu.memory_space<vmem>>, vector<5x32xf32>
    %c5_737 = arith.constant 5 : index
    %c0_738 = arith.constant 0 : index
    %623 = vector.load %arg14[%c5_737, %c0_738] : memref<25x288xf32, #tpu.memory_space<vmem>>, vector<5x32xf32>
    tpu.vector_store %arg14[%c5_737, %c0_738], %622 {strides = array<i32>} : memref<25x288xf32, #tpu.memory_space<vmem>>, vector<5x32xf32>,
    %c8_739 = arith.constant 8 : index
    %c0_740 = arith.constant 0 : index
    %624 = vector.load %arg13[%c8_739, %c0_740] : memref<49x32xf32, #tpu.memory_space<vmem>>, vector<5x32xf32>
    %c5_741 = arith.constant 5 : index
    %c32_742 = arith.constant 32 : index
    %625 = vector.load %arg14[%c5_741, %c32_742] : memref<25x288xf32, #tpu.memory_space<vmem>>, vector<5x32xf32>
    tpu.vector_store %arg14[%c5_741, %c32_742], %624 {strides = array<i32>} : memref<25x288xf32, #tpu.memory_space<vmem>>, vector<5x32xf32>,
    %c9_743 = arith.constant 9 : index
    %c0_744 = arith.constant 0 : index
    %626 = vector.load %arg13[%c9_743, %c0_744] : memref<49x32xf32, #tpu.memory_space<vmem>>, vector<5x32xf32>
    %c5_745 = arith.constant 5 : index
    %c64_746 = arith.constant 64 : index
    %627 = vector.load %arg14[%c5_745, %c64_746] : memref<25x288xf32, #tpu.memory_space<vmem>>, vector<5x32xf32>
    tpu.vector_store %arg14[%c5_745, %c64_746], %626 {strides = array<i32>} : memref<25x288xf32, #tpu.memory_space<vmem>>, vector<5x32xf32>,
    %c14_747 = arith.constant 14 : index
    %c0_748 = arith.constant 0 : index
    %628 = vector.load %arg13[%c14_747, %c0_748] : memref<49x32xf32, #tpu.memory_space<vmem>>, vector<5x32xf32>
    %c5_749 = arith.constant 5 : index
    %c96_750 = arith.constant 96 : index
    %629 = vector.load %arg14[%c5_749, %c96_750] : memref<25x288xf32, #tpu.memory_space<vmem>>, vector<5x32xf32>
    tpu.vector_store %arg14[%c5_749, %c96_750], %628 {strides = array<i32>} : memref<25x288xf32, #tpu.memory_space<vmem>>, vector<5x32xf32>,
    %c15_751 = arith.constant 15 : index
    %c0_752 = arith.constant 0 : index
    %630 = vector.load %arg13[%c15_751, %c0_752] : memref<49x32xf32, #tpu.memory_space<vmem>>, vector<5x32xf32>
    %c5_753 = arith.constant 5 : index
    %c128_754 = arith.constant 128 : index
    %631 = vector.load %arg14[%c5_753, %c128_754] : memref<25x288xf32, #tpu.memory_space<vmem>>, vector<5x32xf32>
    tpu.vector_store %arg14[%c5_753, %c128_754], %630 {strides = array<i32>} : memref<25x288xf32, #tpu.memory_space<vmem>>, vector<5x32xf32>,
    %c16_755 = arith.constant 16 : index
    %c0_756 = arith.constant 0 : index
    %632 = vector.load %arg13[%c16_755, %c0_756] : memref<49x32xf32, #tpu.memory_space<vmem>>, vector<5x32xf32>
    %c5_757 = arith.constant 5 : index
    %c160_758 = arith.constant 160 : index
    %633 = vector.load %arg14[%c5_757, %c160_758] : memref<25x288xf32, #tpu.memory_space<vmem>>, vector<5x32xf32>
    tpu.vector_store %arg14[%c5_757, %c160_758], %632 {strides = array<i32>} : memref<25x288xf32, #tpu.memory_space<vmem>>, vector<5x32xf32>,
    %c21_759 = arith.constant 21 : index
    %c0_760 = arith.constant 0 : index
    %634 = vector.load %arg13[%c21_759, %c0_760] : memref<49x32xf32, #tpu.memory_space<vmem>>, vector<5x32xf32>
    %c5_761 = arith.constant 5 : index
    %c192_762 = arith.constant 192 : index
    %635 = vector.load %arg14[%c5_761, %c192_762] : memref<25x288xf32, #tpu.memory_space<vmem>>, vector<5x32xf32>
    tpu.vector_store %arg14[%c5_761, %c192_762], %634 {strides = array<i32>} : memref<25x288xf32, #tpu.memory_space<vmem>>, vector<5x32xf32>,
    %c22_763 = arith.constant 22 : index
    %c0_764 = arith.constant 0 : index
    %636 = vector.load %arg13[%c22_763, %c0_764] : memref<49x32xf32, #tpu.memory_space<vmem>>, vector<5x32xf32>
    %c5_765 = arith.constant 5 : index
    %c224_766 = arith.constant 224 : index
    %637 = vector.load %arg14[%c5_765, %c224_766] : memref<25x288xf32, #tpu.memory_space<vmem>>, vector<5x32xf32>
    tpu.vector_store %arg14[%c5_765, %c224_766], %636 {strides = array<i32>} : memref<25x288xf32, #tpu.memory_space<vmem>>, vector<5x32xf32>,
    %c23_767 = arith.constant 23 : index
    %c0_768 = arith.constant 0 : index
    %638 = vector.load %arg13[%c23_767, %c0_768] : memref<49x32xf32, #tpu.memory_space<vmem>>, vector<5x32xf32>
    %c5_769 = arith.constant 5 : index
    %c256_770 = arith.constant 256 : index
    %639 = vector.load %arg14[%c5_769, %c256_770] : memref<25x288xf32, #tpu.memory_space<vmem>>, vector<5x32xf32>
    tpu.vector_store %arg14[%c5_769, %c256_770], %638 {strides = array<i32>} : memref<25x288xf32, #tpu.memory_space<vmem>>, vector<5x32xf32>,
    %c14_771 = arith.constant 14 : index
    %c0_772 = arith.constant 0 : index
    %640 = vector.load %arg13[%c14_771, %c0_772] : memref<49x32xf32, #tpu.memory_space<vmem>>, vector<5x32xf32>
    %c10_773 = arith.constant 10 : index
    %c0_774 = arith.constant 0 : index
    %641 = vector.load %arg14[%c10_773, %c0_774] : memref<25x288xf32, #tpu.memory_space<vmem>>, vector<5x32xf32>
    tpu.vector_store %arg14[%c10_773, %c0_774], %640 {strides = array<i32>} : memref<25x288xf32, #tpu.memory_space<vmem>>, vector<5x32xf32>,
    %c15_775 = arith.constant 15 : index
    %c0_776 = arith.constant 0 : index
    %642 = vector.load %arg13[%c15_775, %c0_776] : memref<49x32xf32, #tpu.memory_space<vmem>>, vector<5x32xf32>
    %c10_777 = arith.constant 10 : index
    %c32_778 = arith.constant 32 : index
    %643 = vector.load %arg14[%c10_777, %c32_778] : memref<25x288xf32, #tpu.memory_space<vmem>>, vector<5x32xf32>
    tpu.vector_store %arg14[%c10_777, %c32_778], %642 {strides = array<i32>} : memref<25x288xf32, #tpu.memory_space<vmem>>, vector<5x32xf32>,
    %c16_779 = arith.constant 16 : index
    %c0_780 = arith.constant 0 : index
    %644 = vector.load %arg13[%c16_779, %c0_780] : memref<49x32xf32, #tpu.memory_space<vmem>>, vector<5x32xf32>
    %c10_781 = arith.constant 10 : index
    %c64_782 = arith.constant 64 : index
    %645 = vector.load %arg14[%c10_781, %c64_782] : memref<25x288xf32, #tpu.memory_space<vmem>>, vector<5x32xf32>
    tpu.vector_store %arg14[%c10_781, %c64_782], %644 {strides = array<i32>} : memref<25x288xf32, #tpu.memory_space<vmem>>, vector<5x32xf32>,
    %c21_783 = arith.constant 21 : index
    %c0_784 = arith.constant 0 : index
    %646 = vector.load %arg13[%c21_783, %c0_784] : memref<49x32xf32, #tpu.memory_space<vmem>>, vector<5x32xf32>
    %c10_785 = arith.constant 10 : index
    %c96_786 = arith.constant 96 : index
    %647 = vector.load %arg14[%c10_785, %c96_786] : memref<25x288xf32, #tpu.memory_space<vmem>>, vector<5x32xf32>
    tpu.vector_store %arg14[%c10_785, %c96_786], %646 {strides = array<i32>} : memref<25x288xf32, #tpu.memory_space<vmem>>, vector<5x32xf32>,
    %c22_787 = arith.constant 22 : index
    %c0_788 = arith.constant 0 : index
    %648 = vector.load %arg13[%c22_787, %c0_788] : memref<49x32xf32, #tpu.memory_space<vmem>>, vector<5x32xf32>
    %c10_789 = arith.constant 10 : index
    %c128_790 = arith.constant 128 : index
    %649 = vector.load %arg14[%c10_789, %c128_790] : memref<25x288xf32, #tpu.memory_space<vmem>>, vector<5x32xf32>
    tpu.vector_store %arg14[%c10_789, %c128_790], %648 {strides = array<i32>} : memref<25x288xf32, #tpu.memory_space<vmem>>, vector<5x32xf32>,
    %c23_791 = arith.constant 23 : index
    %c0_792 = arith.constant 0 : index
    %650 = vector.load %arg13[%c23_791, %c0_792] : memref<49x32xf32, #tpu.memory_space<vmem>>, vector<5x32xf32>
    %c10_793 = arith.constant 10 : index
    %c160_794 = arith.constant 160 : index
    %651 = vector.load %arg14[%c10_793, %c160_794] : memref<25x288xf32, #tpu.memory_space<vmem>>, vector<5x32xf32>
    tpu.vector_store %arg14[%c10_793, %c160_794], %650 {strides = array<i32>} : memref<25x288xf32, #tpu.memory_space<vmem>>, vector<5x32xf32>,
    %c28_795 = arith.constant 28 : index
    %c0_796 = arith.constant 0 : index
    %652 = vector.load %arg13[%c28_795, %c0_796] : memref<49x32xf32, #tpu.memory_space<vmem>>, vector<5x32xf32>
    %c10_797 = arith.constant 10 : index
    %c192_798 = arith.constant 192 : index
    %653 = vector.load %arg14[%c10_797, %c192_798] : memref<25x288xf32, #tpu.memory_space<vmem>>, vector<5x32xf32>
    tpu.vector_store %arg14[%c10_797, %c192_798], %652 {strides = array<i32>} : memref<25x288xf32, #tpu.memory_space<vmem>>, vector<5x32xf32>,
    %c29_799 = arith.constant 29 : index
    %c0_800 = arith.constant 0 : index
    %654 = vector.load %arg13[%c29_799, %c0_800] : memref<49x32xf32, #tpu.memory_space<vmem>>, vector<5x32xf32>
    %c10_801 = arith.constant 10 : index
    %c224_802 = arith.constant 224 : index
    %655 = vector.load %arg14[%c10_801, %c224_802] : memref<25x288xf32, #tpu.memory_space<vmem>>, vector<5x32xf32>
    tpu.vector_store %arg14[%c10_801, %c224_802], %654 {strides = array<i32>} : memref<25x288xf32, #tpu.memory_space<vmem>>, vector<5x32xf32>,
    %c30_803 = arith.constant 30 : index
    %c0_804 = arith.constant 0 : index
    %656 = vector.load %arg13[%c30_803, %c0_804] : memref<49x32xf32, #tpu.memory_space<vmem>>, vector<5x32xf32>
    %c10_805 = arith.constant 10 : index
    %c256_806 = arith.constant 256 : index
    %657 = vector.load %arg14[%c10_805, %c256_806] : memref<25x288xf32, #tpu.memory_space<vmem>>, vector<5x32xf32>
    tpu.vector_store %arg14[%c10_805, %c256_806], %656 {strides = array<i32>} : memref<25x288xf32, #tpu.memory_space<vmem>>, vector<5x32xf32>,
    %c21_807 = arith.constant 21 : index
    %c0_808 = arith.constant 0 : index
    %658 = vector.load %arg13[%c21_807, %c0_808] : memref<49x32xf32, #tpu.memory_space<vmem>>, vector<5x32xf32>
    %c15_809 = arith.constant 15 : index
    %c0_810 = arith.constant 0 : index
    %659 = vector.load %arg14[%c15_809, %c0_810] : memref<25x288xf32, #tpu.memory_space<vmem>>, vector<5x32xf32>
    tpu.vector_store %arg14[%c15_809, %c0_810], %658 {strides = array<i32>} : memref<25x288xf32, #tpu.memory_space<vmem>>, vector<5x32xf32>,
    %c22_811 = arith.constant 22 : index
    %c0_812 = arith.constant 0 : index
    %660 = vector.load %arg13[%c22_811, %c0_812] : memref<49x32xf32, #tpu.memory_space<vmem>>, vector<5x32xf32>
    %c15_813 = arith.constant 15 : index
    %c32_814 = arith.constant 32 : index
    %661 = vector.load %arg14[%c15_813, %c32_814] : memref<25x288xf32, #tpu.memory_space<vmem>>, vector<5x32xf32>
    tpu.vector_store %arg14[%c15_813, %c32_814], %660 {strides = array<i32>} : memref<25x288xf32, #tpu.memory_space<vmem>>, vector<5x32xf32>,
    %c23_815 = arith.constant 23 : index
    %c0_816 = arith.constant 0 : index
    %662 = vector.load %arg13[%c23_815, %c0_816] : memref<49x32xf32, #tpu.memory_space<vmem>>, vector<5x32xf32>
    %c15_817 = arith.constant 15 : index
    %c64_818 = arith.constant 64 : index
    %663 = vector.load %arg14[%c15_817, %c64_818] : memref<25x288xf32, #tpu.memory_space<vmem>>, vector<5x32xf32>
    tpu.vector_store %arg14[%c15_817, %c64_818], %662 {strides = array<i32>} : memref<25x288xf32, #tpu.memory_space<vmem>>, vector<5x32xf32>,
    %c28_819 = arith.constant 28 : index
    %c0_820 = arith.constant 0 : index
    %664 = vector.load %arg13[%c28_819, %c0_820] : memref<49x32xf32, #tpu.memory_space<vmem>>, vector<5x32xf32>
    %c15_821 = arith.constant 15 : index
    %c96_822 = arith.constant 96 : index
    %665 = vector.load %arg14[%c15_821, %c96_822] : memref<25x288xf32, #tpu.memory_space<vmem>>, vector<5x32xf32>
    tpu.vector_store %arg14[%c15_821, %c96_822], %664 {strides = array<i32>} : memref<25x288xf32, #tpu.memory_space<vmem>>, vector<5x32xf32>,
    %c29_823 = arith.constant 29 : index
    %c0_824 = arith.constant 0 : index
    %666 = vector.load %arg13[%c29_823, %c0_824] : memref<49x32xf32, #tpu.memory_space<vmem>>, vector<5x32xf32>
    %c15_825 = arith.constant 15 : index
    %c128_826 = arith.constant 128 : index
    %667 = vector.load %arg14[%c15_825, %c128_826] : memref<25x288xf32, #tpu.memory_space<vmem>>, vector<5x32xf32>
    tpu.vector_store %arg14[%c15_825, %c128_826], %666 {strides = array<i32>} : memref<25x288xf32, #tpu.memory_space<vmem>>, vector<5x32xf32>,
    %c30_827 = arith.constant 30 : index
    %c0_828 = arith.constant 0 : index
    %668 = vector.load %arg13[%c30_827, %c0_828] : memref<49x32xf32, #tpu.memory_space<vmem>>, vector<5x32xf32>
    %c15_829 = arith.constant 15 : index
    %c160_830 = arith.constant 160 : index
    %669 = vector.load %arg14[%c15_829, %c160_830] : memref<25x288xf32, #tpu.memory_space<vmem>>, vector<5x32xf32>
    tpu.vector_store %arg14[%c15_829, %c160_830], %668 {strides = array<i32>} : memref<25x288xf32, #tpu.memory_space<vmem>>, vector<5x32xf32>,
    %c35_831 = arith.constant 35 : index
    %c0_832 = arith.constant 0 : index
    %670 = vector.load %arg13[%c35_831, %c0_832] : memref<49x32xf32, #tpu.memory_space<vmem>>, vector<5x32xf32>
    %c15_833 = arith.constant 15 : index
    %c192_834 = arith.constant 192 : index
    %671 = vector.load %arg14[%c15_833, %c192_834] : memref<25x288xf32, #tpu.memory_space<vmem>>, vector<5x32xf32>
    tpu.vector_store %arg14[%c15_833, %c192_834], %670 {strides = array<i32>} : memref<25x288xf32, #tpu.memory_space<vmem>>, vector<5x32xf32>,
    %c36_835 = arith.constant 36 : index
    %c0_836 = arith.constant 0 : index
    %672 = vector.load %arg13[%c36_835, %c0_836] : memref<49x32xf32, #tpu.memory_space<vmem>>, vector<5x32xf32>
    %c15_837 = arith.constant 15 : index
    %c224_838 = arith.constant 224 : index
    %673 = vector.load %arg14[%c15_837, %c224_838] : memref<25x288xf32, #tpu.memory_space<vmem>>, vector<5x32xf32>
    tpu.vector_store %arg14[%c15_837, %c224_838], %672 {strides = array<i32>} : memref<25x288xf32, #tpu.memory_space<vmem>>, vector<5x32xf32>,
    %c37_839 = arith.constant 37 : index
    %c0_840 = arith.constant 0 : index
    %674 = vector.load %arg13[%c37_839, %c0_840] : memref<49x32xf32, #tpu.memory_space<vmem>>, vector<5x32xf32>
    %c15_841 = arith.constant 15 : index
    %c256_842 = arith.constant 256 : index
    %675 = vector.load %arg14[%c15_841, %c256_842] : memref<25x288xf32, #tpu.memory_space<vmem>>, vector<5x32xf32>
    tpu.vector_store %arg14[%c15_841, %c256_842], %674 {strides = array<i32>} : memref<25x288xf32, #tpu.memory_space<vmem>>, vector<5x32xf32>,
    %c28_843 = arith.constant 28 : index
    %c0_844 = arith.constant 0 : index
    %676 = vector.load %arg13[%c28_843, %c0_844] : memref<49x32xf32, #tpu.memory_space<vmem>>, vector<5x32xf32>
    %c20_845 = arith.constant 20 : index
    %c0_846 = arith.constant 0 : index
    %677 = vector.load %arg14[%c20_845, %c0_846] : memref<25x288xf32, #tpu.memory_space<vmem>>, vector<5x32xf32>
    tpu.vector_store %arg14[%c20_845, %c0_846], %676 {strides = array<i32>} : memref<25x288xf32, #tpu.memory_space<vmem>>, vector<5x32xf32>,
    %c29_847 = arith.constant 29 : index
    %c0_848 = arith.constant 0 : index
    %678 = vector.load %arg13[%c29_847, %c0_848] : memref<49x32xf32, #tpu.memory_space<vmem>>, vector<5x32xf32>
    %c20_849 = arith.constant 20 : index
    %c32_850 = arith.constant 32 : index
    %679 = vector.load %arg14[%c20_849, %c32_850] : memref<25x288xf32, #tpu.memory_space<vmem>>, vector<5x32xf32>
    tpu.vector_store %arg14[%c20_849, %c32_850], %678 {strides = array<i32>} : memref<25x288xf32, #tpu.memory_space<vmem>>, vector<5x32xf32>,
    %c30_851 = arith.constant 30 : index
    %c0_852 = arith.constant 0 : index
    %680 = vector.load %arg13[%c30_851, %c0_852] : memref<49x32xf32, #tpu.memory_space<vmem>>, vector<5x32xf32>
    %c20_853 = arith.constant 20 : index
    %c64_854 = arith.constant 64 : index
    %681 = vector.load %arg14[%c20_853, %c64_854] : memref<25x288xf32, #tpu.memory_space<vmem>>, vector<5x32xf32>
    tpu.vector_store %arg14[%c20_853, %c64_854], %680 {strides = array<i32>} : memref<25x288xf32, #tpu.memory_space<vmem>>, vector<5x32xf32>,
    %c35_855 = arith.constant 35 : index
    %c0_856 = arith.constant 0 : index
    %682 = vector.load %arg13[%c35_855, %c0_856] : memref<49x32xf32, #tpu.memory_space<vmem>>, vector<5x32xf32>
    %c20_857 = arith.constant 20 : index
    %c96_858 = arith.constant 96 : index
    %683 = vector.load %arg14[%c20_857, %c96_858] : memref<25x288xf32, #tpu.memory_space<vmem>>, vector<5x32xf32>
    tpu.vector_store %arg14[%c20_857, %c96_858], %682 {strides = array<i32>} : memref<25x288xf32, #tpu.memory_space<vmem>>, vector<5x32xf32>,
    %c36_859 = arith.constant 36 : index
    %c0_860 = arith.constant 0 : index
    %684 = vector.load %arg13[%c36_859, %c0_860] : memref<49x32xf32, #tpu.memory_space<vmem>>, vector<5x32xf32>
    %c20_861 = arith.constant 20 : index
    %c128_862 = arith.constant 128 : index
    %685 = vector.load %arg14[%c20_861, %c128_862] : memref<25x288xf32, #tpu.memory_space<vmem>>, vector<5x32xf32>
    tpu.vector_store %arg14[%c20_861, %c128_862], %684 {strides = array<i32>} : memref<25x288xf32, #tpu.memory_space<vmem>>, vector<5x32xf32>,
    %c37_863 = arith.constant 37 : index
    %c0_864 = arith.constant 0 : index
    %686 = vector.load %arg13[%c37_863, %c0_864] : memref<49x32xf32, #tpu.memory_space<vmem>>, vector<5x32xf32>
    %c20_865 = arith.constant 20 : index
    %c160_866 = arith.constant 160 : index
    %687 = vector.load %arg14[%c20_865, %c160_866] : memref<25x288xf32, #tpu.memory_space<vmem>>, vector<5x32xf32>
    tpu.vector_store %arg14[%c20_865, %c160_866], %686 {strides = array<i32>} : memref<25x288xf32, #tpu.memory_space<vmem>>, vector<5x32xf32>,
    %c42_867 = arith.constant 42 : index
    %c0_868 = arith.constant 0 : index
    %688 = vector.load %arg13[%c42_867, %c0_868] : memref<49x32xf32, #tpu.memory_space<vmem>>, vector<5x32xf32>
    %c20_869 = arith.constant 20 : index
    %c192_870 = arith.constant 192 : index
    %689 = vector.load %arg14[%c20_869, %c192_870] : memref<25x288xf32, #tpu.memory_space<vmem>>, vector<5x32xf32>
    tpu.vector_store %arg14[%c20_869, %c192_870], %688 {strides = array<i32>} : memref<25x288xf32, #tpu.memory_space<vmem>>, vector<5x32xf32>,
    %c43_871 = arith.constant 43 : index
    %c0_872 = arith.constant 0 : index
    %690 = vector.load %arg13[%c43_871, %c0_872] : memref<49x32xf32, #tpu.memory_space<vmem>>, vector<5x32xf32>
    %c20_873 = arith.constant 20 : index
    %c224_874 = arith.constant 224 : index
    %691 = vector.load %arg14[%c20_873, %c224_874] : memref<25x288xf32, #tpu.memory_space<vmem>>, vector<5x32xf32>
    tpu.vector_store %arg14[%c20_873, %c224_874], %690 {strides = array<i32>} : memref<25x288xf32, #tpu.memory_space<vmem>>, vector<5x32xf32>,
    %c44_875 = arith.constant 44 : index
    %c0_876 = arith.constant 0 : index
    %692 = vector.load %arg13[%c44_875, %c0_876] : memref<49x32xf32, #tpu.memory_space<vmem>>, vector<5x32xf32>
    %c20_877 = arith.constant 20 : index
    %c256_878 = arith.constant 256 : index
    %693 = vector.load %arg14[%c20_877, %c256_878] : memref<25x288xf32, #tpu.memory_space<vmem>>, vector<5x32xf32>
    tpu.vector_store %arg14[%c20_877, %c256_878], %692 {strides = array<i32>} : memref<25x288xf32, #tpu.memory_space<vmem>>, vector<5x32xf32>,
    %c0_879 = arith.constant 0 : index
    %c0_880 = arith.constant 0 : index
    %694 = vector.load %arg14[%c0_879, %c0_880] : memref<25x288xf32, #tpu.memory_space<vmem>>, vector<25x288xf32>
    %c0_881 = arith.constant 0 : index
    %c0_882 = arith.constant 0 : index
    %695 = vector.load %arg4[%c0_881, %c0_882] : memref<288x64xf32, #tpu.memory_space<vmem>>, vector<288x64xf32>
    %cst_883 = arith.constant dense<0.000000e+00> : vector<25x64xf32>
    %696 = tpu.matmul %694, %695, %cst_883 {dimension_numbers = #tpu.dot_dimension_numbers<[1], [0], [0], [1], [0, 0, 1, 1], [], []>} : vector<25x288xf32>, vector<288x64xf32>, vector<25x64xf32> -> vector<25x64xf32>
    %c0_884 = arith.constant 0 : index
    %c0_885 = arith.constant 0 : index
    %697 = vector.load %arg5[%c0_884, %c0_885] : memref<1x64xf32, #tpu.memory_space<vmem>>, vector<1x64xf32>
    %698 = vector.broadcast %697 : vector<1x64xf32> to vector<25x64xf32>
    %699 = arith.addf %696, %698 : vector<25x64xf32>
    %cst_886 = arith.constant 0.000000e+00 : f32
    %700 = vector.broadcast %cst_886 : f32 to vector<25x64xf32>
    %701 = arith.maximumf %699, %700 : vector<25x64xf32>
    %c0_887 = arith.constant 0 : index
    %c0_888 = arith.constant 0 : index
    %702 = vector.load %arg15[%c0_887, %c0_888] : memref<25x64xf32, #tpu.memory_space<vmem>>, vector<25x64xf32>
    tpu.vector_store %arg15[%c0_887, %c0_888], %701 {strides = array<i32>} : memref<25x64xf32, #tpu.memory_space<vmem>>, vector<25x64xf32>,
    %cst_889 = arith.constant 0.000000e+00 : f32
    %703 = vector.broadcast %cst_889 : f32 to vector<1x128xf32>
    %c0_890 = arith.constant 0 : index
    %c0_891 = arith.constant 0 : index
    %704 = vector.load %arg15[%c0_890, %c0_891] : memref<25x64xf32, #tpu.memory_space<vmem>>, vector<1x64xf32>
    %c1_892 = arith.constant 1 : index
    %c0_893 = arith.constant 0 : index
    %705 = vector.load %arg15[%c1_892, %c0_893] : memref<25x64xf32, #tpu.memory_space<vmem>>, vector<1x64xf32>
    %706 = arith.maximumf %704, %705 : vector<1x64xf32>
    %c5_894 = arith.constant 5 : index
    %c0_895 = arith.constant 0 : index
    %707 = vector.load %arg15[%c5_894, %c0_895] : memref<25x64xf32, #tpu.memory_space<vmem>>, vector<1x64xf32>
    %c6_896 = arith.constant 6 : index
    %c0_897 = arith.constant 0 : index
    %708 = vector.load %arg15[%c6_896, %c0_897] : memref<25x64xf32, #tpu.memory_space<vmem>>, vector<1x64xf32>
    %709 = arith.maximumf %707, %708 : vector<1x64xf32>
    %710 = arith.maximumf %706, %709 : vector<1x64xf32>
    %c0_898 = arith.constant 0 : index
    %c0_899 = arith.constant 0 : index
    %c0_900 = arith.constant 0 : index
    %711 = vector.load %arg6[%c0_898, %c0_899, %c0_900] : memref<4x64x128xf32, #tpu.memory_space<vmem>>, vector<1x64x128xf32>
    %712 = vector.shape_cast %711 : vector<1x64x128xf32> to vector<64x128xf32>
    %cst_901 = arith.constant dense<0.000000e+00> : vector<1x128xf32>
    %713 = tpu.matmul %710, %712, %cst_901 {dimension_numbers = #tpu.dot_dimension_numbers<[1], [0], [0], [1], [0, 0, 1, 1], [], []>} : vector<1x64xf32>, vector<64x128xf32>, vector<1x128xf32> -> vector<1x128xf32>
    %714 = arith.addf %703, %713 : vector<1x128xf32>
    %c2_902 = arith.constant 2 : index
    %c0_903 = arith.constant 0 : index
    %715 = vector.load %arg15[%c2_902, %c0_903] : memref<25x64xf32, #tpu.memory_space<vmem>>, vector<1x64xf32>
    %c3_904 = arith.constant 3 : index
    %c0_905 = arith.constant 0 : index
    %716 = vector.load %arg15[%c3_904, %c0_905] : memref<25x64xf32, #tpu.memory_space<vmem>>, vector<1x64xf32>
    %717 = arith.maximumf %715, %716 : vector<1x64xf32>
    %c7_906 = arith.constant 7 : index
    %c0_907 = arith.constant 0 : index
    %718 = vector.load %arg15[%c7_906, %c0_907] : memref<25x64xf32, #tpu.memory_space<vmem>>, vector<1x64xf32>
    %c8_908 = arith.constant 8 : index
    %c0_909 = arith.constant 0 : index
    %719 = vector.load %arg15[%c8_908, %c0_909] : memref<25x64xf32, #tpu.memory_space<vmem>>, vector<1x64xf32>
    %720 = arith.maximumf %718, %719 : vector<1x64xf32>
    %721 = arith.maximumf %717, %720 : vector<1x64xf32>
    %c1_910 = arith.constant 1 : index
    %c0_911 = arith.constant 0 : index
    %c0_912 = arith.constant 0 : index
    %722 = vector.load %arg6[%c1_910, %c0_911, %c0_912] : memref<4x64x128xf32, #tpu.memory_space<vmem>>, vector<1x64x128xf32>
    %723 = vector.shape_cast %722 : vector<1x64x128xf32> to vector<64x128xf32>
    %cst_913 = arith.constant dense<0.000000e+00> : vector<1x128xf32>
    %724 = tpu.matmul %721, %723, %cst_913 {dimension_numbers = #tpu.dot_dimension_numbers<[1], [0], [0], [1], [0, 0, 1, 1], [], []>} : vector<1x64xf32>, vector<64x128xf32>, vector<1x128xf32> -> vector<1x128xf32>
    %725 = arith.addf %714, %724 : vector<1x128xf32>
    %c10_914 = arith.constant 10 : index
    %c0_915 = arith.constant 0 : index
    %726 = vector.load %arg15[%c10_914, %c0_915] : memref<25x64xf32, #tpu.memory_space<vmem>>, vector<1x64xf32>
    %c11_916 = arith.constant 11 : index
    %c0_917 = arith.constant 0 : index
    %727 = vector.load %arg15[%c11_916, %c0_917] : memref<25x64xf32, #tpu.memory_space<vmem>>, vector<1x64xf32>
    %728 = arith.maximumf %726, %727 : vector<1x64xf32>
    %c15_918 = arith.constant 15 : index
    %c0_919 = arith.constant 0 : index
    %729 = vector.load %arg15[%c15_918, %c0_919] : memref<25x64xf32, #tpu.memory_space<vmem>>, vector<1x64xf32>
    %c16_920 = arith.constant 16 : index
    %c0_921 = arith.constant 0 : index
    %730 = vector.load %arg15[%c16_920, %c0_921] : memref<25x64xf32, #tpu.memory_space<vmem>>, vector<1x64xf32>
    %731 = arith.maximumf %729, %730 : vector<1x64xf32>
    %732 = arith.maximumf %728, %731 : vector<1x64xf32>
    %c2_922 = arith.constant 2 : index
    %c0_923 = arith.constant 0 : index
    %c0_924 = arith.constant 0 : index
    %733 = vector.load %arg6[%c2_922, %c0_923, %c0_924] : memref<4x64x128xf32, #tpu.memory_space<vmem>>, vector<1x64x128xf32>
    %734 = vector.shape_cast %733 : vector<1x64x128xf32> to vector<64x128xf32>
    %cst_925 = arith.constant dense<0.000000e+00> : vector<1x128xf32>
    %735 = tpu.matmul %732, %734, %cst_925 {dimension_numbers = #tpu.dot_dimension_numbers<[1], [0], [0], [1], [0, 0, 1, 1], [], []>} : vector<1x64xf32>, vector<64x128xf32>, vector<1x128xf32> -> vector<1x128xf32>
    %736 = arith.addf %725, %735 : vector<1x128xf32>
    %c12_926 = arith.constant 12 : index
    %c0_927 = arith.constant 0 : index
    %737 = vector.load %arg15[%c12_926, %c0_927] : memref<25x64xf32, #tpu.memory_space<vmem>>, vector<1x64xf32>
    %c13_928 = arith.constant 13 : index
    %c0_929 = arith.constant 0 : index
    %738 = vector.load %arg15[%c13_928, %c0_929] : memref<25x64xf32, #tpu.memory_space<vmem>>, vector<1x64xf32>
    %739 = arith.maximumf %737, %738 : vector<1x64xf32>
    %c17_930 = arith.constant 17 : index
    %c0_931 = arith.constant 0 : index
    %740 = vector.load %arg15[%c17_930, %c0_931] : memref<25x64xf32, #tpu.memory_space<vmem>>, vector<1x64xf32>
    %c18_932 = arith.constant 18 : index
    %c0_933 = arith.constant 0 : index
    %741 = vector.load %arg15[%c18_932, %c0_933] : memref<25x64xf32, #tpu.memory_space<vmem>>, vector<1x64xf32>
    %742 = arith.maximumf %740, %741 : vector<1x64xf32>
    %743 = arith.maximumf %739, %742 : vector<1x64xf32>
    %c3_934 = arith.constant 3 : index
    %c0_935 = arith.constant 0 : index
    %c0_936 = arith.constant 0 : index
    %744 = vector.load %arg6[%c3_934, %c0_935, %c0_936] : memref<4x64x128xf32, #tpu.memory_space<vmem>>, vector<1x64x128xf32>
    %745 = vector.shape_cast %744 : vector<1x64x128xf32> to vector<64x128xf32>
    %cst_937 = arith.constant dense<0.000000e+00> : vector<1x128xf32>
    %746 = tpu.matmul %743, %745, %cst_937 {dimension_numbers = #tpu.dot_dimension_numbers<[1], [0], [0], [1], [0, 0, 1, 1], [], []>} : vector<1x64xf32>, vector<64x128xf32>, vector<1x128xf32> -> vector<1x128xf32>
    %747 = arith.addf %736, %746 : vector<1x128xf32>
    %c0_938 = arith.constant 0 : index
    %c0_939 = arith.constant 0 : index
    %748 = vector.load %arg7[%c0_938, %c0_939] : memref<1x128xf32, #tpu.memory_space<vmem>>, vector<1x128xf32>
    %749 = arith.addf %747, %748 : vector<1x128xf32>
    %cst_940 = arith.constant 0.000000e+00 : f32
    %750 = vector.broadcast %cst_940 : f32 to vector<1x128xf32>
    %751 = arith.maximumf %749, %750 : vector<1x128xf32>
    %c0_941 = arith.constant 0 : index
    %c0_942 = arith.constant 0 : index
    %752 = vector.load %arg8[%c0_941, %c0_942] : memref<128x128xf32, #tpu.memory_space<vmem>>, vector<128x128xf32>
    %cst_943 = arith.constant dense<0.000000e+00> : vector<1x128xf32>
    %753 = tpu.matmul %751, %752, %cst_943 {dimension_numbers = #tpu.dot_dimension_numbers<[1], [0], [0], [1], [0, 0, 1, 1], [], []>} : vector<1x128xf32>, vector<128x128xf32>, vector<1x128xf32> -> vector<1x128xf32>
    %c0_944 = arith.constant 0 : index
    %c0_945 = arith.constant 0 : index
    %754 = vector.load %arg9[%c0_944, %c0_945] : memref<1x128xf32, #tpu.memory_space<vmem>>, vector<1x128xf32>
    %755 = arith.addf %753, %754 : vector<1x128xf32>
    %c0_946 = arith.constant 0 : index
    %c0_947 = arith.constant 0 : index
    %c0_948 = arith.constant 0 : index
    %756 = vector.load %arg10[%c0_946, %c0_947, %c0_948] : memref<1x1x128xf32, #tpu.memory_space<vmem>>, vector<1x1x128xf32>
    %757 = vector.shape_cast %756 : vector<1x1x128xf32> to vector<1x128xf32>
    %758 = vector.shape_cast %755 : vector<1x128xf32> to vector<1x1x128xf32>
    tpu.vector_store %arg10[%c0_946, %c0_947, %c0_948], %758 {strides = array<i32>} : memref<1x1x128xf32, #tpu.memory_space<vmem>>, vector<1x1x128xf32>,
    return
  }
  func.func @transform_0(%arg0: i32) -> (i32, i32, i32) {
    %c0_i32 = arith.constant 0 : i32
    %c0_i32_0 = arith.constant 0 : i32
    %c0_i32_1 = arith.constant 0 : i32
    return %arg0, %c0_i32, %c0_i32_0 : i32, i32, i32
  }
  func.func @transform_1(%arg0: i32) -> (i32, i32) {
    %c0_i32 = arith.constant 0 : i32
    %c0_i32_0 = arith.constant 0 : i32
    %c0_i32_1 = arith.constant 0 : i32
    return %c0_i32, %c0_i32_0 : i32, i32
  }
  func.func @transform_2(%arg0: i32) -> (i32, i32) {
    %c0_i32 = arith.constant 0 : i32
    %c0_i32_0 = arith.constant 0 : i32
    %c0_i32_1 = arith.constant 0 : i32
    return %c0_i32, %c0_i32_0 : i32, i32
  }
  func.func @transform_3(%arg0: i32) -> (i32, i32) {
    %c0_i32 = arith.constant 0 : i32
    %c0_i32_0 = arith.constant 0 : i32
    %c0_i32_1 = arith.constant 0 : i32
    return %c0_i32, %c0_i32_0 : i32, i32
  }
  func.func @transform_4(%arg0: i32) -> (i32, i32) {
    %c0_i32 = arith.constant 0 : i32
    %c0_i32_0 = arith.constant 0 : i32
    %c0_i32_1 = arith.constant 0 : i32
    return %c0_i32, %c0_i32_0 : i32, i32
  }
  func.func @transform_5(%arg0: i32) -> (i32, i32, i32) {
    %c0_i32 = arith.constant 0 : i32
    %c0_i32_0 = arith.constant 0 : i32
    %c0_i32_1 = arith.constant 0 : i32
    %c0_i32_2 = arith.constant 0 : i32
    return %c0_i32, %c0_i32_0, %c0_i32_1 : i32, i32, i32
  }
  func.func @transform_6(%arg0: i32) -> (i32, i32) {
    %c0_i32 = arith.constant 0 : i32
    %c0_i32_0 = arith.constant 0 : i32
    %c0_i32_1 = arith.constant 0 : i32
    return %c0_i32, %c0_i32_0 : i32, i32
  }
  func.func @transform_7(%arg0: i32) -> (i32, i32) {
    %c0_i32 = arith.constant 0 : i32
    %c0_i32_0 = arith.constant 0 : i32
    %c0_i32_1 = arith.constant 0 : i32
    return %c0_i32, %c0_i32_0 : i32, i32
  }
  func.func @transform_8(%arg0: i32) -> (i32, i32) {
    %c0_i32 = arith.constant 0 : i32
    %c0_i32_0 = arith.constant 0 : i32
    %c0_i32_1 = arith.constant 0 : i32
    return %c0_i32, %c0_i32_0 : i32, i32
  }
  func.func @transform_9(%arg0: i32) -> (i32, i32, i32) {
    %c0_i32 = arith.constant 0 : i32
    %c0_i32_0 = arith.constant 0 : i32
    %c0_i32_1 = arith.constant 0 : i32
    return %arg0, %c0_i32, %c0_i32_0 : i32, i32, i32
  }
}

</mosaic_0001>

<bundles_post_ra>
// kernel: cnn_forward.1
= control target key start
LH: loop header
LB: loop body
LE: loop exit
PB: predicated region body
PF: predicated region fallthrough
CT: control target
= control target key end

     0   :  { %14 = vsyncpa [#allocation8], 0  ;;  %s5465_s0 = inlined_call_operand.vmem [shape: f32[2,16,16], index: 0, kind: input, shape index: {}]   ;;  %s5466_s1 = inlined_call_operand.vmem [shape: f32[9,32], index: 1, kind: input, shape index: {}]   ;;  %s5467_s2 = inlined_call_operand.vmem [shape: f32[1,32], index: 2, kind: input, shape index: {}]   ;;  %s5468_s3 = inlined_call_operand.vmem [shape: f32[288,64], index: 3, kind: input, shape index: {}]   ;;  %s5469_s4 = inlined_call_operand.vmem [shape: f32[1,64], index: 4, kind: input, shape index: {}]   ;;  %s5470_s5 = inlined_call_operand.vmem [shape: f32[4,64,128], index: 5, kind: input, shape index: {}]   ;;  %s5471_s6 = inlined_call_operand.vmem [shape: f32[1,128], index: 6, kind: input, shape index: {}]   ;;  %s5472_s7 = inlined_call_operand.vmem [shape: f32[128,128], index: 7, kind: input, shape index: {}]   ;;  %s5473_s8 = inlined_call_operand.vmem [shape: f32[1,128], index: 8, kind: input, shape index: {}]   ;;  %s5474_s9 = inlined_call_operand.hbm [shape: f32[2,1,128], index: 9, kind: output, shape index: {}]  }
   0x1   :  { %16 = vsyncpa [#allocation8 + $0x1], 0  ;;  %s3996_s30 = smov 0   ;;  %s3998_s10 = smov 0  }
   0x2   :  { %s4000_s11 = smov 0   ;;  %s4002_s12 = smov 0  }
   0x3 LB: > { %s4017_s13 = sadd.s32 4294967295, %s3919_s12   ;;  %s3385_s14 = sadd.s32 4294967294, %s3919_s12   ;;  %s3919_s12 = sphi %s4002_s12, %s5643_s12   ;;  %s3915_s11 = sphi %s4000_s11, %s5642_s11   ;;  %s3911_s10 = sphi %s3998_s10, %s5641_s10   ;;  %s3907_s30 = sphi %s3996_s30, %s5640_s30  }
   0x4   : > { %s4021_s15 = sadd.s32 1, %s3919_s12   ;;  %s223_s16 = sadd.s32 1, %s3915_s11 }
   0x5   : > { %s220_s17 = ssub.s32 %s3919_s12, %s4021_s15  ;;  %p233_p0 = scmp.ne.s32.totalorder %s3915_s11, %s3911_s10 }
   0x6   : > { %p221_p1 = scmp.eq.s32.totalorder %s220_s17, 0  ;;  %p234_p2 = scmp.eq.s32.totalorder %s4017_s13, 1 }
   0x7   : > { %p239_p3 = scmp.ne.s32.totalorder %s3911_s10, %s3907_s30  ;;  %p240_p4 = scmp.eq.s32.totalorder %s3385_s14, 1 }
   0x8   : > { %s4032_s18 = scalar_select %p221_p1, %s3915_s11, %s223_s16  }
   0x9   : > { %p4034_p5 = por %p234_p2, %p233_p0  ;;  %p4038_p6 = por %p240_p4, %p239_p3 }
   0xa   : > { %p3388_p7 = scmp.ge.s32.totalorder %s3919_s12, 1  ;;  %p290_p8 = scmp.lt.s32.totalorder %s3919_s12, 3 }
   0xc   : > { %p291_p9 = pnand %p3388_p7, %p290_p8 }
   0xd   : > { %p325_p10 = scmp.lt.s32.totalorder (!%p291_p9), %s4017_s13, 1  ;;  %s3921_s26 = smov (!%p291_p9), 2  }
   0xe   : > { %294 = sbr.rel (%p291_p9) target bundleno = 1591 (0x637), region = 56  ;;  %s3922_s27 = smov (!%p291_p9), 1  }
   0xf   : > { %s3923_s28 = smov (!%p291_p9), 3   ;;  %s3924_s29 = smov (!%p291_p9), 127  }
  0x10   : > { %s3925_s14 = smov (!%p291_p9), 4   ;;  %s3929_s24 = smov (!%p291_p9), 6  }
  0x11   : > { %s3930_s16 = smov (!%p291_p9), 126   ;;  %s3931_s17 = smov (!%p291_p9), 125  }
  0x13   : > { %s326_s21 = scalar_select %p325_p10, %s4017_s13, 1  ;;  %vm5479_vm0 = vcmask 7168   ;;  %vm5475_vm1 = vcmask 5120   ;;  %v3926_v7 = vmov 0.0   ;;  %v1814_v8 = vld [vmem:[%s5466_s1 + $0x8] sm:$0x1] }
  0x14   : > { %3587 = vmatprep.subr.mxu0 %v3926_v7  ;;  %vm1898_vm2 = vcmask 1040384   ;;  %3791 = vmatprep.subr.mxu1 %v3926_v7  ;;  %v1813_v9 = vld [vmem:[%s5466_s1] sm:$0xff]  ;;  %vm5493_vm3 = vmmov 0   ;;  %vm5483_vm4 = vcmask 15368   ;;  %vm5481_vm5 = vcmask 23568  }
  0x15   : > { %s3454_s22 = sshll.u32 %s326_s21, 4  ;;  %s3927_s21 = smov 5   ;;  %3588 = vmatpush3.msk.msra.mxu0 %vm1898_vm2, %v1814_v8  ;;  %3591 = vmatprep.mubr.msk.f32.mxu0 %vm5493_vm3, %v3926_v7  ;;  %vm5476_vm6 = vcmask 31768   ;;  %vm388_vm7 = vcmask 39968   ;;  %vm5477_vm8 = vcmask 13320   ;;  %vm362_vm9 = vcmask 21520  }
  0x16   : > { %s4049_s25 = scalar_lea.vmem %s5465_s0, %s3454_s22  ;;  %3589 = vmatprep.subr.mxu0 %v3926_v7  ;;  %3793 = vmatpush3.msk.msra.mxu1 %vm1898_vm2, %v1814_v8  ;;  %vm402_vm10 = vcmask 48168   ;;  %vm5478_vm11 = vcmask 56368   ;;  %vm5489_vm12 = vcmask 64568   ;;  %vm5484_vm13 = vcmask 29720   ;;  %s3938_s22 = smov 118  }
  0x17   : > { %v4052_v0 = vld [vmem:[%s4049_s25] sm:$0xff]  ;;  %v337_v3 = vld [vmem:[%s4049_s25 + $0x9] sm:$0x3f]  ;;  %3590 = vmatpush3.msra.mxu0 %v1813_v9  ;;  %3792 = vmatprep.subr.mxu1 %v3926_v7  ;;  %vm5485_vm14 = vcmask 37920   ;;  %vm444_vm15 = vcmask 72768   ;;  %vm404_vm2 = vcmask 46120  }
  0x18   : > { %v4055_v1 = vld [vmem:[%s4049_s25 + $0x1] sm:$0xff]  ;;  %368 = vrot.lane.b32.xlu1 %v4052_v0, %s3921_s26  ;;  %333 = vst.msk [vmem:[#allocation2] sm:$0xff] %vm5479_vm0, %v4052_v0  ;;  %v351_v4 = vld [vmem:[%s4049_s25 + $0xa] sm:$0x3f]  ;;  %3794 = vmatpush3.msra.mxu1 %v1813_v9 }
  0x19   : > { %340 = vrot.lane.b32.xlu0 %v4055_v1, %s3922_s27  ;;  %v4064_v2 = vld [vmem:[%s4049_s25 + $0x2] sm:$0xff]  ;;  %3654 = vmatprep.mubr.msk.f32.mxu1 %vm5493_vm3, %v3926_v7  ;;  %v393_v12 = vld [vmem:[%s4049_s25 + $0xa] sm:$0x3f] }
  0x1a   : > { %v331_v5 = vld [vmem:[%s4049_s25 + $0x8] sm:$0x3f] }
  0x1b   : > { %335 = vst.msk [vmem:[#allocation2 + $0x8] sm:$0x3f] %vm5475_vm1, %v331_v5  ;;  %v365_v6 = vld [vmem:[%s4049_s25 + $0x8] sm:$0x3f] }
  0x1c   : > { %382 = vrot.lane.b32.xlu1 %v4055_v1, %s3923_s28  ;;  %v379_v10 = vld [vmem:[%s4049_s25 + $0x9] sm:$0x3f] }
  0x1d   : > { %354 = vrot.lane.b32.xlu0 %v4064_v2, %s3921_s26  ;;  %v449_v11 = vld [vmem:[%s4049_s25 + $0x8] sm:$0x3f] }
  0x1e   : > { %v407_v13 = vld [vmem:[%s4049_s25 + $0x8] sm:$0x3f] }
  0x1f   : > { %v465_v14 = vld [vmem:[%s4049_s25 + $0xa] sm:$0x3f] }
  0x20   : > { %342 = vrot.lane.b32.xlu1 %v337_v3, %s3922_s27  ;;  %v477_v15 = vld [vmem:[%s4049_s25 + $0x8] sm:$0x3f] }
  0x21   : > { %452 = vrot.lane.b32.xlu0 %v4052_v0, %s3924_s29  ;;  %v421_v16 = vld [vmem:[%s4049_s25 + $0x9] sm:$0x3f] }
  0x22   : > { %v435_v17 = vld [vmem:[%s4049_s25 + $0xa] sm:$0x3f] }
  0x23   : > { %v489_v18 = vld [vmem:[%s4049_s25 + $0x9] sm:$0x3f] }
  0x24   : > { %356 = vrot.lane.b32.xlu1 %v351_v4, %s3921_s26  ;;  %v501_v19 = vld [vmem:[%s4049_s25 + $0xa] sm:$0x3f] }
  0x25   : > { %396 = vrot.lane.b32.xlu0 %v4064_v2, %s3925_s14  ;;  %v513_v20 = vld [vmem:[%s4049_s25 + $0x8] sm:$0x3f] }
  0x26   : > { %v537_v21 = vld [vmem:[%s4049_s25 + $0xa] sm:$0x3f] }
  0x27   : > { %v525_v22 = vld [vmem:[%s4049_s25 + $0x9] sm:$0x3f] }
  0x28   : > { %468 = vrot.lane.b32.xlu1 %v4064_v2, %s3922_s27  ;;  %v549_v23 = vld [vmem:[%s4049_s25 + $0x8] sm:$0x3f] }
  0x29   : > { %410 = vrot.lane.b32.xlu0 %v4052_v0, %s3925_s14  ;;  %v561_v24 = vld [vmem:[%s4049_s25 + $0x9] sm:$0x3f] }
  0x2a   : > { %v581_v25 = vld [vmem:[%s4049_s25 + $0x9] sm:$0x3f] }
  0x2b   : > { %v593_v26 = vld [vmem:[%s4049_s25 + $0xa] sm:$0x3f] }
  0x2c   : > { %424 = vrot.lane.b32.xlu1 %v4055_v1, %s3927_s21  ;;  %v605_v27 = vld [vmem:[%s4049_s25 + $0x8] sm:$0x3f] }
  0x2d   : > { %370 = vrot.lane.b32.xlu0 %v365_v6, %s3921_s26  ;;  %v617_v28 = vld [vmem:[%s4049_s25 + $0x9] sm:$0x3f] }
  0x2e   : > { %v629_v29 = vld [vmem:[%s4049_s25 + $0xa] sm:$0x3f] }
  0x2f   : > { %v653_v30 = vld [vmem:[%s4049_s25 + $0x9] sm:$0x3f] }
  0x30   : > { %384 = vrot.lane.b32.xlu1 %v379_v10, %s3923_s28  ;;  %v641_v31 = vld [vmem:[%s4049_s25 + $0x8] sm:$0x3f] }
  0x31   : > { %480 = vrot.lane.b32.xlu0 %v4052_v0, %s3922_s27  ;;  %v665_v32 = vld [vmem:[%s4049_s25 + $0xa] sm:$0x3f] }
  0x32   : > { %v677_v33 = vld [vmem:[%s4049_s25 + $0x8] sm:$0x3f] }
  0x33   : > { %v693_v34 = vld [vmem:[%s4049_s25 + $0xa] sm:$0x3f] }
  0x34   : > { %454 = vrot.lane.b32.xlu1 %v449_v11, %s3924_s29  ;;  %v705_v37 = vld [vmem:[%s4049_s25 + $0x8] sm:$0x3f] }
  0x35   : > { %438 = vrot.lane.b32.xlu0 %v4064_v2, %s3929_s24  ;;  %v717_v40 = vld [vmem:[%s4049_s25 + $0x9] sm:$0x3f] }
  0x36   : > { %v729_v43 = vld [vmem:[%s4049_s25 + $0xa] sm:$0x3f] }
  0x37   : > { %v741_v46 = vld [vmem:[%s4049_s25 + $0x8] sm:$0x3f] }
  0x38   : > { %398 = vrot.lane.b32.xlu1 %v393_v12, %s3925_s14  ;;  %v753_v49 = vld [vmem:[%s4049_s25 + $0x9] sm:$0x3f] }
  0x39   : > { %492 = vrot.lane.b32.xlu0 %v4055_v1, %s3921_s26  ;;  %v765_v52 = vld [vmem:[%s4049_s25 + $0xa] sm:$0x3f] }
  0x3a   : > { %v777_v55 = vld [vmem:[%s4049_s25 + $0x8] sm:$0x3f] }
  0x3b   : > { %v461_v56 = vld [vmem:[%s4049_s25 + $0x9] sm:$0x3f] }
  0x3c   : > { %412 = vrot.lane.b32.xlu1 %v407_v13, %s3925_s14  ;;  %v789_v61 = vld [vmem:[%s4049_s25 + $0x9] sm:$0x3f] }
  0x3d   : > { %504 = vrot.lane.b32.xlu0 %v4064_v2, %s3923_s28  ;;  %v833_v4 = vld [vmem:[%s4049_s25 + $0x8] sm:$0x3f] }
  0x3e   : > { %v845_v8 = vld [vmem:[%s4049_s25 + $0x9] sm:$0x3f] }
  0x3f   : > { %v857_v11 = vld [vmem:[%s4049_s25 + $0xa] sm:$0x3f] }
  0x40   : > { %516 = vrot.lane.b32.xlu1 %v4052_v0, %s3923_s28 }
  0x41   : > { %470 = vrot.lane.b32.xlu0 %v465_v14, %s3922_s27  ;;  %v869_v14 = vld [vmem:[%s4049_s25 + $0x8] sm:$0x3f] }
  0x44   : > { %482 = vrot.lane.b32.xlu1 %v477_v15, %s3922_s27  ;;  %v809_v15 = vld [vmem:[%s4049_s25 + $0x9] sm:$0x3f] }
  0x45   : > { %426 = vrot.lane.b32.xlu0 %v421_v16, %s3927_s21 }
  0x48   : > { %440 = vrot.lane.b32.xlu1 %v435_v17, %s3929_s24 }
  0x49   : > { %528 = vrot.lane.b32.xlu0 %v4055_v1, %s3925_s14 }
  0x4c   : > { %540 = vrot.lane.b32.xlu1 %v4064_v2, %s3927_s21 }
  0x4d   : > { %494 = vrot.lane.b32.xlu0 %v489_v18, %s3921_s26  ;;  %v881_v18 = vld [vmem:[%s4049_s25 + $0x9] sm:$0x3f] }
  0x50   : > { %506 = vrot.lane.b32.xlu1 %v501_v19, %s3923_s28  ;;  %v821_v19 = vld [vmem:[%s4049_s25 + $0xa] sm:$0x3f] }
  0x51   : > { %552 = vrot.lane.b32.xlu0 %v4052_v0, %s3930_s16 }
  0x54   : > { %518 = vrot.lane.b32.xlu1 %v513_v20, %s3923_s28 }
  0x55   : > { %564 = vrot.lane.b32.xlu0 %v4055_v1, %s3924_s29 }
  0x58   : > { %542 = vrot.lane.b32.xlu1 %v537_v21, %s3927_s21  ;;  %s3934_s21 = smov 122  }
  0x59   : > { %530 = vrot.lane.b32.xlu0 %v525_v22, %s3925_s14 }
  0x5c   : > { %584 = vrot.lane.b32.xlu1 %v4055_v1, %s3922_s27 }
  0x5d   : > { %554 = vrot.lane.b32.xlu0 %v549_v23, %s3930_s16 }
  0x60   : > { %596 = vrot.lane.b32.xlu1 %v4064_v2, %s3921_s26 }
  0x61   : > { %566 = vrot.lane.b32.xlu0 %v561_v24, %s3924_s29 }
  0x64   : > { %620 = vrot.lane.b32.xlu1 %v4055_v1, %s3923_s28 }
  0x65   : > { %608 = vrot.lane.b32.xlu0 %v4052_v0, %s3921_s26 }
  0x68   : > { %632 = vrot.lane.b32.xlu1 %v4064_v2, %s3925_s14 }
  0x69   : > { %586 = vrot.lane.b32.xlu0 %v581_v25, %s3922_s27  ;;  %v893_v25 = vld [vmem:[%s4049_s25 + $0xa] sm:$0x3f] }
  0x6c   : > { %598 = vrot.lane.b32.xlu1 %v593_v26, %s3921_s26 }
  0x6d   : > { %644 = vrot.lane.b32.xlu0 %v4052_v0, %s3931_s17 }
  0x70   : > { %610 = vrot.lane.b32.xlu1 %v605_v27, %s3921_s26 }
  0x71   : > { %656 = vrot.lane.b32.xlu0 %v4055_v1, %s3930_s16 }
  0x74   : > { %622 = vrot.lane.b32.xlu1 %v617_v28, %s3923_s28  ;;  %v905_v28 = vld [vmem:[%s4049_s25 + $0x8] sm:$0x3f] }
  0x75   : > { %668 = vrot.lane.b32.xlu0 %v4064_v2, %s3924_s29 }
  0x78   : > { %634 = vrot.lane.b32.xlu1 %v629_v29, %s3925_s14  ;;  %s3932_s14 = smov 124  }
  0x79   : > { %680 = vrot.lane.b32.xlu0 %v4052_v0, %s3924_s29 }
  0x7c   : > { %658 = vrot.lane.b32.xlu1 %v653_v30, %s3930_s16 }
  0x7d   : > { %646 = vrot.lane.b32.xlu0 %v641_v31, %s3931_s17  ;;  %v573_v31 = vld [vmem:[%s4049_s25 + $0xa] sm:$0x3f] }
  0x80   : > { %670 = vrot.lane.b32.xlu1 %v665_v32, %s3924_s29  ;;  %v921_v32 = vld [vmem:[%s4049_s25 + $0xa] sm:$0x3f] }
  0x81   : > { %696 = vrot.lane.b32.xlu0 %v4064_v2, %s3922_s27 }
  0x84   : > { %682 = vrot.lane.b32.xlu1 %v677_v33, %s3924_s29 }
  0x85   : > { %708 = vrot.lane.b32.xlu0 %v4052_v0, %s3922_s27 }
  0x88   : > { %732 = vrot.lane.b32.xlu1 %v4064_v2, %s3923_s28 }
  0x89   : > { %720 = vrot.lane.b32.xlu0 %v4055_v1, %s3921_s26 }
  0x8a   : > { %v369_v35 = vpop.permute.xlu1 %368 }
  0x8b   : > { %v341_v36 = vpop.permute.xlu0 %340 }
  0x8c   : > { %347 = vst.msk [vmem:[#allocation2] sm:$0xff] %vm5483_vm4, %v341_v36  ;;  %698 = vrot.lane.b32.xlu1 %v693_v34, %s3922_s27 }
  0x8d   : > { %744 = vrot.lane.b32.xlu0 %v4052_v0, %s3932_s14 }
  0x8e   : > { %v383_v38 = vpop.permute.xlu1 %382 }
  0x8f   : > { %v355_v39 = vpop.permute.xlu0 %354 }
  0x90   : > { %361 = vst.msk [vmem:[#allocation2] sm:$0xff] %vm5481_vm5, %v355_v39  ;;  %710 = vrot.lane.b32.xlu1 %v705_v37, %s3922_s27  ;;  %v933_v37 = vld [vmem:[%s4049_s25 + $0x8] sm:$0x3f] }
  0x91   : > { %375 = vst.msk [vmem:[#allocation2] sm:$0xff] %vm5476_vm6, %v369_v35  ;;  %756 = vrot.lane.b32.xlu0 %v4055_v1, %s3931_s17  ;;  %v577_v35 = vld [vmem:[%s4049_s25 + $0x8] sm:$0x3f] }
  0x92   : > { %389 = vst.msk [vmem:[#allocation2] sm:$0xff] %vm388_vm7, %v383_v38  ;;  %v343_v41 = vpop.permute.xlu1 %342 }
  0x93   : > { %v453_v42 = vpop.permute.xlu0 %452  ;;  %349 = vst.msk [vmem:[#allocation2 + $0x8] sm:$0x3f] %vm5477_vm8, %v343_v41 }
  0x94   : > { %458 = vst.msk [vmem:[#allocation2 + $0xe] sm:$0xff] %vm5479_vm0, %v453_v42  ;;  %722 = vrot.lane.b32.xlu1 %v717_v40, %s3921_s26  ;;  %v945_v40 = vld [vmem:[%s4049_s25 + $0x9] sm:$0x3f] }
  0x95   : > { %768 = vrot.lane.b32.xlu0 %v4064_v2, %s3930_s16  ;;  %462 = vst.msk [vmem:[#allocation2 + $0xe] sm:$0xff] %vm5483_vm4, %v4055_v1 }
  0x96   : > { %v357_v44 = vpop.permute.xlu1 %356 }
  0x97   : > { %v397_v45 = vpop.permute.xlu0 %396  ;;  %363 = vst.msk [vmem:[#allocation2 + $0x8] sm:$0x3f] %vm362_vm9, %v357_v44 }
  0x98   : > { %403 = vst.msk [vmem:[#allocation2] sm:$0xff] %vm402_vm10, %v397_v45  ;;  %734 = vrot.lane.b32.xlu1 %v729_v43, %s3923_s28  ;;  %s3933_s28 = smov 123   ;;  %v957_v43 = vld [vmem:[%s4049_s25 + $0xa] sm:$0x3f] }
  0x99   : > { %780 = vrot.lane.b32.xlu0 %v4052_v0, %s3930_s16 }
  0x9a   : > { %v469_v47 = vpop.permute.xlu1 %468 }
  0x9b   : > { %v411_v48 = vpop.permute.xlu0 %410  ;;  %474 = vst.msk [vmem:[#allocation2 + $0xe] sm:$0xff] %vm5481_vm5, %v469_v47 }
  0x9c   : > { %417 = vst.msk [vmem:[#allocation2] sm:$0xff] %vm5478_vm11, %v411_v48  ;;  %792 = vrot.lane.b32.xlu1 %v4055_v1, %s3924_s29 }
  0x9d   : > { %746 = vrot.lane.b32.xlu0 %v741_v46, %s3932_s14  ;;  %v969_v46 = vld [vmem:[%s4049_s25 + $0x8] sm:$0x3f] }
  0x9e   : > { %v425_v50 = vpop.permute.xlu1 %424 }
  0x9f   : > { %v371_v51 = vpop.permute.xlu0 %370  ;;  %431 = vst.msk [vmem:[#allocation2] sm:$0xff] %vm5489_vm12, %v425_v50  ;;  %v981_v50 = vld [vmem:[%s4049_s25 + $0x9] sm:$0x3f] }
  0xa0   : > { %377 = vst.msk [vmem:[#allocation2 + $0x8] sm:$0x3f] %vm5484_vm13, %v371_v51  ;;  %758 = vrot.lane.b32.xlu1 %v753_v49, %s3931_s17 }
  0xa1   : > { %836 = vrot.lane.b32.xlu0 %v4052_v0, %s3933_s28 }
  0xa2   : > { %v385_v53 = vpop.permute.xlu1 %384 }
  0xa3   : > { %v481_v54 = vpop.permute.xlu0 %480  ;;  %391 = vst.msk [vmem:[#allocation2 + $0x8] sm:$0x3f] %vm5485_vm14, %v385_v53  ;;  %v993_v53 = vld [vmem:[%s4049_s25 + $0xa] sm:$0x3f] }
  0xa4   : > { %486 = vst.msk [vmem:[#allocation2 + $0xe] sm:$0xff] %vm5476_vm6, %v481_v54  ;;  %770 = vrot.lane.b32.xlu1 %v765_v52, %s3930_s16  ;;  %vm1822_vm6 = vcmask 72704  }
  0xa5   : > { %848 = vrot.lane.b32.xlu0 %v4055_v1, %s3932_s14 }
  0xa6   : > { %v455_v57 = vpop.permute.xlu1 %454 }
  0xa7   : > { %v439_v58 = vpop.permute.xlu0 %438  ;;  %459 = vst.msk [vmem:[#allocation2 + $0x16] sm:$0x3f] %vm5475_vm1, %v455_v57  ;;  %vm5491_vm1 = vcmask 54320  }
  0xa8   : > { %445 = vst.msk [vmem:[#allocation2] sm:$0xff] %vm444_vm15, %v439_v58  ;;  %782 = vrot.lane.b32.xlu1 %v777_v55, %s3930_s16 }
  0xa9   : > { %860 = vrot.lane.b32.xlu0 %v4064_v2, %s3931_s17  ;;  %463 = vst.msk [vmem:[#allocation2 + $0x16] sm:$0x3f] %vm5477_vm8, %v461_v56  ;;  %vm5482_vm8 = vcmask 62520   ;;  %v1005_v56 = vld [vmem:[%s4049_s25 + $0x8] sm:$0x3f] }
  0xaa   : > { %v399_v59 = vpop.permute.xlu1 %398 }
  0xab   : > { %v493_v60 = vpop.permute.xlu0 %492  ;;  %405 = vst.msk [vmem:[#allocation2 + $0x8] sm:$0x3f] %vm404_vm2, %v399_v59  ;;  %v1017_v59 = vld [vmem:[%s4049_s25 + $0x9] sm:$0x3f] }
  0xac   : > { %498 = vst.msk [vmem:[#allocation2 + $0xe] sm:$0xff] %vm388_vm7, %v493_v60  ;;  %872 = vrot.lane.b32.xlu1 %v4052_v0, %s3931_s17 }
  0xad   : > { %812 = vrot.lane.b32.xlu0 %v4055_v1, %s3922_s27 }
  0xae   : > { %v413_v62 = vpop.permute.xlu1 %412 }
  0xaf   : > { %v505_v63 = vpop.permute.xlu0 %504  ;;  %v1788_v3 = vld [vmem:[#allocation2] sm:$0xff]  ;;  %419 = vst.msk [vmem:[#allocation2 + $0x8] sm:$0x3f] %vm5491_vm1, %v413_v62 }
  0xb0   : > { %510 = vst.msk [vmem:[#allocation2 + $0xe] sm:$0xff] %vm402_vm10, %v505_v63  ;;  %3592 = vmatmul.mubr.msk.f32.vlgmr.msra.gmra.mxu0 %vm1822_vm6, %v1788_v3  ;;  %824 = vrot.lane.b32.xlu1 %v4064_v2, %s3921_s26  ;;  %v1033_v63 = vld [vmem:[%s4049_s25 + $0x8] sm:$0x3f] }
  0xb1   : > { %794 = vrot.lane.b32.xlu0 %v789_v61, %s3924_s29  ;;  %3594 = vmatprep.mubr.msk.f32.mxu0 %vm5493_vm3, %v3926_v7  ;;  %v689_v3 = vld [vmem:[%s4049_s25 + $0x9] sm:$0x3f] }
  0xb2   : > { %v517_v5 = vpop.permute.xlu1 %516 }
  0xb3   : > { %v471_v6 = vpop.permute.xlu0 %470  ;;  %522 = vst.msk [vmem:[#allocation2 + $0xe] sm:$0xff] %vm5478_vm11, %v517_v5  ;;  %vm5480_vm11 = vcmask 70720  }
  0xb4   : > { %475 = vst.msk [vmem:[#allocation2 + $0x16] sm:$0x3f] %vm362_vm9, %v471_v6  ;;  %884 = vrot.lane.b32.xlu1 %v4055_v1, %s3930_s16  ;;  %v1045_v6 = vld [vmem:[%s4049_s25 + $0x9] sm:$0x3f] }
  0xb5   : > { %838 = vrot.lane.b32.xlu0 %v833_v4, %s3933_s28 }
  0xb6   : > { %v483_v9 = vpop.permute.xlu1 %482 }
  0xb7   : > { %v427_v10 = vpop.permute.xlu0 %426  ;;  %487 = vst.msk [vmem:[#allocation2 + $0x16] sm:$0x3f] %vm5484_vm13, %v483_v9 }
  0xb8   : > { %433 = vst.msk [vmem:[#allocation2 + $0x8] sm:$0x3f] %vm5482_vm8, %v427_v10  ;;  %896 = vrot.lane.b32.xlu1 %v4064_v2, %s3924_s29  ;;  %v1057_v10 = vld [vmem:[%s4049_s25 + $0xa] sm:$0x3f] }
  0xb9   : > { %850 = vrot.lane.b32.xlu0 %v845_v8, %s3932_s14 }
  0xba   : > { %v441_v12 = vpop.permute.xlu1 %440 }
  0xbb   : > { %v529_v13 = vpop.permute.xlu0 %528  ;;  %447 = vst.msk [vmem:[#allocation2 + $0x8] sm:$0x3f] %vm5480_vm11, %v441_v12 }
  0xbc   : > { %534 = vst.msk [vmem:[#allocation2 + $0xe] sm:$0xff] %vm5489_vm12, %v529_v13  ;;  %908 = vrot.lane.b32.xlu1 %v4052_v0, %s3924_s29  ;;  %v1069_v13 = vld [vmem:[%s4049_s25 + $0x8] sm:$0x3f] }
  0xbd   : > { %862 = vrot.lane.b32.xlu0 %v857_v11, %s3931_s17 }
  0xbe   : > { %v541_v16 = vpop.permute.xlu1 %540 }
  0xbf   : > { %v495_v17 = vpop.permute.xlu0 %494  ;;  %546 = vst.msk [vmem:[#allocation2 + $0xe] sm:$0xff] %vm444_vm15, %v541_v16 }
  0xc0   : > { %499 = vst.msk [vmem:[#allocation2 + $0x16] sm:$0x3f] %vm5485_vm14, %v495_v17  ;;  %874 = vrot.lane.b32.xlu1 %v869_v14, %s3931_s17  ;;  %v1081_v17 = vld [vmem:[%s4049_s25 + $0x9] sm:$0x3f] }
  0xc1   : > { %814 = vrot.lane.b32.xlu0 %v809_v15, %s3922_s27 }
  0xc2   : > { %v507_v20 = vpop.permute.xlu1 %506 }
  0xc3   : > { %v553_v21 = vpop.permute.xlu0 %552  ;;  %511 = vst.msk [vmem:[#allocation2 + $0x16] sm:$0x3f] %vm404_vm2, %v507_v20  ;;  %v1093_v20 = vld [vmem:[%s4049_s25 + $0xa] sm:$0x3f] }
  0xc4   : > { %558 = vst.msk [vmem:[#allocation2 + $0x1c] sm:$0xff] %vm5479_vm0, %v553_v21  ;;  %886 = vrot.lane.b32.xlu1 %v881_v18, %s3930_s16  ;;  %vm5497_vm0 = vcmask 31768  }
  0xc5   : > { %826 = vrot.lane.b32.xlu0 %v821_v19, %s3921_s26  ;;  %s3935_s26 = smov 121  }
  0xc6   : > { %v519_v22 = vpop.permute.xlu1 %518  ;;  %v1789_v24 = vld [vmem:[#allocation2 + $0x8] sm:$0xff] }
  0xc7   : > { %v565_v23 = vpop.permute.xlu0 %564  ;;  %523 = vst.msk [vmem:[#allocation2 + $0x16] sm:$0x3f] %vm5491_vm1, %v519_v22  ;;  %3595 = vmatmul.mubr.msk.f32.gmra.mxu0 %vm1822_vm6, %v1789_v24 }
  0xc8   : > { %570 = vst.msk [vmem:[#allocation2 + $0x1c] sm:$0xff] %vm5483_vm4, %v565_v23  ;;  %936 = vrot.lane.b32.xlu1 %v4052_v0, %s3934_s21  ;;  %3597 = vmatprep.mubr.msk.f32.mxu0 %vm5493_vm3, %v3926_v7  ;;  %v1105_v23 = vld [vmem:[%s4049_s25 + $0x8] sm:$0x3f] }
  0xc9   : > { %574 = vst.msk [vmem:[#allocation2 + $0x1c] sm:$0xff] %vm5481_vm5, %v4064_v2  ;;  %924 = vrot.lane.b32.xlu0 %v4064_v2, %s3922_s27 }
  0xca   : > { %578 = vst.msk [vmem:[#allocation2 + $0x1c] sm:$0xff] %vm5497_vm0, %v4052_v0  ;;  %v543_v26 = vpop.permute.xlu1 %542  ;;  %vm5498_vm0 = vcmask 5120  }
  0xcb   : > { %v531_v27 = vpop.permute.xlu0 %530 }
  0xcc   : > { %535 = vst.msk [vmem:[#allocation2 + $0x16] sm:$0x3f] %vm5482_vm8, %v531_v27  ;;  %948 = vrot.lane.b32.xlu1 %v4055_v1, %s3933_s28 }
  0xcd   : > { %547 = vst.msk [vmem:[#allocation2 + $0x16] sm:$0x3f] %vm5480_vm11, %v543_v26  ;;  %898 = vrot.lane.b32.xlu0 %v893_v25, %s3924_s29  ;;  %vm5499_vm11 = vcmask 13320   ;;  %v1117_v26 = vld [vmem:[%s4049_s25 + $0x9] sm:$0x3f] }
  0xce   : > { %v585_v29 = vpop.permute.xlu1 %584 }
  0xcf   : > { %v555_v30 = vpop.permute.xlu0 %554  ;;  %590 = vst.msk [vmem:[#allocation2 + $0x1c] sm:$0xff] %vm388_vm7, %v585_v29 }
  0xd0   : > { %559 = vst.msk [vmem:[#allocation2 + $0x24] sm:$0x3f] %vm5498_vm0, %v555_v30  ;;  %960 = vrot.lane.b32.xlu1 %v4064_v2, %s3932_s14  ;;  %vm5501_vm0 = vcmask 7168   ;;  %v1129_v30 = vld [vmem:[%s4049_s25 + $0xa] sm:$0x3f] }
  0xd1   : > { %910 = vrot.lane.b32.xlu0 %v905_v28, %s3924_s29 }
  0xd2   : > { %v597_v33 = vpop.permute.xlu1 %596 }
  0xd3   : > { %v567_v34 = vpop.permute.xlu0 %566  ;;  %602 = vst.msk [vmem:[#allocation2 + $0x1c] sm:$0xff] %vm402_vm10, %v597_v33  ;;  %v1141_v33 = vld [vmem:[%s4049_s25 + $0x8] sm:$0x3f] }
  0xd4   : > { %571 = vst.msk [vmem:[#allocation2 + $0x24] sm:$0x3f] %vm5499_vm11, %v567_v34  ;;  %v1790_v36 = vld [vmem:[#allocation2 + $0x10] sm:$0xff]  ;;  %926 = vrot.lane.b32.xlu1 %v921_v32, %s3922_s27  ;;  %vm5500_vm11 = vcmask 56368   ;;  %s3936_s27 = smov 120  }
  0xd5   : > { %575 = vst.msk [vmem:[#allocation2 + $0x24] sm:$0x3f] %vm362_vm9, %v573_v31  ;;  %972 = vrot.lane.b32.xlu0 %v4052_v0, %s3932_s14  ;;  %3598 = vmatmul.mubr.msk.f32.gmra.mxu0 %vm1822_vm6, %v1790_v36  ;;  %v1153_v36 = vld [vmem:[%s4049_s25 + $0x9] sm:$0x3f] }
  0xd6   : > { %579 = vst.msk [vmem:[#allocation2 + $0x24] sm:$0x3f] %vm5484_vm13, %v577_v35  ;;  %v621_v38 = vpop.permute.xlu1 %620  ;;  %3600 = vmatprep.mubr.msk.f32.mxu0 %vm5493_vm3, %v3926_v7 }
  0xd7   : > { %v609_v39 = vpop.permute.xlu0 %608 }
  0xd8   : > { %614 = vst.msk [vmem:[#allocation2 + $0x1c] sm:$0xff] %vm5500_vm11, %v609_v39  ;;  %984 = vrot.lane.b32.xlu1 %v4055_v1, %s3931_s17  ;;  %vm5502_vm11 = vcmask 70720   ;;  %v801_v39 = vld [vmem:[%s4049_s25 + $0xa] sm:$0x3f] }
  0xd9   : > { %626 = vst.msk [vmem:[#allocation2 + $0x1c] sm:$0xff] %vm5489_vm12, %v621_v38  ;;  %938 = vrot.lane.b32.xlu0 %v933_v37, %s3934_s21 }
  0xda   : > { %v633_v41 = vpop.permute.xlu1 %632 }
  0xdb   : > { %v587_v42 = vpop.permute.xlu0 %586  ;;  %638 = vst.msk [vmem:[#allocation2 + $0x1c] sm:$0xff] %vm444_vm15, %v633_v41 }
  0xdc   : > { %591 = vst.msk [vmem:[#allocation2 + $0x24] sm:$0x3f] %vm5485_vm14, %v587_v42  ;;  %996 = vrot.lane.b32.xlu1 %v4064_v2, %s3930_s16  ;;  %v805_v42 = vld [vmem:[%s4049_s25 + $0x8] sm:$0x3f] }
  0xdd   : > { %950 = vrot.lane.b32.xlu0 %v945_v40, %s3933_s28 }
  0xde   : > { %v599_v44 = vpop.permute.xlu1 %598 }
  0xdf   : > { %v645_v45 = vpop.permute.xlu0 %644  ;;  %603 = vst.msk [vmem:[#allocation2 + $0x24] sm:$0x3f] %vm404_vm2, %v599_v44 }
  0xe0   : > { %650 = vst.msk [vmem:[#allocation2 + $0x2a] sm:$0xff] %vm5501_vm0, %v645_v45  ;;  %1008 = vrot.lane.b32.xlu1 %v4052_v0, %s3930_s16  ;;  %vm5503_vm0 = vcmask 31768  }
  0xe1   : > { %962 = vrot.lane.b32.xlu0 %v957_v43, %s3932_s14  ;;  %v4471_v43 = vld [vmem:[%s4049_s25] sm:$0xff] }
  0xe2   : > { %v611_v47 = vpop.permute.xlu1 %610  ;;  %v1791_v49 = vld [vmem:[#allocation2 + $0x18] sm:$0xff] }
  0xe3   : > { %v657_v48 = vpop.permute.xlu0 %656  ;;  %615 = vst.msk [vmem:[#allocation2 + $0x24] sm:$0x3f] %vm5491_vm1, %v611_v47  ;;  %3601 = vmatmul.mubr.msk.f32.gmra.mxu0 %vm1822_vm6, %v1791_v49  ;;  %v4491_v49 = vld [vmem:[%s4049_s25 + $0x1] sm:$0xff] }
  0xe4   : > { %662 = vst.msk [vmem:[#allocation2 + $0x2a] sm:$0xff] %vm5483_vm4, %v657_v48  ;;  %1020 = vrot.lane.b32.xlu1 %v4055_v1, %s3924_s29  ;;  %3603 = vmatprep.mubr.msk.f32.mxu0 %vm5493_vm3, %v3926_v7 }
  0xe5   : > { %974 = vrot.lane.b32.xlu0 %v969_v46, %s3932_s14  ;;  %v4482_v46 = vld [vmem:[%s4049_s25 + $0x2] sm:$0xff] }
  0xe6   : > { %v623_v51 = vpop.permute.xlu1 %622 }
  0xe7   : > { %v669_v52 = vpop.permute.xlu0 %668  ;;  %627 = vst.msk [vmem:[#allocation2 + $0x24] sm:$0x3f] %vm5482_vm8, %v623_v51  ;;  %vm5505_vm8 = vcmask 13320  }
  0xe8   : > { %674 = vst.msk [vmem:[#allocation2 + $0x2a] sm:$0xff] %vm5481_vm5, %v669_v52  ;;  %1036 = vrot.lane.b32.xlu1 %v4052_v0, %s3935_s26  ;;  %vm5504_vm5 = vcmask 5120   ;;  %v1189_v52 = vld [vmem:[%s4049_s25 + $0x9] sm:$0x3f] }
  0xe9   : > { %986 = vrot.lane.b32.xlu0 %v981_v50, %s3931_s17 }
  0xea   : > { %v635_v54 = vpop.permute.xlu1 %634 }
  0xeb   : > { %v681_v55 = vpop.permute.xlu0 %680  ;;  %639 = vst.msk [vmem:[#allocation2 + $0x24] sm:$0x3f] %vm5502_vm11, %v635_v54  ;;  %vm5508_vm11 = vcmask 62520  }
  0xec   : > { %686 = vst.msk [vmem:[#allocation2 + $0x2a] sm:$0xff] %vm5503_vm0, %v681_v55  ;;  %1048 = vrot.lane.b32.xlu1 %v4055_v1, %s3934_s21  ;;  %vm5509_vm0 = vcmask 23568   ;;  %v1249_v55 = vld [vmem:[%s4049_s25 + $0x8] sm:$0x3f] }
  0xed   : > { %998 = vrot.lane.b32.xlu0 %v993_v53, %s3930_s16  ;;  %690 = vst.msk [vmem:[#allocation2 + $0x2a] sm:$0xff] %vm388_vm7, %v4055_v1 }
  0xee   : > { %v659_v57 = vpop.permute.xlu1 %658 }
  0xef   : > { %v647_v58 = vpop.permute.xlu0 %646 }
  0xf0   : > { %651 = vst.msk [vmem:[#allocation2 + $0x32] sm:$0x3f] %vm5504_vm5, %v647_v58  ;;  %1060 = vrot.lane.b32.xlu1 %v4064_v2, %s3933_s28  ;;  %vm5506_vm5 = vcmask 56368   ;;  %v1261_v58 = vld [vmem:[%s4049_s25 + $0x9] sm:$0x3f] }
  0xf1   : > { %663 = vst.msk [vmem:[#allocation2 + $0x32] sm:$0x3f] %vm5505_vm8, %v659_v57  ;;  %1010 = vrot.lane.b32.xlu0 %v1005_v56, %s3930_s16  ;;  %vm5507_vm8 = vcmask 7168  }
  0xf2   : > { %v671_v60 = vpop.permute.xlu1 %670  ;;  %v1792_v62 = vld [vmem:[#allocation2 + $0x20] sm:$0xff] }
  0xf3   : > { %v697_v61 = vpop.permute.xlu0 %696  ;;  %675 = vst.msk [vmem:[#allocation2 + $0x32] sm:$0x3f] %vm362_vm9, %v671_v60  ;;  %3604 = vmatmul.mubr.msk.f32.gmra.mxu0 %vm1822_vm6, %v1792_v62  ;;  %v1213_v62 = vld [vmem:[%s4049_s25 + $0x8] sm:$0x3f] }
  0xf4   : > { %702 = vst.msk [vmem:[#allocation2 + $0x2a] sm:$0xff] %vm402_vm10, %v697_v61  ;;  %1072 = vrot.lane.b32.xlu1 %v4052_v0, %s3933_s28  ;;  %3606 = vmatprep.mubr.msk.f32.mxu0 %vm5493_vm3, %v3926_v7 }
  0xf5   : > { %1022 = vrot.lane.b32.xlu0 %v1017_v59, %s3924_s29  ;;  %v1201_v59 = vld [vmem:[%s4049_s25 + $0xa] sm:$0x3f] }
  0xf6   : > { %v683_v4 = vpop.permute.xlu1 %682 }
  0xf7   : > { %v709_v5 = vpop.permute.xlu0 %708  ;;  %687 = vst.msk [vmem:[#allocation2 + $0x32] sm:$0x3f] %vm5484_vm13, %v683_v4  ;;  %v1273_v4 = vld [vmem:[%s4049_s25 + $0xa] sm:$0x3f] }
  0xf8   : > { %714 = vst.msk [vmem:[#allocation2 + $0x2a] sm:$0xff] %vm5506_vm5, %v709_v5  ;;  %1084 = vrot.lane.b32.xlu1 %v4055_v1, %s3932_s14  ;;  %vm5510_vm5 = vcmask 70720   ;;  %v917_v5 = vld [vmem:[%s4049_s25 + $0x9] sm:$0x3f] }
  0xf9   : > { %1038 = vrot.lane.b32.xlu0 %v1033_v63, %s3935_s26  ;;  %691 = vst.msk [vmem:[#allocation2 + $0x32] sm:$0x3f] %vm5485_vm14, %v689_v3 }
  0xfa   : > { %v733_v8 = vpop.permute.xlu1 %732 }
  0xfb   : > { %v721_v9 = vpop.permute.xlu0 %720 }
  0xfc   : > { %726 = vst.msk [vmem:[#allocation2 + $0x2a] sm:$0xff] %vm5489_vm12, %v721_v9  ;;  %1096 = vrot.lane.b32.xlu1 %v4064_v2, %s3931_s17 }
  0xfd   : > { %738 = vst.msk [vmem:[#allocation2 + $0x2a] sm:$0xff] %vm444_vm15, %v733_v8  ;;  %1050 = vrot.lane.b32.xlu0 %v1045_v6, %s3934_s21 }
  0xfe   : > { %v699_v11 = vpop.permute.xlu1 %698 }
  0xff   : > { %v745_v12 = vpop.permute.xlu0 %744  ;;  %703 = vst.msk [vmem:[#allocation2 + $0x32] sm:$0x3f] %vm404_vm2, %v699_v11  ;;  %v1225_v11 = vld [vmem:[%s4049_s25 + $0x9] sm:$0x3f] }
 0x100   : > { %750 = vst.msk [vmem:[#allocation2 + $0x38] sm:$0xff] %vm5507_vm8, %v745_v12  ;;  %1108 = vrot.lane.b32.xlu1 %v4052_v0, %s3931_s17  ;;  %vm5511_vm8 = vcmask 31768  }
 0x101   : > { %1062 = vrot.lane.b32.xlu0 %v1057_v10, %s3933_s28  ;;  %v1285_v10 = vld [vmem:[%s4049_s25 + $0x8] sm:$0x3f] }
 0x102   : > { %v711_v14 = vpop.permute.xlu1 %710 }
 0x103   : > { %v757_v15 = vpop.permute.xlu0 %756  ;;  %715 = vst.msk [vmem:[#allocation2 + $0x32] sm:$0x3f] %vm5491_vm1, %v711_v14  ;;  %v1237_v14 = vld [vmem:[%s4049_s25 + $0xa] sm:$0x3f] }
 0x104   : > { %762 = vst.msk [vmem:[#allocation2 + $0x38] sm:$0xff] %vm5483_vm4, %v757_v15  ;;  %v1793_v16 = vld [vmem:[#allocation2 + $0x28] sm:$0xff]  ;;  %1120 = vrot.lane.b32.xlu1 %v4055_v1, %s3930_s16 }
 0x105   : > { %1074 = vrot.lane.b32.xlu0 %v1069_v13, %s3933_s28  ;;  %3607 = vmatmul.mubr.msk.f32.gmra.mxu0 %vm1822_vm6, %v1793_v16 }
 0x106   : > { %v723_v18 = vpop.permute.xlu1 %722  ;;  %3609 = vmatprep.mubr.msk.f32.mxu0 %vm5493_vm3, %v3926_v7 }
 0x107   : > { %v769_v19 = vpop.permute.xlu0 %768  ;;  %727 = vst.msk [vmem:[#allocation2 + $0x32] sm:$0x3f] %vm5508_vm11, %v723_v18  ;;  %vm5512_vm11 = vcmask 5120  }
 0x108   : > { %774 = vst.msk [vmem:[#allocation2 + $0x38] sm:$0xff] %vm5509_vm0, %v769_v19  ;;  %1132 = vrot.lane.b32.xlu1 %v4064_v2, %s3924_s29  ;;  %vm5513_vm0 = vcmask 56368  }
 0x109   : > { %1086 = vrot.lane.b32.xlu0 %v1081_v17, %s3932_s14  ;;  %v1297_v17 = vld [vmem:[%s4049_s25 + $0x9] sm:$0x3f] }
 0x10a   : > { %v735_v21 = vpop.permute.xlu1 %734 }
 0x10b   : > { %v781_v22 = vpop.permute.xlu0 %780  ;;  %739 = vst.msk [vmem:[#allocation2 + $0x32] sm:$0x3f] %vm5510_vm5, %v735_v21  ;;  %vm5514_vm5 = vcmask 13320   ;;  %v1309_v21 = vld [vmem:[%s4049_s25 + $0xa] sm:$0x3f] }
 0x10c   : > { %786 = vst.msk [vmem:[#allocation2 + $0x38] sm:$0xff] %vm5511_vm8, %v781_v22  ;;  %1098 = vrot.lane.b32.xlu1 %v1093_v20, %s3931_s17  ;;  %vm5515_vm8 = vcmask 7168  }
 0x10d   : > { %1144 = vrot.lane.b32.xlu0 %v4052_v0, %s3936_s27 }
 0x10e   : > { %v793_v24 = vpop.permute.xlu1 %792 }
 0x10f   : > { %v747_v25 = vpop.permute.xlu0 %746  ;;  %798 = vst.msk [vmem:[#allocation2 + $0x38] sm:$0xff] %vm388_vm7, %v793_v24  ;;  %v1321_v24 = vld [vmem:[%s4049_s25 + $0x8] sm:$0x3f] }
 0x110   : > { %751 = vst.msk [vmem:[#allocation2 + $0x40] sm:$0x3f] %vm5512_vm11, %v747_v25  ;;  %1110 = vrot.lane.b32.xlu1 %v1105_v23, %s3931_s17  ;;  %vm5516_vm11 = vcmask 23568  }
 0x111   : > { %802 = vst.msk [vmem:[#allocation2 + $0x38] sm:$0xff] %vm402_vm10, %v4064_v2  ;;  %1156 = vrot.lane.b32.xlu0 %v4055_v1, %s3935_s26 }
 0x112   : > { %806 = vst.msk [vmem:[#allocation2 + $0x38] sm:$0xff] %vm5513_vm0, %v4052_v0  ;;  %v759_v27 = vpop.permute.xlu1 %758  ;;  %v1794_v29 = vld [vmem:[#allocation2 + $0x30] sm:$0xff]  ;;  %vm5517_vm0 = vcmask 31768  }
 0x113   : > { %v837_v28 = vpop.permute.xlu0 %836  ;;  %763 = vst.msk [vmem:[#allocation2 + $0x40] sm:$0x3f] %vm5514_vm5, %v759_v27  ;;  %3610 = vmatmul.mubr.msk.f32.gmra.mxu0 %vm1822_vm6, %v1794_v29  ;;  %vm5518_vm5 = vcmask 5120   ;;  %v1333_v27 = vld [vmem:[%s4049_s25 + $0x9] sm:$0x3f] }
 0x114   : > { %842 = vst.msk [vmem:[#allocation2 + $0x46] sm:$0xff] %vm5515_vm8, %v837_v28  ;;  %1122 = vrot.lane.b32.xlu1 %v1117_v26, %s3930_s16  ;;  %3612 = vmatprep.mubr.msk.f32.mxu0 %vm5493_vm3, %v3926_v7  ;;  %vm5519_vm8 = vcmask 13320  }
 0x115   : > { %1168 = vrot.lane.b32.xlu0 %v4064_v2, %s3934_s21 }
 0x116   : > { %v771_v31 = vpop.permute.xlu1 %770 }
 0x117   : > { %v849_v32 = vpop.permute.xlu0 %848  ;;  %775 = vst.msk [vmem:[#allocation2 + $0x40] sm:$0x3f] %vm362_vm9, %v771_v31 }
 0x118   : > { %854 = vst.msk [vmem:[#allocation2 + $0x46] sm:$0xff] %vm5483_vm4, %v849_v32  ;;  %1134 = vrot.lane.b32.xlu1 %v1129_v30, %s3924_s29  ;;  %s3937_s29 = smov 119   ;;  %v1345_v30 = vld [vmem:[%s4049_s25 + $0xa] sm:$0x3f] }
 0x119   : > { %1180 = vrot.lane.b32.xlu0 %v4052_v0, %s3934_s21 }
 0x11a   : > { %v783_v34 = vpop.permute.xlu1 %782 }
 0x11b   : > { %v861_v35 = vpop.permute.xlu0 %860  ;;  %787 = vst.msk [vmem:[#allocation2 + $0x40] sm:$0x3f] %vm5484_vm13, %v783_v34  ;;  %v1357_v34 = vld [vmem:[%s4049_s25 + $0x8] sm:$0x3f] }
 0x11c   : > { %866 = vst.msk [vmem:[#allocation2 + $0x46] sm:$0xff] %vm5516_vm11, %v861_v35  ;;  %1192 = vrot.lane.b32.xlu1 %v4055_v1, %s3933_s28  ;;  %vm5520_vm11 = vcmask 56368  }
 0x11d   : > { %1146 = vrot.lane.b32.xlu0 %v1141_v33, %s3936_s27 }
 0x11e   : > { %v873_v37 = vpop.permute.xlu1 %872 }
 0x11f   : > { %v813_v38 = vpop.permute.xlu0 %812  ;;  %878 = vst.msk [vmem:[#allocation2 + $0x46] sm:$0xff] %vm5517_vm0, %v873_v37  ;;  %vm5521_vm0 = vcmask 62520   ;;  %v1029_v37 = vld [vmem:[%s4049_s25 + $0xa] sm:$0x3f] }
 0x120   : > { %818 = vst.msk [vmem:[#allocation2 + $0x38] sm:$0xff] %vm5489_vm12, %v813_v38  ;;  %1158 = vrot.lane.b32.xlu1 %v1153_v36, %s3935_s26  ;;  %v1369_v38 = vld [vmem:[%s4049_s25 + $0x9] sm:$0x3f] }
 0x121   : > { %1252 = vrot.lane.b32.xlu0 %v4052_v0, %s3937_s29  ;;  %v1165_v0 = vld [vmem:[%s4049_s25 + $0xa] sm:$0x3f] }
 0x122   : > { %v825_v40 = vpop.permute.xlu1 %824 }
 0x123   : > { %v795_v41 = vpop.permute.xlu0 %794  ;;  %830 = vst.msk [vmem:[#allocation2 + $0x38] sm:$0xff] %vm444_vm15, %v825_v40 }
 0x124   : > { %799 = vst.msk [vmem:[#allocation2 + $0x40] sm:$0x3f] %vm5485_vm14, %v795_v41  ;;  %1264 = vrot.lane.b32.xlu1 %v4055_v1, %s3936_s27  ;;  %v1177_v1 = vld [vmem:[%s4049_s25 + $0x8] sm:$0x3f] }
 0x125   : > { %803 = vst.msk [vmem:[#allocation2 + $0x40] sm:$0x3f] %vm404_vm2, %v801_v39  ;;  %1204 = vrot.lane.b32.xlu0 %v4064_v2, %s3932_s14  ;;  %v1381_v41 = vld [vmem:[%s4049_s25 + $0xa] sm:$0x3f] }
 0x126   : > { %807 = vst.msk [vmem:[#allocation2 + $0x40] sm:$0x3f] %vm5491_vm1, %v805_v42  ;;  %v885_v44 = vpop.permute.xlu1 %884 }
 0x127   : > { %v839_v45 = vpop.permute.xlu0 %838  ;;  %890 = vst.msk [vmem:[#allocation2 + $0x46] sm:$0xff] %vm388_vm7, %v885_v44  ;;  %v4611_v44 = vld [vmem:[%s5467_s2] ss:$0 sm:$0xff] }
 0x128   : > { %843 = vst.msk [vmem:[#allocation2 + $0x4e] sm:$0x3f] %vm5518_vm5, %v839_v45  ;;  %1216 = vrot.lane.b32.xlu1 %v4471_v43, %s3932_s14  ;;  %vm5522_vm5 = vcmask 70720   ;;  %v1393_v45 = vld [vmem:[%s4049_s25 + $0x8] sm:$0x3f] }
 0x129   : > { %1170 = vrot.lane.b32.xlu0 %v1165_v0, %s3934_s21 }
 0x12a   : > { %v897_v2 = vpop.permute.xlu1 %896  ;;  %v1795_v48 = vld [vmem:[#allocation2 + $0x38] sm:$0xff] }
 0x12b   : > { %v851_v47 = vpop.permute.xlu0 %850  ;;  %902 = vst.msk [vmem:[#allocation2 + $0x46] sm:$0xff] %vm402_vm10, %v897_v2  ;;  %3613 = vmatmul.mubr.msk.f32.gmra.mxu0 %vm1822_vm6, %v1795_v48 }
 0x12c   : > { %855 = vst.msk [vmem:[#allocation2 + $0x4e] sm:$0x3f] %vm5519_vm8, %v851_v47  ;;  %1182 = vrot.lane.b32.xlu1 %v1177_v1, %s3934_s21  ;;  %3615 = vmatprep.mubr.msk.f32.mxu0 %vm5493_vm3, %v3926_v7  ;;  %vm5523_vm8 = vcmask 7168  }
 0x12d   : > { %1276 = vrot.lane.b32.xlu0 %v4482_v46, %s3935_s26 }
 0x12e   : > { %v909_v50 = vpop.permute.xlu1 %908 }
 0x12f   : > { %v863_v51 = vpop.permute.xlu0 %862  ;;  %914 = vst.msk [vmem:[#allocation2 + $0x46] sm:$0xff] %vm5520_vm11, %v909_v50  ;;  %vm5524_vm11 = vcmask 23568  }
 0x130   : > { %867 = vst.msk [vmem:[#allocation2 + $0x4e] sm:$0x3f] %vm362_vm9, %v863_v51  ;;  %1288 = vrot.lane.b32.xlu1 %v4471_v43, %s3935_s26 }
 0x131   : > { %1228 = vrot.lane.b32.xlu0 %v4491_v49, %s3931_s17  ;;  %918 = vst.msk [vmem:[#allocation2 + $0x46] sm:$0xff] %vm5489_vm12, %v4491_v49 }
 0x132   : > { %v875_v53 = vpop.permute.xlu1 %874 }
 0x133   : > { %v815_v54 = vpop.permute.xlu0 %814  ;;  %879 = vst.msk [vmem:[#allocation2 + $0x4e] sm:$0x3f] %vm5484_vm13, %v875_v53 }
 0x134   : > { %819 = vst.msk [vmem:[#allocation2 + $0x40] sm:$0x3f] %vm5521_vm0, %v815_v54  ;;  %1240 = vrot.lane.b32.xlu1 %v4482_v46, %s3930_s16 }
 0x135   : > { %1194 = vrot.lane.b32.xlu0 %v1189_v52, %s3933_s28  ;;  %v1405_v52 = vld [vmem:[%s4049_s25 + $0x9] sm:$0x3f] }
 0x136   : > { %v887_v56 = vpop.permute.xlu1 %886 }
 0x137   : > { %v827_v57 = vpop.permute.xlu0 %826  ;;  %891 = vst.msk [vmem:[#allocation2 + $0x4e] sm:$0x3f] %vm5485_vm14, %v887_v56  ;;  %v1417_v56 = vld [vmem:[%s4049_s25 + $0xa] sm:$0x3f] }
 0x138   : > { %831 = vst.msk [vmem:[#allocation2 + $0x40] sm:$0x3f] %vm5522_vm5, %v827_v57  ;;  %1300 = vrot.lane.b32.xlu1 %v4491_v49, %s3934_s21 }
 0x139   : > { %1254 = vrot.lane.b32.xlu0 %v1249_v55, %s3937_s29 }
 0x13a   : > { %v937_v60 = vpop.permute.xlu1 %936 }
 0x13b   : > { %v925_v61 = vpop.permute.xlu0 %924  ;;  %942 = vst.msk [vmem:[#allocation2 + $0x54] sm:$0xff] %vm5523_vm8, %v937_v60  ;;  %vm5525_vm8 = vcmask 31768  }
 0x13c   : > { %930 = vst.msk [vmem:[#allocation2 + $0x46] sm:$0xff] %vm444_vm15, %v925_v61  ;;  %1266 = vrot.lane.b32.xlu1 %v1261_v58, %s3936_s27 }
 0x13d   : > { %1206 = vrot.lane.b32.xlu0 %v1201_v59, %s3932_s14  ;;  %v1429_v59 = vld [vmem:[%s4049_s25 + $0x8] sm:$0x3f] }
 0x13e   : > { %v949_v63 = vpop.permute.xlu1 %948 }
 0x13f   : > { %v899_v3 = vpop.permute.xlu0 %898  ;;  %954 = vst.msk [vmem:[#allocation2 + $0x54] sm:$0xff] %vm5483_vm4, %v949_v63 }
 0x140   : > { %903 = vst.msk [vmem:[#allocation2 + $0x4e] sm:$0x3f] %vm404_vm2, %v899_v3  ;;  %1218 = vrot.lane.b32.xlu1 %v1213_v62, %s3932_s14  ;;  %v1441_v62 = vld [vmem:[%s4049_s25 + $0x9] sm:$0x3f] }
 0x141   : > { %1312 = vrot.lane.b32.xlu0 %v4482_v46, %s3933_s28 }
 0x142   : > { %v961_v6 = vpop.permute.xlu1 %960 }
 0x143   : > { %v911_v8 = vpop.permute.xlu0 %910  ;;  %v1796_v9 = vld [vmem:[#allocation2 + $0x40] sm:$0xff]  ;;  %966 = vst.msk [vmem:[#allocation2 + $0x54] sm:$0xff] %vm5524_vm11, %v961_v6  ;;  %vm5526_vm11 = vcmask 5120  }
 0x144   : > { %915 = vst.msk [vmem:[#allocation2 + $0x4e] sm:$0x3f] %vm5491_vm1, %v911_v8  ;;  %3616 = vmatmul.mubr.msk.f32.gmra.mxu0 %vm1822_vm6, %v1796_v9  ;;  %1324 = vrot.lane.b32.xlu1 %v4471_v43, %s3933_s28  ;;  %v1465_v9 = vld [vmem:[%s4049_s25 + $0x8] sm:$0x3f] }
 0x145   : > { %1278 = vrot.lane.b32.xlu0 %v1273_v4, %s3935_s26  ;;  %919 = vst.msk [vmem:[#allocation2 + $0x4e] sm:$0x3f] %vm5521_vm0, %v917_v5  ;;  %3618 = vmatprep.mubr.msk.f32.mxu0 %vm5493_vm3, %v3926_v7  ;;  %vm5527_vm0 = vcmask 13320   ;;  %v1453_v4 = vld [vmem:[%s4049_s25 + $0xa] sm:$0x3f] }
 0x146   : > { %v927_v12 = vpop.permute.xlu1 %926 }
 0x147   : > { %v973_v13 = vpop.permute.xlu0 %972  ;;  %931 = vst.msk [vmem:[#allocation2 + $0x4e] sm:$0x3f] %vm5522_vm5, %v927_v12  ;;  %vm5528_vm5 = vcmask 56368  }
 0x148   : > { %978 = vst.msk [vmem:[#allocation2 + $0x54] sm:$0xff] %vm5525_vm8, %v973_v13  ;;  %1290 = vrot.lane.b32.xlu1 %v1285_v10, %s3935_s26  ;;  %vm5529_vm8 = vcmask 7168  }
 0x149   : > { %1230 = vrot.lane.b32.xlu0 %v1225_v11, %s3931_s17 }
 0x14a   : > { %v985_v15 = vpop.permute.xlu1 %984 }
 0x14b   : > { %v939_v16 = vpop.permute.xlu0 %938  ;;  %990 = vst.msk [vmem:[#allocation2 + $0x54] sm:$0xff] %vm388_vm7, %v985_v15  ;;  %v1477_v15 = vld [vmem:[%s4049_s25 + $0x9] sm:$0x3f] }
 0x14c   : > { %943 = vst.msk [vmem:[#allocation2 + $0x5c] sm:$0x3f] %vm5526_vm11, %v939_v16  ;;  %1242 = vrot.lane.b32.xlu1 %v1237_v14, %s3930_s16  ;;  %vm5530_vm11 = vcmask 23568   ;;  %s3939_s16 = smov 117  }
 0x14d   : > { %1336 = vrot.lane.b32.xlu0 %v4491_v49, %s3932_s14 }
 0x14e   : > { %v997_v18 = vpop.permute.xlu1 %996  ;;  %v1797_v20 = vld [vmem:[#allocation2 + $0x48] sm:$0xff] }
 0x14f   : > { %v951_v19 = vpop.permute.xlu0 %950  ;;  %1002 = vst.msk [vmem:[#allocation2 + $0x54] sm:$0xff] %vm402_vm10, %v997_v18  ;;  %3619 = vmatmul.mubr.msk.f32.gmra.mxu0 %vm1822_vm6, %v1797_v20 }
 0x150   : > { %955 = vst.msk [vmem:[#allocation2 + $0x5c] sm:$0x3f] %vm5527_vm0, %v951_v19  ;;  %1348 = vrot.lane.b32.xlu1 %v4482_v46, %s3931_s17  ;;  %3621 = vmatprep.mubr.msk.f32.mxu0 %vm5493_vm3, %v3926_v7  ;;  %vm5531_vm0 = vcmask 31768   ;;  %v1489_v19 = vld [vmem:[%s4049_s25 + $0xa] sm:$0x3f] }
 0x151   : > { %1302 = vrot.lane.b32.xlu0 %v1297_v17, %s3934_s21 }
 0x152   : > { %v1009_v22 = vpop.permute.xlu1 %1008 }
 0x153   : > { %v963_v23 = vpop.permute.xlu0 %962  ;;  %1014 = vst.msk [vmem:[#allocation2 + $0x54] sm:$0xff] %vm5528_vm5, %v1009_v22  ;;  %vm5532_vm5 = vcmask 62520   ;;  %v1501_v22 = vld [vmem:[%s4049_s25 + $0x8] sm:$0x3f] }
 0x154   : > { %967 = vst.msk [vmem:[#allocation2 + $0x5c] sm:$0x3f] %vm362_vm9, %v963_v23  ;;  %1314 = vrot.lane.b32.xlu1 %v1309_v21, %s3933_s28 }
 0x155   : > { %1360 = vrot.lane.b32.xlu0 %v4471_v43, %s3938_s22 }
 0x156   : > { %v1021_v25 = vpop.permute.xlu1 %1020 }
 0x157   : > { %v975_v26 = vpop.permute.xlu0 %974  ;;  %1026 = vst.msk [vmem:[#allocation2 + $0x54] sm:$0xff] %vm5489_vm12, %v1021_v25 }
 0x158   : > { %979 = vst.msk [vmem:[#allocation2 + $0x5c] sm:$0x3f] %vm5484_vm13, %v975_v26  ;;  %1326 = vrot.lane.b32.xlu1 %v1321_v24, %s3933_s28 }
 0x159   : > { %1030 = vst.msk [vmem:[#allocation2 + $0x54] sm:$0xff] %vm444_vm15, %v4482_v46  ;;  %1372 = vrot.lane.b32.xlu0 %v4491_v49, %s3937_s29 }
 0x15a   : > { %v1037_v28 = vpop.permute.xlu1 %1036 }
 0x15b   : > { %v987_v29 = vpop.permute.xlu0 %986  ;;  %1042 = vst.msk [vmem:[#allocation2 + $0x62] sm:$0xff] %vm5529_vm8, %v1037_v28  ;;  %vm5533_vm8 = vcmask 70720  }
 0x15c   : > { %991 = vst.msk [vmem:[#allocation2 + $0x5c] sm:$0x3f] %vm5485_vm14, %v987_v29  ;;  %1338 = vrot.lane.b32.xlu1 %v1333_v27, %s3932_s14  ;;  %v1513_v27 = vld [vmem:[%s4049_s25 + $0x9] sm:$0x3f] }
 0x15d   : > { %1384 = vrot.lane.b32.xlu0 %v4482_v46, %s3936_s27 }
 0x15e   : > { %v1049_v31 = vpop.permute.xlu1 %1048 }
 0x15f   : > { %v999_v32 = vpop.permute.xlu0 %998  ;;  %1054 = vst.msk [vmem:[#allocation2 + $0x62] sm:$0xff] %vm5483_vm4, %v1049_v31 }
 0x160   : > { %1003 = vst.msk [vmem:[#allocation2 + $0x5c] sm:$0x3f] %vm404_vm2, %v999_v32  ;;  %v1798_v33 = vld [vmem:[#allocation2 + $0x50] sm:$0xff]  ;;  %1350 = vrot.lane.b32.xlu1 %v1345_v30, %s3931_s17  ;;  %s3940_s17 = smov 116  }
 0x161   : > { %1396 = vrot.lane.b32.xlu0 %v4471_v43, %s3936_s27  ;;  %3622 = vmatmul.mubr.msk.f32.gmra.mxu0 %vm1822_vm6, %v1798_v33  ;;  %v1537_v33 = vld [vmem:[%s4049_s25 + $0x8] sm:$0x3f] }
 0x162   : > { %v1061_v35 = vpop.permute.xlu1 %1060  ;;  %3624 = vmatprep.mubr.msk.f32.mxu0 %vm5493_vm3, %v3926_v7 }
 0x163   : > { %v1011_v36 = vpop.permute.xlu0 %1010  ;;  %1066 = vst.msk [vmem:[#allocation2 + $0x62] sm:$0xff] %vm5530_vm11, %v1061_v35  ;;  %vm5534_vm11 = vcmask 5120  }
 0x164   : > { %1015 = vst.msk [vmem:[#allocation2 + $0x5c] sm:$0x3f] %vm5491_vm1, %v1011_v36  ;;  %1408 = vrot.lane.b32.xlu1 %v4491_v49, %s3935_s26 }
 0x165   : > { %1362 = vrot.lane.b32.xlu0 %v1357_v34, %s3938_s22  ;;  %v1525_v34 = vld [vmem:[%s4049_s25 + $0xa] sm:$0x3f] }
 0x166   : > { %v1073_v39 = vpop.permute.xlu1 %1072 }
 0x167   : > { %v1023_v40 = vpop.permute.xlu0 %1022  ;;  %1078 = vst.msk [vmem:[#allocation2 + $0x62] sm:$0xff] %vm5531_vm0, %v1073_v39  ;;  %vm5535_vm0 = vcmask 13320  }
 0x168   : > { %1027 = vst.msk [vmem:[#allocation2 + $0x5c] sm:$0x3f] %vm5532_vm5, %v1023_v40  ;;  %1420 = vrot.lane.b32.xlu1 %v4482_v46, %s3934_s21  ;;  %vm2117_vm5 = vcmask 261120  }
 0x169   : > { %1031 = vst.msk [vmem:[#allocation2 + $0x5c] sm:$0x3f] %vm5533_vm8, %v1029_v37  ;;  %1374 = vrot.lane.b32.xlu0 %v1369_v38, %s3937_s29  ;;  %vm5536_vm8 = vcmask 56368   ;;  %v1561_v37 = vld [vmem:[%s4049_s25 + $0xa] sm:$0x3f] }
 0x16a   : > { %v1085_v42 = vpop.permute.xlu1 %1084  ;;  %v1549_v38 = vld [vmem:[%s4049_s25 + $0x9] sm:$0x3f] }
 0x16b   : > { %v1039_v0 = vpop.permute.xlu0 %1038  ;;  %1090 = vst.msk [vmem:[#allocation2 + $0x62] sm:$0xff] %vm388_vm7, %v1085_v42 }
 0x16c   : > { %1043 = vst.msk [vmem:[#allocation2 + $0x6a] sm:$0x3f] %vm5534_vm11, %v1039_v0  ;;  %1432 = vrot.lane.b32.xlu1 %v4471_v43, %s3934_s21  ;;  %vm5537_vm11 = vcmask 7168  }
 0x16d   : > { %1386 = vrot.lane.b32.xlu0 %v1381_v41, %s3936_s27 }
 0x16e   : > { %v1097_v1 = vpop.permute.xlu1 %1096 }
 0x16f   : > { %v1051_v2 = vpop.permute.xlu0 %1050  ;;  %1102 = vst.msk [vmem:[#allocation2 + $0x62] sm:$0xff] %vm402_vm10, %v1097_v1 }
 0x170   : > { %1055 = vst.msk [vmem:[#allocation2 + $0x6a] sm:$0x3f] %vm5535_vm0, %v1051_v2  ;;  %v1968_v47 = vpop.f32.mrf.mxu0  ;;  %v1799_v48 = vld [vmem:[#allocation2 + $0x58] sm:$0xff]  ;;  %1444 = vrot.lane.b32.xlu1 %v4491_v49, %s3933_s28  ;;  %vm5538_vm0 = vcmask 62520  }
 0x171   : > { %v1969_v50 = vadd.f32 %v4611_v44, %v1968_v47  ;;  %1398 = vrot.lane.b32.xlu0 %v1393_v45, %s3936_s27  ;;  %3625 = vmatmul.mubr.msk.f32.gmra.mxu0 %vm1822_vm6, %v1799_v48 }
 0x172   : > { %v3593_v51 = vpop.f32.mrf.mxu0  ;;  %v1109_v54 = vpop.permute.xlu1 %1108  ;;  %3627 = vmatprep.mubr.msk.f32.mxu0 %vm5493_vm3, %v3926_v7 }
 0x173   : > { %v2092_v53 = vmax.f32 %v1969_v50, 0.0  ;;  %v1063_v55 = vpop.permute.xlu0 %1062  ;;  %1114 = vst.msk [vmem:[#allocation2 + $0x62] sm:$0xff] %vm5536_vm8, %v1109_v54  ;;  %vm5539_vm8 = vcmask 23568  }
 0x174   : > { %1067 = vst.msk [vmem:[#allocation2 + $0x6a] sm:$0x3f] %vm362_vm9, %v1063_v55  ;;  %1456 = vrot.lane.b32.xlu1 %v4482_v46, %s3932_s14  ;;  %v1573_v55 = vld [vmem:[%s4049_s25 + $0x8] sm:$0x3f] }
 0x175   : > { %2118 = vst.msk [vmem:[#allocation3] sm:$0xff] %vm2117_vm5, %v2092_v53  ;;  %1410 = vrot.lane.b32.xlu0 %v1405_v52, %s3935_s26 }
 0x176   : > { %v1121_v57 = vpop.permute.xlu1 %1120 }
 0x177   : > { %v1075_v58 = vpop.permute.xlu0 %1074  ;;  %1126 = vst.msk [vmem:[#allocation2 + $0x62] sm:$0xff] %vm5489_vm12, %v1121_v57 }
 0x178   : > { %1079 = vst.msk [vmem:[#allocation2 + $0x6a] sm:$0x3f] %vm5484_vm13, %v1075_v58  ;;  %1422 = vrot.lane.b32.xlu1 %v1417_v56, %s3934_s21  ;;  %v1585_v58 = vld [vmem:[%s4049_s25 + $0x9] sm:$0x3f] }
 0x179   : > { %1468 = vrot.lane.b32.xlu0 %v4471_v43, %s3939_s16 }
 0x17a   : > { %v1133_v60 = vpop.permute.xlu1 %1132 }
 0x17b   : > { %v1087_v61 = vpop.permute.xlu0 %1086  ;;  %1138 = vst.msk [vmem:[#allocation2 + $0x62] sm:$0xff] %vm444_vm15, %v1133_v60 }
 0x17c   : > { %1091 = vst.msk [vmem:[#allocation2 + $0x6a] sm:$0x3f] %vm5485_vm14, %v1087_v61  ;;  %1434 = vrot.lane.b32.xlu1 %v1429_v59, %s3934_s21  ;;  %v2144_v41 = vld [vmem:[#allocation3] sm:$0xff] }
 0x17d   : > { %1480 = vrot.lane.b32.xlu0 %v4491_v49, %s3938_s22 }
 0x17e   : > { %v1099_v63 = vpop.permute.xlu1 %1098 }
 0x17f   : > { %v1145_v3 = vpop.permute.xlu0 %1144  ;;  %1103 = vst.msk [vmem:[#allocation2 + $0x6a] sm:$0x3f] %vm404_vm2, %v1099_v63 }
 0x180   : > { %1150 = vst.msk [vmem:[#allocation2 + $0x70] sm:$0xff] %vm5537_vm11, %v1145_v3  ;;  %1446 = vrot.lane.b32.xlu1 %v1441_v62, %s3933_s28  ;;  %vm5540_vm11 = vcmask 70720  }
 0x181   : > { %1492 = vrot.lane.b32.xlu0 %v4482_v46, %s3937_s29 }
 0x182   : > { %v1111_v5 = vpop.permute.xlu1 %1110  ;;  %v1800_v8 = vld [vmem:[#allocation2 + $0x60] sm:$0xff] }
 0x183   : > { %v1157_v6 = vpop.permute.xlu0 %1156  ;;  %1115 = vst.msk [vmem:[#allocation2 + $0x6a] sm:$0x3f] %vm5491_vm1, %v1111_v5  ;;  %3628 = vmatmul.mubr.msk.f32.gmra.mxu0 %vm1822_vm6, %v1800_v8 }
 0x184   : > { %1162 = vst.msk [vmem:[#allocation2 + $0x70] sm:$0xff] %vm5483_vm4, %v1157_v6  ;;  %1458 = vrot.lane.b32.xlu1 %v1453_v4, %s3932_s14  ;;  %3630 = vmatprep.mubr.msk.f32.mxu0 %vm5493_vm3, %v3926_v7  ;;  %s3941_s14 = smov 115  }
 0x185   : > { %1504 = vrot.lane.b32.xlu0 %v4471_v43, %s3937_s29 }
 0x186   : > { %v1123_v10 = vpop.permute.xlu1 %1122 }
 0x187   : > { %v1169_v11 = vpop.permute.xlu0 %1168  ;;  %1127 = vst.msk [vmem:[#allocation2 + $0x6a] sm:$0x3f] %vm5538_vm0, %v1123_v10  ;;  %v1973_v12 = vpop.f32.mrf.mxu0  ;;  %vm5541_vm0 = vcmask 31768  }
 0x188   : > { %1174 = vst.msk [vmem:[#allocation2 + $0x70] sm:$0xff] %vm5539_vm8, %v1169_v11  ;;  %v1974_v13 = vadd.f32 %v4611_v44, %v1973_v12  ;;  %1516 = vrot.lane.b32.xlu1 %v4491_v49, %s3936_s27  ;;  %vm5542_vm8 = vcmask 5120   ;;  %v1597_v12 = vld [vmem:[%s4049_s25 + $0xa] sm:$0x3f] }
 0x189   : > { %1470 = vrot.lane.b32.xlu0 %v1465_v9, %s3939_s16  ;;  %v3596_v14 = vpop.f32.mrf.mxu0 }
 0x18a   : > { %v2093_v16 = vmax.f32 %v1974_v13, 0.0  ;;  %v1135_v17 = vpop.permute.xlu1 %1134 }
 0x18b   : > { %v1181_v18 = vpop.permute.xlu0 %1180  ;;  %1139 = vst.msk [vmem:[#allocation2 + $0x6a] sm:$0x3f] %vm5540_vm11, %v1135_v17  ;;  %vm5543_vm11 = vcmask 13320  }
 0x18c   : > { %1186 = vst.msk [vmem:[#allocation2 + $0x70] sm:$0xff] %vm5541_vm0, %v1181_v18  ;;  %1528 = vrot.lane.b32.xlu1 %v4482_v46, %s3935_s26  ;;  %vm5544_vm0 = vcmask 7168  }
 0x18d   : > { %2119 = vst.msk [vmem:[#allocation3 + $0x8] sm:$0xff] %vm2117_vm5, %v2093_v16  ;;  %1482 = vrot.lane.b32.xlu0 %v1477_v15, %s3938_s22  ;;  %v1609_v16 = vld [vmem:[%s4049_s25 + $0x8] sm:$0x3f] }
 0x18e   : > { %v1193_v20 = vpop.permute.xlu1 %1192 }
 0x18f   : > { %v1147_v21 = vpop.permute.xlu0 %1146  ;;  %1198 = vst.msk [vmem:[#allocation2 + $0x70] sm:$0xff] %vm388_vm7, %v1193_v20 }
 0x190   : > { %1151 = vst.msk [vmem:[#allocation2 + $0x78] sm:$0x3f] %vm5542_vm8, %v1147_v21  ;;  %1540 = vrot.lane.b32.xlu1 %v4471_v43, %s3935_s26  ;;  %vm5545_vm8 = vcmask 56368  }
 0x191   : > { %1494 = vrot.lane.b32.xlu0 %v1489_v19, %s3937_s29 }
 0x192   : > { %v1159_v23 = vpop.permute.xlu1 %1158  ;;  %v1801_v25 = vld [vmem:[#allocation2 + $0x68] sm:$0xff] }
 0x193   : > { %v1253_v24 = vpop.permute.xlu0 %1252  ;;  %1163 = vst.msk [vmem:[#allocation2 + $0x78] sm:$0x3f] %vm5543_vm11, %v1159_v23  ;;  %3631 = vmatmul.mubr.msk.f32.gmra.mxu0 %vm1822_vm6, %v1801_v25  ;;  %vm5546_vm11 = vcmask 23568  }
 0x194   : > { %1258 = vst.msk [vmem:[#allocation2 + $0x7e] sm:$0xff] %vm5544_vm0, %v1253_v24  ;;  %1552 = vrot.lane.b32.xlu1 %v4491_v49, %s3934_s21  ;;  %3633 = vmatprep.mubr.msk.f32.mxu0 %vm5493_vm3, %v3926_v7  ;;  %vm5547_vm0 = vcmask 31768   ;;  %v2145_v62 = vld [vmem:[#allocation3 + $0x8] sm:$0x3f] }
 0x195   : > { %1506 = vrot.lane.b32.xlu0 %v1501_v22, %s3937_s29  ;;  %v1978_v26 = vpop.f32.mrf.mxu0  ;;  %v1621_v22 = vld [vmem:[%s4049_s25 + $0x9] sm:$0x3f] }
 0x196   : > { %v1979_v28 = vadd.f32 %v4611_v44, %v1978_v26  ;;  %v1265_v29 = vpop.permute.xlu1 %1264  ;;  %v1681_v26 = vld [vmem:[%s4049_s25 + $0x8] sm:$0x3f] }
 0x197   : > { %v1205_v30 = vpop.permute.xlu0 %1204  ;;  %1270 = vst.msk [vmem:[#allocation2 + $0x7e] sm:$0xff] %vm5483_vm4, %v1265_v29  ;;  %v3599_v31 = vpop.f32.mrf.mxu0  ;;  %vm2158_vm4 = vcmask 258052  }
 0x198   : > { %1210 = vst.msk [vmem:[#allocation2 + $0x70] sm:$0xff] %vm402_vm10, %v1205_v30  ;;  %v2094_v32 = vmax.f32 %v1979_v28, 0.0  ;;  %1564 = vrot.lane.b32.xlu1 %v4482_v46, %s3933_s28 }
 0x199   : > { %1518 = vrot.lane.b32.xlu0 %v1513_v27, %s3936_s27 }
 0x19a   : > { %2120 = vst.msk [vmem:[#allocation3 + $0x10] sm:$0xff] %vm2117_vm5, %v2094_v32  ;;  %v1217_v35 = vpop.permute.xlu1 %1216  ;;  %v1693_v32 = vld [vmem:[%s4049_s25 + $0x9] sm:$0x3f] }
 0x19b   : > { %v1171_v36 = vpop.permute.xlu0 %1170  ;;  %1222 = vst.msk [vmem:[#allocation2 + $0x70] sm:$0xff] %vm5545_vm8, %v1217_v35  ;;  %vm5487_vm8 = vcmask 253952  }
 0x19c   : > { %1175 = vst.msk [vmem:[#allocation2 + $0x78] sm:$0x3f] %vm362_vm9, %v1171_v36  ;;  %1542 = vrot.lane.b32.xlu1 %v1537_v33, %s3935_s26  ;;  %v1633_v33 = vld [vmem:[%s4049_s25 + $0xa] sm:$0x3f] }
 0x19d   : > { %1530 = vrot.lane.b32.xlu0 %v1525_v34, %s3935_s26 }
 0x19e   : > { %v1183_v39 = vpop.permute.xlu1 %1182 }
 0x19f   : > { %v1277_v40 = vpop.permute.xlu0 %1276  ;;  %1187 = vst.msk [vmem:[#allocation2 + $0x78] sm:$0x3f] %vm5484_vm13, %v1183_v39  ;;  %vm5490_vm13 = vcmask 260102  }
 0x1a0   : > { %1282 = vst.msk [vmem:[#allocation2 + $0x7e] sm:$0xff] %vm5546_vm11, %v1277_v40  ;;  %1566 = vrot.lane.b32.xlu1 %v1561_v37, %s3933_s28  ;;  %vm5486_vm11 = vcmask 256002   ;;  %v1645_v37 = vld [vmem:[%s4049_s25 + $0x8] sm:$0x3f]  ;;  %s3943_s28 = smov 64  }
 0x1a1   : > { %1554 = vrot.lane.b32.xlu0 %v1549_v38, %s3934_s21  ;;  %v2146_v42 = vld [vmem:[#allocation3 + $0xe] sm:$0xff]  ;;  %v1705_v40 = vld [vmem:[%s4049_s25 + $0xa] sm:$0x3f] }
 0x1a2   : > { %v2148_v0 = vmax.f32 %v2144_v41, %v2146_v42  ;;  %v1289_v45 = vpop.permute.xlu1 %1288 }
 0x1a3   : > { %v1229_v1 = vpop.permute.xlu0 %1228  ;;  %1294 = vst.msk [vmem:[#allocation2 + $0x7e] sm:$0xff] %vm5547_vm0, %v1289_v45  ;;  %v1983_v2 = vpop.f32.mrf.mxu0  ;;  %vm5548_vm0 = vcmask 5120  }
 0x1a4   : > { %1234 = vst.msk [vmem:[#allocation2 + $0x70] sm:$0xff] %vm5489_vm12, %v1229_v1  ;;  %v2151_v47 = vrot.slane %v2148_v0, 1  ;;  %v1984_v48 = vadd.f32 %v4611_v44, %v1983_v2  ;;  %1588 = vrot.lane.b32.xlu1 %v4491_v49, %s3939_s16  ;;  %v1717_v2 = vld [vmem:[%s4049_s25 + $0x8] sm:$0x3f] }
 0x1a5   : > { %1576 = vrot.lane.b32.xlu0 %v4471_v43, %s3940_s17  ;;  %v3602_v50 = vpop.f32.mrf.mxu0 }
 0x1a6   : > { %v2153_v51 = vmax.f32 %v2148_v0, %v2151_v47  ;;  %v2095_v52 = vmax.f32 %v1984_v48, 0.0  ;;  %v1241_v53 = vpop.permute.xlu1 %1240  ;;  %v1657_v47 = vld [vmem:[%s4049_s25 + $0x9] sm:$0x3f] }
 0x1a7   : > { %v1195_v54 = vpop.permute.xlu0 %1194  ;;  %1246 = vst.msk [vmem:[#allocation2 + $0x70] sm:$0xff] %vm444_vm15, %v1241_v53 }
 0x1a8   : > { %1199 = vst.msk [vmem:[#allocation2 + $0x78] sm:$0x3f] %vm5485_vm14, %v1195_v54  ;;  %1612 = vrot.lane.b32.xlu1 %v4471_v43, %s3938_s22  ;;  %vm5549_vm14 = vcmask 13320  }
 0x1a9   : > { %2121 = vst.msk [vmem:[#allocation3 + $0x18] sm:$0xff] %vm2117_vm5, %v2095_v52  ;;  %1600 = vrot.lane.b32.xlu0 %v4482_v46, %s3938_s22 }
 0x1aa   : > { %2155 = vst.msk [vmem:[#allocation4] sm:$0x1] %vm5487_vm8, %v2153_v51  ;;  %v1301_v56 = vpop.permute.xlu1 %1300 }
 0x1ab   : > { %2157 = vst.msk [vmem:[#allocation4 - $0x1] sm:$0x4] %vm5486_vm11, %v2153_v51  ;;  %v1255_v57 = vpop.permute.xlu0 %1254 }
 0x1ac   : > { %2159 = vst.msk [vmem:[#allocation4 - $0x2] sm:$0x10] %vm2158_vm4, %v2153_v51  ;;  %1624 = vrot.lane.b32.xlu1 %v4491_v49, %s3937_s29 }
 0x1ad   : > { %2161 = vst.msk [vmem:[#allocation4 - $0x3] sm:$0x40] %vm5490_vm13, %v2153_v51  ;;  %1578 = vrot.lane.b32.xlu0 %v1573_v55, %s3940_s17  ;;  %v1729_v55 = vld [vmem:[%s4049_s25 + $0x9] sm:$0x3f] }
 0x1ae   : > { %1306 = vst.msk [vmem:[#allocation2 + $0x7e] sm:$0xff] %vm388_vm7, %v1301_v56  ;;  %v1267_v59 = vpop.permute.xlu1 %1266  ;;  %v1802_v61 = vld [vmem:[#allocation2 + $0x70] sm:$0xff] }
 0x1af   : > { %1259 = vst.msk [vmem:[#allocation2 + $0x86] sm:$0x3f] %vm5548_vm0, %v1255_v57  ;;  %v1207_v60 = vpop.permute.xlu0 %1206  ;;  %3634 = vmatmul.mubr.msk.f32.gmra.mxu0 %vm1822_vm6, %v1802_v61  ;;  %vm5551_vm0 = vcmask 29720  }
 0x1b0   : > { %v2147_v63 = vld [vmem:[#allocation3 + $0x16] sm:$0x3f]  ;;  %1271 = vst.msk [vmem:[#allocation2 + $0x86] sm:$0x3f] %vm5549_vm14, %v1267_v59  ;;  %1590 = vrot.lane.b32.xlu1 %v1585_v58, %s3939_s16  ;;  %3636 = vmatprep.mubr.msk.f32.mxu0 %vm5493_vm3, %v3926_v7  ;;  %vm5550_vm14 = vcmask 56368  }
 0x1b1   : > { %1211 = vst.msk [vmem:[#allocation2 + $0x78] sm:$0x3f] %vm404_vm2, %v1207_v60  ;;  %v2149_v3 = vmax.f32 %v2145_v62, %v2147_v63  ;;  %1684 = vrot.lane.b32.xlu0 %v4471_v43, %s3941_s14 }
 0x1b2   : > { %v1219_v5 = vpop.permute.xlu1 %1218 }
 0x1b3   : > { %v2163_v4 = vrot.slane %v2149_v3, 1  ;;  %v1313_v6 = vpop.permute.xlu0 %1312  ;;  %1223 = vst.msk [vmem:[#allocation2 + $0x78] sm:$0x3f] %vm5491_vm1, %v1219_v5  ;;  %v1988_v8 = vpop.f32.mrf.mxu0 }
 0x1b4   : > { %1318 = vst.msk [vmem:[#allocation2 + $0x7e] sm:$0xff] %vm402_vm10, %v1313_v6  ;;  %v1989_v10 = vadd.f32 %v4611_v44, %v1988_v8  ;;  %1696 = vrot.lane.b32.xlu1 %v4491_v49, %s3940_s17 }
 0x1b5   : > { %v2165_v9 = vmax.f32 %v2149_v3, %v2163_v4  ;;  %1636 = vrot.lane.b32.xlu0 %v4482_v46, %s3936_s27  ;;  %v3605_v11 = vpop.f32.mrf.mxu0  ;;  %v1753_v3 = vld [vmem:[%s4049_s25 + $0x8] sm:$0x3f] }
 0x1b6   : > { %v2096_v13 = vmax.f32 %v1989_v10, 0.0  ;;  %v1325_v14 = vpop.permute.xlu1 %1324  ;;  %v1765_v11 = vld [vmem:[%s4049_s25 + $0x9] sm:$0x3f] }
 0x1b7   : > { %v1279_v15 = vpop.permute.xlu0 %1278  ;;  %2166 = vst.msk [vmem:[#allocation4 + $0x4] sm:$0x1] %vm5487_vm8, %v2165_v9  ;;  %vm5488_vm8 = vcmask 258048  }
 0x1b8   : > { %2167 = vst.msk [vmem:[#allocation4 + $0x3] sm:$0x4] %vm5486_vm11, %v2165_v9  ;;  %1648 = vrot.lane.b32.xlu1 %v4471_v43, %s3936_s27  ;;  %vm5552_vm11 = vcmask 62520  }
 0x1b9   : > { %2168 = vst.msk [vmem:[#allocation4 + $0x2] sm:$0x10] %vm2158_vm4, %v2165_v9  ;;  %1602 = vrot.lane.b32.xlu0 %v1597_v12, %s3938_s22 }
 0x1ba   : > { %1330 = vst.msk [vmem:[#allocation2 + $0x7e] sm:$0xff] %vm5550_vm14, %v1325_v14  ;;  %v1291_v17 = vpop.permute.xlu1 %1290  ;;  %vm5553_vm14 = vcmask 70720  }
 0x1bb   : > { %1283 = vst.msk [vmem:[#allocation2 + $0x86] sm:$0x3f] %vm362_vm9, %v1279_v15  ;;  %v1231_v18 = vpop.permute.xlu0 %1230 }
 0x1bc   : > { %2122 = vst.msk [vmem:[#allocation3 + $0x20] sm:$0xff] %vm2117_vm5, %v2096_v13  ;;  %1614 = vrot.lane.b32.xlu1 %v1609_v16, %s3938_s22 }
 0x1bd   : > { %1295 = vst.msk [vmem:[#allocation2 + $0x86] sm:$0x3f] %vm5551_vm0, %v1291_v17  ;;  %1708 = vrot.lane.b32.xlu0 %v4482_v46, %s3939_s16  ;;  %vm5555_vm0 = vcmask 7168  }
 0x1be   : > { %1235 = vst.msk [vmem:[#allocation2 + $0x78] sm:$0x3f] %vm5552_vm11, %v1231_v18  ;;  %v2295_v19 = vld [vmem:[#allocation4] sm:$0x1f]  ;;  %v1243_v20 = vpop.permute.xlu1 %1242  ;;  %vm5554_vm11 = vcmask 37920  }
 0x1bf   : > { %v1337_v21 = vpop.permute.xlu0 %1336  ;;  %2297 = vst.msk [vmem:[#allocation5] sm:$0x1f] %vm5488_vm8, %v2295_v19  ;;  %vm5560_vm8 = vcmask 31768  }
 0x1c0   : > { %1247 = vst.msk [vmem:[#allocation2 + $0x78] sm:$0x3f] %vm5553_vm14, %v1243_v20  ;;  %1720 = vrot.lane.b32.xlu1 %v4471_v43, %s3939_s16  ;;  %vm5556_vm14 = vcmask 15368  }
 0x1c1   : > { %1342 = vst.msk [vmem:[#allocation2 + $0x7e] sm:$0xff] %vm5489_vm12, %v1337_v21  ;;  %1660 = vrot.lane.b32.xlu0 %v4491_v49, %s3935_s26 }
 0x1c2   : > { %v1349_v23 = vpop.permute.xlu1 %1348 }
 0x1c3   : > { %v1303_v24 = vpop.permute.xlu0 %1302  ;;  %1354 = vst.msk [vmem:[#allocation2 + $0x7e] sm:$0xff] %vm444_vm15, %v1349_v23  ;;  %v2169_v56 = vld [vmem:[#allocation3 + $0x1c] sm:$0xff] }
 0x1c4   : > { %1307 = vst.msk [vmem:[#allocation2 + $0x86] sm:$0x3f] %vm5554_vm11, %v1303_v24  ;;  %1672 = vrot.lane.b32.xlu1 %v4482_v46, %s3934_s21  ;;  %vm5557_vm11 = vcmask 62520  }
 0x1c5   : > { %1626 = vrot.lane.b32.xlu0 %v1621_v22, %s3937_s29  ;;  %v1993_v25 = vpop.f32.mrf.mxu0 }
 0x1c6   : > { %v1994_v27 = vadd.f32 %v4611_v44, %v1993_v25  ;;  %v1315_v28 = vpop.permute.xlu1 %1314 }
 0x1c7   : > { %v1361_v29 = vpop.permute.xlu0 %1360  ;;  %1319 = vst.msk [vmem:[#allocation2 + $0x86] sm:$0x3f] %vm404_vm2, %v1315_v28  ;;  %v3608_v30 = vpop.f32.mrf.mxu0 }
 0x1c8   : > { %1366 = vst.msk [vmem:[#allocation2 + $0x8c] sm:$0xff] %vm5555_vm0, %v1361_v29  ;;  %v2097_v31 = vmax.f32 %v1994_v27, 0.0  ;;  %1732 = vrot.lane.b32.xlu1 %v4491_v49, %s3938_s22  ;;  %vm5558_vm0 = vcmask 23568   ;;  %v2298_v27 = vld [vmem:[#allocation4 + $0x1] sm:$0x1f] }
 0x1c9   : > { %1686 = vrot.lane.b32.xlu0 %v1681_v26, %s3941_s14 }
 0x1ca   : > { %2123 = vst.msk [vmem:[#allocation3 + $0x28] sm:$0xff] %vm2117_vm5, %v2097_v31  ;;  %v1327_v34 = vpop.permute.xlu1 %1326  ;;  %v1803_v36 = vld [vmem:[#allocation2 + $0x78] sm:$0xff] }
 0x1cb   : > { %v1373_v35 = vpop.permute.xlu0 %1372  ;;  %1331 = vst.msk [vmem:[#allocation2 + $0x86] sm:$0x3f] %vm5491_vm1, %v1327_v34  ;;  %3637 = vmatmul.mubr.msk.f32.gmra.mxu0 %vm1822_vm6, %v1803_v36  ;;  %v2305_v34 = vld [vmem:[#allocation4 + $0x2] sm:$0x1f] }
 0x1cc   : > { %1378 = vst.msk [vmem:[#allocation2 + $0x8c] sm:$0xff] %vm5556_vm14, %v1373_v35  ;;  %1698 = vrot.lane.b32.xlu1 %v1693_v32, %s3940_s17  ;;  %3639 = vmatprep.mubr.msk.f32.mxu0 %vm5493_vm3, %v3926_v7  ;;  %vm5559_vm14 = vcmask 70720  }
 0x1cd   : > { %1638 = vrot.lane.b32.xlu0 %v1633_v33, %s3936_s27 }
 0x1ce   : > { %v1339_v38 = vpop.permute.xlu1 %1338 }
 0x1cf   : > { %v1385_v39 = vpop.permute.xlu0 %1384  ;;  %1343 = vst.msk [vmem:[#allocation2 + $0x86] sm:$0x3f] %vm5557_vm11, %v1339_v38  ;;  %vm5561_vm11 = vcmask 5120  }
 0x1d0   : > { %1390 = vst.msk [vmem:[#allocation2 + $0x8c] sm:$0xff] %vm5558_vm0, %v1385_v39  ;;  %1650 = vrot.lane.b32.xlu1 %v1645_v37, %s3936_s27  ;;  %vm5563_vm0 = vcmask 56368  }
 0x1d1   : > { %1744 = vrot.lane.b32.xlu0 %v4482_v46, %s3937_s29  ;;  %v2170_v59 = vld [vmem:[#allocation3 + $0x24] sm:$0x3f] }
 0x1d2   : > { %v1351_v41 = vpop.permute.xlu1 %1350 }
 0x1d3   : > { %v1397_v42 = vpop.permute.xlu0 %1396  ;;  %1355 = vst.msk [vmem:[#allocation2 + $0x86] sm:$0x3f] %vm5559_vm14, %v1351_v41  ;;  %v1998_v0 = vpop.f32.mrf.mxu0  ;;  %vm5564_vm14 = vcmask 29720  }
 0x1d4   : > { %1402 = vst.msk [vmem:[#allocation2 + $0x8c] sm:$0xff] %vm5560_vm8, %v1397_v42  ;;  %v1999_v45 = vadd.f32 %v4611_v44, %v1998_v0  ;;  %1756 = vrot.lane.b32.xlu1 %v4471_v43, %s3937_s29  ;;  %v1669_v43 = vld [vmem:[%s4049_s25 + $0xa] sm:$0x3f]  ;;  %vm5562_vm8 = vcmask 13320  }
 0x1d5   : > { %1710 = vrot.lane.b32.xlu0 %v1705_v40, %s3939_s16  ;;  %v3611_v1 = vpop.f32.mrf.mxu0 }
 0x1d6   : > { %v2098_v48 = vmax.f32 %v1999_v45, 0.0  ;;  %v1409_v50 = vpop.permute.xlu1 %1408 }
 0x1d7   : > { %v1363_v51 = vpop.permute.xlu0 %1362  ;;  %1414 = vst.msk [vmem:[#allocation2 + $0x8c] sm:$0xff] %vm388_vm7, %v1409_v50 }
 0x1d8   : > { %1367 = vst.msk [vmem:[#allocation2 + $0x94] sm:$0x3f] %vm5561_vm11, %v1363_v51  ;;  %1722 = vrot.lane.b32.xlu1 %v1717_v2, %s3939_s16  ;;  %vm5565_vm11 = vcmask 253952   ;;  %s3451_s16 = sshll.u32 %s4017_s13, 4 }
 0x1d9   : > { %2124 = vst.msk [vmem:[#allocation3 + $0x30] sm:$0xff] %vm2117_vm5, %v2098_v48  ;;  %1662 = vrot.lane.b32.xlu0 %v1657_v47, %s3935_s26 }
 0x1da   : > { %v1421_v52 = vpop.permute.xlu1 %1420  ;;  %v1804_v54 = vld [vmem:[#allocation2 + $0x80] sm:$0xff] }
 0x1db   : > { %v1375_v53 = vpop.permute.xlu0 %1374  ;;  %1426 = vst.msk [vmem:[#allocation2 + $0x8c] sm:$0xff] %vm402_vm10, %v1421_v52  ;;  %3640 = vmatmul.mubr.msk.f32.gmra.mxu0 %vm1822_vm6, %v1804_v54 }
 0x1dc   : > { %1379 = vst.msk [vmem:[#allocation2 + $0x94] sm:$0x3f] %vm5562_vm8, %v1375_v53  ;;  %1674 = vrot.lane.b32.xlu1 %v1669_v43, %s3934_s21  ;;  %3642 = vmatprep.mubr.msk.f32.mxu0 %vm5493_vm3, %v3926_v7  ;;  %vm5566_vm8 = vcmask 256002   ;;  %s3944_s21 = smov 96  }
 0x1dd   : > { %1768 = vrot.lane.b32.xlu0 %v4491_v49, %s3936_s27  ;;  %v1741_v49 = vld [vmem:[%s4049_s25 + $0xa] sm:$0x3f] }
 0x1de   : > { %v1433_v57 = vpop.permute.xlu1 %1432 }
 0x1df   : > { %v1387_v58 = vpop.permute.xlu0 %1386  ;;  %1438 = vst.msk [vmem:[#allocation2 + $0x8c] sm:$0xff] %vm5563_vm0, %v1433_v57  ;;  %vm5567_vm0 = vmmov %vm5565_vm11 }
 0x1e0   : > { %v2171_v60 = vld [vmem:[#allocation3 + $0x2a] sm:$0xff]  ;;  %v2172_v61 = vld [vmem:[#allocation3 + $0x32] sm:$0x3f]  ;;  %1391 = vst.msk [vmem:[#allocation2 + $0x94] sm:$0x3f] %vm362_vm9, %v1387_v58  ;;  %1780 = vrot.lane.b32.xlu1 %v4482_v46, %s3935_s26 }
 0x1e1   : > { %v2173_v62 = vmax.f32 %v2169_v56, %v2171_v60  ;;  %v2174_v63 = vmax.f32 %v2170_v59, %v2172_v61  ;;  %1734 = vrot.lane.b32.xlu0 %v1729_v55, %s3938_s22  ;;  %v1777_v46 = vld [vmem:[%s4049_s25 + $0xa] sm:$0x3f]  ;;  %s3942_s25 = smov 32   ;;  %s323_s22 = sand.u32 1, %s3911_s10  }
 0x1e2   : > { %v1445_v6 = vpop.permute.xlu1 %1444  ;;  %s324_s17 = scalar_lea.vmem [#allocation7], %s323_s22 }
 0x1e3   : > { %v2176_v4 = vrot.slane %v2173_v62, 1  ;;  %v2184_v5 = vrot.slane %v2174_v63, 1  ;;  %v1399_v8 = vpop.permute.xlu0 %1398  ;;  %1450 = vst.msk [vmem:[#allocation2 + $0x8c] sm:$0xff] %vm5489_vm12, %v1445_v6  ;;  %vm5569_vm12 = vcmask 37920   ;;  %s3330_s14 = sshll.u32 %s324_s17, 4  ;;  %s3331_s14 = int_to_ptr.vmem [resolvable:$true] %s3330_s14 }
 0x1e4   : > { %1403 = vst.msk [vmem:[#allocation2 + $0x94] sm:$0x3f] %vm5564_vm14, %v1399_v8  ;;  %1758 = vrot.lane.b32.xlu1 %v1753_v3, %s3937_s29  ;;  %vm5568_vm14 = vmmov %vm5566_vm8 }
 0x1e5   : > { %v2178_v9 = vmax.f32 %v2173_v62, %v2176_v4  ;;  %v2186_v10 = vmax.f32 %v2174_v63, %v2184_v5  ;;  %1746 = vrot.lane.b32.xlu0 %v1741_v49, %s3937_s29  ;;  %s3945_s29 = smov [#allocation7]  }
 0x1e6   : > { %v1457_v12 = vpop.permute.xlu1 %1456  ;;  %s3863_s13 = sshll.u32 %s3945_s29, 4  ;;  %s3864_s13 = int_to_ptr.vmem [resolvable:$false] %s3863_s13 }
 0x1e7   : > { %v1411_v13 = vpop.permute.xlu0 %1410  ;;  %2181 = vst.msk [vmem:[#allocation4 + $0x5] sm:$0x10] %vm2158_vm4, %v2178_v9  ;;  %2189 = vst.msk [vmem:[#allocation4 + $0x9] sm:$0x10] %vm2158_vm4, %v2186_v10  ;;  %s3865_s23 = scalar_lea.vmem %s3864_s13, 32  ;;  %p3866_p0 = scmp.lt.s32.totalorder %s3331_s14, %s3864_s13 }
 0x1e8   : > { %2182 = vst.msk [vmem:[#allocation4 + $0x4] sm:$0x40] %vm5490_vm13, %v2178_v9  ;;  %1782 = vrot.lane.b32.xlu1 %v1777_v46, %s3935_s26  ;;  %vm5576_vm13 = vcmask 31768  }
 0x1e9   : > { %2187 = vst.msk [vmem:[#allocation4 + $0xb] sm:$0x1] %vm5565_vm11, %v2186_v10  ;;  %1770 = vrot.lane.b32.xlu0 %v1765_v11, %s3936_s27  ;;  %vm5570_vm11 = vcmask 7168  }
 0x1ea   : > { %2188 = vst.msk [vmem:[#allocation4 + $0xa] sm:$0x4] %vm5566_vm8, %v2186_v10  ;;  %v1423_v14 = vpop.permute.xlu1 %1422  ;;  %vm2345_vm8 = vcmask 261125  }
 0x1eb   : > { %2179 = vst.msk [vmem:[#allocation4 + $0x7] sm:$0x1] %vm5567_vm0, %v2178_v9  ;;  %v1469_v15 = vpop.permute.xlu0 %1468  ;;  %v2003_v16 = vpop.f32.mrf.mxu0  ;;  %vm5492_vm0 = vcmask 254976  }
 0x1ec   : > { %2180 = vst.msk [vmem:[#allocation4 + $0x6] sm:$0x4] %vm5568_vm14, %v2178_v9  ;;  %v2004_v17 = vadd.f32 %v4611_v44, %v2003_v16  ;;  %vm5572_vm14 = vcmask 258048  }
 0x1ed   : > { %1462 = vst.msk [vmem:[#allocation2 + $0x8c] sm:$0xff] %vm444_vm15, %v1457_v12  ;;  %v3614_v18 = vpop.f32.mrf.mxu0 }
 0x1ee   : > { %1415 = vst.msk [vmem:[#allocation2 + $0x94] sm:$0x3f] %vm5569_vm12, %v1411_v13  ;;  %v2099_v20 = vmax.f32 %v2004_v17, 0.0  ;;  %v1435_v21 = vpop.permute.xlu1 %1434  ;;  %vm5571_vm12 = vcmask 15368  }
 0x1ef   : > { %1427 = vst.msk [vmem:[#allocation2 + $0x94] sm:$0x3f] %vm404_vm2, %v1423_v14  ;;  %v1481_v22 = vpop.permute.xlu0 %1480 }
 0x1f0   : > { %1474 = vst.msk [vmem:[#allocation2 + $0x9a] sm:$0xff] %vm5570_vm11, %v1469_v15  ;;  %vm5573_vm11 = vcmask 62520  }
 0x1f1   : > { %v2321_v19 = vld [vmem:[#allocation4 + $0x9] sm:$0x1f]  ;;  %1439 = vst.msk [vmem:[#allocation2 + $0x94] sm:$0x3f] %vm5491_vm1, %v1435_v21 }
 0x1f2   : > { %2323 = vrot.lane.b32.xlu0 %v2321_v19, %s3942_s25  ;;  %1486 = vst.msk [vmem:[#allocation2 + $0x9a] sm:$0xff] %vm5571_vm12, %v1481_v22  ;;  %v1447_v29 = vpop.permute.xlu1 %1446  ;;  %vm5574_vm12 = vcmask 23568   ;;  %v2359_v35 = vld [vmem:[#allocation4 + $0x9] sm:$0x1f] }
 0x1f3   : > { %v2319_v24 = vld [vmem:[#allocation4 + $0x8] sm:$0x1f]  ;;  %2125 = vst.msk [vmem:[#allocation3 + $0x38] sm:$0xff] %vm2117_vm5, %v2099_v20  ;;  %v1493_v30 = vpop.permute.xlu0 %1492  ;;  %v2361_v38 = vrot.slane %v2359_v35, 3 }
 0x1f4   : > { %v1805_v23 = vld [vmem:[#allocation2 + $0x88] sm:$0xff]  ;;  %v2341_v25 = vld [vmem:[#allocation4 + $0x7] sm:$0x1f]  ;;  %2320 = vst.msk [vmem:[#allocation5 + $0x8] sm:$0x1f] %vm5572_vm14, %v2319_v24  ;;  %vm5575_vm14 = vcmask 70720  }
 0x1f5   : > { %3643 = vmatmul.mubr.msk.f32.gmra.mxu0 %vm1822_vm6, %v1805_v23  ;;  %v2343_v26 = vrot.slane %v2341_v25, 3  ;;  %v2349_v28 = vld [vmem:[#allocation4 + $0x8] sm:$0x1f]  ;;  %1451 = vst.msk [vmem:[#allocation2 + $0x94] sm:$0x3f] %vm5573_vm11, %v1447_v29  ;;  %vm5577_vm11 = vcmask 5120  }
 0x1f6   : > { %3645 = vmatprep.mubr.msk.f32.mxu0 %vm5493_vm3, %v3926_v7  ;;  %2300 = vrot.lane.b32.xlu0 %v2298_v27, %s3942_s25  ;;  %1498 = vst.msk [vmem:[#allocation2 + $0x9a] sm:$0xff] %vm5574_vm12, %v1493_v30  ;;  %v2351_v31 = vrot.slane %v2349_v28, 3  ;;  %v1459_v32 = vpop.permute.xlu1 %1458  ;;  %v2312_v42 = vld [vmem:[#allocation4 + $0x7] sm:$0x1f]  ;;  %vm5579_vm12 = vcmask 56368  }
 0x1f7   : > { %2346 = vst.msk [vmem:[#allocation5] sm:$0xe0] %vm2345_vm8, %v2343_v26  ;;  %v1505_v33 = vpop.permute.xlu0 %1504 }
 0x1f8   : > { %2348 = vst.msk [vmem:[#allocation5 + $0x18] sm:$0x3] %vm5492_vm0, %v2343_v26  ;;  %vm5594_vm0 = vcmask 7168  }
 0x1f9   : > { %1463 = vst.msk [vmem:[#allocation2 + $0x94] sm:$0x3f] %vm5575_vm14, %v1459_v32  ;;  %vm5580_vm14 = vcmask 64568  }
 0x1fa   : > { %2352 = vrot.lane.b32.xlu0 %v2351_v31, %s3942_s25  ;;  %1510 = vst.msk [vmem:[#allocation2 + $0x9a] sm:$0xff] %vm5576_vm13, %v1505_v33  ;;  %v1517_v36 = vpop.permute.xlu1 %1516  ;;  %vm5578_vm13 = vcmask 13320   ;;  %v2190_v4 = vld [vmem:[#allocation3 + $0x38] sm:$0xff] }
 0x1fb   : > { %v1471_v37 = vpop.permute.xlu0 %1470  ;;  %1522 = vst.msk [vmem:[#allocation2 + $0x9a] sm:$0xff] %vm388_vm7, %v1517_v36 }
 0x1fc   : > { %1475 = vst.msk [vmem:[#allocation2 + $0xa2] sm:$0x3f] %vm5577_vm11, %v1471_v37  ;;  %vm5581_vm11 = vcmask 29720  }
 0x1fe   : > { %2307 = vrot.lane.b32.xlu0 %v2305_v34, %s3943_s28  ;;  %v1529_v39 = vpop.permute.xlu1 %1528 }
 0x1ff   : > { %v1483_v40 = vpop.permute.xlu0 %1482  ;;  %1534 = vst.msk [vmem:[#allocation2 + $0x9a] sm:$0xff] %vm402_vm10, %v1529_v39 }
 0x200   : > { %v1806_v41 = vld [vmem:[#allocation2 + $0x90] sm:$0xff]  ;;  %1487 = vst.msk [vmem:[#allocation2 + $0xa2] sm:$0x3f] %vm5578_vm13, %v1483_v40  ;;  %vm5582_vm13 = vcmask 37920  }
 0x201   : > { %3646 = vmatmul.mubr.msk.f32.gmra.mxu0 %vm1822_vm6, %v1806_v41 }
 0x202   : > { %2362 = vrot.lane.b32.xlu0 %v2361_v38, %s3943_s28  ;;  %3648 = vmatprep.mubr.msk.f32.mxu0 %vm5493_vm3, %v3926_v7  ;;  %v1541_v0 = vpop.permute.xlu1 %1540 }
 0x203   : > { %v1495_v45 = vpop.permute.xlu0 %1494  ;;  %1546 = vst.msk [vmem:[#allocation2 + $0x9a] sm:$0xff] %vm5579_vm12, %v1541_v0  ;;  %vm5583_vm12 = vcmask 62520  }
 0x204   : > { %1499 = vst.msk [vmem:[#allocation2 + $0xa2] sm:$0x3f] %vm362_vm9, %v1495_v45  ;;  %v2008_v1 = vpop.f32.mrf.mxu0 }
 0x205   : > { %v2009_v2 = vadd.f32 %v4611_v44, %v2008_v1 }
 0x206   : > { %2314 = vrot.lane.b32.xlu0 %v2312_v42, %s3944_s21  ;;  %v3617_v47 = vpop.f32.mrf.mxu0  ;;  %v1553_v50 = vpop.permute.xlu1 %1552 }
 0x207   : > { %v2100_v48 = vmax.f32 %v2009_v2, 0.0  ;;  %v1507_v51 = vpop.permute.xlu0 %1506  ;;  %1558 = vst.msk [vmem:[#allocation2 + $0x9a] sm:$0xff] %vm5580_vm14, %v1553_v50  ;;  %vm5584_vm14 = vcmask 70720  }
 0x208   : > { %1511 = vst.msk [vmem:[#allocation2 + $0xa2] sm:$0x3f] %vm5581_vm11, %v1507_v51  ;;  %vm5585_vm11 = vcmask 7168  }
 0x209   : > { %2126 = vst.msk [vmem:[#allocation3 + $0x40] sm:$0xff] %vm2117_vm5, %v2100_v48 }
 0x20a   : > { %v1565_v43 = vpop.permute.xlu1 %1564 }
 0x20b   : > { %v1519_v52 = vpop.permute.xlu0 %1518  ;;  %1570 = vst.msk [vmem:[#allocation2 + $0x9a] sm:$0xff] %vm444_vm15, %v1565_v43 }
 0x20c   : > { %1523 = vst.msk [vmem:[#allocation2 + $0xa2] sm:$0x3f] %vm5582_vm13, %v1519_v52  ;;  %vm5586_vm13 = vcmask 15368  }
 0x20e   : > { %v1543_v53 = vpop.permute.xlu1 %1542 }
 0x20f   : > { %v1531_v54 = vpop.permute.xlu0 %1530  ;;  %v2013_v55 = vpop.f32.mrf.mxu0 }
 0x210   : > { %1535 = vst.msk [vmem:[#allocation2 + $0xa2] sm:$0x3f] %vm404_vm2, %v1531_v54  ;;  %v2014_v56 = vadd.f32 %v4611_v44, %v2013_v55  ;;  %v2191_v22 = vld [vmem:[#allocation3 + $0x40] sm:$0x3f] }
 0x211   : > { %1547 = vst.msk [vmem:[#allocation2 + $0xa2] sm:$0x3f] %vm5491_vm1, %v1543_v53  ;;  %v3620_v57 = vpop.f32.mrf.mxu0  ;;  %vm5588_vm1 = vcmask 31768  }
 0x212   : > { %v2101_v58 = vmax.f32 %v2014_v56, 0.0  ;;  %v1567_v59 = vpop.permute.xlu1 %1566  ;;  %v1807_v61 = vld [vmem:[#allocation2 + $0x98] sm:$0xff] }
 0x213   : > { %v1555_v60 = vpop.permute.xlu0 %1554  ;;  %3649 = vmatmul.mubr.msk.f32.gmra.mxu0 %vm1822_vm6, %v1807_v61 }
 0x214   : > { %1559 = vst.msk [vmem:[#allocation2 + $0xa2] sm:$0x3f] %vm5583_vm12, %v1555_v60  ;;  %3651 = vmatprep.mubr.msk.f32.mxu0 %vm5493_vm3, %v3926_v7  ;;  %vm5587_vm12 = vcmask 23568  }
 0x215   : > { %2127 = vst.msk [vmem:[#allocation3 + $0x48] sm:$0xff] %vm2117_vm5, %v2101_v58 }
 0x216   : > { %1571 = vst.msk [vmem:[#allocation2 + $0xa2] sm:$0x3f] %vm5584_vm14, %v1567_v59  ;;  %v1589_v62 = vpop.permute.xlu1 %1588  ;;  %vm5589_vm14 = vcmask 5120  }
 0x217   : > { %v1577_v63 = vpop.permute.xlu0 %1576 }
 0x218   : > { %1582 = vst.msk [vmem:[#allocation2 + $0xa8] sm:$0xff] %vm5585_vm11, %v1577_v63  ;;  %vm5590_vm11 = vcmask 253952  }
 0x219   : > { %1594 = vst.msk [vmem:[#allocation2 + $0xa8] sm:$0xff] %vm5586_vm13, %v1589_v62  ;;  %vm5591_vm13 = vcmask 256002  }
 0x21a   : > { %v1613_v49 = vpop.permute.xlu1 %1612 }
 0x21b   : > { %v1601_v3 = vpop.permute.xlu0 %1600 }
 0x21c   : > { %v2192_v5 = vld [vmem:[#allocation3 + $0x46] sm:$0xff]  ;;  %1606 = vst.msk [vmem:[#allocation2 + $0xa8] sm:$0xff] %vm5587_vm12, %v1601_v3  ;;  %vm5592_vm12 = vcmask 260102  }
 0x21d   : > { %v1808_v6 = vld [vmem:[#allocation2 + $0xa0] sm:$0xff]  ;;  %v2194_v8 = vmax.f32 %v2190_v4, %v2192_v5  ;;  %1618 = vst.msk [vmem:[#allocation2 + $0xa8] sm:$0xff] %vm5588_vm1, %v1613_v49  ;;  %vm5593_vm1 = vcmask 13320  }
 0x21e   : > { %3652 = vmatmul.mubr.msk.f32.gmra.mxu0 %vm1822_vm6, %v1808_v6  ;;  %v1625_v10 = vpop.permute.xlu1 %1624  ;;  %v4950_v49 = vld [vmem:[%s5467_s2] ss:$0 sm:$0xff] }
 0x21f   : > { %v2197_v9 = vrot.slane %v2194_v8, 1  ;;  %v1579_v11 = vpop.permute.xlu0 %1578  ;;  %1630 = vst.msk [vmem:[#allocation2 + $0xa8] sm:$0xff] %vm388_vm7, %v1625_v10 }
 0x220   : > { %1583 = vst.msk [vmem:[#allocation2 + $0xb0] sm:$0x3f] %vm5589_vm14, %v1579_v11  ;;  %vm5595_vm14 = vcmask 15368  }
 0x221   : > { %v2199_v46 = vmax.f32 %v2194_v8, %v2197_v9  ;;  %v2018_v12 = vpop.f32.mrf.mxu0 }
 0x222   : > { %v2019_v13 = vadd.f32 %v4611_v44, %v2018_v12  ;;  %v1591_v14 = vpop.permute.xlu1 %1590  ;;  %v2649_v12 = vld [vmem:[%s5468_s3 + $0x78] sm:$0xff] }
 0x223   : > { %2200 = vst.msk [vmem:[#allocation4 + $0xe] sm:$0x1] %vm5590_vm11, %v2199_v46  ;;  %v1685_v15 = vpop.permute.xlu0 %1684  ;;  %v3623_v16 = vpop.f32.mrf.mxu0  ;;  %vm5596_vm11 = vcmask 56368  }
 0x224   : > { %2201 = vst.msk [vmem:[#allocation4 + $0xd] sm:$0x4] %vm5591_vm13, %v2199_v46  ;;  %v2102_v17 = vmax.f32 %v2019_v13, 0.0  ;;  %vm5598_vm13 = vcmask 23568   ;;  %v2664_v13 = vld [vmem:[%s5468_s3 + $0xf0] sm:$0xff] }
 0x225   : > { %2202 = vst.msk [vmem:[#allocation4 + $0xc] sm:$0x10] %vm2158_vm4, %v2199_v46 }
 0x226   : > { %2203 = vst.msk [vmem:[#allocation4 + $0xb] sm:$0x40] %vm5592_vm12, %v2199_v46  ;;  %v1697_v18 = vpop.permute.xlu1 %1696  ;;  %vm5599_vm12 = vcmask 31768   ;;  %v2665_v46 = vld [vmem:[%s5468_s3 + $0xf8] sm:$0xff] }
 0x227   : > { %1595 = vst.msk [vmem:[#allocation2 + $0xb0] sm:$0x3f] %vm5593_vm1, %v1591_v14  ;;  %v1637_v19 = vpop.permute.xlu0 %1636  ;;  %vm5600_vm1 = vcmask 64568   ;;  %3482 = vmatprep.subr.mxu0 %v2665_v46  ;;  %v2648_v14 = vld [vmem:[%s5468_s3 + $0x70] sm:$0xff]  ;;  %v2653_v46 = vld [vmem:[%s5468_s3 + $0x98] sm:$0xff] }
 0x228   : > { %1690 = vst.msk [vmem:[#allocation2 + $0xb6] sm:$0xff] %vm5594_vm0, %v1685_v15  ;;  %vm5597_vm0 = vcmask 29720   ;;  %3483 = vmatpush3.msra.mxu0 %v2649_v12 }
 0x229   : > { %2128 = vst.msk [vmem:[#allocation3 + $0x50] sm:$0xff] %vm2117_vm5, %v2102_v17  ;;  %3484 = vmatprep.subr.mxu0 %v2664_v13  ;;  %v2663_v17 = vld [vmem:[%s5468_s3 + $0xe8] sm:$0xff] }
 0x22a   : > { %1702 = vst.msk [vmem:[#allocation2 + $0xb6] sm:$0xff] %vm5595_vm14, %v1697_v18  ;;  %v1649_v20 = vpop.permute.xlu1 %1648  ;;  %vm5601_vm14 = vcmask 253952   ;;  %3485 = vmatpush3.msra.mxu0 %v2648_v14 }
 0x22b   : > { %1642 = vst.msk [vmem:[#allocation2 + $0xa8] sm:$0xff] %vm402_vm10, %v1637_v19  ;;  %v1603_v21 = vpop.permute.xlu0 %1602  ;;  %3486 = vmatprep.subr.mxu0 %v2663_v17  ;;  %v2652_v17 = vld [vmem:[%s5468_s3 + $0x90] sm:$0xff] }
 0x22c   : > { %1654 = vst.msk [vmem:[#allocation2 + $0xa8] sm:$0xff] %vm5596_vm11, %v1649_v20  ;;  %vm5602_vm11 = vcmask 256002   ;;  %v2647_v20 = vld [vmem:[%s5468_s3 + $0x68] sm:$0xff] }
 0x22d   : > { %1607 = vst.msk [vmem:[#allocation2 + $0xb0] sm:$0x3f] %vm362_vm9, %v1603_v21  ;;  %3487 = vmatpush3.msra.mxu0 %v2647_v20 }
 0x22e   : > { %v1615_v25 = vpop.permute.xlu1 %1614 }
 0x22f   : > { %v1709_v26 = vpop.permute.xlu0 %1708  ;;  %1619 = vst.msk [vmem:[#allocation2 + $0xb0] sm:$0x3f] %vm5597_vm0, %v1615_v25  ;;  %vm5603_vm0 = vcmask 37920   ;;  %v2646_v25 = vld [vmem:[%s5468_s3 + $0x60] sm:$0xff] }
 0x230   : > { %v2193_v23 = vld [vmem:[#allocation3 + $0x4e] sm:$0x3f]  ;;  %1714 = vst.msk [vmem:[#allocation2 + $0xb6] sm:$0xff] %vm5598_vm13, %v1709_v26  ;;  %vm5604_vm13 = vcmask 5120  }
 0x231   : > { %v2195_v24 = vmax.f32 %v2191_v22, %v2193_v23  ;;  %v2023_v28 = vpop.f32.mrf.mxu0 }
 0x232   : > { %v2024_v30 = vadd.f32 %v4611_v44, %v2023_v28  ;;  %v1721_v31 = vpop.permute.xlu1 %1720  ;;  %v2661_v28 = vld [vmem:[%s5468_s3 + $0xd8] sm:$0xff] }
 0x233   : > { %v2205_v27 = vrot.slane %v2195_v24, 1  ;;  %v1661_v32 = vpop.permute.xlu0 %1660  ;;  %1726 = vst.msk [vmem:[#allocation2 + $0xb6] sm:$0xff] %vm5599_vm12, %v1721_v31  ;;  %v3626_v33 = vpop.f32.mrf.mxu0  ;;  %vm5605_vm12 = vcmask 258048  }
 0x234   : > { %1666 = vst.msk [vmem:[#allocation2 + $0xa8] sm:$0xff] %vm5600_vm1, %v1661_v32  ;;  %v2103_v34 = vmax.f32 %v2024_v30, 0.0  ;;  %vm5606_vm1 = vcmask 13320   ;;  %v2645_v30 = vld [vmem:[%s5468_s3 + $0x58] sm:$0xff] }
 0x235   : > { %v2207_v29 = vmax.f32 %v2195_v24, %v2205_v27  ;;  %v2662_v24 = vld [vmem:[%s5468_s3 + $0xe0] sm:$0xff] }
 0x236   : > { %2129 = vst.msk [vmem:[#allocation3 + $0x58] sm:$0xff] %vm2117_vm5, %v2103_v34  ;;  %v1673_v35 = vpop.permute.xlu1 %1672  ;;  %3488 = vmatprep.subr.mxu0 %v2662_v24  ;;  %v2660_v34 = vld [vmem:[%s5468_s3 + $0xd0] sm:$0xff]  ;;  %v2635_v24 = vld [vmem:[%s5468_s3 + $0x8] sm:$0xff] }
 0x237   : > { %2208 = vst.msk [vmem:[#allocation4 + $0x12] sm:$0x1] %vm5601_vm14, %v2207_v29  ;;  %v1627_v36 = vpop.permute.xlu0 %1626  ;;  %vm5607_vm14 = vcmask 254976   ;;  %3489 = vmatpush3.msra.mxu0 %v2646_v25  ;;  %v2668_v25 = vld [vmem:[%s5468_s3 + $0x110] sm:$0xff] }
 0x238   : > { %2209 = vst.msk [vmem:[#allocation4 + $0x11] sm:$0x4] %vm5602_vm11, %v2207_v29  ;;  %vm5608_vm11 = vcmask 54320   ;;  %3490 = vmatprep.subr.mxu0 %v2661_v28 }
 0x239   : > { %2210 = vst.msk [vmem:[#allocation4 + $0x10] sm:$0x10] %vm2158_vm4, %v2207_v29  ;;  %3491 = vmatpush3.msra.mxu0 %v2645_v30 }
 0x23a   : > { %1678 = vst.msk [vmem:[#allocation2 + $0xa8] sm:$0xff] %vm444_vm15, %v1673_v35  ;;  %v1733_v37 = vpop.permute.xlu1 %1732  ;;  %3492 = vmatprep.subr.mxu0 %v2660_v34  ;;  %v2644_v35 = vld [vmem:[%s5468_s3 + $0x50] sm:$0xff] }
 0x23b   : > { %1631 = vst.msk [vmem:[#allocation2 + $0xb0] sm:$0x3f] %vm5603_vm0, %v1627_v36  ;;  %v1687_v38 = vpop.permute.xlu0 %1686  ;;  %vm5609_vm0 = vcmask 56368   ;;  %3493 = vmatpush3.msra.mxu0 %v2644_v35  ;;  %v2659_v36 = vld [vmem:[%s5468_s3 + $0xc8] sm:$0xff] }
 0x23c   : > { %1738 = vst.msk [vmem:[#allocation2 + $0xb6] sm:$0xff] %vm388_vm7, %v1733_v37  ;;  %vm2419_vm7 = vcmask 260098   ;;  %3494 = vmatprep.subr.mxu0 %v2659_v36 }
 0x23d   : > { %1691 = vst.msk [vmem:[#allocation2 + $0xbe] sm:$0x3f] %vm5604_vm13, %v1687_v38  ;;  %vm5610_vm13 = vcmask 29720   ;;  %v2211_v15 = vld [vmem:[#allocation3 + $0x54] sm:$0xff]  ;;  %v2643_v38 = vld [vmem:[%s5468_s3 + $0x48] sm:$0xff] }
 0x23e   : > { %v1699_v42 = vpop.permute.xlu1 %1698  ;;  %v2415_v47 = vld [vmem:[#allocation4 + $0xe] sm:$0x1f]  ;;  %3495 = vmatpush3.msra.mxu0 %v2643_v38 }
 0x23f   : > { %v1639_v0 = vpop.permute.xlu0 %1638  ;;  %v2379_v1 = vld [vmem:[#allocation4 + $0xf] sm:$0x1f]  ;;  %1703 = vst.msk [vmem:[#allocation2 + $0xbe] sm:$0x3f] %vm5606_vm1, %v1699_v42  ;;  %v2417_v48 = vrot.slane %v2415_v47, 6  ;;  %vm5613_vm1 = vcmask 64568  }
 0x240   : > { %v2385_v39 = vld [vmem:[#allocation4 + $0x10] sm:$0x1f]  ;;  %1643 = vst.msk [vmem:[#allocation2 + $0xb0] sm:$0x3f] %vm404_vm2, %v1639_v0  ;;  %v2381_v2 = vrot.slane %v2379_v1, 3  ;;  %v2657_v42 = vld [vmem:[%s5468_s3 + $0xb8] sm:$0xff] }
 0x241   : > { %v2339_v40 = vld [vmem:[#allocation4 + $0x10] sm:$0x1f]  ;;  %v2387_v41 = vrot.slane %v2385_v39, 3  ;;  %v1809_v45 = vld [vmem:[#allocation2 + $0xa8] sm:$0xff]  ;;  %2420 = vst.msk [vmem:[#allocation5 + $0x18] sm:$0x7c] %vm2419_vm7, %v2417_v48 }
 0x242   : > { %2340 = vst.msk [vmem:[#allocation5 + $0x10] sm:$0x1f] %vm5605_vm12, %v2339_v40  ;;  %3655 = vmatmul.mubr.msk.f32.vlgmr.msra.gmra.mxu1 %vm1822_vm6, %v1809_v45  ;;  %v2327_v50 = vld [vmem:[#allocation4 + $0xe] sm:$0x1f]  ;;  %v1651_v51 = vpop.permute.xlu1 %1650  ;;  %vm5611_vm12 = vcmask 62520  }
 0x243   : > { %2388 = vrot.lane.b32.xlu1 %v2387_v41, %s3942_s25  ;;  %3657 = vmatprep.mubr.msk.f32.mxu1 %vm5493_vm3, %v3926_v7  ;;  %2383 = vst.msk [vmem:[#allocation5 + $0x8] sm:$0xe0] %vm2345_vm8, %v2381_v2  ;;  %v1745_v43 = vpop.permute.xlu0 %1744  ;;  %v2028_v52 = vpop.f32.mrf.mxu0  ;;  %v2658_v40 = vld [vmem:[%s5468_s3 + $0xc0] sm:$0xff]  ;;  %v2641_v45 = vld [vmem:[%s5468_s3 + $0x38] sm:$0xff] }
 0x244   : > { %2384 = vst.msk [vmem:[#allocation5 + $0x20] sm:$0x3] %vm5607_vm14, %v2381_v2  ;;  %v2029_v53 = vadd.f32 %v4611_v44, %v2028_v52  ;;  %vm5614_vm14 = vcmask 37920   ;;  %3496 = vmatprep.subr.mxu0 %v2658_v40  ;;  %v2642_v41 = vld [vmem:[%s5468_s3 + $0x40] sm:$0xff] }
 0x245   : > { %1655 = vst.msk [vmem:[#allocation2 + $0xb0] sm:$0x3f] %vm5608_vm11, %v1651_v51  ;;  %v3629_v54 = vpop.f32.mrf.mxu0  ;;  %3497 = vmatpush3.msra.mxu0 %v2642_v41  ;;  %v2429_v14 = vld [vmem:[#allocation4 + $0x10] sm:$0x1f] }
 0x246   : > { %1750 = vst.msk [vmem:[#allocation2 + $0xb6] sm:$0xff] %vm402_vm10, %v1745_v43  ;;  %v2104_v55 = vmax.f32 %v2029_v53, 0.0  ;;  %v1757_v56 = vpop.permute.xlu1 %1756  ;;  %vm5612_vm10 = vcmask 70720   ;;  %3498 = vmatprep.subr.mxu0 %v2657_v42  ;;  %v2656_v43 = vld [vmem:[%s5468_s3 + $0xb0] sm:$0xff]  ;;  %v2421_v53 = vld [vmem:[#allocation4 + $0xf] sm:$0x1f] }
 0x247   : > { %2329 = vrot.lane.b32.xlu1 %v2327_v50, %s3943_s28  ;;  %v1711_v57 = vpop.permute.xlu0 %1710  ;;  %1762 = vst.msk [vmem:[#allocation2 + $0xb6] sm:$0xff] %vm5609_vm0, %v1757_v56  ;;  %vm5618_vm0 = vcmask 253952   ;;  %3499 = vmatpush3.msra.mxu0 %v2641_v45  ;;  %v2640_v54 = vld [vmem:[%s5468_s3 + $0x30] sm:$0xff]  ;;  %v2431_v20 = vrot.slane %v2429_v14, 6 }
 0x248   : > { %1715 = vst.msk [vmem:[#allocation2 + $0xbe] sm:$0x3f] %vm362_vm9, %v1711_v57  ;;  %vm5615_vm9 = vmmov %vm5608_vm11  ;;  %vm2303_vm11 = vcmask 520448   ;;  %3500 = vmatprep.subr.mxu0 %v2656_v43 }
 0x249   : > { %2130 = vst.msk [vmem:[#allocation3 + $0x60] sm:$0xff] %vm2117_vm5, %v2104_v55  ;;  %3501 = vmatpush3.msra.mxu0 %v2640_v54 }
 0x24a   : > { %v1723_v58 = vpop.permute.xlu1 %1722 }
 0x24b   : > { %v1663_v59 = vpop.permute.xlu0 %1662  ;;  %1727 = vst.msk [vmem:[#allocation2 + $0xbe] sm:$0x3f] %vm5610_vm13, %v1723_v58  ;;  %vm5619_vm13 = vcmask 256002  }
 0x24c   : > { %1667 = vst.msk [vmem:[#allocation2 + $0xb0] sm:$0x3f] %vm5611_vm12, %v1663_v59 }
 0x24e   : > { %v1675_v60 = vpop.permute.xlu1 %1674 }
 0x24f   : > { %v1769_v61 = vpop.permute.xlu0 %1768  ;;  %1679 = vst.msk [vmem:[#allocation2 + $0xb0] sm:$0x3f] %vm5612_vm10, %v1675_v60 }
 0x250   : > { %1774 = vst.msk [vmem:[#allocation2 + $0xb6] sm:$0xff] %vm5613_vm1, %v1769_v61  ;;  %v2212_v16 = vld [vmem:[#allocation3 + $0x5c] sm:$0x3f]  ;;  %vm5622_vm1 = vcmask 260102  }
 0x252   : > { %v1781_v44 = vpop.permute.xlu1 %1780 }
 0x253   : > { %v1735_v62 = vpop.permute.xlu0 %1734  ;;  %1786 = vst.msk [vmem:[#allocation2 + $0xb6] sm:$0xff] %vm444_vm15, %v1781_v44  ;;  %v2033_v63 = vpop.f32.mrf.mxu0  ;;  %vm5616_vm15 = vmmov %vm5611_vm12  ;;  %v2423_v44 = vrot.slane %v2421_v53, 6 }
 0x254   : > { %1739 = vst.msk [vmem:[#allocation2 + $0xbe] sm:$0x3f] %vm5614_vm14, %v1735_v62  ;;  %v2034_v3 = vadd.f32 %v4950_v49, %v2033_v63  ;;  %vm5620_vm12 = vmmov %vm5618_vm0  ;;  %vm2355_vm14 = vcmask 523525   ;;  %v2655_v63 = vld [vmem:[%s5468_s3 + $0xa8] sm:$0xff] }
 0x255   : > { %v3632_v4 = vpop.f32.mrf.mxu0  ;;  %3502 = vmatprep.subr.mxu0 %v2655_v63 }
 0x256   : > { %v2105_v5 = vmax.f32 %v2034_v3, 0.0  ;;  %v1759_v8 = vpop.permute.xlu1 %1758  ;;  %v2639_v3 = vld [vmem:[%s5468_s3 + $0x28] sm:$0xff]  ;;  %v2333_v4 = vld [vmem:[#allocation4 + $0xf] sm:$0x1f] }
 0x257   : > { %v1747_v6 = vpop.permute.xlu0 %1746  ;;  %3503 = vmatpush3.msra.mxu0 %v2639_v3 }
 0x258   : > { %1751 = vst.msk [vmem:[#allocation2 + $0xbe] sm:$0x3f] %vm404_vm2, %v1747_v6  ;;  %vm5617_vm2 = vmmov %vm5612_vm10  ;;  %v2654_v6 = vld [vmem:[%s5468_s3 + $0xa0] sm:$0xff] }
 0x259   : > { %2131 = vst.msk [vmem:[#allocation3 + $0x68] sm:$0xff] %vm2117_vm5, %v2105_v5  ;;  %vm5621_vm10 = vmmov %vm5619_vm13  ;;  %3504 = vmatprep.subr.mxu0 %v2654_v6 }
 0x25a   : > { %1763 = vst.msk [vmem:[#allocation2 + $0xbe] sm:$0x3f] %vm5615_vm9, %v1759_v8  ;;  %v1783_v10 = vpop.permute.xlu1 %1782  ;;  %v1810_v11 = vld [vmem:[#allocation2 + $0xb0] sm:$0xff]  ;;  %vm2357_vm9 = vcmask 517376  }
 0x25b   : > { %v1771_v9 = vpop.permute.xlu0 %1770  ;;  %3658 = vmatmul.mubr.msk.f32.gmra.mxu1 %vm1822_vm6, %v1810_v11 }
 0x25c   : > { %1775 = vst.msk [vmem:[#allocation2 + $0xbe] sm:$0x3f] %vm5616_vm15, %v1771_v9  ;;  %3660 = vmatprep.mubr.msk.f32.mxu1 %vm5493_vm3, %v3926_v7  ;;  %vm2310_vm15 = vcmask 782848  }
 0x25d   : > { %1787 = vst.msk [vmem:[#allocation2 + $0xbe] sm:$0x3f] %vm5617_vm2, %v1783_v10  ;;  %vm2367_vm2 = vcmask 779776   ;;  %v2638_v10 = vld [vmem:[%s5468_s3 + $0x20] sm:$0xff] }
 0x25e   : > { %3505 = vmatpush3.msra.mxu0 %v2638_v10 }
 0x25f   : > { %3506 = vmatprep.subr.mxu0 %v2653_v46 }
 0x260   : > { %v2213_v18 = vld [vmem:[#allocation3 + $0x62] sm:$0xff]  ;;  %v2214_v19 = vld [vmem:[#allocation3 + $0x6a] sm:$0x3f] }
 0x261   : > { %v2215_v21 = vmax.f32 %v2211_v15, %v2213_v18  ;;  %v2216_v22 = vmax.f32 %v2212_v16, %v2214_v19  ;;  %v2637_v15 = vld [vmem:[%s5468_s3 + $0x18] sm:$0xff]  ;;  %v2636_v18 = vld [vmem:[%s5468_s3 + $0x10] sm:$0xff] }
 0x262   : > { %v2369_v16 = vld [vmem:[#allocation4 + $0xe] sm:$0x1f]  ;;  %3507 = vmatpush3.msra.mxu0 %v2637_v15 }
 0x263   : > { %v2218_v26 = vrot.slane %v2215_v21, 1  ;;  %v2226_v27 = vrot.slane %v2216_v22, 1  ;;  %v2669_v19 = vld [vmem:[%s5468_s3 + $0x118] sm:$0xff]  ;;  %3508 = vmatprep.subr.mxu0 %v2652_v17 }
 0x264   : > { %v2324_v23 = vpop.permute.xlu0 %2323  ;;  %v1811_v29 = vld [vmem:[#allocation2 + $0xb8] sm:$0xff]  ;;  %v1812_v37 = vld [vmem:[#allocation2 + $0xc0] sm:$0xf]  ;;  %3666 = vmatprep.subr.mxu1 %v2669_v19  ;;  %3509 = vmatpush3.msra.mxu0 %v2636_v18 }
 0x265   : > { %2326 = vst.msk [vmem:[#allocation5 + $0x8] sm:$0x1f] %vm2303_vm11, %v2324_v23  ;;  %v2220_v31 = vmax.f32 %v2215_v21, %v2218_v26  ;;  %v2228_v32 = vmax.f32 %v2216_v22, %v2226_v27  ;;  %3661 = vmatmul.mubr.msk.f32.gmra.mxu1 %vm1822_vm6, %v1811_v29  ;;  %v2651_v21 = vld [vmem:[%s5468_s3 + $0x88] sm:$0xff]  ;;  %v2371_v22 = vrot.slane %v2369_v16, 3  ;;  %v2650_v26 = vld [vmem:[%s5468_s3 + $0x80] sm:$0xff] }
 0x266   : > { %3663 = vmatprep.mubr.msk.f32.mxu1 %vm5493_vm3, %v3926_v7  ;;  %3667 = vmatpush3.msra.mxu1 %v2669_v19  ;;  %v2634_v27 = vld [vmem:[%s5468_s3] sm:$0xff]  ;;  %v2667_v29 = vld [vmem:[%s5468_s3 + $0x108] sm:$0xff]  ;;  %vm2501_vm3 = vcmask 781824  }
 0x267   : > { %2229 = vst.msk [vmem:[#allocation4 + $0x19] sm:$0x1] %vm5618_vm0, %v2228_v32  ;;  %vm2142_vm0 = vcmask 257024   ;;  %3510 = vmatprep.subr.mxu0 %v2651_v21  ;;  %3668 = vmatprep.subr.mxu1 %v2668_v25 }
 0x268   : > { %v2301_v33 = vpop.permute.xlu0 %2300  ;;  %2230 = vst.msk [vmem:[#allocation4 + $0x18] sm:$0x4] %vm5619_vm13, %v2228_v32  ;;  %vm2480_vm13 = vcmask 261127   ;;  %3511 = vmatpush3.msra.mxu0 %v2635_v24  ;;  %3669 = vmatpush3.msra.mxu1 %v2668_v25 }
 0x269   : > { %2304 = vst.msk [vmem:[#allocation5] sm:$0x1f] %vm2303_vm11, %v2301_v33  ;;  %3664 = vmatmul.mubr.msk.f32.gmra.mxu1 %vm1822_vm6, %v1812_v37  ;;  %vm2365_vm6 = vcmask 785925   ;;  %vm5623_vm11 = vcmask 254976   ;;  %3512 = vmatprep.subr.mxu0 %v2650_v26 }
 0x26a   : > { %2231 = vst.msk [vmem:[#allocation4 + $0x17] sm:$0x10] %vm2158_vm4, %v2228_v32  ;;  %2223 = vst.msk [vmem:[#allocation4 + $0x13] sm:$0x10] %vm2158_vm4, %v2220_v31  ;;  %3513 = vmatpush3.msra.mxu0 %v2634_v27  ;;  %3670 = vmatprep.subr.mxu1 %v2667_v29  ;;  %v2666_v32 = vld [vmem:[%s5468_s3 + $0x100] sm:$0xff] }
 0x26b   : > { %2221 = vst.msk [vmem:[#allocation4 + $0x15] sm:$0x1] %vm5620_vm12, %v2220_v31  ;;  %3737 = vmatprep.subr.mxu0 %v3926_v7  ;;  %3671 = vmatpush3.msra.mxu1 %v2667_v29 }
 0x26c   : > { %2222 = vst.msk [vmem:[#allocation4 + $0x14] sm:$0x4] %vm5621_vm10, %v2220_v31  ;;  %v2353_v39 = vpop.permute.xlu0 %2352  ;;  %3672 = vmatprep.subr.mxu1 %v2666_v32 }
 0x26d   : > { %2224 = vst.msk [vmem:[#allocation4 + $0x12] sm:$0x40] %vm5622_vm1, %v2220_v31  ;;  %3673 = vmatpush3.msra.mxu1 %v2666_v32 }
 0x26e   : > { %2356 = vst.msk [vmem:[#allocation5] sm:$0xe0] %vm2355_vm14, %v2353_v39  ;;  %3680 = vmatprep.subr.mxu1 %v3926_v7 }
 0x26f   : > { %2358 = vst.msk [vmem:[#allocation5 + $0x18] sm:$0x3] %vm2357_vm9, %v2353_v39  ;;  %v2038_v52 = vpop.f32.mrf.mxu0 }
 0x270   : > { %v2308_v0 = vpop.permute.xlu0 %2307  ;;  %v2039_v55 = vadd.f32 %v4950_v49, %v2038_v52 }
 0x271   : > { %2311 = vst.msk [vmem:[#allocation5] sm:$0x1f] %vm2310_vm15, %v2308_v0  ;;  %v3635_v58 = vpop.f32.mrf.mxu0 }
 0x272   : > { %v2106_v61 = vmax.f32 %v2039_v55, 0.0 }
 0x274   : > { %v2409_v1 = vld [vmem:[#allocation4 + $0x17] sm:$0x1f]  ;;  %v2363_v56 = vpop.permute.xlu0 %2362  ;;  %2132 = vst.msk [vmem:[#allocation3 + $0x70] sm:$0xff] %vm2117_vm5, %v2106_v61 }
 0x275   : > { %v2450_v2 = vld [vmem:[#allocation4 + $0x17] sm:$0x1f]  ;;  %v2411_v48 = vrot.slane %v2409_v1, 3  ;;  %2366 = vst.msk [vmem:[#allocation5] sm:$0xe0] %vm2365_vm6, %v2363_v56 }
 0x276   : > { %v2393_v47 = vld [vmem:[#allocation4 + $0x15] sm:$0x1f]  ;;  %v2452_v50 = vrot.slane %v2450_v2, 6  ;;  %2368 = vst.msk [vmem:[#allocation5 + $0x18] sm:$0x3] %vm2367_vm2, %v2363_v56 }
 0x277   : > { %v2395_v51 = vrot.slane %v2393_v47, 3  ;;  %2413 = vst.msk [vmem:[#allocation5 + $0x10] sm:$0xe0] %vm2345_vm8, %v2411_v48  ;;  %v2445_v57 = vld [vmem:[#allocation4 + $0x16] sm:$0x1f]  ;;  %vm2317_vm8 = vcmask 1045248  }
 0x278   : > { %2414 = vst.msk [vmem:[#allocation5 + $0x28] sm:$0x3] %vm5623_vm11, %v2411_v48  ;;  %2453 = vrot.lane.b32.xlu0 %v2452_v50, %s3942_s25  ;;  %v2447_v59 = vrot.slane %v2445_v57, 6  ;;  %v2476_v60 = vld [vmem:[#allocation4 + $0x15] sm:$0x1f]  ;;  %v2315_v8 = vpop.permute.xlu0 %2314  ;;  %vm5624_vm11 = vmmov %vm5620_vm12 }
 0x279   : > { %2396 = vrot.lane.b32.xlu1 %v2395_v51, %s3943_s28  ;;  %v2478_v62 = vrot.slane %v2476_v60, 1  ;;  %v2483_v5 = vld [vmem:[#allocation4 + $0x16] sm:$0x1f]  ;;  %2318 = vst.msk [vmem:[#allocation5] sm:$0x1f] %vm2317_vm8, %v2315_v8 }
 0x27a   : > { %2449 = vst.msk [vmem:[#allocation5 + $0x20] sm:$0x7c] %vm2419_vm7, %v2447_v59  ;;  %v2401_v9 = vld [vmem:[#allocation4 + $0x16] sm:$0x1f]  ;;  %v2485_v11 = vrot.slane %v2483_v5, 1 }
 0x27b   : > { %2481 = vst.msk [vmem:[#allocation5 + $0x18] sm:$0x80] %vm2480_vm13, %v2478_v62  ;;  %v2403_v13 = vrot.slane %v2401_v9, 3  ;;  %v2493_v23 = vld [vmem:[#allocation4 + $0x17] sm:$0x1f]  ;;  %v2232_v41 = vld [vmem:[#allocation3 + $0x70] sm:$0xff] }
 0x27c   : > { %2424 = vrot.lane.b32.xlu0 %v2423_v44, %s3942_s25  ;;  %2482 = vst.msk [vmem:[#allocation5 + $0x30] sm:$0xf] %vm2142_vm0, %v2478_v62  ;;  %v2495_v28 = vrot.slane %v2493_v23, 1  ;;  %v2437_v30 = vld [vmem:[#allocation4 + $0x15] sm:$0x1f] }
 0x27d   : > { %2335 = vrot.lane.b32.xlu1 %v2333_v4, %s3944_s21  ;;  %v2439_v31 = vrot.slane %v2437_v30, 6 }
 0x27e   : > { %v2624_v12 = vld [vmem:[#allocation5 + $0x10] sm:$0xff] }
 0x27f   : > { %3674 = vmatprep.mubr.msk.f32.mxu1 %vm2117_vm5, %v2624_v12 }
 0x280   : > { %2486 = vrot.lane.b32.xlu0 %v2485_v11, %s3942_s25 }
 0x281   : > { %2404 = vrot.lane.b32.xlu1 %v2403_v13, %s3944_s21 }
 0x284   : > { %2432 = vrot.lane.b32.xlu0 %v2431_v20, %s3943_s28 }
 0x285   : > { %2372 = vrot.lane.b32.xlu1 %v2371_v22, %s3944_s21 }
 0x288   : > { %2496 = vrot.lane.b32.xlu0 %v2495_v28, %s3943_s28 }
 0x28b   : > { %v2043_v33 = vpop.f32.mrf.mxu0 }
 0x28c   : > { %2440 = vrot.lane.b32.xlu0 %v2439_v31, %s3944_s21  ;;  %v2044_v34 = vadd.f32 %v4950_v49, %v2043_v33 }
 0x28d   : > { %v3638_v35 = vpop.f32.mrf.mxu0 }
 0x28e   : > { %v2107_v36 = vmax.f32 %v2044_v34, 0.0 }
 0x290   : > { %2133 = vst.msk [vmem:[#allocation3 + $0x78] sm:$0xff] %vm2117_vm5, %v2107_v36 }
 0x297   : > { %v2233_v52 = vld [vmem:[#allocation3 + $0x78] sm:$0x3f] }
 0x29b   : > { %v2048_v37 = vpop.f32.mrf.mxu0 }
 0x29c   : > { %v2049_v38 = vadd.f32 %v4950_v49, %v2048_v37 }
 0x29d   : > { %v3641_v39 = vpop.f32.mrf.mxu0 }
 0x29e   : > { %v2108_v40 = vmax.f32 %v2049_v38, 0.0 }
 0x2a0   : > { %2134 = vst.msk [vmem:[#allocation3 + $0x80] sm:$0xff] %vm2117_vm5, %v2108_v40 }
 0x2a7   : > { %v2234_v42 = vld [vmem:[#allocation3 + $0x7e] sm:$0xff] }
 0x2a8   : > { %v2236_v0 = vmax.f32 %v2232_v41, %v2234_v42 }
 0x2aa   : > { %v2239_v45 = vrot.slane %v2236_v0, 1 }
 0x2ac   : > { %v2241_v1 = vmax.f32 %v2236_v0, %v2239_v45 }
 0x2ae   : > { %2242 = vst.msk [vmem:[#allocation4 + $0x1c] sm:$0x1] %vm5620_vm12, %v2241_v1  ;;  %vm2489_vm12 = vcmask 523527  }
 0x2af   : > { %2243 = vst.msk [vmem:[#allocation4 + $0x1b] sm:$0x4] %vm5621_vm10, %v2241_v1 }
 0x2b0   : > { %2244 = vst.msk [vmem:[#allocation4 + $0x1a] sm:$0x10] %vm2158_vm4, %v2241_v1 }
 0x2b1   : > { %2245 = vst.msk [vmem:[#allocation4 + $0x19] sm:$0x40] %vm5622_vm1, %v2241_v1  ;;  %vm2375_vm1 = vcmask 1048325  }
 0x2b5   : > { %v2053_v2 = vpop.f32.mrf.mxu0  ;;  %v2389_v47 = vpop.permute.xlu1 %2388 }
 0x2b6   : > { %v2054_v48 = vadd.f32 %v4950_v49, %v2053_v2  ;;  %2391 = vst.msk [vmem:[#allocation5 + $0x8] sm:$0xe0] %vm2355_vm14, %v2389_v47  ;;  %vm5625_vm14 = vmmov %vm5621_vm10  ;;  %vm2491_vm10 = vcmask 519424  }
 0x2b7   : > { %2392 = vst.msk [vmem:[#allocation5 + $0x20] sm:$0x3] %vm2357_vm9, %v2389_v47  ;;  %v3644_v50 = vpop.f32.mrf.mxu0  ;;  %vm2553_vm9 = vcmask 261124  }
 0x2b8   : > { %v2109_v51 = vmax.f32 %v2054_v48, 0.0 }
 0x2b9   : > { %v2330_v43 = vpop.permute.xlu1 %2329 }
 0x2ba   : > { %2135 = vst.msk [vmem:[#allocation3 + $0x88] sm:$0xff] %vm2117_vm5, %v2109_v51 }
 0x2bb   : > { %2332 = vst.msk [vmem:[#allocation5 + $0x8] sm:$0x1f] %vm2310_vm15, %v2330_v43  ;;  %vm5626_vm15 = vmmov %vm5624_vm11 }
 0x2c1   : > { %v2235_v53 = vld [vmem:[#allocation3 + $0x86] sm:$0x3f]  ;;  %v2058_v56 = vpop.f32.mrf.mxu0 }
 0x2c2   : > { %v2237_v54 = vmax.f32 %v2233_v52, %v2235_v53  ;;  %v2059_v58 = vadd.f32 %v4950_v49, %v2058_v56 }
 0x2c3   : > { %v3647_v59 = vpop.f32.mrf.mxu0 }
 0x2c4   : > { %v2247_v55 = vrot.slane %v2237_v54, 1  ;;  %v2110_v60 = vmax.f32 %v2059_v58, 0.0 }
 0x2c6   : > { %v2249_v57 = vmax.f32 %v2237_v54, %v2247_v55  ;;  %2136 = vst.msk [vmem:[#allocation3 + $0x90] sm:$0xff] %vm2117_vm5, %v2110_v60 }
 0x2c8   : > { %2250 = vst.msk [vmem:[#allocation4 + $0x20] sm:$0x1] %vm5624_vm11, %v2249_v57  ;;  %vm2377_vm11 = vcmask 1042176  }
 0x2c9   : > { %2251 = vst.msk [vmem:[#allocation4 + $0x1f] sm:$0x4] %vm5625_vm14, %v2249_v57 }
 0x2ca   : > { %2252 = vst.msk [vmem:[#allocation4 + $0x1e] sm:$0x10] %vm2158_vm4, %v2249_v57 }
 0x2cd   : > { %v2253_v21 = vld [vmem:[#allocation3 + $0x8c] sm:$0xff] }
 0x2cf   : > { %v2457_v3 = vld [vmem:[#allocation4 + $0x1c] sm:$0x1f] }
 0x2d0   : > { %v2513_v4 = vld [vmem:[#allocation4 + $0x1d] sm:$0x1f]  ;;  %v2459_v8 = vrot.slane %v2457_v3, 6 }
 0x2d1   : > { %v2519_v61 = vld [vmem:[#allocation4 + $0x1e] sm:$0x1f]  ;;  %v2515_v5 = vrot.slane %v2513_v4, 1 }
 0x2d2   : > { %v2471_v44 = vld [vmem:[#allocation4 + $0x1e] sm:$0x1f]  ;;  %v2521_v62 = vrot.slane %v2519_v61, 1 }
 0x2d3   : > { %v2473_v63 = vrot.slane %v2471_v44, 6  ;;  %v2549_v6 = vld [vmem:[#allocation4 + $0x1c] sm:$0x1f]  ;;  %2517 = vst.msk [vmem:[#allocation5 + $0x20] sm:$0x80] %vm2480_vm13, %v2515_v5  ;;  %v2063_v10 = vpop.f32.mrf.mxu0 }
 0x2d4   : > { %2522 = vrot.lane.b32.xlu1 %v2521_v62, %s3942_s25  ;;  %v2551_v9 = vrot.slane %v2549_v6, 4  ;;  %2518 = vst.msk [vmem:[#allocation5 + $0x38] sm:$0xf] %vm2142_vm0, %v2515_v5  ;;  %v2064_v11 = vadd.f32 %v4950_v49, %v2063_v10  ;;  %v2464_v1 = vld [vmem:[#allocation4 + $0x1d] sm:$0x1f] }
 0x2d5   : > { %2475 = vst.msk [vmem:[#allocation5 + $0x28] sm:$0x7c] %vm2419_vm7, %v2473_v63  ;;  %v3650_v46 = vpop.f32.mrf.mxu0  ;;  %vm2427_vm7 = vcmask 522498   ;;  %v2466_v48 = vrot.slane %v2464_v1, 6  ;;  %v2503_v54 = vld [vmem:[#allocation4 + $0x1c] sm:$0x1f] }
 0x2d6   : > { %2554 = vst.msk [vmem:[#allocation5 + $0x30] sm:$0xf0] %vm2553_vm9, %v2551_v9  ;;  %v2111_v12 = vmax.f32 %v2064_v11, 0.0  ;;  %v2505_v57 = vrot.slane %v2503_v54, 1  ;;  %v2556_v58 = vld [vmem:[#allocation4 + $0x1d] sm:$0x1f] }
 0x2d7   : > { %2555 = vst.msk [vmem:[#allocation5 + $0x48] sm:$0x1] %vm5626_vm15, %v2551_v9  ;;  %v2558_v59 = vrot.slane %v2556_v58, 4  ;;  %v2566_v60 = vld [vmem:[#allocation4 + $0x1e] sm:$0x1f]  ;;  %v3430_v58 = vld [vmem:[%s5470_s5 + $0x78] sm:$0xff] }
 0x2d8   : > { %2460 = vrot.lane.b32.xlu1 %v2459_v8, %s3943_s28  ;;  %2137 = vst.msk [vmem:[#allocation3 + $0x98] sm:$0xff] %vm2117_vm5, %v2111_v12  ;;  %v2568_v61 = vrot.slane %v2566_v60, 4  ;;  %v3428_v60 = vld [vmem:[%s5470_s5 + $0x68] sm:$0xff] }
 0x2de   : > { %v2068_v13 = vpop.f32.mrf.mxu0 }
 0x2df   : > { %v2069_v14 = vadd.f32 %v4950_v49, %v2068_v13  ;;  %v2254_v22 = vld [vmem:[#allocation3 + $0x94] sm:$0x3f] }
 0x2e0   : > { %v3653_v15 = vpop.f32.mrf.mxu0 }
 0x2e1   : > { %v2112_v16 = vmax.f32 %v2069_v14, 0.0 }
 0x2e3   : > { %2138 = vst.msk [vmem:[#allocation3 + $0xa0] sm:$0xff] %vm2117_vm5, %v2112_v16 }
 0x2ea   : > { %v2454_v17 = vpop.permute.xlu0 %2453  ;;  %v2255_v23 = vld [vmem:[#allocation3 + $0x9a] sm:$0xff]  ;;  %v2256_v24 = vld [vmem:[#allocation3 + $0xa2] sm:$0x3f] }
 0x2eb   : > { %v2397_v18 = vpop.permute.xlu1 %2396  ;;  %2456 = vst.msk [vmem:[#allocation5 + $0x20] sm:$0x7c] %vm2427_vm7, %v2454_v17  ;;  %v2257_v25 = vmax.f32 %v2253_v21, %v2255_v23  ;;  %v2258_v26 = vmax.f32 %v2254_v22, %v2256_v24 }
 0x2ec   : > { %2399 = vst.msk [vmem:[#allocation5 + $0x8] sm:$0xe0] %vm2365_vm6, %v2397_v18  ;;  %vm2435_vm6 = vcmask 784898  }
 0x2ed   : > { %2400 = vst.msk [vmem:[#allocation5 + $0x20] sm:$0x3] %vm2367_vm2, %v2397_v18  ;;  %v2260_v28 = vrot.slane %v2257_v25, 1  ;;  %v2268_v29 = vrot.slane %v2258_v26, 1  ;;  %vm5627_vm2 = vmmov %vm5626_vm15 }
 0x2ee   : > { %v2425_v19 = vpop.permute.xlu0 %2424 }
 0x2ef   : > { %v2336_v20 = vpop.permute.xlu1 %2335  ;;  %2428 = vst.msk [vmem:[#allocation5 + $0x18] sm:$0x7c] %vm2427_vm7, %v2425_v19  ;;  %v2262_v31 = vmax.f32 %v2257_v25, %v2260_v28  ;;  %v2270_v32 = vmax.f32 %v2258_v26, %v2268_v29  ;;  %vm5631_vm7 = vcmask 260102  }
 0x2f0   : > { %2338 = vst.msk [vmem:[#allocation5 + $0x8] sm:$0x1f] %vm2317_vm8, %v2336_v20  ;;  %vm5628_vm8 = vmmov %vm5625_vm14 }
 0x2f1   : > { %2271 = vst.msk [vmem:[#allocation4 + $0x27] sm:$0x1] %vm5627_vm2, %v2270_v32  ;;  %vm5629_vm14 = vmmov %vm5627_vm2  ;;  %vm2499_vm2 = vcmask 785927  }
 0x2f2   : > { %v2487_v27 = vpop.permute.xlu0 %2486  ;;  %2272 = vst.msk [vmem:[#allocation4 + $0x26] sm:$0x4] %vm5628_vm8, %v2270_v32  ;;  %vm5630_vm15 = vmmov %vm5628_vm8  ;;  %vm2443_vm8 = vcmask 1047298  }
 0x2f3   : > { %2490 = vst.msk [vmem:[#allocation5 + $0x18] sm:$0x80] %vm2489_vm12, %v2487_v27  ;;  %v2405_v30 = vpop.permute.xlu1 %2404 }
 0x2f4   : > { %2492 = vst.msk [vmem:[#allocation5 + $0x30] sm:$0xf] %vm2491_vm10, %v2487_v27 }
 0x2f5   : > { %2407 = vst.msk [vmem:[#allocation5 + $0x8] sm:$0xe0] %vm2375_vm1, %v2405_v30 }
 0x2f6   : > { %2408 = vst.msk [vmem:[#allocation5 + $0x20] sm:$0x3] %vm2377_vm11, %v2405_v30  ;;  %v2433_v33 = vpop.permute.xlu0 %2432 }
 0x2f7   : > { %2273 = vst.msk [vmem:[#allocation4 + $0x25] sm:$0x10] %vm2158_vm4, %v2270_v32  ;;  %2265 = vst.msk [vmem:[#allocation4 + $0x21] sm:$0x10] %vm2158_vm4, %v2262_v31  ;;  %v2373_v34 = vpop.permute.xlu1 %2372 }
 0x2f8   : > { %2263 = vst.msk [vmem:[#allocation4 + $0x23] sm:$0x1] %vm5629_vm14, %v2262_v31 }
 0x2f9   : > { %2264 = vst.msk [vmem:[#allocation4 + $0x22] sm:$0x4] %vm5630_vm15, %v2262_v31 }
 0x2fa   : > { %2266 = vst.msk [vmem:[#allocation4 + $0x20] sm:$0x40] %vm5631_vm7, %v2262_v31  ;;  %v2497_v35 = vpop.permute.xlu0 %2496 }
 0x2fb   : > { %2436 = vst.msk [vmem:[#allocation5 + $0x18] sm:$0x7c] %vm2435_vm6, %v2433_v33 }
 0x2fc   : > { %2376 = vst.msk [vmem:[#allocation5] sm:$0xe0] %vm2375_vm1, %v2373_v34  ;;  %v2623_v36 = vld [vmem:[#allocation5 + $0x8] sm:$0xff]  ;;  %vm5632_vm1 = vmmov %vm5629_vm14 }
 0x2fd   : > { %2378 = vst.msk [vmem:[#allocation5 + $0x18] sm:$0x3] %vm2377_vm11, %v2373_v34  ;;  %2753 = vmatprep.mubr.f32.mxu0 %v2623_v36  ;;  %vm5634_vm11 = vmmov %vm5630_vm15 }
 0x2fe   : > { %2500 = vst.msk [vmem:[#allocation5 + $0x18] sm:$0x80] %vm2499_vm2, %v2497_v35  ;;  %v2441_v38 = vpop.permute.xlu0 %2440  ;;  %vm5635_vm14 = vmmov %vm5631_vm7  ;;  %vm2572_vm7 = vcmask 785924  }
 0x2ff   : > { %2502 = vst.msk [vmem:[#allocation5 + $0x30] sm:$0xf] %vm2501_vm3, %v2497_v35  ;;  %vm5637_vm15 = vmmov %vm5634_vm11 }
 0x300   : > { %2444 = vst.msk [vmem:[#allocation5 + $0x18] sm:$0x7c] %vm2443_vm8, %v2441_v38 }
 0x301   : > { %v2543_v37 = vld [vmem:[#allocation4 + $0x25] sm:$0x1f] }
 0x302   : > { %v2592_v39 = vld [vmem:[#allocation4 + $0x25] sm:$0x1f]  ;;  %v2545_v41 = vrot.slane %v2543_v37, 1  ;;  %v2073_v51 = vpop.f32.mrf.mxu1 }
 0x303   : > { %v2527_v40 = vld [vmem:[#allocation4 + $0x23] sm:$0x1f]  ;;  %v2622_v42 = vld [vmem:[#allocation5] sm:$0xff]  ;;  %v2594_v0 = vrot.slane %v2592_v39, 4  ;;  %v2074_v52 = vadd.f32 %v4950_v49, %v2073_v51 }
 0x304   : > { %v2529_v45 = vrot.slane %v2527_v40, 1  ;;  %2754 = vmatmul.mubr.f32.vlgmr.msra.gmra.mxu0 %v2622_v42  ;;  %v2586_v2 = vld [vmem:[#allocation4 + $0x24] sm:$0x1f]  ;;  %2547 = vst.msk [vmem:[#allocation5 + $0x28] sm:$0x80] %vm2480_vm13, %v2545_v41  ;;  %v3656_v55 = vpop.f32.mrf.mxu1  ;;  %vm5633_vm13 = vmmov %vm5632_vm1 }
 0x305   : > { %2548 = vst.msk [vmem:[#allocation5 + $0x40] sm:$0xf] %vm2142_vm0, %v2545_v41  ;;  %2595 = vrot.lane.b32.xlu0 %v2594_v0, %s3942_s25  ;;  %v2588_v47 = vrot.slane %v2586_v2, 4  ;;  %v2535_v50 = vld [vmem:[#allocation4 + $0x24] sm:$0x1f]  ;;  %v2113_v56 = vmax.f32 %v2074_v52, 0.0 }
 0x306   : > { %2530 = vrot.lane.b32.xlu1 %v2529_v45, %s3943_s28  ;;  %v2537_v43 = vrot.slane %v2535_v50, 1  ;;  %v2576_v44 = vld [vmem:[#allocation4 + $0x23] sm:$0x1f] }
 0x307   : > { %2590 = vst.msk [vmem:[#allocation5 + $0x38] sm:$0xf0] %vm2553_vm9, %v2588_v47  ;;  %v2578_v62 = vrot.slane %v2576_v44, 4  ;;  %v3426_v44 = vld [vmem:[%s5470_s5 + $0x58] sm:$0xff] }
 0x308   : > { %2591 = vst.msk [vmem:[#allocation5 + $0x50] sm:$0x1] %vm5632_vm1, %v2588_v47 }
 0x309   : > { %2139 = vst.msk [vmem:[#allocation3 + $0xa8] sm:$0xff] %vm2117_vm5, %v2113_v56 }
 0x30a   : > { %2467 = vrot.lane.b32.xlu1 %v2466_v48, %s3944_s21  ;;  %v5206_v48 = vld [vmem:[%s5469_s4] ss:$0 sm:$0xff] }
 0x30b   : > { %v2627_v53 = vld [vmem:[#allocation5 + $0x28] sm:$0xff] }
 0x30c   : > { %3675 = vmatmul.mubr.msk.f32.vlgmr.msra.gmra.mxu1 %vm2117_vm5, %v2627_v53 }
 0x30d   : > { %3681 = vmatpush3.msra.mxu1 %v3430_v58 }
 0x30e   : > { %2538 = vrot.lane.b32.xlu1 %v2537_v43, %s3944_s21  ;;  %3682 = vmatprep.subr.mxu1 %v3926_v7 }
 0x310   : > { %v2274_v14 = vld [vmem:[#allocation3 + $0xa8] sm:$0xff] }
 0x312   : > { %2506 = vrot.lane.b32.xlu1 %v2505_v57, %s3944_s21 }
 0x316   : > { %2559 = vrot.lane.b32.xlu1 %v2558_v59, %s3942_s25  ;;  %v3429_v59 = vld [vmem:[%s5470_s5 + $0x70] sm:$0xff]  ;;  %s5430_s25 = scalar_lea.hbm %s5474_s9, %s3451_s16 }
 0x317   : > { %3683 = vmatpush3.msra.mxu1 %v3429_v59 }
 0x318   : > { %3684 = vmatprep.subr.mxu1 %v3926_v7 }
 0x319   : > { %3685 = vmatpush3.msra.mxu1 %v3428_v60 }
 0x31a   : > { %2569 = vrot.lane.b32.xlu1 %v2568_v61, %s3943_s28  ;;  %v3427_v61 = vld [vmem:[%s5470_s5 + $0x60] sm:$0xff]  ;;  %3686 = vmatprep.subr.mxu1 %v3926_v7 }
 0x31b   : > { %v2078_v63 = vpop.f32.mrf.mxu1  ;;  %3687 = vmatpush3.msra.mxu1 %v3427_v61 }
 0x31c   : > { %v2079_v3 = vadd.f32 %v4950_v49, %v2078_v63  ;;  %3688 = vmatprep.subr.mxu1 %v3926_v7  ;;  %v3424_v63 = vld [vmem:[%s5470_s5 + $0x48] sm:$0xff] }
 0x31d   : > { %v3659_v4 = vpop.f32.mrf.mxu1  ;;  %3689 = vmatpush3.msra.mxu1 %v3426_v44 }
 0x31e   : > { %2579 = vrot.lane.b32.xlu1 %v2578_v62, %s3944_s21  ;;  %v2114_v5 = vmax.f32 %v2079_v3, 0.0  ;;  %v3425_v62 = vld [vmem:[%s5470_s5 + $0x50] sm:$0xff]  ;;  %3690 = vmatprep.subr.mxu1 %v3926_v7  ;;  %v3423_v3 = vld [vmem:[%s5470_s5 + $0x40] sm:$0xff]  ;;  %v3449_v4 = vld [vmem:[%s5470_s5 + $0xf8] sm:$0xff] }
 0x31f   : > { %3691 = vmatpush3.msra.mxu1 %v3425_v62  ;;  %3738 = vmatpush3.msra.mxu0 %v3449_v4 }
 0x320   : > { %2140 = vst.msk [vmem:[#allocation3 + $0xb0] sm:$0xff] %vm2117_vm5, %v2114_v5  ;;  %3692 = vmatprep.subr.mxu1 %v3926_v7  ;;  %3739 = vmatprep.subr.mxu0 %v3926_v7  ;;  %v3448_v5 = vld [vmem:[%s5470_s5 + $0xf0] sm:$0xff] }
 0x321   : > { %3693 = vmatpush3.msra.mxu1 %v3424_v63  ;;  %3740 = vmatpush3.msra.mxu0 %v3448_v5 }
 0x322   : > { %3694 = vmatprep.subr.mxu1 %v3926_v7  ;;  %3741 = vmatprep.subr.mxu0 %v3926_v7 }
 0x323   : > { %3695 = vmatpush3.msra.mxu1 %v3423_v3 }
 0x324   : > { %3699 = vmatprep.subr.mxu1 %v3926_v7 }
 0x325   : > { %v2083_v6 = vpop.f32.mrf.mxu1 }
 0x326   : > { %v2084_v8 = vadd.f32 %v4950_v49, %v2083_v6  ;;  %v3447_v6 = vld [vmem:[%s5470_s5 + $0xe8] sm:$0xff] }
 0x327   : > { %v3662_v9 = vpop.f32.mrf.mxu1  ;;  %v2275_v18 = vld [vmem:[#allocation3 + $0xb0] sm:$0x3f]  ;;  %3742 = vmatpush3.msra.mxu0 %v3447_v6 }
 0x328   : > { %v2115_v10 = vmax.f32 %v2084_v8, 0.0  ;;  %v3446_v8 = vld [vmem:[%s5470_s5 + $0xe0] sm:$0xff]  ;;  %3743 = vmatprep.subr.mxu0 %v3926_v7  ;;  %v3445_v9 = vld [vmem:[%s5470_s5 + $0xd8] sm:$0xff] }
 0x329   : > { %v2088_v11 = vpop.f32.mrf.mxu1  ;;  %3744 = vmatpush3.msra.mxu0 %v3446_v8 }
 0x32a   : > { %2141 = vst.msk [vmem:[#allocation3 + $0xb8] sm:$0xff] %vm2117_vm5, %v2115_v10  ;;  %v2089_v46 = vadd.f32 %v4950_v49, %v2088_v11  ;;  %3745 = vmatprep.subr.mxu0 %v3926_v7  ;;  %v3444_v10 = vld [vmem:[%s5470_s5 + $0xd0] sm:$0xff]  ;;  %v3443_v11 = vld [vmem:[%s5470_s5 + $0xc8] sm:$0xff] }
 0x32b   : > { %v3665_v12 = vpop.f32.mrf.mxu1  ;;  %3746 = vmatpush3.msra.mxu0 %v3445_v9 }
 0x32c   : > { %v2116_v13 = vmax.f32 %v2089_v46, 0.0  ;;  %3747 = vmatprep.subr.mxu0 %v3926_v7  ;;  %v3442_v46 = vld [vmem:[%s5470_s5 + $0xc0] sm:$0xff] }
 0x32d   : > { %3748 = vmatpush3.msra.mxu0 %v3444_v10  ;;  %v3244_v10 = vld [vmem:[%s5472_s7 + $0x78] sm:$0xff] }
 0x32e   : > { %2143 = vst.msk [vmem:[#allocation3 + $0xc0] sm:$0xf] %vm2142_vm0, %v2116_v13  ;;  %vm5636_vm0 = vmmov %vm5632_vm1  ;;  %vm2863_vm1 = vcmask 523264   ;;  %3749 = vmatprep.subr.mxu0 %v3926_v7 }
 0x32f   : > { %3750 = vmatpush3.msra.mxu0 %v3443_v11  ;;  %v3243_v11 = vld [vmem:[%s5472_s7 + $0x70] sm:$0xff] }
 0x330   : > { %3751 = vmatprep.subr.mxu0 %v3926_v7 }
 0x331   : > { %v2276_v15 = vld [vmem:[#allocation3 + $0xb6] sm:$0xff]  ;;  %3752 = vmatpush3.msra.mxu0 %v3442_v46  ;;  %v3242_v46 = vld [vmem:[%s5472_s7 + $0x68] sm:$0xff] }
 0x332   : > { %v2278_v16 = vmax.f32 %v2274_v14, %v2276_v15 }
 0x334   : > { %v2281_v17 = vrot.slane %v2278_v16, 1 }
 0x335   : > { %v2277_v19 = vld [vmem:[#allocation3 + $0xbe] sm:$0x3f] }
 0x336   : > { %v2283_v20 = vmax.f32 %v2278_v16, %v2281_v17  ;;  %v2279_v21 = vmax.f32 %v2275_v18, %v2277_v19 }
 0x338   : > { %2284 = vst.msk [vmem:[#allocation4 + $0x2a] sm:$0x1] %vm5633_vm13, %v2283_v20  ;;  %v2289_v49 = vrot.slane %v2279_v21, 1 }
 0x339   : > { %2285 = vst.msk [vmem:[#allocation4 + $0x29] sm:$0x4] %vm5634_vm11, %v2283_v20 }
 0x33a   : > { %2286 = vst.msk [vmem:[#allocation4 + $0x28] sm:$0x10] %vm2158_vm4, %v2283_v20  ;;  %v2291_v22 = vmax.f32 %v2279_v21, %v2289_v49 }
 0x33b   : > { %2287 = vst.msk [vmem:[#allocation4 + $0x27] sm:$0x40] %vm5635_vm14, %v2283_v20 }
 0x33c   : > { %2294 = vst.msk [vmem:[#allocation4 + $0x2c] sm:$0x10] %vm2158_vm4, %v2291_v22  ;;  %vm5638_vm4 = vmmov %vm5636_vm0 }
 0x33d   : > { %2292 = vst.msk [vmem:[#allocation4 + $0x2e] sm:$0x1] %vm5636_vm0, %v2291_v22 }
 0x33e   : > { %2293 = vst.msk [vmem:[#allocation4 + $0x2d] sm:$0x4] %vm5637_vm15, %v2291_v22 }
 0x344   : > { %v2600_v25 = vld [vmem:[#allocation4 + $0x2a] sm:$0x1f] }
 0x345   : > { %v2616_v26 = vld [vmem:[#allocation4 + $0x2c] sm:$0x1f]  ;;  %v2602_v27 = vrot.slane %v2600_v25, 4  ;;  %v2882_v25 = vld [vmem:[%s5470_s5 + $0x30] sm:$0xff] }
 0x346   : > { %v2523_v23 = vpop.permute.xlu1 %2522  ;;  %v2618_v28 = vrot.slane %v2616_v26, 4  ;;  %v2608_v29 = vld [vmem:[#allocation4 + $0x2b] sm:$0x1f]  ;;  %v2881_v26 = vld [vmem:[%s5470_s5 + $0x28] sm:$0xff] }
 0x347   : > { %2525 = vst.msk [vmem:[#allocation5 + $0x20] sm:$0x80] %vm2489_vm12, %v2523_v23  ;;  %2603 = vrot.lane.b32.xlu0 %v2602_v27, %s3943_s28  ;;  %v2610_v30 = vrot.slane %v2608_v29, 4  ;;  %vm5639_vm12 = vmmov 0   ;;  %v2880_v27 = vld [vmem:[%s5470_s5 + $0x20] sm:$0xff]  ;;  %s3318_s28 = scalar_lea.sflag [#allocation8], %s323_s22 }
 0x348   : > { %2526 = vst.msk [vmem:[#allocation5 + $0x38] sm:$0xf] %vm2491_vm10, %v2523_v23  ;;  %vm2562_vm10 = vcmask 523524  }
 0x349   : > { %2620 = vst.msk [vmem:[#allocation5 + $0x40] sm:$0xf0] %vm2553_vm9, %v2618_v28  ;;  %vm2509_vm9 = vcmask 1048327  }
 0x34a   : > { %v2461_v24 = vpop.permute.xlu1 %2460  ;;  %2621 = vst.msk [vmem:[#allocation5 + $0x58] sm:$0x1] %vm5638_vm4, %v2618_v28  ;;  %v2879_v28 = vld [vmem:[%s5470_s5 + $0x18] sm:$0xff] }
 0x34b   : > { %2463 = vst.msk [vmem:[#allocation5 + $0x20] sm:$0x7c] %vm2435_vm6, %v2461_v24  ;;  %2611 = vrot.lane.b32.xlu0 %v2610_v30, %s3944_s21  ;;  %vm2564_vm6 = vcmask 516352   ;;  %v2883_v24 = vld [vmem:[%s5470_s5 + $0x38] sm:$0xff]  ;;  %s3859_s21 = scalar_lea.vmem %s3331_s14, 16 }
 0x34c   : > { %p3860_p11 = scmp.ne.s32.totalorder %s3331_s14, %s3859_s21  ;;  %p3867_p1 = scmp.lt.s32.totalorder %s3865_s23, %s3859_s21 }
 0x34e   : > { %p3861_p12 = pnand %p3860_p11, %p4034_p5  ;;  %p3868_p2 = por %p3867_p1, %p3866_p0 }
 0x350   : > { %v2630_v31 = vld [vmem:[#allocation5 + $0x40] sm:$0xff]  ;;  %p3862_p13 = pneg %p3861_p12 }
 0x351   : > { %v2633_v32 = vld [vmem:[#allocation5 + $0x58] sm:$0x1]  ;;  %3677 = vmatprep.mubr.msk.f32.mxu1 %vm2117_vm5, %v2630_v31 }
 0x352   : > { %3678 = vmatmul.mubr.msk.f32.gmra.mxu1 %vm2117_vm5, %v2633_v32  ;;  %vm2511_vm5 = vcmask 1044224   ;;  %p3869_p3 = pnand %p3868_p2, %p3862_p13 }
 0x353   : > { %3696 = vmatprep.mubr.msk.f32.mxu1 %vm5639_vm12, %v3926_v7 }
 0x377   : > { %v2596_v33 = vpop.permute.xlu0 %2595 }
 0x378   : > { %v2531_v34 = vpop.permute.xlu1 %2530  ;;  %2598 = vst.msk [vmem:[#allocation5 + $0x38] sm:$0xf0] %vm2562_vm10, %v2596_v33 }
 0x379   : > { %2599 = vst.msk [vmem:[#allocation5 + $0x50] sm:$0x1] %vm2564_vm6, %v2596_v33  ;;  %v2878_v33 = vld [vmem:[%s5470_s5 + $0x10] sm:$0xff] }
 0x37a   : > { %2533 = vst.msk [vmem:[#allocation5 + $0x20] sm:$0x80] %vm2499_vm2, %v2531_v34  ;;  %vm2582_vm2 = vcmask 1048324  }
 0x37b   : > { %2534 = vst.msk [vmem:[#allocation5 + $0x38] sm:$0xf] %vm2501_vm3, %v2531_v34  ;;  %vm2574_vm3 = vcmask 778752   ;;  %v2877_v34 = vld [vmem:[%s5470_s5 + $0x8] sm:$0xff] }
 0x37c   : > { %v2468_v35 = vpop.permute.xlu1 %2467 }
 0x37d   : > { %2470 = vst.msk [vmem:[#allocation5 + $0x20] sm:$0x7c] %vm2443_vm8, %v2468_v35  ;;  %vm2584_vm8 = vcmask 1041152  }
 0x380   : > { %v2539_v36 = vpop.permute.xlu1 %2538 }
 0x381   : > { %2541 = vst.msk [vmem:[#allocation5 + $0x20] sm:$0x80] %vm2509_vm9, %v2539_v36 }
 0x382   : > { %2542 = vst.msk [vmem:[#allocation5 + $0x38] sm:$0xf] %vm2511_vm5, %v2539_v36 }
 0x384   : > { %v2507_v37 = vpop.permute.xlu1 %2506 }
 0x385   : > { %2510 = vst.msk [vmem:[#allocation5 + $0x18] sm:$0x80] %vm2509_vm9, %v2507_v37 }
 0x386   : > { %2512 = vst.msk [vmem:[#allocation5 + $0x30] sm:$0xf] %vm2511_vm5, %v2507_v37  ;;  %v2876_v37 = vld [vmem:[%s5470_s5] sm:$0xff] }
 0x388   : > { %v2560_v38 = vpop.permute.xlu1 %2559  ;;  %v2626_v39 = vld [vmem:[#allocation5 + $0x20] sm:$0xff] }
 0x389   : > { %2563 = vst.msk [vmem:[#allocation5 + $0x30] sm:$0xf0] %vm2562_vm10, %v2560_v38  ;;  %2758 = vmatprep.mubr.f32.mxu0 %v2626_v39  ;;  %v3440_v39 = vld [vmem:[%s5470_s5 + $0xb8] sm:$0xff] }
 0x38a   : > { %2565 = vst.msk [vmem:[#allocation5 + $0x48] sm:$0x1] %vm2564_vm6, %v2560_v38 }
 0x38c   : > { %v2570_v40 = vpop.permute.xlu1 %2569  ;;  %v2625_v41 = vld [vmem:[#allocation5 + $0x18] sm:$0xff] }
 0x38d   : > { %2573 = vst.msk [vmem:[#allocation5 + $0x30] sm:$0xf0] %vm2572_vm7, %v2570_v40  ;;  %2759 = vmatmul.mubr.f32.gmra.mxu0 %v2625_v41  ;;  %v3438_v41 = vld [vmem:[%s5470_s5 + $0xa8] sm:$0xff] }
 0x38e   : > { %2575 = vst.msk [vmem:[#allocation5 + $0x48] sm:$0x1] %vm2574_vm3, %v2570_v40  ;;  %v3439_v40 = vld [vmem:[%s5470_s5 + $0xb0] sm:$0xff] }
 0x390   : > { %v2580_v42 = vpop.permute.xlu1 %2579 }
 0x391   : > { %2583 = vst.msk [vmem:[#allocation5 + $0x30] sm:$0xf0] %vm2582_vm2, %v2580_v42 }
 0x392   : > { %2585 = vst.msk [vmem:[#allocation5 + $0x48] sm:$0x1] %vm2584_vm8, %v2580_v42  ;;  %v3437_v42 = vld [vmem:[%s5470_s5 + $0xa0] sm:$0xff] }
 0x398   : > { %v2628_v54 = vld [vmem:[#allocation5 + $0x30] sm:$0xff] }
 0x399   : > { %v2631_v57 = vld [vmem:[#allocation5 + $0x48] sm:$0x1] }
 0x3b9   : > { %v2604_v0 = vpop.permute.xlu0 %2603 }
 0x3ba   : > { %2606 = vst.msk [vmem:[#allocation5 + $0x38] sm:$0xf0] %vm2572_vm7, %v2604_v0 }
 0x3bb   : > { %2607 = vst.msk [vmem:[#allocation5 + $0x50] sm:$0x1] %vm2574_vm3, %v2604_v0  ;;  %v3436_v0 = vld [vmem:[%s5470_s5 + $0x98] sm:$0xff] }
 0x3bd   : > { %v2612_v2 = vpop.permute.xlu0 %2611 }
 0x3be   : > { %2614 = vst.msk [vmem:[#allocation5 + $0x38] sm:$0xf0] %vm2582_vm2, %v2612_v2 }
 0x3bf   : > { %2615 = vst.msk [vmem:[#allocation5 + $0x50] sm:$0x1] %vm2584_vm8, %v2612_v2  ;;  %v3433_v2 = vld [vmem:[%s5470_s5 + $0x80] sm:$0xff] }
 0x3c4   : > { %v3514_v45 = vpop.f32.mrf.mxu0 }
 0x3c5   : > { %v2629_v52 = vld [vmem:[#allocation5 + $0x38] sm:$0xff] }
 0x3c6   : > { %v3515_v1 = vpop.f32.mrf.mxu0  ;;  %2763 = vmatprep.mubr.f32.mxu0 %v2629_v52  ;;  %v2632_v55 = vld [vmem:[#allocation5 + $0x50] sm:$0x1] }
 0x3c7   : > { %v3516_v47 = vadd.f32 %v3515_v1, %v3514_v45  ;;  %2764 = vmatmul.mubr.f32.gmra.mxu0 %v2628_v54  ;;  %v3435_v45 = vld [vmem:[%s5470_s5 + $0x90] sm:$0xff]  ;;  %v3434_v1 = vld [vmem:[%s5470_s5 + $0x88] sm:$0xff] }
 0x3c8   : > { %2768 = vmatprep.mubr.f32.mxu0 %v2632_v55 }
 0x3c9   : > { %v2756_v51 = vadd.f32 %v3516_v47, %v5206_v48 }
 0x3cb   : > { %2769 = vmatmul.mubr.f32.gmra.mxu0 %v2631_v57 }
 0x3cc   : > { %v5208_v50 = vpop.f32.mrf.mxu1  ;;  %3753 = vmatprep.mubr.msk.f32.mxu0 %vm5639_vm12, %v3926_v7 }
 0x3ce   : > { %v2840_v43 = vpop.f32.mrf.mxu1 }
 0x3cf   : > { %v2841_v53 = vadd.f32 %v2840_v43, %v2756_v51 }
 0x3d1   : > { %v2859_v56 = vmax.f32 %v2841_v53, 0.0 }
 0x3d3   : > { %2864 = vst.msk [vmem:[#allocation6] sm:$0xff] %vm2863_vm1, %v2859_v56 }
 0x3da   : > { %v2884_v18 = vld [vmem:[#allocation6 + $0x2] sm:$0x1]  ;;  %v2885_v19 = vld [vmem:[#allocation6 + $0x3] sm:$0x1]  ;;  %v2887_v20 = vld [vmem:[#allocation6 + $0x7] sm:$0x1] }
 0x3db   : > { %v2886_v49 = vmax.f32 %v2884_v18, %v2885_v19  ;;  %v2869_v29 = vld [vmem:[#allocation6] sm:$0x1]  ;;  %v2870_v30 = vld [vmem:[#allocation6 + $0x1] sm:$0x1]  ;;  %v2872_v31 = vld [vmem:[#allocation6 + $0x5] sm:$0x1] }
 0x3dc   : > { %v2873_v32 = vld [vmem:[#allocation6 + $0x6] sm:$0x1]  ;;  %v2871_v35 = vmax.f32 %v2869_v29, %v2870_v30  ;;  %v3235_v18 = vld [vmem:[%s5472_s7 + $0x30] sm:$0xff] }
 0x3dd   : > { %v2874_v36 = vmax.f32 %v2872_v31, %v2873_v32  ;;  %v3234_v19 = vld [vmem:[%s5472_s7 + $0x28] sm:$0xff]  ;;  %v3226_v32 = vld [vmem:[%s5471_s6] sm:$0x1] }
 0x3df   : > { %v2875_v38 = vmax.f32 %v2871_v35, %v2874_v36 }
 0x44d   : > { %v3517_v12 = vpop.f32.mrf.mxu0 }
 0x44f   : > { %v3518_v13 = vpop.f32.mrf.mxu0 }
 0x450   : > { %v3519_v14 = vadd.f32 %v3518_v13, %v3517_v12  ;;  %v3241_v12 = vld [vmem:[%s5472_s7 + $0x60] sm:$0xff]  ;;  %v3240_v13 = vld [vmem:[%s5472_s7 + $0x58] sm:$0xff] }
 0x452   : > { %v2761_v15 = vadd.f32 %v3519_v14, %v5206_v48  ;;  %v3239_v14 = vld [vmem:[%s5472_s7 + $0x50] sm:$0xff] }
 0x454   : > { %v2846_v16 = vadd.f32 %v5208_v50, %v2761_v15  ;;  %v3679_v50 = vpop.f32.mrf.mxu1  ;;  %v3238_v15 = vld [vmem:[%s5472_s7 + $0x48] sm:$0xff] }
 0x456   : > { %v2860_v17 = vmax.f32 %v2846_v16, 0.0  ;;  %v2850_v54 = vpop.f32.mrf.mxu1  ;;  %v3237_v16 = vld [vmem:[%s5472_s7 + $0x40] sm:$0xff] }
 0x458   : > { %2865 = vst.msk [vmem:[#allocation6 + $0x8] sm:$0xff] %vm2863_vm1, %v2860_v17  ;;  %v3236_v17 = vld [vmem:[%s5472_s7 + $0x38] sm:$0xff] }
 0x45f   : > { %v2888_v21 = vld [vmem:[#allocation6 + $0x8] sm:$0x1]  ;;  %v3046_v58 = vld [vmem:[#allocation6 + $0xa] sm:$0x1]  ;;  %v3047_v59 = vld [vmem:[#allocation6 + $0xb] sm:$0x1] }
 0x460   : > { %v2889_v22 = vmax.f32 %v2887_v20, %v2888_v21  ;;  %v3136_v60 = vld [vmem:[#allocation6 + $0xc] sm:$0x1]  ;;  %v3137_v61 = vld [vmem:[#allocation6 + $0xd] sm:$0x1]  ;;  %v3049_v44 = vld [vmem:[#allocation6 + $0xf] sm:$0x1]  ;;  %v3048_v4 = vmax.f32 %v3046_v58, %v3047_v59 }
 0x461   : > { %v3138_v6 = vmax.f32 %v3136_v60, %v3137_v61  ;;  %v3233_v20 = vld [vmem:[%s5472_s7 + $0x20] sm:$0xff]  ;;  %v3232_v21 = vld [vmem:[%s5472_s7 + $0x18] sm:$0xff] }
 0x462   : > { %v2890_v23 = vmax.f32 %v2886_v49, %v2889_v22  ;;  %v3231_v49 = vld [vmem:[%s5472_s7 + $0x10] sm:$0xff]  ;;  %v3230_v22 = vld [vmem:[%s5472_s7 + $0x8] sm:$0xff] }
 0x464   : > { %3697 = vmatmul.mubr.msk.f32.vlgmr.msra.gmra.mxu1 %vm2863_vm1, %v2890_v23  ;;  %v3229_v23 = vld [vmem:[%s5472_s7] sm:$0xff] }
 0x465   : > { %3700 = vmatpush3.msra.mxu1 %v2883_v24  ;;  %3715 = vmatprep.mubr.msk.f32.mxu1 %vm5639_vm12, %v3926_v7 }
 0x466   : > { %3701 = vmatprep.subr.mxu1 %v3926_v7 }
 0x467   : > { %3702 = vmatpush3.msra.mxu1 %v2882_v25 }
 0x468   : > { %3703 = vmatprep.subr.mxu1 %v3926_v7 }
 0x469   : > { %3704 = vmatpush3.msra.mxu1 %v2881_v26 }
 0x46a   : > { %3705 = vmatprep.subr.mxu1 %v3926_v7 }
 0x46b   : > { %3706 = vmatpush3.msra.mxu1 %v2880_v27 }
 0x46c   : > { %3707 = vmatprep.subr.mxu1 %v3926_v7 }
 0x46d   : > { %3708 = vmatpush3.msra.mxu1 %v2879_v28 }
 0x46e   : > { %3709 = vmatprep.subr.mxu1 %v3926_v7 }
 0x46f   : > { %3710 = vmatpush3.msra.mxu1 %v2878_v33 }
 0x470   : > { %3711 = vmatprep.subr.mxu1 %v3926_v7 }
 0x471   : > { %3712 = vmatpush3.msra.mxu1 %v2877_v34 }
 0x472   : > { %3713 = vmatprep.subr.mxu1 %v3926_v7 }
 0x473   : > { %3714 = vmatpush3.msra.mxu1 %v2876_v37  ;;  %v3245_v37 = vld [vmem:[%s5473_s8] sm:$0x1] }
 0x474   : > { %3716 = vmatmul.mubr.msk.f32.vlgmr.msra.gmra.mxu1 %vm2863_vm1, %v2875_v38  ;;  %3718 = vmatprep.subr.mxu1 %v3926_v7 }
 0x475   : > { %3719 = vmatpush3.msra.mxu1 %v3440_v39  ;;  %3734 = vmatprep.mubr.msk.f32.mxu1 %vm5639_vm12, %v3926_v7 }
 0x476   : > { %3720 = vmatprep.subr.mxu1 %v3926_v7 }
 0x477   : > { %3721 = vmatpush3.msra.mxu1 %v3439_v40 }
 0x478   : > { %3722 = vmatprep.subr.mxu1 %v3926_v7 }
 0x479   : > { %3723 = vmatpush3.msra.mxu1 %v3438_v41 }
 0x47a   : > { %3724 = vmatprep.subr.mxu1 %v3926_v7 }
 0x47b   : > { %3725 = vmatpush3.msra.mxu1 %v3437_v42 }
 0x47c   : > { %3726 = vmatprep.subr.mxu1 %v3926_v7 }
 0x47d   : > { %3727 = vmatpush3.msra.mxu1 %v3436_v0 }
 0x47e   : > { %3728 = vmatprep.subr.mxu1 %v3926_v7 }
 0x47f   : > { %3729 = vmatpush3.msra.mxu1 %v3435_v45 }
 0x480   : > { %3730 = vmatprep.subr.mxu1 %v3926_v7 }
 0x481   : > { %3731 = vmatpush3.msra.mxu1 %v3434_v1 }
 0x482   : > { %3732 = vmatprep.subr.mxu1 %v3926_v7 }
 0x483   : > { %3733 = vmatpush3.msra.mxu1 %v3433_v2 }
 0x484   : > { %3756 = vmatprep.subr.mxu1 %v3926_v7 }
 0x487   : > { %v3520_v47 = vpop.f32.mrf.mxu0 }
 0x489   : > { %v3521_v51 = vpop.f32.mrf.mxu0 }
 0x48a   : > { %v3522_v43 = vadd.f32 %v3521_v51, %v3520_v47 }
 0x48b   : > { %v3523_v52 = vpop.f32.mrf.mxu0 }
 0x48c   : > { %v2766_v53 = vadd.f32 %v3522_v43, %v5206_v48 }
 0x48d   : > { %v3524_v55 = vpop.f32.mrf.mxu0 }
 0x48e   : > { %v2851_v56 = vadd.f32 %v2850_v54, %v2766_v53 }
 0x490   : > { %v2861_v57 = vmax.f32 %v2851_v56, 0.0 }
 0x492   : > { %2866 = vst.msk [vmem:[#allocation6 + $0x10] sm:$0xff] %vm2863_vm1, %v2861_v57 }
 0x499   : > { %v3050_v62 = vld [vmem:[#allocation6 + $0x10] sm:$0x1]  ;;  %v3139_v63 = vld [vmem:[#allocation6 + $0x11] sm:$0x1]  ;;  %v3140_v3 = vld [vmem:[#allocation6 + $0x12] sm:$0x1] }
 0x49a   : > { %v3051_v5 = vmax.f32 %v3049_v44, %v3050_v62  ;;  %v3141_v8 = vmax.f32 %v3139_v63, %v3140_v3 }
 0x49c   : > { %v3052_v9 = vmax.f32 %v3048_v4, %v3051_v5  ;;  %v3142_v48 = vmax.f32 %v3138_v6, %v3141_v8 }
 0x49e   : > { %3735 = vmatmul.mubr.msk.f32.vlgmr.msra.gmra.mxu1 %vm2863_vm1, %v3052_v9  ;;  %3754 = vmatmul.mubr.msk.f32.vlgmr.msra.gmra.mxu0 %vm2863_vm1, %v3142_v48 }
 0x49f   : > { %3788 = vmatprep.mubr.msk.f32.mxu1 %vm5639_vm12, %v3926_v7  ;;  %3757 = vmatpush3.msra.mxu1 %v3244_v10 }
 0x4a0   : > { %3758 = vmatprep.subr.mxu1 %v3926_v7 }
 0x4a1   : > { %3759 = vmatpush3.msra.mxu1 %v3243_v11 }
 0x4a2   : > { %3760 = vmatprep.subr.mxu1 %v3926_v7 }
 0x4a3   : > { %3761 = vmatpush3.msra.mxu1 %v3242_v46 }
 0x4a4   : > { %3762 = vmatprep.subr.mxu1 %v3926_v7 }
 0x4a5   : > { %3763 = vmatpush3.msra.mxu1 %v3241_v12 }
 0x4a6   : > { %3764 = vmatprep.subr.mxu1 %v3926_v7 }
 0x4a7   : > { %3765 = vmatpush3.msra.mxu1 %v3240_v13 }
 0x4a8   : > { %3766 = vmatprep.subr.mxu1 %v3926_v7 }
 0x4a9   : > { %3767 = vmatpush3.msra.mxu1 %v3239_v14 }
 0x4aa   : > { %3768 = vmatprep.subr.mxu1 %v3926_v7 }
 0x4ab   : > { %3769 = vmatpush3.msra.mxu1 %v3238_v15 }
 0x4ac   : > { %3770 = vmatprep.subr.mxu1 %v3926_v7 }
 0x4ad   : > { %3771 = vmatpush3.msra.mxu1 %v3237_v16 }
 0x4ae   : > { %3772 = vmatprep.subr.mxu1 %v3926_v7 }
 0x4af   : > { %3773 = vmatpush3.msra.mxu1 %v3236_v17 }
 0x4b0   : > { %3774 = vmatprep.subr.mxu1 %v3926_v7 }
 0x4b1   : > { %3775 = vmatpush3.msra.mxu1 %v3235_v18 }
 0x4b2   : > { %3776 = vmatprep.subr.mxu1 %v3926_v7 }
 0x4b3   : > { %3777 = vmatpush3.msra.mxu1 %v3234_v19 }
 0x4b4   : > { %3778 = vmatprep.subr.mxu1 %v3926_v7 }
 0x4b5   : > { %3779 = vmatpush3.msra.mxu1 %v3233_v20 }
 0x4b6   : > { %3780 = vmatprep.subr.mxu1 %v3926_v7 }
 0x4b7   : > { %3781 = vmatpush3.msra.mxu1 %v3232_v21 }
 0x4b8   : > { %3782 = vmatprep.subr.mxu1 %v3926_v7 }
 0x4b9   : > { %3783 = vmatpush3.msra.mxu1 %v3231_v49 }
 0x4ba   : > { %3784 = vmatprep.subr.mxu1 %v3926_v7 }
 0x4bb   : > { %3785 = vmatpush3.msra.mxu1 %v3230_v22 }
 0x4bc   : > { %3786 = vmatprep.subr.mxu1 %v3926_v7 }
 0x4bd   : > { %3787 = vmatpush3.msra.mxu1 %v3229_v23 }
 0x524   : > { %v2969_v24 = vpop.f32.mrf.mxu1 }
 0x526   : > { %v3698_v25 = vpop.f32.mrf.mxu1 }
 0x534   : > { %v3042_v26 = vpop.f32.mrf.mxu1 }
 0x535   : > { %v3043_v28 = vadd.f32 %v3042_v26, %v2969_v24 }
 0x536   : > { %v3717_v27 = vpop.f32.mrf.mxu1 }
 0x55e   : > { %v3131_v29 = vpop.f32.mrf.mxu1  ;;  %v3221_v30 = vpop.f32.mrf.mxu0 }
 0x55f   : > { %v3135_v31 = vadd.f32 %v3131_v29, %v3043_v28 }
 0x560   : > { %v3736_v33 = vpop.f32.mrf.mxu1  ;;  %v3755_v34 = vpop.f32.mrf.mxu0 }
 0x561   : > { %v3225_v35 = vadd.f32 %v3221_v30, %v3135_v31 }
 0x563   : > { %v3227_v36 = vadd.f32 %v3226_v32, %v3225_v35 }
 0x565   : > { %v3228_v7 = vmax.f32 %v3227_v36, 0.0 }
 0x567   : > { %3789 = vmatmul.mubr.f32.vlgmr.msra.gmra.mxu1 %v3228_v7 }
 0x627   : > { %v3312_v38 = vpop.f32.mrf.mxu1 }
 0x628   : > { %v3313_v39 = vadd.f32 %v3312_v38, %v3245_v37 }
 0x629   : > { %v3790_v40 = vpop.f32.mrf.mxu1 }
 0x62a   : > { %3316 = vst [vmem:[%s324_s17] sm:$0x1] %v3313_v39 }
 0x62b   : > { %3872 = shalt.err (!%p3869_p3)
}
 0x62c   : > { %s3873_s24 = scalar_lea.hbm %s5430_s25, 16  ;;  %s3877_s17 = scalar_lea.hbm %s5474_s9, 32 }
 0x62d   : > { %p3874_p4 = scmp.ne.s32.totalorder %s5430_s25, %s3873_s24  ;;  %p3878_p9 = scmp.lt.s32.totalorder %s5430_s25, %s5474_s9 }
 0x62e   : > { %p3879_p10 = scmp.lt.s32.totalorder %s3877_s17, %s3873_s24 }
 0x62f   : > { %p3875_p7 = pnand %p3874_p4, %p4034_p5 }
 0x630   : > { %p3880_p11 = por %p3879_p10, %p3878_p9 }
 0x631   : > { %p3876_p8 = pneg %p3875_p7 }
 0x633   : > { %p3881_p12 = pnand %p3880_p11, %p3876_p8 }
 0x635   : > { %3884 = shalt.err (!%p3881_p12)
}
 0x636   : > { %3795 = dma.vmem_to_hbm [thread:$0]  (%p4034_p5), %s3331_s14, 16, %s5430_s25, %s3318_s28  }
 0x637 PF: > { %p3801_p13 = scmp.ge.s32.totalorder %s3919_s12, 2  ;;  %s3342_s21 = sand.u32 1, %s3907_s30  }
 0x638   : > { %s3343_s29 = scalar_lea.sflag [#allocation8], %s3342_s21 }
 0x639   : > { %p3798_p0 = pnand %p3801_p13, %p4038_p6 }
 0x63b   : > { %p3799_p1 = pneg %p3798_p0 }
 0x63d   : > { %3902 = dma.done.wait (%p3799_p1), %s3343_s29, 16  }
 0x63e   : > { %3904 = vsyncadd (%p3799_p1), %s3343_s29, 4294967280  ;;  %p19_p2 = scmp.ge.s32.totalorder %s4021_s15, 4   ;;  %s5640_s30 = smov %s3911_s10 }
 0x63f   : > { %s5641_s10 = smov %s3915_s11  ;;  %s5642_s11 = smov %s4032_s18 }
 0x640   : > { %s5643_s12 = smov %s4021_s15  ;;  %21 = sbr.rel (!%p19_p2) target bundleno = 3 (0x3), region = 94 }
 0x645   :  { %3347 = vsyncpa [#allocation8], 1 }
 0x646   :  { %3349 = vsyncpa [#allocation8 + $0x1], 1 }

</bundles_post_ra>
